<compile_context>
chip_gen: v7x
topology: tpu7x:2x2x1
jax: 0.10.0
libtpu: 0.0.40
codegen_flags: <defaults>
</compile_context>

<pallas_src>
import math

import jax
import jax.numpy as jnp
from jax import lax
from jax.experimental import pallas as pl
from jax.experimental.pallas import tpu as pltpu

# ---- hyperparameters implied by the module (kept small) ----
B = 2              # batch
C = 16             # eeg_channel
T = 64             # number of time samples
E = 2 * C          # transformer embed dim = 32
H = 4              # attention heads
HD = E // H        # head dim = 8
FF = C // 8        # transformer feed-forward dim = 2
HID = C // 2       # final MLP hidden dim = 8
K = 11             # conv kernel size
PAD = 5            # conv padding ("same")
N_BLOCKS = 2       # transformer blocks
BT = B * T         # lane-packed token count = 128
OUT_LANES = 128    # lane-dense output width
EPS_BN = 1e-5
EPS_LN = 1e-5


def _layernorm(x, g, b):
    mu = jnp.mean(x, axis=-1, keepdims=True)
    var = jnp.mean((x - mu) ** 2, axis=-1, keepdims=True)
    return (x - mu) * lax.rsqrt(var + EPS_LN) * g + b


def eeg_kernel(a1_ref, c1w_ref, b1_ref, c2w_ref, cmask_ref, posb_ref,
               wqkv_ref, qb_ref, wout_ref, l1w_ref, l1b_ref, l2w_ref,
               evec_ref, avg_ref, m1w_ref, m1b_ref, m2_ref, o_ref):
    f32 = jnp.float32

    # ---- Conv1d(C->C, k=11, "same", no bias) + BN1 (folded) + ReLU; Dropout1d = id ----
    # im2col was hoisted to the wrapper: a1 is (K*C, B*T), one lane-dense MXU matmul here.
    h = jnp.maximum(
        jnp.dot(c1w_ref[...], a1_ref[...], preferred_element_type=f32) + b1_ref[...],
        0.0)                                                     # (C, B*T)

    # ---- Conv1d(C->2C, k=11, "same", no bias) + BN2 scale (folded): shift & accumulate ----
    # roll on the lane axis (XLU slot) + precomputed 0/1 edge mask (cheap VPU mul) replaces
    # the zero-padded scratch + second im2col of the previous version.
    h2 = jnp.zeros((E, BT), f32)
    for k in range(K):
        if k == PAD:
            col = h                                              # zero shift, full mask
        else:
            col = pltpu.roll(h, (PAD - k) % BT, axis=1) * cmask_ref[k:k + 1, :]
        h2 = h2 + jnp.dot(c2w_ref[k], col, preferred_element_type=f32)   # (E, B*T)

    # single (E, B*T) -> (B*T, E) transpose to token-major layout, positional encoding with
    # the BN2 shift folded in (no activation between conv2+BN2 and the PE, dropout = id)
    z = h2.T + posb_ref[...]                                     # (B*T, E)

    # ---- 2 x TransformerBlock(E, 4 heads, FF) — per-sample attention, no mask ----
    for blk in range(N_BLOCKS):
        ev = evec_ref[blk]     # rows: out_b(+bv@Wout), ln0_g, ln0_b, ff2_b, ln1_g, ln1_b
        # one fused lane-dense qkv projection per block; q pre-scaled by 1/sqrt(HD),
        # k bias dropped, v bias folded into out_b (all at pack time)
        qkv = jnp.dot(z, wqkv_ref[blk], preferred_element_type=f32) + qb_ref[blk]  # (BT,3E)
        w_out = wout_ref[blk]                                    # (E, E), head-major rows
        y0 = jnp.broadcast_to(ev[0:1, :], (T, E))                # out-proj bias (hoisted)
        y_parts = []
        for b in range(B):
            r0, r1 = b * T, (b + 1) * T
            y_b = y0
            for hh in range(H):
                c0 = hh * HD
                q = qkv[r0:r1, c0:c0 + HD]                       # (T, HD), pre-scaled
                kk = qkv[r0:r1, E + c0:E + c0 + HD]              # (T, HD)
                v = qkv[r0:r1, 2 * E + c0:2 * E + c0 + HD]       # (T, HD)
                # q @ k^T without an explicit transpose (contract last dims)
                s = lax.dot_general(q, kk, (((1,), (1,)), ((), ())),
                                    preferred_element_type=f32)  # (T, T) — only same-sample
                s = s - jnp.max(s, axis=-1, keepdims=True)
                p = jnp.exp(s)
                p = p * pl.reciprocal(jnp.sum(p, axis=-1, keepdims=True), approx=True)
                oh = jnp.dot(p, v, preferred_element_type=f32)   # (T, HD)
                # head-concat + out_proj fused as accumulation over per-head W_out slices
                y_b = y_b + jnp.dot(oh, w_out[c0:c0 + HD, :],
                                    preferred_element_type=f32)  # (T, E)
            y_parts.append(y_b)
        y = jnp.concatenate(y_parts, axis=0)                     # (B*T, E), aligned concat
        # attention dropout -> identity (inference)
        z = _layernorm(z + y, ev[1:2, :], ev[2:3, :])
        u = jnp.maximum(
            jnp.dot(z, l1w_ref[blk], preferred_element_type=f32) + l1b_ref[blk], 0.0)
        y = jnp.dot(u, l2w_ref[blk], preferred_element_type=f32) + ev[3:4, :]
        z = _layernorm(z + y, ev[4:5, :], ev[5:6, :])

    # ---- temporal mean per sample as a single MXU dot + final MLP head ----
    m = jnp.dot(avg_ref[...], z, preferred_element_type=f32)     # (B, E)
    u = jnp.maximum(
        jnp.dot(m, m1w_ref[...], preferred_element_type=f32) + m1b_ref[...], 0.0)
    o_ref[...] = (jnp.dot(u, m2_ref[0:HID, :], preferred_element_type=f32)
                  + m2_ref[HID:HID + 1, :])                      # (B, 128); col 0 = logit


# ---------------------------------------------------------------------------
# Parameter generation (PyTorch layout) and packing into kernel layout.
# ---------------------------------------------------------------------------
def init_torch_params(key):
    keys = jax.random.split(key, 48)
    it = iter(keys)

    def nrm(shape, scale=0.1):
        return scale * jax.random.normal(next(it), shape, jnp.float32)

    p = {}
    p["conv1_w"] = nrm((C, C, K))                     # Conv1d(C, C, 11), no bias
    p["bn1_g"] = 1.0 + nrm((C,)); p["bn1_b"] = nrm((C,))
    p["bn1_rm"] = nrm((C,))
    p["bn1_rv"] = 1.0 + 0.1 * jnp.abs(jax.random.normal(next(it), (C,), jnp.float32))
    p["conv2_w"] = nrm((E, C, K))                     # Conv1d(C, 2C, 11), no bias
    p["bn2_g"] = 1.0 + nrm((E,)); p["bn2_b"] = nrm((E,))
    p["bn2_rm"] = nrm((E,))
    p["bn2_rv"] = 1.0 + 0.1 * jnp.abs(jax.random.normal(next(it), (E,), jnp.float32))
    p["blocks"] = []
    for _ in range(N_BLOCKS):
        p["blocks"].append(dict(
            in_w=nrm((3 * E, E)), in_b=nrm((3 * E,)),
            out_w=nrm((E, E)), out_b=nrm((E,)),
            ln0_g=1.0 + nrm((E,)), ln0_b=nrm((E,)),
            ff1_w=nrm((FF, E)), ff1_b=nrm((FF,)),
            ff2_w=nrm((E, FF)), ff2_b=nrm((E,)),
            ln1_g=1.0 + nrm((E,)), ln1_b=nrm((E,)),
        ))
    p["mlp1_w"] = nrm((HID, E)); p["mlp1_b"] = nrm((HID,))
    p["mlp2_w"] = nrm((1, HID)); p["mlp2_b"] = nrm((1,))
    return p


def pack_params(p):
    kp = {}
    # BatchNorm1d (eval): fold gamma/beta/running stats; scale goes into the conv weights.
    s1 = p["bn1_g"] / jnp.sqrt(p["bn1_rv"] + EPS_BN)
    b1 = p["bn1_b"] - p["bn1_rm"] * s1
    s2 = p["bn2_g"] / jnp.sqrt(p["bn2_rv"] + EPS_BN)
    b2 = p["bn2_b"] - p["bn2_rm"] * s2
    # conv1 flattened for the wrapper-side im2col: (C_out, K*C_in), k-major rows
    kp["c1w"] = jnp.transpose(p["conv1_w"], (0, 2, 1)).reshape(C, K * C) * s1[:, None]
    kp["b1"] = b1.reshape(C, 1)
    # conv2 per-tap weights for shift-and-accumulate: (K, E, C), BN2 scale folded
    kp["c2w"] = jnp.stack([p["conv2_w"][:, :, k] * s2[:, None] for k in range(K)])
    # conv2 edge mask: mask_k[b*T + t] = 1  iff  0 <= t + k - PAD < T
    t = jnp.arange(T)
    kp["cmask"] = jnp.stack(
        [jnp.tile(((t + k - PAD >= 0) & (t + k - PAD < T)).astype(jnp.float32), (B,))
         for k in range(K)])                                     # (K, B*T)
    # positional encoding (first T rows of the max_len=1000 table), tiled over the
    # lane-packed batch rows, with the BN2 shift folded in
    tt = jnp.arange(T, dtype=jnp.float32)[:, None]
    den = jnp.power(10000.0, jnp.arange(0, E, 2, dtype=jnp.float32) / E)
    ang = tt / den
    pos = jnp.zeros((T, E), jnp.float32)
    pos = pos.at[:, 0::2].set(jnp.sin(ang)).at[:, 1::2].set(jnp.cos(ang))
    kp["posb"] = jnp.tile(pos, (B, 1)) + b2[None, :]             # (B*T, E)
    # attention: fused qkv weights (q pre-scaled), q-only bias row, W_out^T, folded out bias
    inv = 1.0 / math.sqrt(HD)
    wqkv, qb, wout, evec = [], [], [], []
    for blk in p["blocks"]:
        wq = blk["in_w"][0:E, :].T * inv                         # (E, E), 1/sqrt(HD) folded
        wk = blk["in_w"][E:2 * E, :].T
        wv = blk["in_w"][2 * E:3 * E, :].T
        wqkv.append(jnp.concatenate([wq, wk, wv], axis=1))       # (E, 3E)
        qb.append(jnp.concatenate(
            [blk["in_b"][0:E] * inv, jnp.zeros((2 * E,), jnp.float32)]).reshape(1, 3 * E))
        wout.append(blk["out_w"].T)                              # (E, E), head-major rows
        # k-bias cancels under softmax; v-bias folds into the out-proj bias: bv @ W_out^T
        out_b_eff = blk["out_b"] + blk["in_b"][2 * E:3 * E] @ blk["out_w"].T
        evec.append(jnp.stack([out_b_eff, blk["ln0_g"], blk["ln0_b"],
                               blk["ff2_b"], blk["ln1_g"], blk["ln1_b"]]))
    kp["wqkv"] = jnp.stack(wqkv)                                 # (NB, E, 3E)
    kp["qb"] = jnp.stack(qb)                                     # (NB, 1, 3E)
    kp["wout"] = jnp.stack(wout)                                 # (NB, E, E)
    kp["evec"] = jnp.stack(evec)                                 # (NB, 6, E)
    kp["l1w"] = jnp.stack([blk["ff1_w"].T for blk in p["blocks"]])          # (NB, E, FF)
    kp["l1b"] = jnp.stack([blk["ff1_b"].reshape(1, FF) for blk in p["blocks"]])
    kp["l2w"] = jnp.stack([blk["ff2_w"].T for blk in p["blocks"]])          # (NB, FF, E)
    # per-sample temporal mean as a matmul: avg[b, b*T:(b+1)*T] = 1/T
    sid = jnp.repeat(jnp.arange(B), T)
    kp["avg"] = (jnp.arange(B)[:, None] == sid[None, :]).astype(jnp.float32) / T   # (B, BT)
    # classification head; final Linear padded to a lane-dense 128-wide output
    kp["m1w"] = p["mlp1_w"].T                                    # (E, HID)
    kp["m1b"] = p["mlp1_b"].reshape(1, HID)
    m2w = jnp.zeros((HID, OUT_LANES), jnp.float32).at[:, 0].set(p["mlp2_w"][0])
    m2b = jnp.zeros((1, OUT_LANES), jnp.float32).at[0, 0].set(p["mlp2_b"][0])
    kp["m2"] = jnp.concatenate([m2w, m2b], axis=0)               # (HID+1, 128)
    return kp


# ---------------------------------------------------------------------------
# Wrapper
# ---------------------------------------------------------------------------
def eeg_forward(x, kp):
    """x: (B, C, T) float32 (NCW, like the PyTorch module). Returns (B, 1) logits."""
    xpad = jnp.pad(x, ((0, 0), (0, 0), (PAD, PAD)))              # pad time for "same" conv
    # conv1 im2col hoisted out of the kernel (pure layout work on ~9 KB, done by XLA):
    # a1[k*C + c, b*T + t] = xpad[b, c, k + t]
    a1 = jnp.concatenate(
        [jnp.concatenate([xpad[b, :, k:k + T] for k in range(K)], axis=0)
         for b in range(B)], axis=1)                             # (K*C, B*T)

    order = ["c1w", "b1", "c2w", "cmask", "posb",
             "wqkv", "qb", "wout", "l1w", "l1b", "l2w", "evec",
             "avg", "m1w", "m1b", "m2"]
    params = [kp[name] for name in order]

    def full(a):
        nd = a.ndim
        return pl.BlockSpec(a.shape, lambda i, _nd=nd: (0,) * _nd)

    out = pl.pallas_call(
        eeg_kernel,
        out_shape=jax.ShapeDtypeStruct((B, OUT_LANES), jnp.float32),
        grid_spec=pltpu.PrefetchScalarGridSpec(
            num_scalar_prefetch=0,
            grid=(1,),                  # whole batch in one step; working set ~100 KB
            in_specs=[full(a1)] + [full(a) for a in params],
            out_specs=pl.BlockSpec((B, OUT_LANES), lambda i: (0, 0)),
        ),
        compiler_params=pltpu.CompilerParams(
            dimension_semantics=("arbitrary",)),
    )(a1, *params)
    return out[:, :1]                                            # (B, 1)


if __name__ == "__main__":
    key = jax.random.PRNGKey(0)
    k_x, k_p = jax.random.split(key)
    x = jax.random.normal(k_x, (B, C, T), jnp.float32)
    torch_params = init_torch_params(k_p)
    kernel_params = pack_params(torch_params)

    y = eeg_forward(x, kernel_params)
    jax.block_until_ready(y)
    assert y.shape == (B, 1)
    print("KERNEL_OK")
</pallas_src>

<mosaic_0001>
module attributes {stable_mosaic.version = 11 : i64} {
  func.func @eeg_kernel(%arg0: i32, %arg1: memref<176x128xf32, #tpu.memory_space<vmem>>, %arg2: memref<16x176xf32, #tpu.memory_space<vmem>>, %arg3: memref<16x1xf32, #tpu.memory_space<vmem>>, %arg4: memref<11x32x16xf32, #tpu.memory_space<vmem>>, %arg5: memref<11x128xf32, #tpu.memory_space<vmem>>, %arg6: memref<128x32xf32, #tpu.memory_space<vmem>>, %arg7: memref<2x32x96xf32, #tpu.memory_space<vmem>>, %arg8: memref<2x1x96xf32, #tpu.memory_space<vmem>>, %arg9: memref<2x32x32xf32, #tpu.memory_space<vmem>>, %arg10: memref<2x32x2xf32, #tpu.memory_space<vmem>>, %arg11: memref<2x1x2xf32, #tpu.memory_space<vmem>>, %arg12: memref<2x2x32xf32, #tpu.memory_space<vmem>>, %arg13: memref<2x6x32xf32, #tpu.memory_space<vmem>>, %arg14: memref<2x128xf32, #tpu.memory_space<vmem>>, %arg15: memref<32x8xf32, #tpu.memory_space<vmem>>, %arg16: memref<1x8xf32, #tpu.memory_space<vmem>>, %arg17: memref<9x128xf32, #tpu.memory_space<vmem>>, %arg18: memref<2x128xf32, #tpu.memory_space<vmem>>) attributes {dimension_semantics = [#tpu.dimension_semantics<arbitrary>], iteration_bounds = array<i64: 1>, scalar_prefetch = 0 : i64, scratch_operands = 0 : i64, tpu.core_type = #tpu.core_type<tc>, window_params = [{pipeline_mode = #tpu.pipeline_mode<synchronous>, transform_indices = @transform_0, window_bounds = array<i64: 176, 128>}, {pipeline_mode = #tpu.pipeline_mode<synchronous>, transform_indices = @transform_1, window_bounds = array<i64: 16, 176>}, {pipeline_mode = #tpu.pipeline_mode<synchronous>, transform_indices = @transform_2, window_bounds = array<i64: 16, 1>}, {pipeline_mode = #tpu.pipeline_mode<synchronous>, transform_indices = @transform_3, window_bounds = array<i64: 11, 32, 16>}, {pipeline_mode = #tpu.pipeline_mode<synchronous>, transform_indices = @transform_4, window_bounds = array<i64: 11, 128>}, {pipeline_mode = #tpu.pipeline_mode<synchronous>, transform_indices = @transform_5, window_bounds = array<i64: 128, 32>}, {pipeline_mode = #tpu.pipeline_mode<synchronous>, transform_indices = @transform_6, window_bounds = array<i64: 2, 32, 96>}, {pipeline_mode = #tpu.pipeline_mode<synchronous>, transform_indices = @transform_7, window_bounds = array<i64: 2, 1, 96>}, {pipeline_mode = #tpu.pipeline_mode<synchronous>, transform_indices = @transform_8, window_bounds = array<i64: 2, 32, 32>}, {pipeline_mode = #tpu.pipeline_mode<synchronous>, transform_indices = @transform_9, window_bounds = array<i64: 2, 32, 2>}, {pipeline_mode = #tpu.pipeline_mode<synchronous>, transform_indices = @transform_10, window_bounds = array<i64: 2, 1, 2>}, {pipeline_mode = #tpu.pipeline_mode<synchronous>, transform_indices = @transform_11, window_bounds = array<i64: 2, 2, 32>}, {pipeline_mode = #tpu.pipeline_mode<synchronous>, transform_indices = @transform_12, window_bounds = array<i64: 2, 6, 32>}, {pipeline_mode = #tpu.pipeline_mode<synchronous>, transform_indices = @transform_13, window_bounds = array<i64: 2, 128>}, {pipeline_mode = #tpu.pipeline_mode<synchronous>, transform_indices = @transform_14, window_bounds = array<i64: 32, 8>}, {pipeline_mode = #tpu.pipeline_mode<synchronous>, transform_indices = @transform_15, window_bounds = array<i64: 1, 8>}, {pipeline_mode = #tpu.pipeline_mode<synchronous>, transform_indices = @transform_16, window_bounds = array<i64: 9, 128>}, {pipeline_mode = #tpu.pipeline_mode<synchronous>, transform_indices = @transform_17, window_bounds = array<i64: 2, 128>}]} {
    %c0 = arith.constant 0 : index
    %c0_0 = arith.constant 0 : index
    %0 = vector.load %arg2[%c0, %c0_0] : memref<16x176xf32, #tpu.memory_space<vmem>>, vector<16x176xf32>
    %c0_1 = arith.constant 0 : index
    %c0_2 = arith.constant 0 : index
    %1 = vector.load %arg1[%c0_1, %c0_2] : memref<176x128xf32, #tpu.memory_space<vmem>>, vector<176x128xf32>
    %cst = arith.constant dense<0.000000e+00> : vector<16x128xf32>
    %2 = tpu.matmul %0, %1, %cst {dimension_numbers = #tpu.dot_dimension_numbers<[1], [0], [0], [1], [0, 0, 1, 1], [], []>} : vector<16x176xf32>, vector<176x128xf32>, vector<16x128xf32> -> vector<16x128xf32>
    %c0_3 = arith.constant 0 : index
    %c0_4 = arith.constant 0 : index
    %3 = vector.load %arg3[%c0_3, %c0_4] : memref<16x1xf32, #tpu.memory_space<vmem>>, vector<16x1xf32>
    %4 = vector.broadcast %3 : vector<16x1xf32> to vector<16x128xf32>
    %5 = arith.addf %2, %4 : vector<16x128xf32>
    %cst_5 = arith.constant 0.000000e+00 : f32
    %6 = vector.broadcast %cst_5 : f32 to vector<16x128xf32>
    %7 = arith.maximumf %5, %6 : vector<16x128xf32>
    %cst_6 = arith.constant 0.000000e+00 : f32
    %8 = vector.broadcast %cst_6 : f32 to vector<32x128xf32>
    %c5_i32 = arith.constant 5 : i32
    %9 = tpu.dynamic_rotate %7 by %c5_i32 dim 1 : vector<16x128xf32>, i32 -> vector<16x128xf32>
    %c0_7 = arith.constant 0 : index
    %c0_8 = arith.constant 0 : index
    %10 = vector.load %arg5[%c0_7, %c0_8] : memref<11x128xf32, #tpu.memory_space<vmem>>, vector<1x128xf32>
    %11 = vector.broadcast %10 : vector<1x128xf32> to vector<16x128xf32>
    %12 = arith.mulf %9, %11 : vector<16x128xf32>
    %c0_9 = arith.constant 0 : index
    %c0_10 = arith.constant 0 : index
    %c0_11 = arith.constant 0 : index
    %13 = vector.load %arg4[%c0_9, %c0_10, %c0_11] : memref<11x32x16xf32, #tpu.memory_space<vmem>>, vector<1x32x16xf32>
    %14 = vector.shape_cast %13 : vector<1x32x16xf32> to vector<32x16xf32>
    %cst_12 = arith.constant dense<0.000000e+00> : vector<32x128xf32>
    %15 = tpu.matmul %14, %12, %cst_12 {dimension_numbers = #tpu.dot_dimension_numbers<[1], [0], [0], [1], [0, 0, 1, 1], [], []>} : vector<32x16xf32>, vector<16x128xf32>, vector<32x128xf32> -> vector<32x128xf32>
    %16 = arith.addf %8, %15 : vector<32x128xf32>
    %c4_i32 = arith.constant 4 : i32
    %17 = tpu.dynamic_rotate %7 by %c4_i32 dim 1 : vector<16x128xf32>, i32 -> vector<16x128xf32>
    %c1 = arith.constant 1 : index
    %c0_13 = arith.constant 0 : index
    %18 = vector.load %arg5[%c1, %c0_13] : memref<11x128xf32, #tpu.memory_space<vmem>>, vector<1x128xf32>
    %19 = vector.broadcast %18 : vector<1x128xf32> to vector<16x128xf32>
    %20 = arith.mulf %17, %19 : vector<16x128xf32>
    %c1_14 = arith.constant 1 : index
    %c0_15 = arith.constant 0 : index
    %c0_16 = arith.constant 0 : index
    %21 = vector.load %arg4[%c1_14, %c0_15, %c0_16] : memref<11x32x16xf32, #tpu.memory_space<vmem>>, vector<1x32x16xf32>
    %22 = vector.shape_cast %21 : vector<1x32x16xf32> to vector<32x16xf32>
    %cst_17 = arith.constant dense<0.000000e+00> : vector<32x128xf32>
    %23 = tpu.matmul %22, %20, %cst_17 {dimension_numbers = #tpu.dot_dimension_numbers<[1], [0], [0], [1], [0, 0, 1, 1], [], []>} : vector<32x16xf32>, vector<16x128xf32>, vector<32x128xf32> -> vector<32x128xf32>
    %24 = arith.addf %16, %23 : vector<32x128xf32>
    %c3_i32 = arith.constant 3 : i32
    %25 = tpu.dynamic_rotate %7 by %c3_i32 dim 1 : vector<16x128xf32>, i32 -> vector<16x128xf32>
    %c2 = arith.constant 2 : index
    %c0_18 = arith.constant 0 : index
    %26 = vector.load %arg5[%c2, %c0_18] : memref<11x128xf32, #tpu.memory_space<vmem>>, vector<1x128xf32>
    %27 = vector.broadcast %26 : vector<1x128xf32> to vector<16x128xf32>
    %28 = arith.mulf %25, %27 : vector<16x128xf32>
    %c2_19 = arith.constant 2 : index
    %c0_20 = arith.constant 0 : index
    %c0_21 = arith.constant 0 : index
    %29 = vector.load %arg4[%c2_19, %c0_20, %c0_21] : memref<11x32x16xf32, #tpu.memory_space<vmem>>, vector<1x32x16xf32>
    %30 = vector.shape_cast %29 : vector<1x32x16xf32> to vector<32x16xf32>
    %cst_22 = arith.constant dense<0.000000e+00> : vector<32x128xf32>
    %31 = tpu.matmul %30, %28, %cst_22 {dimension_numbers = #tpu.dot_dimension_numbers<[1], [0], [0], [1], [0, 0, 1, 1], [], []>} : vector<32x16xf32>, vector<16x128xf32>, vector<32x128xf32> -> vector<32x128xf32>
    %32 = arith.addf %24, %31 : vector<32x128xf32>
    %c2_i32 = arith.constant 2 : i32
    %33 = tpu.dynamic_rotate %7 by %c2_i32 dim 1 : vector<16x128xf32>, i32 -> vector<16x128xf32>
    %c3 = arith.constant 3 : index
    %c0_23 = arith.constant 0 : index
    %34 = vector.load %arg5[%c3, %c0_23] : memref<11x128xf32, #tpu.memory_space<vmem>>, vector<1x128xf32>
    %35 = vector.broadcast %34 : vector<1x128xf32> to vector<16x128xf32>
    %36 = arith.mulf %33, %35 : vector<16x128xf32>
    %c3_24 = arith.constant 3 : index
    %c0_25 = arith.constant 0 : index
    %c0_26 = arith.constant 0 : index
    %37 = vector.load %arg4[%c3_24, %c0_25, %c0_26] : memref<11x32x16xf32, #tpu.memory_space<vmem>>, vector<1x32x16xf32>
    %38 = vector.shape_cast %37 : vector<1x32x16xf32> to vector<32x16xf32>
    %cst_27 = arith.constant dense<0.000000e+00> : vector<32x128xf32>
    %39 = tpu.matmul %38, %36, %cst_27 {dimension_numbers = #tpu.dot_dimension_numbers<[1], [0], [0], [1], [0, 0, 1, 1], [], []>} : vector<32x16xf32>, vector<16x128xf32>, vector<32x128xf32> -> vector<32x128xf32>
    %40 = arith.addf %32, %39 : vector<32x128xf32>
    %c1_i32 = arith.constant 1 : i32
    %41 = tpu.dynamic_rotate %7 by %c1_i32 dim 1 : vector<16x128xf32>, i32 -> vector<16x128xf32>
    %c4 = arith.constant 4 : index
    %c0_28 = arith.constant 0 : index
    %42 = vector.load %arg5[%c4, %c0_28] : memref<11x128xf32, #tpu.memory_space<vmem>>, vector<1x128xf32>
    %43 = vector.broadcast %42 : vector<1x128xf32> to vector<16x128xf32>
    %44 = arith.mulf %41, %43 : vector<16x128xf32>
    %c4_29 = arith.constant 4 : index
    %c0_30 = arith.constant 0 : index
    %c0_31 = arith.constant 0 : index
    %45 = vector.load %arg4[%c4_29, %c0_30, %c0_31] : memref<11x32x16xf32, #tpu.memory_space<vmem>>, vector<1x32x16xf32>
    %46 = vector.shape_cast %45 : vector<1x32x16xf32> to vector<32x16xf32>
    %cst_32 = arith.constant dense<0.000000e+00> : vector<32x128xf32>
    %47 = tpu.matmul %46, %44, %cst_32 {dimension_numbers = #tpu.dot_dimension_numbers<[1], [0], [0], [1], [0, 0, 1, 1], [], []>} : vector<32x16xf32>, vector<16x128xf32>, vector<32x128xf32> -> vector<32x128xf32>
    %48 = arith.addf %40, %47 : vector<32x128xf32>
    %c5 = arith.constant 5 : index
    %c0_33 = arith.constant 0 : index
    %c0_34 = arith.constant 0 : index
    %49 = vector.load %arg4[%c5, %c0_33, %c0_34] : memref<11x32x16xf32, #tpu.memory_space<vmem>>, vector<1x32x16xf32>
    %50 = vector.shape_cast %49 : vector<1x32x16xf32> to vector<32x16xf32>
    %cst_35 = arith.constant dense<0.000000e+00> : vector<32x128xf32>
    %51 = tpu.matmul %50, %7, %cst_35 {dimension_numbers = #tpu.dot_dimension_numbers<[1], [0], [0], [1], [0, 0, 1, 1], [], []>} : vector<32x16xf32>, vector<16x128xf32>, vector<32x128xf32> -> vector<32x128xf32>
    %52 = arith.addf %48, %51 : vector<32x128xf32>
    %c127_i32 = arith.constant 127 : i32
    %53 = tpu.dynamic_rotate %7 by %c127_i32 dim 1 : vector<16x128xf32>, i32 -> vector<16x128xf32>
    %c6 = arith.constant 6 : index
    %c0_36 = arith.constant 0 : index
    %54 = vector.load %arg5[%c6, %c0_36] : memref<11x128xf32, #tpu.memory_space<vmem>>, vector<1x128xf32>
    %55 = vector.broadcast %54 : vector<1x128xf32> to vector<16x128xf32>
    %56 = arith.mulf %53, %55 : vector<16x128xf32>
    %c6_37 = arith.constant 6 : index
    %c0_38 = arith.constant 0 : index
    %c0_39 = arith.constant 0 : index
    %57 = vector.load %arg4[%c6_37, %c0_38, %c0_39] : memref<11x32x16xf32, #tpu.memory_space<vmem>>, vector<1x32x16xf32>
    %58 = vector.shape_cast %57 : vector<1x32x16xf32> to vector<32x16xf32>
    %cst_40 = arith.constant dense<0.000000e+00> : vector<32x128xf32>
    %59 = tpu.matmul %58, %56, %cst_40 {dimension_numbers = #tpu.dot_dimension_numbers<[1], [0], [0], [1], [0, 0, 1, 1], [], []>} : vector<32x16xf32>, vector<16x128xf32>, vector<32x128xf32> -> vector<32x128xf32>
    %60 = arith.addf %52, %59 : vector<32x128xf32>
    %c126_i32 = arith.constant 126 : i32
    %61 = tpu.dynamic_rotate %7 by %c126_i32 dim 1 : vector<16x128xf32>, i32 -> vector<16x128xf32>
    %c7 = arith.constant 7 : index
    %c0_41 = arith.constant 0 : index
    %62 = vector.load %arg5[%c7, %c0_41] : memref<11x128xf32, #tpu.memory_space<vmem>>, vector<1x128xf32>
    %63 = vector.broadcast %62 : vector<1x128xf32> to vector<16x128xf32>
    %64 = arith.mulf %61, %63 : vector<16x128xf32>
    %c7_42 = arith.constant 7 : index
    %c0_43 = arith.constant 0 : index
    %c0_44 = arith.constant 0 : index
    %65 = vector.load %arg4[%c7_42, %c0_43, %c0_44] : memref<11x32x16xf32, #tpu.memory_space<vmem>>, vector<1x32x16xf32>
    %66 = vector.shape_cast %65 : vector<1x32x16xf32> to vector<32x16xf32>
    %cst_45 = arith.constant dense<0.000000e+00> : vector<32x128xf32>
    %67 = tpu.matmul %66, %64, %cst_45 {dimension_numbers = #tpu.dot_dimension_numbers<[1], [0], [0], [1], [0, 0, 1, 1], [], []>} : vector<32x16xf32>, vector<16x128xf32>, vector<32x128xf32> -> vector<32x128xf32>
    %68 = arith.addf %60, %67 : vector<32x128xf32>
    %c125_i32 = arith.constant 125 : i32
    %69 = tpu.dynamic_rotate %7 by %c125_i32 dim 1 : vector<16x128xf32>, i32 -> vector<16x128xf32>
    %c8 = arith.constant 8 : index
    %c0_46 = arith.constant 0 : index
    %70 = vector.load %arg5[%c8, %c0_46] : memref<11x128xf32, #tpu.memory_space<vmem>>, vector<1x128xf32>
    %71 = vector.broadcast %70 : vector<1x128xf32> to vector<16x128xf32>
    %72 = arith.mulf %69, %71 : vector<16x128xf32>
    %c8_47 = arith.constant 8 : index
    %c0_48 = arith.constant 0 : index
    %c0_49 = arith.constant 0 : index
    %73 = vector.load %arg4[%c8_47, %c0_48, %c0_49] : memref<11x32x16xf32, #tpu.memory_space<vmem>>, vector<1x32x16xf32>
    %74 = vector.shape_cast %73 : vector<1x32x16xf32> to vector<32x16xf32>
    %cst_50 = arith.constant dense<0.000000e+00> : vector<32x128xf32>
    %75 = tpu.matmul %74, %72, %cst_50 {dimension_numbers = #tpu.dot_dimension_numbers<[1], [0], [0], [1], [0, 0, 1, 1], [], []>} : vector<32x16xf32>, vector<16x128xf32>, vector<32x128xf32> -> vector<32x128xf32>
    %76 = arith.addf %68, %75 : vector<32x128xf32>
    %c124_i32 = arith.constant 124 : i32
    %77 = tpu.dynamic_rotate %7 by %c124_i32 dim 1 : vector<16x128xf32>, i32 -> vector<16x128xf32>
    %c9 = arith.constant 9 : index
    %c0_51 = arith.constant 0 : index
    %78 = vector.load %arg5[%c9, %c0_51] : memref<11x128xf32, #tpu.memory_space<vmem>>, vector<1x128xf32>
    %79 = vector.broadcast %78 : vector<1x128xf32> to vector<16x128xf32>
    %80 = arith.mulf %77, %79 : vector<16x128xf32>
    %c9_52 = arith.constant 9 : index
    %c0_53 = arith.constant 0 : index
    %c0_54 = arith.constant 0 : index
    %81 = vector.load %arg4[%c9_52, %c0_53, %c0_54] : memref<11x32x16xf32, #tpu.memory_space<vmem>>, vector<1x32x16xf32>
    %82 = vector.shape_cast %81 : vector<1x32x16xf32> to vector<32x16xf32>
    %cst_55 = arith.constant dense<0.000000e+00> : vector<32x128xf32>
    %83 = tpu.matmul %82, %80, %cst_55 {dimension_numbers = #tpu.dot_dimension_numbers<[1], [0], [0], [1], [0, 0, 1, 1], [], []>} : vector<32x16xf32>, vector<16x128xf32>, vector<32x128xf32> -> vector<32x128xf32>
    %84 = arith.addf %76, %83 : vector<32x128xf32>
    %c123_i32 = arith.constant 123 : i32
    %85 = tpu.dynamic_rotate %7 by %c123_i32 dim 1 : vector<16x128xf32>, i32 -> vector<16x128xf32>
    %c10 = arith.constant 10 : index
    %c0_56 = arith.constant 0 : index
    %86 = vector.load %arg5[%c10, %c0_56] : memref<11x128xf32, #tpu.memory_space<vmem>>, vector<1x128xf32>
    %87 = vector.broadcast %86 : vector<1x128xf32> to vector<16x128xf32>
    %88 = arith.mulf %85, %87 : vector<16x128xf32>
    %c10_57 = arith.constant 10 : index
    %c0_58 = arith.constant 0 : index
    %c0_59 = arith.constant 0 : index
    %89 = vector.load %arg4[%c10_57, %c0_58, %c0_59] : memref<11x32x16xf32, #tpu.memory_space<vmem>>, vector<1x32x16xf32>
    %90 = vector.shape_cast %89 : vector<1x32x16xf32> to vector<32x16xf32>
    %cst_60 = arith.constant dense<0.000000e+00> : vector<32x128xf32>
    %91 = tpu.matmul %90, %88, %cst_60 {dimension_numbers = #tpu.dot_dimension_numbers<[1], [0], [0], [1], [0, 0, 1, 1], [], []>} : vector<32x16xf32>, vector<16x128xf32>, vector<32x128xf32> -> vector<32x128xf32>
    %92 = arith.addf %84, %91 : vector<32x128xf32>
    %93 = tpu.transpose %92, [1, 0] : vector<32x128xf32> -> vector<128x32xf32>
    %c0_61 = arith.constant 0 : index
    %c0_62 = arith.constant 0 : index
    %94 = vector.load %arg6[%c0_61, %c0_62] : memref<128x32xf32, #tpu.memory_space<vmem>>, vector<128x32xf32>
    %95 = arith.addf %93, %94 : vector<128x32xf32>
    %c0_63 = arith.constant 0 : index
    %c0_64 = arith.constant 0 : index
    %c0_65 = arith.constant 0 : index
    %96 = vector.load %arg13[%c0_63, %c0_64, %c0_65] : memref<2x6x32xf32, #tpu.memory_space<vmem>>, vector<1x6x32xf32>
    %97 = vector.shape_cast %96 : vector<1x6x32xf32> to vector<6x32xf32>
    %c0_66 = arith.constant 0 : index
    %c0_67 = arith.constant 0 : index
    %c0_68 = arith.constant 0 : index
    %98 = vector.load %arg7[%c0_66, %c0_67, %c0_68] : memref<2x32x96xf32, #tpu.memory_space<vmem>>, vector<1x32x96xf32>
    %99 = vector.shape_cast %98 : vector<1x32x96xf32> to vector<32x96xf32>
    %cst_69 = arith.constant dense<0.000000e+00> : vector<128x96xf32>
    %100 = tpu.matmul %95, %99, %cst_69 {dimension_numbers = #tpu.dot_dimension_numbers<[1], [0], [0], [1], [0, 0, 1, 1], [], []>} : vector<128x32xf32>, vector<32x96xf32>, vector<128x96xf32> -> vector<128x96xf32>
    %c0_70 = arith.constant 0 : index
    %c0_71 = arith.constant 0 : index
    %c0_72 = arith.constant 0 : index
    %101 = vector.load %arg8[%c0_70, %c0_71, %c0_72] : memref<2x1x96xf32, #tpu.memory_space<vmem>>, vector<1x1x96xf32>
    %102 = vector.shape_cast %101 : vector<1x1x96xf32> to vector<1x96xf32>
    %103 = vector.broadcast %102 : vector<1x96xf32> to vector<128x96xf32>
    %104 = arith.addf %100, %103 : vector<128x96xf32>
    %c0_73 = arith.constant 0 : index
    %c0_74 = arith.constant 0 : index
    %c0_75 = arith.constant 0 : index
    %105 = vector.load %arg9[%c0_73, %c0_74, %c0_75] : memref<2x32x32xf32, #tpu.memory_space<vmem>>, vector<1x32x32xf32>
    %106 = vector.shape_cast %105 : vector<1x32x32xf32> to vector<32x32xf32>
    %107 = vector.extract_strided_slice %97 {offsets = [0, 0], sizes = [1, 32], strides = [1, 1]} : vector<6x32xf32> to vector<1x32xf32>
    %108 = vector.shape_cast %107 : vector<1x32xf32> to vector<1x32xf32>
    %109 = vector.broadcast %108 : vector<1x32xf32> to vector<64x32xf32>
    %110 = vector.extract_strided_slice %104 {offsets = [0, 0], sizes = [64, 8], strides = [1, 1]} : vector<128x96xf32> to vector<64x8xf32>
    %111 = vector.extract_strided_slice %104 {offsets = [0, 32], sizes = [64, 8], strides = [1, 1]} : vector<128x96xf32> to vector<64x8xf32>
    %112 = vector.extract_strided_slice %104 {offsets = [0, 64], sizes = [64, 8], strides = [1, 1]} : vector<128x96xf32> to vector<64x8xf32>
    %cst_76 = arith.constant dense<0.000000e+00> : vector<64x64xf32>
    %113 = tpu.matmul %110, %111, %cst_76 {dimension_numbers = #tpu.dot_dimension_numbers<[1], [1], [0], [0], [0, 0, 1, 0], [], []>} : vector<64x8xf32>, vector<64x8xf32>, vector<64x64xf32> -> vector<64x64xf32>
    %cst_77 = arith.constant dense<0xFF800000> : vector<64xf32>
    %114 = vector.multi_reduction <maximumf>, %113, %cst_77 [1] : vector<64x64xf32> to vector<64xf32>
    %115 = vector.shape_cast %114 : vector<64xf32> to vector<64x1xf32>
    %116 = vector.broadcast %115 : vector<64x1xf32> to vector<64x64xf32>
    %117 = arith.subf %113, %116 : vector<64x64xf32>
    %118 = math.exp %117 : vector<64x64xf32>
    %cst_78 = arith.constant dense<0.000000e+00> : vector<64xf32>
    %119 = vector.multi_reduction <add>, %118, %cst_78 [1] : vector<64x64xf32> to vector<64xf32>
    %120 = vector.shape_cast %119 : vector<64xf32> to vector<64x1xf32>
    %121 = tpu.reciprocal %120 {approx = true} : vector<64x1xf32> -> vector<64x1xf32>
    %122 = vector.broadcast %121 : vector<64x1xf32> to vector<64x64xf32>
    %123 = arith.mulf %118, %122 : vector<64x64xf32>
    %cst_79 = arith.constant dense<0.000000e+00> : vector<64x8xf32>
    %124 = tpu.matmul %123, %112, %cst_79 {dimension_numbers = #tpu.dot_dimension_numbers<[1], [0], [0], [1], [0, 0, 1, 1], [], []>} : vector<64x64xf32>, vector<64x8xf32>, vector<64x8xf32> -> vector<64x8xf32>
    %125 = vector.extract_strided_slice %106 {offsets = [0, 0], sizes = [8, 32], strides = [1, 1]} : vector<32x32xf32> to vector<8x32xf32>
    %cst_80 = arith.constant dense<0.000000e+00> : vector<64x32xf32>
    %126 = tpu.matmul %124, %125, %cst_80 {dimension_numbers = #tpu.dot_dimension_numbers<[1], [0], [0], [1], [0, 0, 1, 1], [], []>} : vector<64x8xf32>, vector<8x32xf32>, vector<64x32xf32> -> vector<64x32xf32>
    %127 = arith.addf %109, %126 : vector<64x32xf32>
    %128 = vector.extract_strided_slice %104 {offsets = [0, 8], sizes = [64, 8], strides = [1, 1]} : vector<128x96xf32> to vector<64x8xf32>
    %129 = vector.extract_strided_slice %104 {offsets = [0, 40], sizes = [64, 8], strides = [1, 1]} : vector<128x96xf32> to vector<64x8xf32>
    %130 = vector.extract_strided_slice %104 {offsets = [0, 72], sizes = [64, 8], strides = [1, 1]} : vector<128x96xf32> to vector<64x8xf32>
    %cst_81 = arith.constant dense<0.000000e+00> : vector<64x64xf32>
    %131 = tpu.matmul %128, %129, %cst_81 {dimension_numbers = #tpu.dot_dimension_numbers<[1], [1], [0], [0], [0, 0, 1, 0], [], []>} : vector<64x8xf32>, vector<64x8xf32>, vector<64x64xf32> -> vector<64x64xf32>
    %cst_82 = arith.constant dense<0xFF800000> : vector<64xf32>
    %132 = vector.multi_reduction <maximumf>, %131, %cst_82 [1] : vector<64x64xf32> to vector<64xf32>
    %133 = vector.shape_cast %132 : vector<64xf32> to vector<64x1xf32>
    %134 = vector.broadcast %133 : vector<64x1xf32> to vector<64x64xf32>
    %135 = arith.subf %131, %134 : vector<64x64xf32>
    %136 = math.exp %135 : vector<64x64xf32>
    %cst_83 = arith.constant dense<0.000000e+00> : vector<64xf32>
    %137 = vector.multi_reduction <add>, %136, %cst_83 [1] : vector<64x64xf32> to vector<64xf32>
    %138 = vector.shape_cast %137 : vector<64xf32> to vector<64x1xf32>
    %139 = tpu.reciprocal %138 {approx = true} : vector<64x1xf32> -> vector<64x1xf32>
    %140 = vector.broadcast %139 : vector<64x1xf32> to vector<64x64xf32>
    %141 = arith.mulf %136, %140 : vector<64x64xf32>
    %cst_84 = arith.constant dense<0.000000e+00> : vector<64x8xf32>
    %142 = tpu.matmul %141, %130, %cst_84 {dimension_numbers = #tpu.dot_dimension_numbers<[1], [0], [0], [1], [0, 0, 1, 1], [], []>} : vector<64x64xf32>, vector<64x8xf32>, vector<64x8xf32> -> vector<64x8xf32>
    %143 = vector.extract_strided_slice %106 {offsets = [8, 0], sizes = [8, 32], strides = [1, 1]} : vector<32x32xf32> to vector<8x32xf32>
    %cst_85 = arith.constant dense<0.000000e+00> : vector<64x32xf32>
    %144 = tpu.matmul %142, %143, %cst_85 {dimension_numbers = #tpu.dot_dimension_numbers<[1], [0], [0], [1], [0, 0, 1, 1], [], []>} : vector<64x8xf32>, vector<8x32xf32>, vector<64x32xf32> -> vector<64x32xf32>
    %145 = arith.addf %127, %144 : vector<64x32xf32>
    %146 = vector.extract_strided_slice %104 {offsets = [0, 16], sizes = [64, 8], strides = [1, 1]} : vector<128x96xf32> to vector<64x8xf32>
    %147 = vector.extract_strided_slice %104 {offsets = [0, 48], sizes = [64, 8], strides = [1, 1]} : vector<128x96xf32> to vector<64x8xf32>
    %148 = vector.extract_strided_slice %104 {offsets = [0, 80], sizes = [64, 8], strides = [1, 1]} : vector<128x96xf32> to vector<64x8xf32>
    %cst_86 = arith.constant dense<0.000000e+00> : vector<64x64xf32>
    %149 = tpu.matmul %146, %147, %cst_86 {dimension_numbers = #tpu.dot_dimension_numbers<[1], [1], [0], [0], [0, 0, 1, 0], [], []>} : vector<64x8xf32>, vector<64x8xf32>, vector<64x64xf32> -> vector<64x64xf32>
    %cst_87 = arith.constant dense<0xFF800000> : vector<64xf32>
    %150 = vector.multi_reduction <maximumf>, %149, %cst_87 [1] : vector<64x64xf32> to vector<64xf32>
    %151 = vector.shape_cast %150 : vector<64xf32> to vector<64x1xf32>
    %152 = vector.broadcast %151 : vector<64x1xf32> to vector<64x64xf32>
    %153 = arith.subf %149, %152 : vector<64x64xf32>
    %154 = math.exp %153 : vector<64x64xf32>
    %cst_88 = arith.constant dense<0.000000e+00> : vector<64xf32>
    %155 = vector.multi_reduction <add>, %154, %cst_88 [1] : vector<64x64xf32> to vector<64xf32>
    %156 = vector.shape_cast %155 : vector<64xf32> to vector<64x1xf32>
    %157 = tpu.reciprocal %156 {approx = true} : vector<64x1xf32> -> vector<64x1xf32>
    %158 = vector.broadcast %157 : vector<64x1xf32> to vector<64x64xf32>
    %159 = arith.mulf %154, %158 : vector<64x64xf32>
    %cst_89 = arith.constant dense<0.000000e+00> : vector<64x8xf32>
    %160 = tpu.matmul %159, %148, %cst_89 {dimension_numbers = #tpu.dot_dimension_numbers<[1], [0], [0], [1], [0, 0, 1, 1], [], []>} : vector<64x64xf32>, vector<64x8xf32>, vector<64x8xf32> -> vector<64x8xf32>
    %161 = vector.extract_strided_slice %106 {offsets = [16, 0], sizes = [8, 32], strides = [1, 1]} : vector<32x32xf32> to vector<8x32xf32>
    %cst_90 = arith.constant dense<0.000000e+00> : vector<64x32xf32>
    %162 = tpu.matmul %160, %161, %cst_90 {dimension_numbers = #tpu.dot_dimension_numbers<[1], [0], [0], [1], [0, 0, 1, 1], [], []>} : vector<64x8xf32>, vector<8x32xf32>, vector<64x32xf32> -> vector<64x32xf32>
    %163 = arith.addf %145, %162 : vector<64x32xf32>
    %164 = vector.extract_strided_slice %104 {offsets = [0, 24], sizes = [64, 8], strides = [1, 1]} : vector<128x96xf32> to vector<64x8xf32>
    %165 = vector.extract_strided_slice %104 {offsets = [0, 56], sizes = [64, 8], strides = [1, 1]} : vector<128x96xf32> to vector<64x8xf32>
    %166 = vector.extract_strided_slice %104 {offsets = [0, 88], sizes = [64, 8], strides = [1, 1]} : vector<128x96xf32> to vector<64x8xf32>
    %cst_91 = arith.constant dense<0.000000e+00> : vector<64x64xf32>
    %167 = tpu.matmul %164, %165, %cst_91 {dimension_numbers = #tpu.dot_dimension_numbers<[1], [1], [0], [0], [0, 0, 1, 0], [], []>} : vector<64x8xf32>, vector<64x8xf32>, vector<64x64xf32> -> vector<64x64xf32>
    %cst_92 = arith.constant dense<0xFF800000> : vector<64xf32>
    %168 = vector.multi_reduction <maximumf>, %167, %cst_92 [1] : vector<64x64xf32> to vector<64xf32>
    %169 = vector.shape_cast %168 : vector<64xf32> to vector<64x1xf32>
    %170 = vector.broadcast %169 : vector<64x1xf32> to vector<64x64xf32>
    %171 = arith.subf %167, %170 : vector<64x64xf32>
    %172 = math.exp %171 : vector<64x64xf32>
    %cst_93 = arith.constant dense<0.000000e+00> : vector<64xf32>
    %173 = vector.multi_reduction <add>, %172, %cst_93 [1] : vector<64x64xf32> to vector<64xf32>
    %174 = vector.shape_cast %173 : vector<64xf32> to vector<64x1xf32>
    %175 = tpu.reciprocal %174 {approx = true} : vector<64x1xf32> -> vector<64x1xf32>
    %176 = vector.broadcast %175 : vector<64x1xf32> to vector<64x64xf32>
    %177 = arith.mulf %172, %176 : vector<64x64xf32>
    %cst_94 = arith.constant dense<0.000000e+00> : vector<64x8xf32>
    %178 = tpu.matmul %177, %166, %cst_94 {dimension_numbers = #tpu.dot_dimension_numbers<[1], [0], [0], [1], [0, 0, 1, 1], [], []>} : vector<64x64xf32>, vector<64x8xf32>, vector<64x8xf32> -> vector<64x8xf32>
    %179 = vector.extract_strided_slice %106 {offsets = [24, 0], sizes = [8, 32], strides = [1, 1]} : vector<32x32xf32> to vector<8x32xf32>
    %cst_95 = arith.constant dense<0.000000e+00> : vector<64x32xf32>
    %180 = tpu.matmul %178, %179, %cst_95 {dimension_numbers = #tpu.dot_dimension_numbers<[1], [0], [0], [1], [0, 0, 1, 1], [], []>} : vector<64x8xf32>, vector<8x32xf32>, vector<64x32xf32> -> vector<64x32xf32>
    %181 = arith.addf %163, %180 : vector<64x32xf32>
    %182 = vector.extract_strided_slice %104 {offsets = [64, 0], sizes = [64, 8], strides = [1, 1]} : vector<128x96xf32> to vector<64x8xf32>
    %183 = vector.extract_strided_slice %104 {offsets = [64, 32], sizes = [64, 8], strides = [1, 1]} : vector<128x96xf32> to vector<64x8xf32>
    %184 = vector.extract_strided_slice %104 {offsets = [64, 64], sizes = [64, 8], strides = [1, 1]} : vector<128x96xf32> to vector<64x8xf32>
    %cst_96 = arith.constant dense<0.000000e+00> : vector<64x64xf32>
    %185 = tpu.matmul %182, %183, %cst_96 {dimension_numbers = #tpu.dot_dimension_numbers<[1], [1], [0], [0], [0, 0, 1, 0], [], []>} : vector<64x8xf32>, vector<64x8xf32>, vector<64x64xf32> -> vector<64x64xf32>
    %cst_97 = arith.constant dense<0xFF800000> : vector<64xf32>
    %186 = vector.multi_reduction <maximumf>, %185, %cst_97 [1] : vector<64x64xf32> to vector<64xf32>
    %187 = vector.shape_cast %186 : vector<64xf32> to vector<64x1xf32>
    %188 = vector.broadcast %187 : vector<64x1xf32> to vector<64x64xf32>
    %189 = arith.subf %185, %188 : vector<64x64xf32>
    %190 = math.exp %189 : vector<64x64xf32>
    %cst_98 = arith.constant dense<0.000000e+00> : vector<64xf32>
    %191 = vector.multi_reduction <add>, %190, %cst_98 [1] : vector<64x64xf32> to vector<64xf32>
    %192 = vector.shape_cast %191 : vector<64xf32> to vector<64x1xf32>
    %193 = tpu.reciprocal %192 {approx = true} : vector<64x1xf32> -> vector<64x1xf32>
    %194 = vector.broadcast %193 : vector<64x1xf32> to vector<64x64xf32>
    %195 = arith.mulf %190, %194 : vector<64x64xf32>
    %cst_99 = arith.constant dense<0.000000e+00> : vector<64x8xf32>
    %196 = tpu.matmul %195, %184, %cst_99 {dimension_numbers = #tpu.dot_dimension_numbers<[1], [0], [0], [1], [0, 0, 1, 1], [], []>} : vector<64x64xf32>, vector<64x8xf32>, vector<64x8xf32> -> vector<64x8xf32>
    %197 = vector.extract_strided_slice %106 {offsets = [0, 0], sizes = [8, 32], strides = [1, 1]} : vector<32x32xf32> to vector<8x32xf32>
    %cst_100 = arith.constant dense<0.000000e+00> : vector<64x32xf32>
    %198 = tpu.matmul %196, %197, %cst_100 {dimension_numbers = #tpu.dot_dimension_numbers<[1], [0], [0], [1], [0, 0, 1, 1], [], []>} : vector<64x8xf32>, vector<8x32xf32>, vector<64x32xf32> -> vector<64x32xf32>
    %199 = arith.addf %109, %198 : vector<64x32xf32>
    %200 = vector.extract_strided_slice %104 {offsets = [64, 8], sizes = [64, 8], strides = [1, 1]} : vector<128x96xf32> to vector<64x8xf32>
    %201 = vector.extract_strided_slice %104 {offsets = [64, 40], sizes = [64, 8], strides = [1, 1]} : vector<128x96xf32> to vector<64x8xf32>
    %202 = vector.extract_strided_slice %104 {offsets = [64, 72], sizes = [64, 8], strides = [1, 1]} : vector<128x96xf32> to vector<64x8xf32>
    %cst_101 = arith.constant dense<0.000000e+00> : vector<64x64xf32>
    %203 = tpu.matmul %200, %201, %cst_101 {dimension_numbers = #tpu.dot_dimension_numbers<[1], [1], [0], [0], [0, 0, 1, 0], [], []>} : vector<64x8xf32>, vector<64x8xf32>, vector<64x64xf32> -> vector<64x64xf32>
    %cst_102 = arith.constant dense<0xFF800000> : vector<64xf32>
    %204 = vector.multi_reduction <maximumf>, %203, %cst_102 [1] : vector<64x64xf32> to vector<64xf32>
    %205 = vector.shape_cast %204 : vector<64xf32> to vector<64x1xf32>
    %206 = vector.broadcast %205 : vector<64x1xf32> to vector<64x64xf32>
    %207 = arith.subf %203, %206 : vector<64x64xf32>
    %208 = math.exp %207 : vector<64x64xf32>
    %cst_103 = arith.constant dense<0.000000e+00> : vector<64xf32>
    %209 = vector.multi_reduction <add>, %208, %cst_103 [1] : vector<64x64xf32> to vector<64xf32>
    %210 = vector.shape_cast %209 : vector<64xf32> to vector<64x1xf32>
    %211 = tpu.reciprocal %210 {approx = true} : vector<64x1xf32> -> vector<64x1xf32>
    %212 = vector.broadcast %211 : vector<64x1xf32> to vector<64x64xf32>
    %213 = arith.mulf %208, %212 : vector<64x64xf32>
    %cst_104 = arith.constant dense<0.000000e+00> : vector<64x8xf32>
    %214 = tpu.matmul %213, %202, %cst_104 {dimension_numbers = #tpu.dot_dimension_numbers<[1], [0], [0], [1], [0, 0, 1, 1], [], []>} : vector<64x64xf32>, vector<64x8xf32>, vector<64x8xf32> -> vector<64x8xf32>
    %215 = vector.extract_strided_slice %106 {offsets = [8, 0], sizes = [8, 32], strides = [1, 1]} : vector<32x32xf32> to vector<8x32xf32>
    %cst_105 = arith.constant dense<0.000000e+00> : vector<64x32xf32>
    %216 = tpu.matmul %214, %215, %cst_105 {dimension_numbers = #tpu.dot_dimension_numbers<[1], [0], [0], [1], [0, 0, 1, 1], [], []>} : vector<64x8xf32>, vector<8x32xf32>, vector<64x32xf32> -> vector<64x32xf32>
    %217 = arith.addf %199, %216 : vector<64x32xf32>
    %218 = vector.extract_strided_slice %104 {offsets = [64, 16], sizes = [64, 8], strides = [1, 1]} : vector<128x96xf32> to vector<64x8xf32>
    %219 = vector.extract_strided_slice %104 {offsets = [64, 48], sizes = [64, 8], strides = [1, 1]} : vector<128x96xf32> to vector<64x8xf32>
    %220 = vector.extract_strided_slice %104 {offsets = [64, 80], sizes = [64, 8], strides = [1, 1]} : vector<128x96xf32> to vector<64x8xf32>
    %cst_106 = arith.constant dense<0.000000e+00> : vector<64x64xf32>
    %221 = tpu.matmul %218, %219, %cst_106 {dimension_numbers = #tpu.dot_dimension_numbers<[1], [1], [0], [0], [0, 0, 1, 0], [], []>} : vector<64x8xf32>, vector<64x8xf32>, vector<64x64xf32> -> vector<64x64xf32>
    %cst_107 = arith.constant dense<0xFF800000> : vector<64xf32>
    %222 = vector.multi_reduction <maximumf>, %221, %cst_107 [1] : vector<64x64xf32> to vector<64xf32>
    %223 = vector.shape_cast %222 : vector<64xf32> to vector<64x1xf32>
    %224 = vector.broadcast %223 : vector<64x1xf32> to vector<64x64xf32>
    %225 = arith.subf %221, %224 : vector<64x64xf32>
    %226 = math.exp %225 : vector<64x64xf32>
    %cst_108 = arith.constant dense<0.000000e+00> : vector<64xf32>
    %227 = vector.multi_reduction <add>, %226, %cst_108 [1] : vector<64x64xf32> to vector<64xf32>
    %228 = vector.shape_cast %227 : vector<64xf32> to vector<64x1xf32>
    %229 = tpu.reciprocal %228 {approx = true} : vector<64x1xf32> -> vector<64x1xf32>
    %230 = vector.broadcast %229 : vector<64x1xf32> to vector<64x64xf32>
    %231 = arith.mulf %226, %230 : vector<64x64xf32>
    %cst_109 = arith.constant dense<0.000000e+00> : vector<64x8xf32>
    %232 = tpu.matmul %231, %220, %cst_109 {dimension_numbers = #tpu.dot_dimension_numbers<[1], [0], [0], [1], [0, 0, 1, 1], [], []>} : vector<64x64xf32>, vector<64x8xf32>, vector<64x8xf32> -> vector<64x8xf32>
    %233 = vector.extract_strided_slice %106 {offsets = [16, 0], sizes = [8, 32], strides = [1, 1]} : vector<32x32xf32> to vector<8x32xf32>
    %cst_110 = arith.constant dense<0.000000e+00> : vector<64x32xf32>
    %234 = tpu.matmul %232, %233, %cst_110 {dimension_numbers = #tpu.dot_dimension_numbers<[1], [0], [0], [1], [0, 0, 1, 1], [], []>} : vector<64x8xf32>, vector<8x32xf32>, vector<64x32xf32> -> vector<64x32xf32>
    %235 = arith.addf %217, %234 : vector<64x32xf32>
    %236 = vector.extract_strided_slice %104 {offsets = [64, 24], sizes = [64, 8], strides = [1, 1]} : vector<128x96xf32> to vector<64x8xf32>
    %237 = vector.extract_strided_slice %104 {offsets = [64, 56], sizes = [64, 8], strides = [1, 1]} : vector<128x96xf32> to vector<64x8xf32>
    %238 = vector.extract_strided_slice %104 {offsets = [64, 88], sizes = [64, 8], strides = [1, 1]} : vector<128x96xf32> to vector<64x8xf32>
    %cst_111 = arith.constant dense<0.000000e+00> : vector<64x64xf32>
    %239 = tpu.matmul %236, %237, %cst_111 {dimension_numbers = #tpu.dot_dimension_numbers<[1], [1], [0], [0], [0, 0, 1, 0], [], []>} : vector<64x8xf32>, vector<64x8xf32>, vector<64x64xf32> -> vector<64x64xf32>
    %cst_112 = arith.constant dense<0xFF800000> : vector<64xf32>
    %240 = vector.multi_reduction <maximumf>, %239, %cst_112 [1] : vector<64x64xf32> to vector<64xf32>
    %241 = vector.shape_cast %240 : vector<64xf32> to vector<64x1xf32>
    %242 = vector.broadcast %241 : vector<64x1xf32> to vector<64x64xf32>
    %243 = arith.subf %239, %242 : vector<64x64xf32>
    %244 = math.exp %243 : vector<64x64xf32>
    %cst_113 = arith.constant dense<0.000000e+00> : vector<64xf32>
    %245 = vector.multi_reduction <add>, %244, %cst_113 [1] : vector<64x64xf32> to vector<64xf32>
    %246 = vector.shape_cast %245 : vector<64xf32> to vector<64x1xf32>
    %247 = tpu.reciprocal %246 {approx = true} : vector<64x1xf32> -> vector<64x1xf32>
    %248 = vector.broadcast %247 : vector<64x1xf32> to vector<64x64xf32>
    %249 = arith.mulf %244, %248 : vector<64x64xf32>
    %cst_114 = arith.constant dense<0.000000e+00> : vector<64x8xf32>
    %250 = tpu.matmul %249, %238, %cst_114 {dimension_numbers = #tpu.dot_dimension_numbers<[1], [0], [0], [1], [0, 0, 1, 1], [], []>} : vector<64x64xf32>, vector<64x8xf32>, vector<64x8xf32> -> vector<64x8xf32>
    %251 = vector.extract_strided_slice %106 {offsets = [24, 0], sizes = [8, 32], strides = [1, 1]} : vector<32x32xf32> to vector<8x32xf32>
    %cst_115 = arith.constant dense<0.000000e+00> : vector<64x32xf32>
    %252 = tpu.matmul %250, %251, %cst_115 {dimension_numbers = #tpu.dot_dimension_numbers<[1], [0], [0], [1], [0, 0, 1, 1], [], []>} : vector<64x8xf32>, vector<8x32xf32>, vector<64x32xf32> -> vector<64x32xf32>
    %253 = arith.addf %235, %252 : vector<64x32xf32>
    %254 = tpu.concatenate %181, %253 in 0 : vector<64x32xf32>, vector<64x32xf32> -> vector<128x32xf32>
    %255 = arith.addf %95, %254 : vector<128x32xf32>
    %256 = vector.extract_strided_slice %97 {offsets = [1, 0], sizes = [1, 32], strides = [1, 1]} : vector<6x32xf32> to vector<1x32xf32>
    %257 = vector.extract_strided_slice %97 {offsets = [2, 0], sizes = [1, 32], strides = [1, 1]} : vector<6x32xf32> to vector<1x32xf32>
    %cst_116 = arith.constant dense<0.000000e+00> : vector<128xf32>
    %258 = vector.multi_reduction <add>, %255, %cst_116 [1] : vector<128x32xf32> to vector<128xf32>
    %259 = vector.shape_cast %258 : vector<128xf32> to vector<128x1xf32>
    %cst_117 = arith.constant 3.200000e+01 : f32
    %260 = vector.broadcast %cst_117 : f32 to vector<128x1xf32>
    %261 = arith.divf %259, %260 : vector<128x1xf32>
    %262 = vector.broadcast %261 : vector<128x1xf32> to vector<128x32xf32>
    %263 = arith.subf %255, %262 : vector<128x32xf32>
    %264 = arith.mulf %263, %263 : vector<128x32xf32>
    %cst_118 = arith.constant dense<0.000000e+00> : vector<128xf32>
    %265 = vector.multi_reduction <add>, %264, %cst_118 [1] : vector<128x32xf32> to vector<128xf32>
    %266 = vector.shape_cast %265 : vector<128xf32> to vector<128x1xf32>
    %cst_119 = arith.constant 3.200000e+01 : f32
    %267 = vector.broadcast %cst_119 : f32 to vector<128x1xf32>
    %268 = arith.divf %266, %267 : vector<128x1xf32>
    %269 = vector.broadcast %261 : vector<128x1xf32> to vector<128x32xf32>
    %270 = arith.subf %255, %269 : vector<128x32xf32>
    %cst_120 = arith.constant 9.99999974E-6 : f32
    %271 = vector.broadcast %cst_120 : f32 to vector<128x1xf32>
    %272 = arith.addf %268, %271 : vector<128x1xf32>
    %273 = math.rsqrt %272 : vector<128x1xf32>
    %274 = vector.broadcast %273 : vector<128x1xf32> to vector<128x32xf32>
    %275 = arith.mulf %270, %274 : vector<128x32xf32>
    %276 = vector.broadcast %256 : vector<1x32xf32> to vector<128x32xf32>
    %277 = arith.mulf %275, %276 : vector<128x32xf32>
    %278 = vector.broadcast %257 : vector<1x32xf32> to vector<128x32xf32>
    %279 = arith.addf %277, %278 : vector<128x32xf32>
    %c0_121 = arith.constant 0 : index
    %c0_122 = arith.constant 0 : index
    %c0_123 = arith.constant 0 : index
    %280 = vector.load %arg10[%c0_121, %c0_122, %c0_123] : memref<2x32x2xf32, #tpu.memory_space<vmem>>, vector<1x32x2xf32>
    %281 = vector.shape_cast %280 : vector<1x32x2xf32> to vector<32x2xf32>
    %cst_124 = arith.constant dense<0.000000e+00> : vector<128x2xf32>
    %282 = tpu.matmul %279, %281, %cst_124 {dimension_numbers = #tpu.dot_dimension_numbers<[1], [0], [0], [1], [0, 0, 1, 1], [], []>} : vector<128x32xf32>, vector<32x2xf32>, vector<128x2xf32> -> vector<128x2xf32>
    %c0_125 = arith.constant 0 : index
    %c0_126 = arith.constant 0 : index
    %c0_127 = arith.constant 0 : index
    %283 = vector.load %arg11[%c0_125, %c0_126, %c0_127] : memref<2x1x2xf32, #tpu.memory_space<vmem>>, vector<1x1x2xf32>
    %284 = vector.shape_cast %283 : vector<1x1x2xf32> to vector<1x2xf32>
    %285 = vector.broadcast %284 : vector<1x2xf32> to vector<128x2xf32>
    %286 = arith.addf %282, %285 : vector<128x2xf32>
    %cst_128 = arith.constant 0.000000e+00 : f32
    %287 = vector.broadcast %cst_128 : f32 to vector<128x2xf32>
    %288 = arith.maximumf %286, %287 : vector<128x2xf32>
    %c0_129 = arith.constant 0 : index
    %c0_130 = arith.constant 0 : index
    %c0_131 = arith.constant 0 : index
    %289 = vector.load %arg12[%c0_129, %c0_130, %c0_131] : memref<2x2x32xf32, #tpu.memory_space<vmem>>, vector<1x2x32xf32>
    %290 = vector.shape_cast %289 : vector<1x2x32xf32> to vector<2x32xf32>
    %cst_132 = arith.constant dense<0.000000e+00> : vector<128x32xf32>
    %291 = tpu.matmul %288, %290, %cst_132 {dimension_numbers = #tpu.dot_dimension_numbers<[1], [0], [0], [1], [0, 0, 1, 1], [], []>} : vector<128x2xf32>, vector<2x32xf32>, vector<128x32xf32> -> vector<128x32xf32>
    %292 = vector.extract_strided_slice %97 {offsets = [3, 0], sizes = [1, 32], strides = [1, 1]} : vector<6x32xf32> to vector<1x32xf32>
    %293 = vector.broadcast %292 : vector<1x32xf32> to vector<128x32xf32>
    %294 = arith.addf %291, %293 : vector<128x32xf32>
    %295 = arith.addf %279, %294 : vector<128x32xf32>
    %296 = vector.extract_strided_slice %97 {offsets = [4, 0], sizes = [1, 32], strides = [1, 1]} : vector<6x32xf32> to vector<1x32xf32>
    %297 = vector.extract_strided_slice %97 {offsets = [5, 0], sizes = [1, 32], strides = [1, 1]} : vector<6x32xf32> to vector<1x32xf32>
    %cst_133 = arith.constant dense<0.000000e+00> : vector<128xf32>
    %298 = vector.multi_reduction <add>, %295, %cst_133 [1] : vector<128x32xf32> to vector<128xf32>
    %299 = vector.shape_cast %298 : vector<128xf32> to vector<128x1xf32>
    %cst_134 = arith.constant 3.200000e+01 : f32
    %300 = vector.broadcast %cst_134 : f32 to vector<128x1xf32>
    %301 = arith.divf %299, %300 : vector<128x1xf32>
    %302 = vector.broadcast %301 : vector<128x1xf32> to vector<128x32xf32>
    %303 = arith.subf %295, %302 : vector<128x32xf32>
    %304 = arith.mulf %303, %303 : vector<128x32xf32>
    %cst_135 = arith.constant dense<0.000000e+00> : vector<128xf32>
    %305 = vector.multi_reduction <add>, %304, %cst_135 [1] : vector<128x32xf32> to vector<128xf32>
    %306 = vector.shape_cast %305 : vector<128xf32> to vector<128x1xf32>
    %cst_136 = arith.constant 3.200000e+01 : f32
    %307 = vector.broadcast %cst_136 : f32 to vector<128x1xf32>
    %308 = arith.divf %306, %307 : vector<128x1xf32>
    %309 = vector.broadcast %301 : vector<128x1xf32> to vector<128x32xf32>
    %310 = arith.subf %295, %309 : vector<128x32xf32>
    %cst_137 = arith.constant 9.99999974E-6 : f32
    %311 = vector.broadcast %cst_137 : f32 to vector<128x1xf32>
    %312 = arith.addf %308, %311 : vector<128x1xf32>
    %313 = math.rsqrt %312 : vector<128x1xf32>
    %314 = vector.broadcast %313 : vector<128x1xf32> to vector<128x32xf32>
    %315 = arith.mulf %310, %314 : vector<128x32xf32>
    %316 = vector.broadcast %296 : vector<1x32xf32> to vector<128x32xf32>
    %317 = arith.mulf %315, %316 : vector<128x32xf32>
    %318 = vector.broadcast %297 : vector<1x32xf32> to vector<128x32xf32>
    %319 = arith.addf %317, %318 : vector<128x32xf32>
    %c1_138 = arith.constant 1 : index
    %c0_139 = arith.constant 0 : index
    %c0_140 = arith.constant 0 : index
    %320 = vector.load %arg13[%c1_138, %c0_139, %c0_140] : memref<2x6x32xf32, #tpu.memory_space<vmem>>, vector<1x6x32xf32>
    %321 = vector.shape_cast %320 : vector<1x6x32xf32> to vector<6x32xf32>
    %c1_141 = arith.constant 1 : index
    %c0_142 = arith.constant 0 : index
    %c0_143 = arith.constant 0 : index
    %322 = vector.load %arg7[%c1_141, %c0_142, %c0_143] : memref<2x32x96xf32, #tpu.memory_space<vmem>>, vector<1x32x96xf32>
    %323 = vector.shape_cast %322 : vector<1x32x96xf32> to vector<32x96xf32>
    %cst_144 = arith.constant dense<0.000000e+00> : vector<128x96xf32>
    %324 = tpu.matmul %319, %323, %cst_144 {dimension_numbers = #tpu.dot_dimension_numbers<[1], [0], [0], [1], [0, 0, 1, 1], [], []>} : vector<128x32xf32>, vector<32x96xf32>, vector<128x96xf32> -> vector<128x96xf32>
    %c1_145 = arith.constant 1 : index
    %c0_146 = arith.constant 0 : index
    %c0_147 = arith.constant 0 : index
    %325 = vector.load %arg8[%c1_145, %c0_146, %c0_147] : memref<2x1x96xf32, #tpu.memory_space<vmem>>, vector<1x1x96xf32>
    %326 = vector.shape_cast %325 : vector<1x1x96xf32> to vector<1x96xf32>
    %327 = vector.broadcast %326 : vector<1x96xf32> to vector<128x96xf32>
    %328 = arith.addf %324, %327 : vector<128x96xf32>
    %c1_148 = arith.constant 1 : index
    %c0_149 = arith.constant 0 : index
    %c0_150 = arith.constant 0 : index
    %329 = vector.load %arg9[%c1_148, %c0_149, %c0_150] : memref<2x32x32xf32, #tpu.memory_space<vmem>>, vector<1x32x32xf32>
    %330 = vector.shape_cast %329 : vector<1x32x32xf32> to vector<32x32xf32>
    %331 = vector.extract_strided_slice %321 {offsets = [0, 0], sizes = [1, 32], strides = [1, 1]} : vector<6x32xf32> to vector<1x32xf32>
    %332 = vector.shape_cast %331 : vector<1x32xf32> to vector<1x32xf32>
    %333 = vector.broadcast %332 : vector<1x32xf32> to vector<64x32xf32>
    %334 = vector.extract_strided_slice %328 {offsets = [0, 0], sizes = [64, 8], strides = [1, 1]} : vector<128x96xf32> to vector<64x8xf32>
    %335 = vector.extract_strided_slice %328 {offsets = [0, 32], sizes = [64, 8], strides = [1, 1]} : vector<128x96xf32> to vector<64x8xf32>
    %336 = vector.extract_strided_slice %328 {offsets = [0, 64], sizes = [64, 8], strides = [1, 1]} : vector<128x96xf32> to vector<64x8xf32>
    %cst_151 = arith.constant dense<0.000000e+00> : vector<64x64xf32>
    %337 = tpu.matmul %334, %335, %cst_151 {dimension_numbers = #tpu.dot_dimension_numbers<[1], [1], [0], [0], [0, 0, 1, 0], [], []>} : vector<64x8xf32>, vector<64x8xf32>, vector<64x64xf32> -> vector<64x64xf32>
    %cst_152 = arith.constant dense<0xFF800000> : vector<64xf32>
    %338 = vector.multi_reduction <maximumf>, %337, %cst_152 [1] : vector<64x64xf32> to vector<64xf32>
    %339 = vector.shape_cast %338 : vector<64xf32> to vector<64x1xf32>
    %340 = vector.broadcast %339 : vector<64x1xf32> to vector<64x64xf32>
    %341 = arith.subf %337, %340 : vector<64x64xf32>
    %342 = math.exp %341 : vector<64x64xf32>
    %cst_153 = arith.constant dense<0.000000e+00> : vector<64xf32>
    %343 = vector.multi_reduction <add>, %342, %cst_153 [1] : vector<64x64xf32> to vector<64xf32>
    %344 = vector.shape_cast %343 : vector<64xf32> to vector<64x1xf32>
    %345 = tpu.reciprocal %344 {approx = true} : vector<64x1xf32> -> vector<64x1xf32>
    %346 = vector.broadcast %345 : vector<64x1xf32> to vector<64x64xf32>
    %347 = arith.mulf %342, %346 : vector<64x64xf32>
    %cst_154 = arith.constant dense<0.000000e+00> : vector<64x8xf32>
    %348 = tpu.matmul %347, %336, %cst_154 {dimension_numbers = #tpu.dot_dimension_numbers<[1], [0], [0], [1], [0, 0, 1, 1], [], []>} : vector<64x64xf32>, vector<64x8xf32>, vector<64x8xf32> -> vector<64x8xf32>
    %349 = vector.extract_strided_slice %330 {offsets = [0, 0], sizes = [8, 32], strides = [1, 1]} : vector<32x32xf32> to vector<8x32xf32>
    %cst_155 = arith.constant dense<0.000000e+00> : vector<64x32xf32>
    %350 = tpu.matmul %348, %349, %cst_155 {dimension_numbers = #tpu.dot_dimension_numbers<[1], [0], [0], [1], [0, 0, 1, 1], [], []>} : vector<64x8xf32>, vector<8x32xf32>, vector<64x32xf32> -> vector<64x32xf32>
    %351 = arith.addf %333, %350 : vector<64x32xf32>
    %352 = vector.extract_strided_slice %328 {offsets = [0, 8], sizes = [64, 8], strides = [1, 1]} : vector<128x96xf32> to vector<64x8xf32>
    %353 = vector.extract_strided_slice %328 {offsets = [0, 40], sizes = [64, 8], strides = [1, 1]} : vector<128x96xf32> to vector<64x8xf32>
    %354 = vector.extract_strided_slice %328 {offsets = [0, 72], sizes = [64, 8], strides = [1, 1]} : vector<128x96xf32> to vector<64x8xf32>
    %cst_156 = arith.constant dense<0.000000e+00> : vector<64x64xf32>
    %355 = tpu.matmul %352, %353, %cst_156 {dimension_numbers = #tpu.dot_dimension_numbers<[1], [1], [0], [0], [0, 0, 1, 0], [], []>} : vector<64x8xf32>, vector<64x8xf32>, vector<64x64xf32> -> vector<64x64xf32>
    %cst_157 = arith.constant dense<0xFF800000> : vector<64xf32>
    %356 = vector.multi_reduction <maximumf>, %355, %cst_157 [1] : vector<64x64xf32> to vector<64xf32>
    %357 = vector.shape_cast %356 : vector<64xf32> to vector<64x1xf32>
    %358 = vector.broadcast %357 : vector<64x1xf32> to vector<64x64xf32>
    %359 = arith.subf %355, %358 : vector<64x64xf32>
    %360 = math.exp %359 : vector<64x64xf32>
    %cst_158 = arith.constant dense<0.000000e+00> : vector<64xf32>
    %361 = vector.multi_reduction <add>, %360, %cst_158 [1] : vector<64x64xf32> to vector<64xf32>
    %362 = vector.shape_cast %361 : vector<64xf32> to vector<64x1xf32>
    %363 = tpu.reciprocal %362 {approx = true} : vector<64x1xf32> -> vector<64x1xf32>
    %364 = vector.broadcast %363 : vector<64x1xf32> to vector<64x64xf32>
    %365 = arith.mulf %360, %364 : vector<64x64xf32>
    %cst_159 = arith.constant dense<0.000000e+00> : vector<64x8xf32>
    %366 = tpu.matmul %365, %354, %cst_159 {dimension_numbers = #tpu.dot_dimension_numbers<[1], [0], [0], [1], [0, 0, 1, 1], [], []>} : vector<64x64xf32>, vector<64x8xf32>, vector<64x8xf32> -> vector<64x8xf32>
    %367 = vector.extract_strided_slice %330 {offsets = [8, 0], sizes = [8, 32], strides = [1, 1]} : vector<32x32xf32> to vector<8x32xf32>
    %cst_160 = arith.constant dense<0.000000e+00> : vector<64x32xf32>
    %368 = tpu.matmul %366, %367, %cst_160 {dimension_numbers = #tpu.dot_dimension_numbers<[1], [0], [0], [1], [0, 0, 1, 1], [], []>} : vector<64x8xf32>, vector<8x32xf32>, vector<64x32xf32> -> vector<64x32xf32>
    %369 = arith.addf %351, %368 : vector<64x32xf32>
    %370 = vector.extract_strided_slice %328 {offsets = [0, 16], sizes = [64, 8], strides = [1, 1]} : vector<128x96xf32> to vector<64x8xf32>
    %371 = vector.extract_strided_slice %328 {offsets = [0, 48], sizes = [64, 8], strides = [1, 1]} : vector<128x96xf32> to vector<64x8xf32>
    %372 = vector.extract_strided_slice %328 {offsets = [0, 80], sizes = [64, 8], strides = [1, 1]} : vector<128x96xf32> to vector<64x8xf32>
    %cst_161 = arith.constant dense<0.000000e+00> : vector<64x64xf32>
    %373 = tpu.matmul %370, %371, %cst_161 {dimension_numbers = #tpu.dot_dimension_numbers<[1], [1], [0], [0], [0, 0, 1, 0], [], []>} : vector<64x8xf32>, vector<64x8xf32>, vector<64x64xf32> -> vector<64x64xf32>
    %cst_162 = arith.constant dense<0xFF800000> : vector<64xf32>
    %374 = vector.multi_reduction <maximumf>, %373, %cst_162 [1] : vector<64x64xf32> to vector<64xf32>
    %375 = vector.shape_cast %374 : vector<64xf32> to vector<64x1xf32>
    %376 = vector.broadcast %375 : vector<64x1xf32> to vector<64x64xf32>
    %377 = arith.subf %373, %376 : vector<64x64xf32>
    %378 = math.exp %377 : vector<64x64xf32>
    %cst_163 = arith.constant dense<0.000000e+00> : vector<64xf32>
    %379 = vector.multi_reduction <add>, %378, %cst_163 [1] : vector<64x64xf32> to vector<64xf32>
    %380 = vector.shape_cast %379 : vector<64xf32> to vector<64x1xf32>
    %381 = tpu.reciprocal %380 {approx = true} : vector<64x1xf32> -> vector<64x1xf32>
    %382 = vector.broadcast %381 : vector<64x1xf32> to vector<64x64xf32>
    %383 = arith.mulf %378, %382 : vector<64x64xf32>
    %cst_164 = arith.constant dense<0.000000e+00> : vector<64x8xf32>
    %384 = tpu.matmul %383, %372, %cst_164 {dimension_numbers = #tpu.dot_dimension_numbers<[1], [0], [0], [1], [0, 0, 1, 1], [], []>} : vector<64x64xf32>, vector<64x8xf32>, vector<64x8xf32> -> vector<64x8xf32>
    %385 = vector.extract_strided_slice %330 {offsets = [16, 0], sizes = [8, 32], strides = [1, 1]} : vector<32x32xf32> to vector<8x32xf32>
    %cst_165 = arith.constant dense<0.000000e+00> : vector<64x32xf32>
    %386 = tpu.matmul %384, %385, %cst_165 {dimension_numbers = #tpu.dot_dimension_numbers<[1], [0], [0], [1], [0, 0, 1, 1], [], []>} : vector<64x8xf32>, vector<8x32xf32>, vector<64x32xf32> -> vector<64x32xf32>
    %387 = arith.addf %369, %386 : vector<64x32xf32>
    %388 = vector.extract_strided_slice %328 {offsets = [0, 24], sizes = [64, 8], strides = [1, 1]} : vector<128x96xf32> to vector<64x8xf32>
    %389 = vector.extract_strided_slice %328 {offsets = [0, 56], sizes = [64, 8], strides = [1, 1]} : vector<128x96xf32> to vector<64x8xf32>
    %390 = vector.extract_strided_slice %328 {offsets = [0, 88], sizes = [64, 8], strides = [1, 1]} : vector<128x96xf32> to vector<64x8xf32>
    %cst_166 = arith.constant dense<0.000000e+00> : vector<64x64xf32>
    %391 = tpu.matmul %388, %389, %cst_166 {dimension_numbers = #tpu.dot_dimension_numbers<[1], [1], [0], [0], [0, 0, 1, 0], [], []>} : vector<64x8xf32>, vector<64x8xf32>, vector<64x64xf32> -> vector<64x64xf32>
    %cst_167 = arith.constant dense<0xFF800000> : vector<64xf32>
    %392 = vector.multi_reduction <maximumf>, %391, %cst_167 [1] : vector<64x64xf32> to vector<64xf32>
    %393 = vector.shape_cast %392 : vector<64xf32> to vector<64x1xf32>
    %394 = vector.broadcast %393 : vector<64x1xf32> to vector<64x64xf32>
    %395 = arith.subf %391, %394 : vector<64x64xf32>
    %396 = math.exp %395 : vector<64x64xf32>
    %cst_168 = arith.constant dense<0.000000e+00> : vector<64xf32>
    %397 = vector.multi_reduction <add>, %396, %cst_168 [1] : vector<64x64xf32> to vector<64xf32>
    %398 = vector.shape_cast %397 : vector<64xf32> to vector<64x1xf32>
    %399 = tpu.reciprocal %398 {approx = true} : vector<64x1xf32> -> vector<64x1xf32>
    %400 = vector.broadcast %399 : vector<64x1xf32> to vector<64x64xf32>
    %401 = arith.mulf %396, %400 : vector<64x64xf32>
    %cst_169 = arith.constant dense<0.000000e+00> : vector<64x8xf32>
    %402 = tpu.matmul %401, %390, %cst_169 {dimension_numbers = #tpu.dot_dimension_numbers<[1], [0], [0], [1], [0, 0, 1, 1], [], []>} : vector<64x64xf32>, vector<64x8xf32>, vector<64x8xf32> -> vector<64x8xf32>
    %403 = vector.extract_strided_slice %330 {offsets = [24, 0], sizes = [8, 32], strides = [1, 1]} : vector<32x32xf32> to vector<8x32xf32>
    %cst_170 = arith.constant dense<0.000000e+00> : vector<64x32xf32>
    %404 = tpu.matmul %402, %403, %cst_170 {dimension_numbers = #tpu.dot_dimension_numbers<[1], [0], [0], [1], [0, 0, 1, 1], [], []>} : vector<64x8xf32>, vector<8x32xf32>, vector<64x32xf32> -> vector<64x32xf32>
    %405 = arith.addf %387, %404 : vector<64x32xf32>
    %406 = vector.extract_strided_slice %328 {offsets = [64, 0], sizes = [64, 8], strides = [1, 1]} : vector<128x96xf32> to vector<64x8xf32>
    %407 = vector.extract_strided_slice %328 {offsets = [64, 32], sizes = [64, 8], strides = [1, 1]} : vector<128x96xf32> to vector<64x8xf32>
    %408 = vector.extract_strided_slice %328 {offsets = [64, 64], sizes = [64, 8], strides = [1, 1]} : vector<128x96xf32> to vector<64x8xf32>
    %cst_171 = arith.constant dense<0.000000e+00> : vector<64x64xf32>
    %409 = tpu.matmul %406, %407, %cst_171 {dimension_numbers = #tpu.dot_dimension_numbers<[1], [1], [0], [0], [0, 0, 1, 0], [], []>} : vector<64x8xf32>, vector<64x8xf32>, vector<64x64xf32> -> vector<64x64xf32>
    %cst_172 = arith.constant dense<0xFF800000> : vector<64xf32>
    %410 = vector.multi_reduction <maximumf>, %409, %cst_172 [1] : vector<64x64xf32> to vector<64xf32>
    %411 = vector.shape_cast %410 : vector<64xf32> to vector<64x1xf32>
    %412 = vector.broadcast %411 : vector<64x1xf32> to vector<64x64xf32>
    %413 = arith.subf %409, %412 : vector<64x64xf32>
    %414 = math.exp %413 : vector<64x64xf32>
    %cst_173 = arith.constant dense<0.000000e+00> : vector<64xf32>
    %415 = vector.multi_reduction <add>, %414, %cst_173 [1] : vector<64x64xf32> to vector<64xf32>
    %416 = vector.shape_cast %415 : vector<64xf32> to vector<64x1xf32>
    %417 = tpu.reciprocal %416 {approx = true} : vector<64x1xf32> -> vector<64x1xf32>
    %418 = vector.broadcast %417 : vector<64x1xf32> to vector<64x64xf32>
    %419 = arith.mulf %414, %418 : vector<64x64xf32>
    %cst_174 = arith.constant dense<0.000000e+00> : vector<64x8xf32>
    %420 = tpu.matmul %419, %408, %cst_174 {dimension_numbers = #tpu.dot_dimension_numbers<[1], [0], [0], [1], [0, 0, 1, 1], [], []>} : vector<64x64xf32>, vector<64x8xf32>, vector<64x8xf32> -> vector<64x8xf32>
    %421 = vector.extract_strided_slice %330 {offsets = [0, 0], sizes = [8, 32], strides = [1, 1]} : vector<32x32xf32> to vector<8x32xf32>
    %cst_175 = arith.constant dense<0.000000e+00> : vector<64x32xf32>
    %422 = tpu.matmul %420, %421, %cst_175 {dimension_numbers = #tpu.dot_dimension_numbers<[1], [0], [0], [1], [0, 0, 1, 1], [], []>} : vector<64x8xf32>, vector<8x32xf32>, vector<64x32xf32> -> vector<64x32xf32>
    %423 = arith.addf %333, %422 : vector<64x32xf32>
    %424 = vector.extract_strided_slice %328 {offsets = [64, 8], sizes = [64, 8], strides = [1, 1]} : vector<128x96xf32> to vector<64x8xf32>
    %425 = vector.extract_strided_slice %328 {offsets = [64, 40], sizes = [64, 8], strides = [1, 1]} : vector<128x96xf32> to vector<64x8xf32>
    %426 = vector.extract_strided_slice %328 {offsets = [64, 72], sizes = [64, 8], strides = [1, 1]} : vector<128x96xf32> to vector<64x8xf32>
    %cst_176 = arith.constant dense<0.000000e+00> : vector<64x64xf32>
    %427 = tpu.matmul %424, %425, %cst_176 {dimension_numbers = #tpu.dot_dimension_numbers<[1], [1], [0], [0], [0, 0, 1, 0], [], []>} : vector<64x8xf32>, vector<64x8xf32>, vector<64x64xf32> -> vector<64x64xf32>
    %cst_177 = arith.constant dense<0xFF800000> : vector<64xf32>
    %428 = vector.multi_reduction <maximumf>, %427, %cst_177 [1] : vector<64x64xf32> to vector<64xf32>
    %429 = vector.shape_cast %428 : vector<64xf32> to vector<64x1xf32>
    %430 = vector.broadcast %429 : vector<64x1xf32> to vector<64x64xf32>
    %431 = arith.subf %427, %430 : vector<64x64xf32>
    %432 = math.exp %431 : vector<64x64xf32>
    %cst_178 = arith.constant dense<0.000000e+00> : vector<64xf32>
    %433 = vector.multi_reduction <add>, %432, %cst_178 [1] : vector<64x64xf32> to vector<64xf32>
    %434 = vector.shape_cast %433 : vector<64xf32> to vector<64x1xf32>
    %435 = tpu.reciprocal %434 {approx = true} : vector<64x1xf32> -> vector<64x1xf32>
    %436 = vector.broadcast %435 : vector<64x1xf32> to vector<64x64xf32>
    %437 = arith.mulf %432, %436 : vector<64x64xf32>
    %cst_179 = arith.constant dense<0.000000e+00> : vector<64x8xf32>
    %438 = tpu.matmul %437, %426, %cst_179 {dimension_numbers = #tpu.dot_dimension_numbers<[1], [0], [0], [1], [0, 0, 1, 1], [], []>} : vector<64x64xf32>, vector<64x8xf32>, vector<64x8xf32> -> vector<64x8xf32>
    %439 = vector.extract_strided_slice %330 {offsets = [8, 0], sizes = [8, 32], strides = [1, 1]} : vector<32x32xf32> to vector<8x32xf32>
    %cst_180 = arith.constant dense<0.000000e+00> : vector<64x32xf32>
    %440 = tpu.matmul %438, %439, %cst_180 {dimension_numbers = #tpu.dot_dimension_numbers<[1], [0], [0], [1], [0, 0, 1, 1], [], []>} : vector<64x8xf32>, vector<8x32xf32>, vector<64x32xf32> -> vector<64x32xf32>
    %441 = arith.addf %423, %440 : vector<64x32xf32>
    %442 = vector.extract_strided_slice %328 {offsets = [64, 16], sizes = [64, 8], strides = [1, 1]} : vector<128x96xf32> to vector<64x8xf32>
    %443 = vector.extract_strided_slice %328 {offsets = [64, 48], sizes = [64, 8], strides = [1, 1]} : vector<128x96xf32> to vector<64x8xf32>
    %444 = vector.extract_strided_slice %328 {offsets = [64, 80], sizes = [64, 8], strides = [1, 1]} : vector<128x96xf32> to vector<64x8xf32>
    %cst_181 = arith.constant dense<0.000000e+00> : vector<64x64xf32>
    %445 = tpu.matmul %442, %443, %cst_181 {dimension_numbers = #tpu.dot_dimension_numbers<[1], [1], [0], [0], [0, 0, 1, 0], [], []>} : vector<64x8xf32>, vector<64x8xf32>, vector<64x64xf32> -> vector<64x64xf32>
    %cst_182 = arith.constant dense<0xFF800000> : vector<64xf32>
    %446 = vector.multi_reduction <maximumf>, %445, %cst_182 [1] : vector<64x64xf32> to vector<64xf32>
    %447 = vector.shape_cast %446 : vector<64xf32> to vector<64x1xf32>
    %448 = vector.broadcast %447 : vector<64x1xf32> to vector<64x64xf32>
    %449 = arith.subf %445, %448 : vector<64x64xf32>
    %450 = math.exp %449 : vector<64x64xf32>
    %cst_183 = arith.constant dense<0.000000e+00> : vector<64xf32>
    %451 = vector.multi_reduction <add>, %450, %cst_183 [1] : vector<64x64xf32> to vector<64xf32>
    %452 = vector.shape_cast %451 : vector<64xf32> to vector<64x1xf32>
    %453 = tpu.reciprocal %452 {approx = true} : vector<64x1xf32> -> vector<64x1xf32>
    %454 = vector.broadcast %453 : vector<64x1xf32> to vector<64x64xf32>
    %455 = arith.mulf %450, %454 : vector<64x64xf32>
    %cst_184 = arith.constant dense<0.000000e+00> : vector<64x8xf32>
    %456 = tpu.matmul %455, %444, %cst_184 {dimension_numbers = #tpu.dot_dimension_numbers<[1], [0], [0], [1], [0, 0, 1, 1], [], []>} : vector<64x64xf32>, vector<64x8xf32>, vector<64x8xf32> -> vector<64x8xf32>
    %457 = vector.extract_strided_slice %330 {offsets = [16, 0], sizes = [8, 32], strides = [1, 1]} : vector<32x32xf32> to vector<8x32xf32>
    %cst_185 = arith.constant dense<0.000000e+00> : vector<64x32xf32>
    %458 = tpu.matmul %456, %457, %cst_185 {dimension_numbers = #tpu.dot_dimension_numbers<[1], [0], [0], [1], [0, 0, 1, 1], [], []>} : vector<64x8xf32>, vector<8x32xf32>, vector<64x32xf32> -> vector<64x32xf32>
    %459 = arith.addf %441, %458 : vector<64x32xf32>
    %460 = vector.extract_strided_slice %328 {offsets = [64, 24], sizes = [64, 8], strides = [1, 1]} : vector<128x96xf32> to vector<64x8xf32>
    %461 = vector.extract_strided_slice %328 {offsets = [64, 56], sizes = [64, 8], strides = [1, 1]} : vector<128x96xf32> to vector<64x8xf32>
    %462 = vector.extract_strided_slice %328 {offsets = [64, 88], sizes = [64, 8], strides = [1, 1]} : vector<128x96xf32> to vector<64x8xf32>
    %cst_186 = arith.constant dense<0.000000e+00> : vector<64x64xf32>
    %463 = tpu.matmul %460, %461, %cst_186 {dimension_numbers = #tpu.dot_dimension_numbers<[1], [1], [0], [0], [0, 0, 1, 0], [], []>} : vector<64x8xf32>, vector<64x8xf32>, vector<64x64xf32> -> vector<64x64xf32>
    %cst_187 = arith.constant dense<0xFF800000> : vector<64xf32>
    %464 = vector.multi_reduction <maximumf>, %463, %cst_187 [1] : vector<64x64xf32> to vector<64xf32>
    %465 = vector.shape_cast %464 : vector<64xf32> to vector<64x1xf32>
    %466 = vector.broadcast %465 : vector<64x1xf32> to vector<64x64xf32>
    %467 = arith.subf %463, %466 : vector<64x64xf32>
    %468 = math.exp %467 : vector<64x64xf32>
    %cst_188 = arith.constant dense<0.000000e+00> : vector<64xf32>
    %469 = vector.multi_reduction <add>, %468, %cst_188 [1] : vector<64x64xf32> to vector<64xf32>
    %470 = vector.shape_cast %469 : vector<64xf32> to vector<64x1xf32>
    %471 = tpu.reciprocal %470 {approx = true} : vector<64x1xf32> -> vector<64x1xf32>
    %472 = vector.broadcast %471 : vector<64x1xf32> to vector<64x64xf32>
    %473 = arith.mulf %468, %472 : vector<64x64xf32>
    %cst_189 = arith.constant dense<0.000000e+00> : vector<64x8xf32>
    %474 = tpu.matmul %473, %462, %cst_189 {dimension_numbers = #tpu.dot_dimension_numbers<[1], [0], [0], [1], [0, 0, 1, 1], [], []>} : vector<64x64xf32>, vector<64x8xf32>, vector<64x8xf32> -> vector<64x8xf32>
    %475 = vector.extract_strided_slice %330 {offsets = [24, 0], sizes = [8, 32], strides = [1, 1]} : vector<32x32xf32> to vector<8x32xf32>
    %cst_190 = arith.constant dense<0.000000e+00> : vector<64x32xf32>
    %476 = tpu.matmul %474, %475, %cst_190 {dimension_numbers = #tpu.dot_dimension_numbers<[1], [0], [0], [1], [0, 0, 1, 1], [], []>} : vector<64x8xf32>, vector<8x32xf32>, vector<64x32xf32> -> vector<64x32xf32>
    %477 = arith.addf %459, %476 : vector<64x32xf32>
    %478 = tpu.concatenate %405, %477 in 0 : vector<64x32xf32>, vector<64x32xf32> -> vector<128x32xf32>
    %479 = arith.addf %319, %478 : vector<128x32xf32>
    %480 = vector.extract_strided_slice %321 {offsets = [1, 0], sizes = [1, 32], strides = [1, 1]} : vector<6x32xf32> to vector<1x32xf32>
    %481 = vector.extract_strided_slice %321 {offsets = [2, 0], sizes = [1, 32], strides = [1, 1]} : vector<6x32xf32> to vector<1x32xf32>
    %cst_191 = arith.constant dense<0.000000e+00> : vector<128xf32>
    %482 = vector.multi_reduction <add>, %479, %cst_191 [1] : vector<128x32xf32> to vector<128xf32>
    %483 = vector.shape_cast %482 : vector<128xf32> to vector<128x1xf32>
    %cst_192 = arith.constant 3.200000e+01 : f32
    %484 = vector.broadcast %cst_192 : f32 to vector<128x1xf32>
    %485 = arith.divf %483, %484 : vector<128x1xf32>
    %486 = vector.broadcast %485 : vector<128x1xf32> to vector<128x32xf32>
    %487 = arith.subf %479, %486 : vector<128x32xf32>
    %488 = arith.mulf %487, %487 : vector<128x32xf32>
    %cst_193 = arith.constant dense<0.000000e+00> : vector<128xf32>
    %489 = vector.multi_reduction <add>, %488, %cst_193 [1] : vector<128x32xf32> to vector<128xf32>
    %490 = vector.shape_cast %489 : vector<128xf32> to vector<128x1xf32>
    %cst_194 = arith.constant 3.200000e+01 : f32
    %491 = vector.broadcast %cst_194 : f32 to vector<128x1xf32>
    %492 = arith.divf %490, %491 : vector<128x1xf32>
    %493 = vector.broadcast %485 : vector<128x1xf32> to vector<128x32xf32>
    %494 = arith.subf %479, %493 : vector<128x32xf32>
    %cst_195 = arith.constant 9.99999974E-6 : f32
    %495 = vector.broadcast %cst_195 : f32 to vector<128x1xf32>
    %496 = arith.addf %492, %495 : vector<128x1xf32>
    %497 = math.rsqrt %496 : vector<128x1xf32>
    %498 = vector.broadcast %497 : vector<128x1xf32> to vector<128x32xf32>
    %499 = arith.mulf %494, %498 : vector<128x32xf32>
    %500 = vector.broadcast %480 : vector<1x32xf32> to vector<128x32xf32>
    %501 = arith.mulf %499, %500 : vector<128x32xf32>
    %502 = vector.broadcast %481 : vector<1x32xf32> to vector<128x32xf32>
    %503 = arith.addf %501, %502 : vector<128x32xf32>
    %c1_196 = arith.constant 1 : index
    %c0_197 = arith.constant 0 : index
    %c0_198 = arith.constant 0 : index
    %504 = vector.load %arg10[%c1_196, %c0_197, %c0_198] : memref<2x32x2xf32, #tpu.memory_space<vmem>>, vector<1x32x2xf32>
    %505 = vector.shape_cast %504 : vector<1x32x2xf32> to vector<32x2xf32>
    %cst_199 = arith.constant dense<0.000000e+00> : vector<128x2xf32>
    %506 = tpu.matmul %503, %505, %cst_199 {dimension_numbers = #tpu.dot_dimension_numbers<[1], [0], [0], [1], [0, 0, 1, 1], [], []>} : vector<128x32xf32>, vector<32x2xf32>, vector<128x2xf32> -> vector<128x2xf32>
    %c1_200 = arith.constant 1 : index
    %c0_201 = arith.constant 0 : index
    %c0_202 = arith.constant 0 : index
    %507 = vector.load %arg11[%c1_200, %c0_201, %c0_202] : memref<2x1x2xf32, #tpu.memory_space<vmem>>, vector<1x1x2xf32>
    %508 = vector.shape_cast %507 : vector<1x1x2xf32> to vector<1x2xf32>
    %509 = vector.broadcast %508 : vector<1x2xf32> to vector<128x2xf32>
    %510 = arith.addf %506, %509 : vector<128x2xf32>
    %cst_203 = arith.constant 0.000000e+00 : f32
    %511 = vector.broadcast %cst_203 : f32 to vector<128x2xf32>
    %512 = arith.maximumf %510, %511 : vector<128x2xf32>
    %c1_204 = arith.constant 1 : index
    %c0_205 = arith.constant 0 : index
    %c0_206 = arith.constant 0 : index
    %513 = vector.load %arg12[%c1_204, %c0_205, %c0_206] : memref<2x2x32xf32, #tpu.memory_space<vmem>>, vector<1x2x32xf32>
    %514 = vector.shape_cast %513 : vector<1x2x32xf32> to vector<2x32xf32>
    %cst_207 = arith.constant dense<0.000000e+00> : vector<128x32xf32>
    %515 = tpu.matmul %512, %514, %cst_207 {dimension_numbers = #tpu.dot_dimension_numbers<[1], [0], [0], [1], [0, 0, 1, 1], [], []>} : vector<128x2xf32>, vector<2x32xf32>, vector<128x32xf32> -> vector<128x32xf32>
    %516 = vector.extract_strided_slice %321 {offsets = [3, 0], sizes = [1, 32], strides = [1, 1]} : vector<6x32xf32> to vector<1x32xf32>
    %517 = vector.broadcast %516 : vector<1x32xf32> to vector<128x32xf32>
    %518 = arith.addf %515, %517 : vector<128x32xf32>
    %519 = arith.addf %503, %518 : vector<128x32xf32>
    %520 = vector.extract_strided_slice %321 {offsets = [4, 0], sizes = [1, 32], strides = [1, 1]} : vector<6x32xf32> to vector<1x32xf32>
    %521 = vector.extract_strided_slice %321 {offsets = [5, 0], sizes = [1, 32], strides = [1, 1]} : vector<6x32xf32> to vector<1x32xf32>
    %cst_208 = arith.constant dense<0.000000e+00> : vector<128xf32>
    %522 = vector.multi_reduction <add>, %519, %cst_208 [1] : vector<128x32xf32> to vector<128xf32>
    %523 = vector.shape_cast %522 : vector<128xf32> to vector<128x1xf32>
    %cst_209 = arith.constant 3.200000e+01 : f32
    %524 = vector.broadcast %cst_209 : f32 to vector<128x1xf32>
    %525 = arith.divf %523, %524 : vector<128x1xf32>
    %526 = vector.broadcast %525 : vector<128x1xf32> to vector<128x32xf32>
    %527 = arith.subf %519, %526 : vector<128x32xf32>
    %528 = arith.mulf %527, %527 : vector<128x32xf32>
    %cst_210 = arith.constant dense<0.000000e+00> : vector<128xf32>
    %529 = vector.multi_reduction <add>, %528, %cst_210 [1] : vector<128x32xf32> to vector<128xf32>
    %530 = vector.shape_cast %529 : vector<128xf32> to vector<128x1xf32>
    %cst_211 = arith.constant 3.200000e+01 : f32
    %531 = vector.broadcast %cst_211 : f32 to vector<128x1xf32>
    %532 = arith.divf %530, %531 : vector<128x1xf32>
    %533 = vector.broadcast %525 : vector<128x1xf32> to vector<128x32xf32>
    %534 = arith.subf %519, %533 : vector<128x32xf32>
    %cst_212 = arith.constant 9.99999974E-6 : f32
    %535 = vector.broadcast %cst_212 : f32 to vector<128x1xf32>
    %536 = arith.addf %532, %535 : vector<128x1xf32>
    %537 = math.rsqrt %536 : vector<128x1xf32>
    %538 = vector.broadcast %537 : vector<128x1xf32> to vector<128x32xf32>
    %539 = arith.mulf %534, %538 : vector<128x32xf32>
    %540 = vector.broadcast %520 : vector<1x32xf32> to vector<128x32xf32>
    %541 = arith.mulf %539, %540 : vector<128x32xf32>
    %542 = vector.broadcast %521 : vector<1x32xf32> to vector<128x32xf32>
    %543 = arith.addf %541, %542 : vector<128x32xf32>
    %c0_213 = arith.constant 0 : index
    %c0_214 = arith.constant 0 : index
    %544 = vector.load %arg14[%c0_213, %c0_214] : memref<2x128xf32, #tpu.memory_space<vmem>>, vector<2x128xf32>
    %cst_215 = arith.constant dense<0.000000e+00> : vector<2x32xf32>
    %545 = tpu.matmul %544, %543, %cst_215 {dimension_numbers = #tpu.dot_dimension_numbers<[1], [0], [0], [1], [0, 0, 1, 1], [], []>} : vector<2x128xf32>, vector<128x32xf32>, vector<2x32xf32> -> vector<2x32xf32>
    %c0_216 = arith.constant 0 : index
    %c0_217 = arith.constant 0 : index
    %546 = vector.load %arg15[%c0_216, %c0_217] : memref<32x8xf32, #tpu.memory_space<vmem>>, vector<32x8xf32>
    %cst_218 = arith.constant dense<0.000000e+00> : vector<2x8xf32>
    %547 = tpu.matmul %545, %546, %cst_218 {dimension_numbers = #tpu.dot_dimension_numbers<[1], [0], [0], [1], [0, 0, 1, 1], [], []>} : vector<2x32xf32>, vector<32x8xf32>, vector<2x8xf32> -> vector<2x8xf32>
    %c0_219 = arith.constant 0 : index
    %c0_220 = arith.constant 0 : index
    %548 = vector.load %arg16[%c0_219, %c0_220] : memref<1x8xf32, #tpu.memory_space<vmem>>, vector<1x8xf32>
    %549 = vector.broadcast %548 : vector<1x8xf32> to vector<2x8xf32>
    %550 = arith.addf %547, %549 : vector<2x8xf32>
    %cst_221 = arith.constant 0.000000e+00 : f32
    %551 = vector.broadcast %cst_221 : f32 to vector<2x8xf32>
    %552 = arith.maximumf %550, %551 : vector<2x8xf32>
    %c0_222 = arith.constant 0 : index
    %c0_223 = arith.constant 0 : index
    %553 = vector.load %arg17[%c0_222, %c0_223] : memref<9x128xf32, #tpu.memory_space<vmem>>, vector<8x128xf32>
    %cst_224 = arith.constant dense<0.000000e+00> : vector<2x128xf32>
    %554 = tpu.matmul %552, %553, %cst_224 {dimension_numbers = #tpu.dot_dimension_numbers<[1], [0], [0], [1], [0, 0, 1, 1], [], []>} : vector<2x8xf32>, vector<8x128xf32>, vector<2x128xf32> -> vector<2x128xf32>
    %c8_225 = arith.constant 8 : index
    %c0_226 = arith.constant 0 : index
    %555 = vector.load %arg17[%c8_225, %c0_226] : memref<9x128xf32, #tpu.memory_space<vmem>>, vector<1x128xf32>
    %556 = vector.broadcast %555 : vector<1x128xf32> to vector<2x128xf32>
    %557 = arith.addf %554, %556 : vector<2x128xf32>
    %c0_227 = arith.constant 0 : index
    %c0_228 = arith.constant 0 : index
    %558 = vector.load %arg18[%c0_227, %c0_228] : memref<2x128xf32, #tpu.memory_space<vmem>>, vector<2x128xf32>
    tpu.vector_store %arg18[%c0_227, %c0_228], %557 {strides = array<i32>} : memref<2x128xf32, #tpu.memory_space<vmem>>, vector<2x128xf32>,
    return
  }
  func.func @transform_0(%arg0: i32) -> (i32, i32) {
    %c0_i32 = arith.constant 0 : i32
    %c0_i32_0 = arith.constant 0 : i32
    %c0_i32_1 = arith.constant 0 : i32
    return %c0_i32, %c0_i32_0 : i32, i32
  }
  func.func @transform_1(%arg0: i32) -> (i32, i32) {
    %c0_i32 = arith.constant 0 : i32
    %c0_i32_0 = arith.constant 0 : i32
    %c0_i32_1 = arith.constant 0 : i32
    return %c0_i32, %c0_i32_0 : i32, i32
  }
  func.func @transform_2(%arg0: i32) -> (i32, i32) {
    %c0_i32 = arith.constant 0 : i32
    %c0_i32_0 = arith.constant 0 : i32
    %c0_i32_1 = arith.constant 0 : i32
    return %c0_i32, %c0_i32_0 : i32, i32
  }
  func.func @transform_3(%arg0: i32) -> (i32, i32, i32) {
    %c0_i32 = arith.constant 0 : i32
    %c0_i32_0 = arith.constant 0 : i32
    %c0_i32_1 = arith.constant 0 : i32
    %c0_i32_2 = arith.constant 0 : i32
    return %c0_i32, %c0_i32_0, %c0_i32_1 : i32, i32, i32
  }
  func.func @transform_4(%arg0: i32) -> (i32, i32) {
    %c0_i32 = arith.constant 0 : i32
    %c0_i32_0 = arith.constant 0 : i32
    %c0_i32_1 = arith.constant 0 : i32
    return %c0_i32, %c0_i32_0 : i32, i32
  }
  func.func @transform_5(%arg0: i32) -> (i32, i32) {
    %c0_i32 = arith.constant 0 : i32
    %c0_i32_0 = arith.constant 0 : i32
    %c0_i32_1 = arith.constant 0 : i32
    return %c0_i32, %c0_i32_0 : i32, i32
  }
  func.func @transform_6(%arg0: i32) -> (i32, i32, i32) {
    %c0_i32 = arith.constant 0 : i32
    %c0_i32_0 = arith.constant 0 : i32
    %c0_i32_1 = arith.constant 0 : i32
    %c0_i32_2 = arith.constant 0 : i32
    return %c0_i32, %c0_i32_0, %c0_i32_1 : i32, i32, i32
  }
  func.func @transform_7(%arg0: i32) -> (i32, i32, i32) {
    %c0_i32 = arith.constant 0 : i32
    %c0_i32_0 = arith.constant 0 : i32
    %c0_i32_1 = arith.constant 0 : i32
    %c0_i32_2 = arith.constant 0 : i32
    return %c0_i32, %c0_i32_0, %c0_i32_1 : i32, i32, i32
  }
  func.func @transform_8(%arg0: i32) -> (i32, i32, i32) {
    %c0_i32 = arith.constant 0 : i32
    %c0_i32_0 = arith.constant 0 : i32
    %c0_i32_1 = arith.constant 0 : i32
    %c0_i32_2 = arith.constant 0 : i32
    return %c0_i32, %c0_i32_0, %c0_i32_1 : i32, i32, i32
  }
  func.func @transform_9(%arg0: i32) -> (i32, i32, i32) {
    %c0_i32 = arith.constant 0 : i32
    %c0_i32_0 = arith.constant 0 : i32
    %c0_i32_1 = arith.constant 0 : i32
    %c0_i32_2 = arith.constant 0 : i32
    return %c0_i32, %c0_i32_0, %c0_i32_1 : i32, i32, i32
  }
  func.func @transform_10(%arg0: i32) -> (i32, i32, i32) {
    %c0_i32 = arith.constant 0 : i32
    %c0_i32_0 = arith.constant 0 : i32
    %c0_i32_1 = arith.constant 0 : i32
    %c0_i32_2 = arith.constant 0 : i32
    return %c0_i32, %c0_i32_0, %c0_i32_1 : i32, i32, i32
  }
  func.func @transform_11(%arg0: i32) -> (i32, i32, i32) {
    %c0_i32 = arith.constant 0 : i32
    %c0_i32_0 = arith.constant 0 : i32
    %c0_i32_1 = arith.constant 0 : i32
    %c0_i32_2 = arith.constant 0 : i32
    return %c0_i32, %c0_i32_0, %c0_i32_1 : i32, i32, i32
  }
  func.func @transform_12(%arg0: i32) -> (i32, i32, i32) {
    %c0_i32 = arith.constant 0 : i32
    %c0_i32_0 = arith.constant 0 : i32
    %c0_i32_1 = arith.constant 0 : i32
    %c0_i32_2 = arith.constant 0 : i32
    return %c0_i32, %c0_i32_0, %c0_i32_1 : i32, i32, i32
  }
  func.func @transform_13(%arg0: i32) -> (i32, i32) {
    %c0_i32 = arith.constant 0 : i32
    %c0_i32_0 = arith.constant 0 : i32
    %c0_i32_1 = arith.constant 0 : i32
    return %c0_i32, %c0_i32_0 : i32, i32
  }
  func.func @transform_14(%arg0: i32) -> (i32, i32) {
    %c0_i32 = arith.constant 0 : i32
    %c0_i32_0 = arith.constant 0 : i32
    %c0_i32_1 = arith.constant 0 : i32
    return %c0_i32, %c0_i32_0 : i32, i32
  }
  func.func @transform_15(%arg0: i32) -> (i32, i32) {
    %c0_i32 = arith.constant 0 : i32
    %c0_i32_0 = arith.constant 0 : i32
    %c0_i32_1 = arith.constant 0 : i32
    return %c0_i32, %c0_i32_0 : i32, i32
  }
  func.func @transform_16(%arg0: i32) -> (i32, i32) {
    %c0_i32 = arith.constant 0 : i32
    %c0_i32_0 = arith.constant 0 : i32
    %c0_i32_1 = arith.constant 0 : i32
    return %c0_i32, %c0_i32_0 : i32, i32
  }
  func.func @transform_17(%arg0: i32) -> (i32, i32) {
    %c0_i32 = arith.constant 0 : i32
    %c0_i32_0 = arith.constant 0 : i32
    %c0_i32_1 = arith.constant 0 : i32
    return %c0_i32, %c0_i32_0 : i32, i32
  }
}

</mosaic_0001>

<bundles_post_ra>
// kernel: tpu_custom_call.1
= control target key start
LH: loop header
LB: loop body
LE: loop exit
PB: predicated region body
PF: predicated region fallthrough
CT: control target
= control target key end

     0   :  { %s22725_s0 = inlined_call_operand.vmem [shape: f32[176,128], index: 0, kind: input, shape index: {}]   ;;  %s22726_s1 = inlined_call_operand.vmem [shape: f32[16,176], index: 1, kind: input, shape index: {}]   ;;  %s22727_s2 = inlined_call_operand.vmem [shape: f32[16,1], index: 2, kind: input, shape index: {}]   ;;  %s22728_s3 = inlined_call_operand.vmem [shape: f32[11,32,16], index: 3, kind: input, shape index: {}]   ;;  %s22729_s4 = inlined_call_operand.vmem [shape: f32[11,128], index: 4, kind: input, shape index: {}]   ;;  %s22730_s5 = inlined_call_operand.vmem [shape: f32[128,32], index: 5, kind: input, shape index: {}]   ;;  %s22731_s6 = inlined_call_operand.vmem [shape: f32[2,32,96], index: 6, kind: input, shape index: {}]   ;;  %s22732_s7 = inlined_call_operand.vmem [shape: f32[2,1,96], index: 7, kind: input, shape index: {}]   ;;  %s22733_s8 = inlined_call_operand.vmem [shape: f32[2,32,32], index: 8, kind: input, shape index: {}]   ;;  %s22734_s9 = inlined_call_operand.vmem [shape: f32[2,32,2], index: 9, kind: input, shape index: {}]   ;;  %s22735_s10 = inlined_call_operand.vmem [shape: f32[2,1,2], index: 10, kind: input, shape index: {}]   ;;  %s22736_s11 = inlined_call_operand.vmem [shape: f32[2,2,32], index: 11, kind: input, shape index: {}]   ;;  %s22737_s12 = inlined_call_operand.vmem [shape: f32[2,6,32], index: 12, kind: input, shape index: {}]   ;;  %s22738_s13 = inlined_call_operand.vmem [shape: f32[2,128], index: 13, kind: input, shape index: {}]   ;;  %s22739_s14 = inlined_call_operand.vmem [shape: f32[32,8], index: 14, kind: input, shape index: {}]   ;;  %s22740_s15 = inlined_call_operand.vmem [shape: f32[1,8], index: 15, kind: input, shape index: {}]   ;;  %s22741_s16 = inlined_call_operand.vmem [shape: f32[9,128], index: 16, kind: input, shape index: {}]   ;;  %s22742_s17 = inlined_call_operand.hbm [shape: f32[2,128], index: 17, kind: output, shape index: {}]  }
   0x1   :  { %22766 = sst [smem:[#allocation12_spill]] %s22725_s0 }
   0x2   :  { %22767 = sst [smem:[#allocation13_spill]] %s22726_s1 }
   0x3   :  { %s22768_s26 = sld [smem:[#allocation12_spill]]  ;;  %v22745_v3 = vmov 0.0|0.0   ;;  %v18160_v6 = vmov 0   ;;  %vm95_vm0 = vcmask 392192   ;;  %s22769_s24 = sld [smem:[#allocation13_spill]]  ;;  %v83_v14 = vld [vmem:[%s22727_s2] sm:$0xff] }
   0x4   :  { %15869 = vmatprep.subr.bf16.mxu0 %v22745_v3  ;;  %16842 = vset.pattern.permute.xlu0 %v18160_v6 }
   0x5   :  { %87 = vperm.xlu0 %16842, %v83_v14  }
   0x9   :  { %v61_v0 = vld [vmem:[%s22768_s26] sm:$0xff]  ;;  %v62_v1 = vld [vmem:[%s22768_s26 + $0x8] sm:$0xff]  ;;  %v63_v2 = vld [vmem:[%s22768_s26 + $0x10] sm:$0xff] }
   0xa   :  { %v15870_v4 = vpack.c.bf16 %v62_v1, %v61_v0  ;;  %v64_v5 = vld [vmem:[%s22768_s26 + $0x18] sm:$0xff]  ;;  %v65_v8 = vld [vmem:[%s22768_s26 + $0x20] sm:$0xff]  ;;  %v66_v9 = vld [vmem:[%s22768_s26 + $0x28] sm:$0xff] }
   0xb   :  { %v15873_v7 = vpack.c.bf16 %v64_v5, %v63_v2  ;;  %v15876_v10 = vpack.c.bf16 %v66_v9, %v65_v8  ;;  %v58_v11 = vld [vmem:[%s22769_s24 + $0x8] sm:$0xff]  ;;  %v67_v12 = vld [vmem:[%s22768_s26 + $0x30] sm:$0xff]  ;;  %v68_v13 = vld [vmem:[%s22768_s26 + $0x38] sm:$0xff] }
   0xc   :  { %15871 = vmatpush1.bf16.msra.mxu0 %v15870_v4  ;;  %12818 = vmatprep.mubr.msk.f32.mxu0 %vm95_vm0, %v58_v11 }
   0xd   :  { %15872 = vmatprep.subr.bf16.mxu0 %v22745_v3 }
  0x10   :  { %15874 = vmatpush1.bf16.msra.mxu0 %v15873_v7 }
  0x11   :  { %15875 = vmatprep.subr.bf16.mxu0 %v22745_v3 }
  0x12   :  { %22 = vsyncpa [#allocation3], 0  ;;  %v84_v15 = vld [vmem:[%s22727_s2 + $0x8] sm:$0xff]  ;;  %v15879_v16 = vpack.c.bf16 %v68_v13, %v67_v12  ;;  %v69_v17 = vld [vmem:[%s22768_s26 + $0x40] sm:$0xff]  ;;  %vm210_vm1 = vcmask 130048   ;;  %s18161_s27 = smov 5  }
  0x13   :  { %v70_v18 = vld [vmem:[%s22768_s26 + $0x48] sm:$0xff]  ;;  %92 = vperm.xlu0 %16842, %v84_v15   ;;  %v71_v20 = vld [vmem:[%s22768_s26 + $0x50] sm:$0xff]  ;;  %v72_v21 = vld [vmem:[%s22768_s26 + $0x58] sm:$0xff]  ;;  %s18163_s28 = smov 3   ;;  %s18164_s29 = smov 2   ;;  %vm1523_vm2 = vcmask 261120  }
  0x14   :  { %15877 = vmatpush1.bf16.msra.mxu0 %v15876_v10  ;;  %v15882_v19 = vpack.c.bf16 %v70_v18, %v69_v17  ;;  %v15885_v22 = vpack.c.bf16 %v72_v21, %v71_v20  ;;  %v73_v23 = vld [vmem:[%s22768_s26 + $0x60] sm:$0xff]  ;;  %v74_v24 = vld [vmem:[%s22768_s26 + $0x68] sm:$0xff]  ;;  %v75_v26 = vld [vmem:[%s22768_s26 + $0x70] sm:$0xff]  ;;  %s18165_s0 = smov 1   ;;  %s18166_s30 = smov 127   ;;  %vm1749_vm3 = vcmask 64512  }
  0x15   :  { %15878 = vmatprep.subr.bf16.mxu0 %v22745_v3  ;;  %v15888_v25 = vpack.c.bf16 %v74_v24, %v73_v23  ;;  %v76_v27 = vld [vmem:[%s22768_s26 + $0x78] sm:$0xff]  ;;  %v77_v29 = vld [vmem:[%s22768_s26 + $0x80] sm:$0xff]  ;;  %v78_v30 = vld [vmem:[%s22768_s26 + $0x88] sm:$0xff]  ;;  %s18167_s18 = smov 126   ;;  %s18168_s19 = smov 125   ;;  %vm1887_vm5 = vcmask 523264  }
  0x16   :  { %v15891_v28 = vpack.c.bf16 %v76_v27, %v75_v26  ;;  %v15894_v31 = vpack.c.bf16 %v78_v30, %v77_v29  ;;  %v79_v32 = vld [vmem:[%s22768_s26 + $0x90] sm:$0xff]  ;;  %v80_v33 = vld [vmem:[%s22768_s26 + $0x98] sm:$0xff]  ;;  %v81_v35 = vld [vmem:[%s22768_s26 + $0xa0] sm:$0xff]  ;;  %s18169_s1 = smov 124   ;;  %s18170_s20 = smov 123   ;;  %vm6626_vm6 = vcmask 1041408  }
  0x17   :  { %v15897_v34 = vpack.c.bf16 %v80_v33, %v79_v32  ;;  %v82_v36 = vld [vmem:[%s22768_s26 + $0xa8] sm:$0xff]  ;;  %v57_v38 = vld [vmem:[%s22769_s24] sm:$0xff]  ;;  %v60_v39 = vld [vmem:[%s22769_s24 + $0x18] sm:$0xff]  ;;  %s18173_s21 = smov 88   ;;  %s18174_s22 = smov 120   ;;  %vm6577_vm7 = vcmask 15360  }
  0x18   :  { %15880 = vmatpush1.bf16.msra.mxu0 %v15879_v16  ;;  %v15900_v37 = vpack.c.bf16 %v82_v36, %v81_v35  ;;  %v59_v40 = vld [vmem:[%s22769_s24 + $0x10] sm:$0xff]  ;;  %v12822_v45 = vld [vmem:[%s22728_s3 + $0x20] sm:$0xff]  ;;  %s18162_s24 = smov 4   ;;  %v12823_v2 = vld [vmem:[%s22728_s3 + $0x28] sm:$0xff]  ;;  %s18175_s23 = smov 56   ;;  %vm18182_vm8 = vmmov 0  }
  0x19   :  { %15881 = vmatprep.subr.bf16.mxu0 %v22745_v3  ;;  %14412 = vmatprep.mubr.msk.f32.mxu1 %vm210_vm1, %v12822_v45  ;;  %v12821_v55 = vld [vmem:[%s22729_s4 + $0x1] ss:$0 sm:$0xff]  ;;  %v12820_v59 = vld [vmem:[%s22729_s4] ss:$0 sm:$0xff]  ;;  %v12834_v1 = vld [vmem:[%s22729_s4 + $0x2] ss:$0 sm:$0xff] }
  0x1a   :  { %v12824_v5 = vld [vmem:[%s22728_s3 + $0x30] sm:$0xff]  ;;  %v12843_v9 = vld [vmem:[%s22729_s4 + $0x3] ss:$0 sm:$0xff]  ;;  %v12825_v11 = vld [vmem:[%s22728_s3 + $0x38] sm:$0xff]  ;;  %s18176_s25 = smov 80   ;;  %s18177_s26 = smov 112  }
  0x1b   :  { %v190_v13 = vld [vmem:[%s22728_s3] sm:$0xff]  ;;  %v191_v17 = vld [vmem:[%s22728_s3 + $0x8] sm:$0xff]  ;;  %v193_v21 = vld [vmem:[%s22728_s3 + $0x18] sm:$0xff]  ;;  %s18178_s2 = smov 72  }
  0x1c   :  { %15883 = vmatpush1.bf16.msra.mxu0 %v15882_v19  ;;  %v192_v19 = vld [vmem:[%s22728_s3 + $0x10] sm:$0xff]  ;;  %v12852_v23 = vld [vmem:[%s22729_s4 + $0x4] ss:$0 sm:$0xff]  ;;  %v12836_v26 = vld [vmem:[%s22728_s3 + $0x48] sm:$0xff] }
  0x1d   :  { %15884 = vmatprep.subr.bf16.mxu0 %v22745_v3  ;;  %v12838_v30 = vld [vmem:[%s22728_s3 + $0x58] sm:$0xff]  ;;  %v12845_v32 = vld [vmem:[%s22728_s3 + $0x68] sm:$0xff]  ;;  %v12846_v33 = vld [vmem:[%s22728_s3 + $0x70] sm:$0xff] }
  0x1e   :  { %v12847_v35 = vld [vmem:[%s22728_s3 + $0x78] sm:$0xff]  ;;  %v12853_v36 = vld [vmem:[%s22728_s3 + $0x80] sm:$0xff]  ;;  %vm18771_vm4 = vmpackc.low %vm1749_vm3, %vm1749_vm3 }
  0x1f   :  { %v12856_v45 = vld [vmem:[%s22728_s3 + $0x98] sm:$0xff] }
  0x20   :  { %15886 = vmatpush1.bf16.msra.mxu0 %v15885_v22  ;;  %v12835_v22 = vld [vmem:[%s22728_s3 + $0x40] sm:$0xff] }
  0x21   :  { %15887 = vmatprep.subr.bf16.mxu0 %v22745_v3 }
  0x24   :  { %15889 = vmatpush1.bf16.msra.mxu0 %v15888_v25 }
  0x25   :  { %15890 = vmatprep.subr.bf16.mxu0 %v22745_v3 }
  0x28   :  { %15892 = vmatpush1.bf16.msra.mxu0 %v15891_v28  ;;  %v12837_v28 = vld [vmem:[%s22728_s3 + $0x50] sm:$0xff] }
  0x29   :  { %15893 = vmatprep.subr.bf16.mxu0 %v22745_v3 }
  0x2c   :  { %15895 = vmatpush1.bf16.msra.mxu0 %v15894_v31  ;;  %v12844_v31 = vld [vmem:[%s22728_s3 + $0x60] sm:$0xff] }
  0x2d   :  { %15896 = vmatprep.subr.bf16.mxu0 %v22745_v3 }
  0x30   :  { %15898 = vmatpush1.bf16.msra.mxu0 %v15897_v34 }
  0x31   :  { %15899 = vmatprep.subr.bf16.mxu0 %v22745_v3 }
  0x34   :  { %15901 = vmatpush1.bf16.msra.mxu0 %v15900_v37  ;;  %v12869_v37 = vld [vmem:[%s22729_s4 + $0x6] ss:$0 sm:$0xff] }
  0x37   :  { %167 = vmatmul.mubr.f32.vlgmr.msra.gmra.mrb[0].mxu0 %v57_v38 }
  0x38   :  { %12819 = vmatprep.mubr.msk.f32.mxu0 %vm95_vm0, %v60_v39 }
  0x3b   :  { %172 = vmatmul.mubr.f32.gmra.mrb[2].mxu0 %v59_v40  ;;  %v12854_v40 = vld [vmem:[%s22728_s3 + $0x88] sm:$0xff] }
  0x84   :  { %v88_v41 = vpop.permute.xlu0 %87 }
  0x92   :  { %v93_v47 = vpop.permute.xlu0 %92 }
 0x10a   :  { %v168_v42 = vpop.f32.mrb[0].mxu0 }
 0x10b   :  { %v169_v43 = vadd.f32 %v168_v42, %v88_v41  ;;  %v170_v44 = vpop.f32.mrb[1].mxu0  ;;  %v12855_v42 = vld [vmem:[%s22728_s3 + $0x90] sm:$0xff] }
 0x10d   :  { %v177_v46 = vmax.f32 %v169_v43, 0.0 }
 0x10e   :  { %v173_v48 = vpop.f32.mrb[2].mxu0 }
 0x10f   :  { %v174_v49 = vadd.f32 %v173_v48, %v93_v47  ;;  %v175_v50 = vpop.f32.mrb[3].mxu0  ;;  %179 = vrot.lane.b32.xlu0 %v177_v46, %s18161_s27  ;;  %194 = vrot.lane.b32.xlu1 %v177_v46, %s18162_s24  ;;  %v12878_v47 = vld [vmem:[%s22729_s4 + $0x7] ss:$0 sm:$0xff] }
 0x110   :  { %v12862_v50 = vld [vmem:[%s22728_s3 + $0xa8] sm:$0xff] }
 0x111   :  { %v178_v51 = vmax.f32 %v174_v49, 0.0 }
 0x113   :  { %405 = vrot.lane.b32.xlu0 %v177_v46, %s18163_s28  ;;  %196 = vrot.lane.b32.xlu1 %v178_v51, %s18162_s24  ;;  %v18376_v52 = vpack.c.bf16 %v178_v51, %v177_v46 }
 0x117   :  { %522 = vrot.lane.b32.xlu0 %v177_v46, %s18164_s29  ;;  %181 = vrot.lane.b32.xlu1 %v178_v51, %s18161_s27  ;;  %s18179_s27 = smov 104  }
 0x11b   :  { %639 = vrot.lane.b32.xlu0 %v177_v46, %s18165_s0  ;;  %407 = vrot.lane.b32.xlu1 %v178_v51, %s18163_s28 }
 0x11f   :  { %862 = vrot.lane.b32.xlu0 %v177_v46, %s18166_s30  ;;  %524 = vrot.lane.b32.xlu1 %v178_v51, %s18164_s29 }
 0x123   :  { %979 = vrot.lane.b32.xlu0 %v177_v46, %s18167_s18  ;;  %641 = vrot.lane.b32.xlu1 %v178_v51, %s18165_s0  ;;  %s18180_s0 = smov 48  }
 0x127   :  { %1096 = vrot.lane.b32.xlu0 %v177_v46, %s18168_s19  ;;  %864 = vrot.lane.b32.xlu1 %v178_v51, %s18166_s30  ;;  %s18181_s30 = smov 40  }
 0x12b   :  { %1213 = vrot.lane.b32.xlu0 %v177_v46, %s18169_s1  ;;  %981 = vrot.lane.b32.xlu1 %v178_v51, %s18167_s18 }
 0x12f   :  { %1330 = vrot.lane.b32.xlu0 %v177_v46, %s18170_s20  ;;  %1098 = vrot.lane.b32.xlu1 %v178_v51, %s18168_s19  ;;  %v12861_v46 = vld [vmem:[%s22728_s3 + $0xa0] sm:$0xff] }
 0x133   :  { %1215 = vrot.lane.b32.xlu1 %v178_v51, %s18169_s1 }
 0x137   :  { %1332 = vrot.lane.b32.xlu1 %v178_v51, %s18170_s20 }
 0x181   :  { %v195_v53 = vpop.permute.xlu1 %194  ;;  %v180_v54 = vpop.permute.xlu0 %179 }
 0x182   :  { %v203_v57 = vmul.f32 %v12821_v55, %v195_v53  ;;  %v188_v63 = vmul.f32 %v12820_v59, %v180_v54 }
 0x185   :  { %v197_v56 = vpop.permute.xlu1 %196  ;;  %v406_v61 = vpop.permute.xlu0 %405 }
 0x186   :  { %v204_v58 = vmul.f32 %v12821_v55, %v197_v56  ;;  %v414_v7 = vmul.f32 %v12834_v1, %v406_v61  ;;  %v12864_v55 = vld [vmem:[%s22728_s3 + $0xb8] sm:$0xff]  ;;  %v12870_v56 = vld [vmem:[%s22728_s3 + $0xc0] sm:$0xff] }
 0x188   :  { %v15902_v60 = vpack.c.bf16 %v204_v58, %v203_v57  ;;  %v12887_v57 = vld [vmem:[%s22729_s4 + $0x8] ss:$0 sm:$0xff] }
 0x189   :  { %v182_v62 = vpop.permute.xlu1 %181  ;;  %v523_v10 = vpop.permute.xlu0 %522 }
 0x18a   :  { %v189_v0 = vmul.f32 %v12820_v59, %v182_v62  ;;  %15903 = vmatprep.subr.bf16.mxu1 %v15902_v60  ;;  %v531_v15 = vmul.f32 %v12843_v9, %v523_v10  ;;  %v12872_v62 = vld [vmem:[%s22728_s3 + $0xd0] sm:$0xff] }
 0x18b   :  { %15905 = vmatpush3.bf16.msra.mxu1 %v15902_v60  ;;  %v12871_v60 = vld [vmem:[%s22728_s3 + $0xc8] sm:$0xff] }
 0x18c   :  { %v15906_v4 = vpack.c.bf16 %v189_v0, %v188_v63 }
 0x18d   :  { %v408_v6 = vpop.permute.xlu1 %407  ;;  %v640_v24 = vpop.permute.xlu0 %639 }
 0x18e   :  { %v415_v8 = vmul.f32 %v12834_v1, %v408_v6  ;;  %14413 = vmatmul.mubr.msk.f32.vlgmr.msra.gmra.mrb[0].mxu1 %vm210_vm1, %v12823_v2  ;;  %15907 = vmatprep.subr.bf16.mxu1 %v15906_v4  ;;  %v648_v27 = vmul.f32 %v12852_v23, %v640_v24  ;;  %v12873_v1 = vld [vmem:[%s22728_s3 + $0xd8] sm:$0xff]  ;;  %v12879_v2 = vld [vmem:[%s22728_s3 + $0xe0] sm:$0xff]  ;;  %v12899_v24 = vld [vmem:[%s22728_s3 + $0x130] sm:$0xff] }
 0x18f   :  { %15909 = vmatpush3.bf16.msra.mxu1 %v15906_v4  ;;  %14415 = vmatprep.mubr.msk.f32.mxu1 %vm210_vm1, %v12824_v5  ;;  %v12896_v4 = vld [vmem:[%s22729_s4 + $0x9] ss:$0 sm:$0xff] }
 0x190   :  { %v15910_v12 = vpack.c.bf16 %v415_v8, %v414_v7  ;;  %v12880_v7 = vld [vmem:[%s22728_s3 + $0xe8] sm:$0xff] }
 0x191   :  { %v525_v14 = vpop.permute.xlu1 %524  ;;  %v863_v38 = vpop.permute.xlu0 %862 }
 0x192   :  { %v532_v16 = vmul.f32 %v12843_v9, %v525_v14  ;;  %14416 = vmatmul.mubr.msk.f32.gmra.mrb[2].mxu1 %vm210_vm1, %v12825_v11  ;;  %15911 = vmatprep.subr.bf16.mxu1 %v15910_v12  ;;  %v871_v41 = vmul.f32 %v12869_v37, %v863_v38  ;;  %v12881_v9 = vld [vmem:[%s22728_s3 + $0xf0] sm:$0xff]  ;;  %v12905_v14 = vld [vmem:[%s22729_s4 + $0xa] ss:$0 sm:$0xff]  ;;  %s18184_s4 = smov [#allocation2]  }
 0x193   :  { %14422 = vmatprep.mubr.msk.f32.mxu1 %vm210_vm1, %v190_v13  ;;  %v12888_v13 = vld [vmem:[%s22728_s3 + $0x100] sm:$0xff]  ;;  %s12810_s28 = sshll.u32 %s18184_s4, 4  ;;  %s12811_s28 = int_to_ptr.vmem [resolvable:$true] %s12810_s28 }
 0x194   :  { %v15914_v18 = vpack.c.bf16 %v532_v16, %v531_v15  ;;  %s18135_s29 = scalar_lea.vmem %s12811_s28, 32  ;;  %p18140_p1 = scmp.lt.s32.totalorder %s12811_s28, %s12811_s28 }
 0x195   :  { %v642_v20 = vpop.permute.xlu1 %641  ;;  %v980_v48 = vpop.permute.xlu0 %979  ;;  %p18136_p0 = scmp.ne.s32.totalorder %s12811_s28, %s18135_s29  ;;  %p18141_p2 = scmp.lt.s32.totalorder %s18135_s29, %s18135_s29 }
 0x196   :  { %14423 = vmatmul.mubr.msk.f32.vlgmr.msra.gmra.mrb[0].mxu1 %vm210_vm1, %v191_v17  ;;  %v649_v25 = vmul.f32 %v12852_v23, %v642_v20  ;;  %v988_v51 = vmul.f32 %v12878_v47, %v980_v48  ;;  %v12889_v17 = vld [vmem:[%s22728_s3 + $0x108] sm:$0xff] }
 0x197   :  { %15913 = vmatpush3.bf16.msra.mxu1 %v15910_v12  ;;  %14425 = vmatprep.mubr.msk.f32.mxu1 %vm210_vm1, %v192_v19  ;;  %v12882_v12 = vld [vmem:[%s22728_s3 + $0xf8] sm:$0xff]  ;;  %v12890_v19 = vld [vmem:[%s22728_s3 + $0x110] sm:$0xff]  ;;  %v12898_v23 = vld [vmem:[%s22728_s3 + $0x128] sm:$0xff]  ;;  %p18142_p3 = por %p18141_p2, %p18140_p1 }
 0x198   :  { %15915 = vmatprep.subr.bf16.mxu1 %v15914_v18  ;;  %v15918_v29 = vpack.c.bf16 %v649_v25, %v648_v27  ;;  %v12900_v25 = vld [vmem:[%s22728_s3 + $0x138] sm:$0xff]  ;;  %v12907_v27 = vld [vmem:[%s22728_s3 + $0x148] sm:$0xff] }
 0x199   :  { %v865_v34 = vpop.permute.xlu1 %864  ;;  %v1097_v58 = vpop.permute.xlu0 %1096  ;;  %p18143_p4 = pnand %p18142_p3, %p18136_p0 }
 0x19a   :  { %14426 = vmatmul.mubr.msk.f32.gmra.mrb[2].mxu1 %vm210_vm1, %v193_v21  ;;  %v872_v39 = vmul.f32 %v12869_v37, %v865_v34  ;;  %v1105_v61 = vmul.f32 %v12887_v57, %v1097_v58  ;;  %v12891_v21 = vld [vmem:[%s22728_s3 + $0x118] sm:$0xff]  ;;  %v1485_v58 = vld [vmem:[%s22730_s5 + $0x30] sm:$0xff] }
 0x19b   :  { %14432 = vmatprep.mubr.msk.f32.mxu1 %vm210_vm1, %v12835_v22  ;;  %v12897_v22 = vld [vmem:[%s22728_s3 + $0x120] sm:$0xff] }
 0x19c   :  { %v15926_v43 = vpack.c.bf16 %v872_v39, %v871_v41 }
 0x19d   :  { %v982_v44 = vpop.permute.xlu1 %981  ;;  %v1214_v5 = vpop.permute.xlu0 %1213 }
 0x19e   :  { %14433 = vmatmul.mubr.msk.f32.vlgmr.msra.gmra.mrb[0].mxu1 %vm210_vm1, %v12836_v26  ;;  %v989_v49 = vmul.f32 %v12878_v47, %v982_v44  ;;  %v1222_v8 = vmul.f32 %v12896_v4, %v1214_v5  ;;  %v12906_v26 = vld [vmem:[%s22728_s3 + $0x140] sm:$0xff] }
 0x19f   :  { %15917 = vmatpush3.bf16.msra.mxu1 %v15914_v18  ;;  %14435 = vmatprep.mubr.msk.f32.mxu1 %vm210_vm1, %v12837_v28  ;;  %v12908_v28 = vld [vmem:[%s22728_s3 + $0x150] sm:$0xff] }
 0x1a0   :  { %15919 = vmatprep.subr.bf16.mxu1 %v15918_v29  ;;  %v15930_v53 = vpack.c.bf16 %v989_v49, %v988_v51  ;;  %v1482_v49 = vld [vmem:[%s22730_s5 + $0x18] sm:$0xff] }
 0x1a1   :  { %v1099_v54 = vpop.permute.xlu1 %1098  ;;  %v1331_v15 = vpop.permute.xlu0 %1330 }
 0x1a2   :  { %14436 = vmatmul.mubr.msk.f32.gmra.mrb[2].mxu1 %vm210_vm1, %v12838_v30  ;;  %v1106_v59 = vmul.f32 %v12887_v57, %v1099_v54  ;;  %v1339_v18 = vmul.f32 %v12905_v14, %v1331_v15  ;;  %v1512_v30 = vld [vmem:[%s22731_s6] sm:$0xff] }
 0x1a3   :  { %14442 = vmatprep.mubr.msk.f32.mxu1 %vm210_vm1, %v12844_v31  ;;  %v1513_v31 = vld [vmem:[%s22731_s6 + $0x8] sm:$0xff] }
 0x1a4   :  { %v15934_v63 = vpack.c.bf16 %v1106_v59, %v1105_v61  ;;  %v1486_v61 = vld [vmem:[%s22730_s5 + $0x38] sm:$0xff] }
 0x1a5   :  { %v1216_v0 = vpop.permute.xlu1 %1215 }
 0x1a6   :  { %14443 = vmatmul.mubr.msk.f32.vlgmr.msra.gmra.mrb[0].mxu1 %vm210_vm1, %v12845_v32  ;;  %v1223_v6 = vmul.f32 %v12896_v4, %v1216_v0  ;;  %v15946_v32 = vpack.c.bf16 %v1513_v31, %v1512_v30  ;;  %v1487_v0 = vld [vmem:[%s22730_s5 + $0x40] sm:$0xff]  ;;  %v1488_v4 = vld [vmem:[%s22730_s5 + $0x48] sm:$0xff] }
 0x1a7   :  { %15921 = vmatpush3.bf16.msra.mxu1 %v15918_v29  ;;  %14445 = vmatprep.mubr.msk.f32.mxu1 %vm210_vm1, %v12846_v33  ;;  %v12909_v29 = vld [vmem:[%s22728_s3 + $0x158] sm:$0xff] }
 0x1a8   :  { %15923 = vmatprep.subr.bf16.mxu1 %v18376_v52  ;;  %v15938_v10 = vpack.c.bf16 %v1223_v6, %v1222_v8  ;;  %15947 = vmatprep.subr.bf16.mxu0 %v15946_v32 }
 0x1a9   :  { %v1333_v11 = vpop.permute.xlu1 %1332  ;;  %15949 = vmatpush3.bf16.msra.mxu0 %v15946_v32 }
 0x1aa   :  { %14446 = vmatmul.mubr.msk.f32.gmra.mrb[2].mxu1 %vm210_vm1, %v12847_v35  ;;  %v1340_v16 = vmul.f32 %v12905_v14, %v1333_v11  ;;  %v1514_v35 = vld [vmem:[%s22731_s6 + $0x10] sm:$0xff] }
 0x1ab   :  { %14452 = vmatprep.mubr.msk.f32.mxu1 %vm210_vm1, %v12853_v36  ;;  %v1515_v36 = vld [vmem:[%s22731_s6 + $0x18] sm:$0xff] }
 0x1ac   :  { %v15942_v20 = vpack.c.bf16 %v1340_v16, %v1339_v18  ;;  %v15950_v38 = vpack.c.bf16 %v1515_v36, %v1514_v35  ;;  %v1492_v16 = vld [vmem:[%s22730_s5 + $0x68] sm:$0xff] }
 0x1ae   :  { %14453 = vmatmul.mubr.msk.f32.vlgmr.msra.gmra.mrb[0].mxu1 %vm210_vm1, %v12854_v40  ;;  %15951 = vmatprep.subr.bf16.mxu0 %v15950_v38  ;;  %v1479_v40 = vld [vmem:[%s22730_s5] sm:$0xff] }
 0x1af   :  { %15925 = vmatpush3.bf16.msra.mxu1 %v18376_v52  ;;  %14455 = vmatprep.mubr.msk.f32.mxu1 %vm210_vm1, %v12855_v42  ;;  %v12863_v52 = vld [vmem:[%s22728_s3 + $0xb0] sm:$0xff]  ;;  %s18172_s3 = smov 64  }
 0x1b0   :  { %15927 = vmatprep.subr.bf16.mxu1 %v15926_v43  ;;  %15953 = vmatpush3.bf16.msra.mxu0 %v15950_v38 }
 0x1b2   :  { %14456 = vmatmul.mubr.msk.f32.gmra.mrb[2].mxu1 %vm210_vm1, %v12856_v45 }
 0x1b3   :  { %14462 = vmatprep.mubr.msk.f32.mxu1 %vm210_vm1, %v12861_v46  ;;  %v1481_v46 = vld [vmem:[%s22730_s5 + $0x10] sm:$0xff] }
 0x1b6   :  { %14463 = vmatmul.mubr.msk.f32.vlgmr.msra.gmra.mrb[0].mxu1 %vm210_vm1, %v12862_v50 }
 0x1b7   :  { %15929 = vmatpush3.bf16.msra.mxu1 %v15926_v43  ;;  %14465 = vmatprep.mubr.msk.f32.mxu1 %vm210_vm1, %v12863_v52  ;;  %v1480_v43 = vld [vmem:[%s22730_s5 + $0x8] sm:$0xff]  ;;  %v1483_v52 = vld [vmem:[%s22730_s5 + $0x20] sm:$0xff] }
 0x1b8   :  { %15931 = vmatprep.subr.bf16.mxu1 %v15930_v53 }
 0x1ba   :  { %14466 = vmatmul.mubr.msk.f32.gmra.mrb[2].mxu1 %vm210_vm1, %v12864_v55  ;;  %v1484_v55 = vld [vmem:[%s22730_s5 + $0x28] sm:$0xff] }
 0x1bb   :  { %14472 = vmatprep.mubr.msk.f32.mxu1 %vm210_vm1, %v12870_v56 }
 0x1be   :  { %14473 = vmatmul.mubr.msk.f32.vlgmr.msra.gmra.mrb[0].mxu1 %vm210_vm1, %v12871_v60 }
 0x1bf   :  { %15933 = vmatpush3.bf16.msra.mxu1 %v15930_v53  ;;  %14475 = vmatprep.mubr.msk.f32.mxu1 %vm210_vm1, %v12872_v62 }
 0x1c0   :  { %15935 = vmatprep.subr.bf16.mxu1 %v15934_v63 }
 0x1c2   :  { %14476 = vmatmul.mubr.msk.f32.gmra.mrb[2].mxu1 %vm210_vm1, %v12873_v1 }
 0x1c3   :  { %14482 = vmatprep.mubr.msk.f32.mxu1 %vm210_vm1, %v12879_v2 }
 0x1c6   :  { %14483 = vmatmul.mubr.msk.f32.vlgmr.msra.gmra.mrb[0].mxu1 %vm210_vm1, %v12880_v7  ;;  %v1489_v7 = vld [vmem:[%s22730_s5 + $0x50] sm:$0xff] }
 0x1c7   :  { %15937 = vmatpush3.bf16.msra.mxu1 %v15934_v63  ;;  %14485 = vmatprep.mubr.msk.f32.mxu1 %vm210_vm1, %v12881_v9 }
 0x1c8   :  { %15939 = vmatprep.subr.bf16.mxu1 %v15938_v10 }
 0x1ca   :  { %14486 = vmatmul.mubr.msk.f32.gmra.mrb[2].mxu1 %vm210_vm1, %v12882_v12 }
 0x1cb   :  { %14492 = vmatprep.mubr.msk.f32.mxu1 %vm210_vm1, %v12888_v13  ;;  %v1491_v13 = vld [vmem:[%s22730_s5 + $0x60] sm:$0xff] }
 0x1ce   :  { %14493 = vmatmul.mubr.msk.f32.vlgmr.msra.gmra.mrb[0].mxu1 %vm210_vm1, %v12889_v17 }
 0x1cf   :  { %15941 = vmatpush3.bf16.msra.mxu1 %v15938_v10  ;;  %14495 = vmatprep.mubr.msk.f32.mxu1 %vm210_vm1, %v12890_v19  ;;  %v1490_v10 = vld [vmem:[%s22730_s5 + $0x58] sm:$0xff]  ;;  %v1493_v19 = vld [vmem:[%s22730_s5 + $0x70] sm:$0xff] }
 0x1d0   :  { %15943 = vmatprep.subr.bf16.mxu1 %v15942_v20 }
 0x1d2   :  { %14496 = vmatmul.mubr.msk.f32.gmra.mrb[2].mxu1 %vm210_vm1, %v12891_v21 }
 0x1d3   :  { %14502 = vmatprep.mubr.msk.f32.mxu1 %vm210_vm1, %v12897_v22  ;;  %v1494_v22 = vld [vmem:[%s22730_s5 + $0x78] sm:$0xff]  ;;  %s18171_s5 = smov 96  }
 0x1d6   :  { %14503 = vmatmul.mubr.msk.f32.vlgmr.msra.gmra.mrb[0].mxu1 %vm210_vm1, %v12898_v23 }
 0x1d7   :  { %15945 = vmatpush3.bf16.msra.mxu1 %v15942_v20  ;;  %14505 = vmatprep.mubr.msk.f32.mxu1 %vm210_vm1, %v12899_v24 }
 0x1da   :  { %14506 = vmatmul.mubr.msk.f32.gmra.mrb[2].mxu1 %vm210_vm1, %v12900_v25  ;;  %v12914_v25 = vld [vmem:[%s22732_s7] ss:$0 sm:$0xff] }
 0x1db   :  { %14512 = vmatprep.mubr.msk.f32.mxu1 %vm210_vm1, %v12906_v26 }
 0x1de   :  { %14513 = vmatmul.mubr.msk.f32.vlgmr.msra.gmra.mrb[0].mxu1 %vm210_vm1, %v12907_v27 }
 0x1df   :  { %14515 = vmatprep.mubr.msk.f32.mxu1 %vm210_vm1, %v12908_v28 }
 0x1e2   :  { %14516 = vmatmul.mubr.msk.f32.gmra.mrb[2].mxu1 %vm210_vm1, %v12909_v29 }
 0x2b1   :  { %v14514_v33 = vpop.f32.mrb[0].mxu1 }
 0x2b2   :  { %v1424_v34 = vpop.f32.mrb[1].mxu1 }
 0x2b3   :  { %1447 = vxpose.xlu0.b32.start [1/4] (short) %v1424_v34, 128 }
 0x2b5   :  { %v14517_v37 = vpop.f32.mrb[2].mxu1 }
 0x2b6   :  { %v1434_v39 = vpop.f32.mrb[3].mxu1 }
 0x2b7   :  { %1448 = vxpose.xlu0.b32.cont [2/4] (short) %v14514_v33, 128 }
 0x2bb   :  { %1449 = vxpose.xlu0.b32.cont [3/4] (short) %v1434_v39, 128 }
 0x2bf   :  { %1450 = vxpose.xlu0.b32.end [4/4] (short) %v14517_v37, 128 }
 0x333   :  { %v1463_v41 = vpop.trf.xlu0 }
 0x334   :  { %v18597_v42 = vadd.f32 %v1479_v40, %v1463_v41 }
 0x336   :  { %14526 = vmatprep.mubr.msk.f32.mxu0 %vm1523_vm2, %v18597_v42 }
 0x337   :  { %v1464_v44 = vpop.trf.xlu0 }
 0x338   :  { %v18604_v45 = vadd.f32 %v1480_v43, %v1464_v44 }
 0x33a   :  { %14527 = vmatmul.mubr.msk.f32.vlgmr.msra.gmra.mrb[4].mxu0 %vm1523_vm2, %v18604_v45 }
 0x33b   :  { %v1465_v47 = vpop.trf.xlu0 }
 0x33c   :  { %v18611_v48 = vadd.f32 %v1481_v46, %v1465_v47 }
 0x33e   :  { %14529 = vmatprep.mubr.msk.f32.mxu0 %vm1523_vm2, %v18611_v48 }
 0x33f   :  { %v1466_v50 = vpop.trf.xlu0 }
 0x340   :  { %v18618_v51 = vadd.f32 %v1482_v49, %v1466_v50 }
 0x342   :  { %14530 = vmatmul.mubr.msk.f32.gmra.mrb[6].mxu0 %vm1523_vm2, %v18618_v51 }
 0x343   :  { %v1467_v53 = vpop.trf.xlu0 }
 0x344   :  { %v18625_v54 = vadd.f32 %v1483_v52, %v1467_v53 }
 0x346   :  { %14532 = vmatprep.mubr.msk.f32.mxu0 %vm1523_vm2, %v18625_v54 }
 0x347   :  { %v1468_v56 = vpop.trf.xlu0 }
 0x348   :  { %v18632_v57 = vadd.f32 %v1484_v55, %v1468_v56 }
 0x34a   :  { %14533 = vmatmul.mubr.msk.f32.gmra.mrb[8].mxu0 %vm1523_vm2, %v18632_v57 }
 0x34b   :  { %v1469_v59 = vpop.trf.xlu0 }
 0x34c   :  { %v18639_v60 = vadd.f32 %v1485_v58, %v1469_v59 }
 0x34e   :  { %14535 = vmatprep.mubr.msk.f32.mxu0 %vm1523_vm2, %v18639_v60 }
 0x34f   :  { %v1470_v62 = vpop.trf.xlu0 }
 0x350   :  { %v18646_v63 = vadd.f32 %v1486_v61, %v1470_v62 }
 0x352   :  { %14536 = vmatmul.mubr.msk.f32.gmra.mrb[10].mxu0 %vm1523_vm2, %v18646_v63 }
 0x353   :  { %v1471_v1 = vpop.trf.xlu0 }
 0x354   :  { %v18653_v2 = vadd.f32 %v1487_v0, %v1471_v1 }
 0x356   :  { %22770 = vst [vmem:[#allocation5_spill] sm:$0xff] %v18653_v2  ;;  %14538 = vmatprep.mubr.msk.f32.mxu0 %vm1523_vm2, %v18653_v2 }
 0x357   :  { %v1472_v5 = vpop.trf.xlu0 }
 0x358   :  { %v18660_v6 = vadd.f32 %v1488_v4, %v1472_v5 }
 0x35a   :  { %14539 = vmatmul.mubr.msk.f32.gmra.mrb[12].mxu0 %vm1523_vm2, %v18660_v6 }
 0x35b   :  { %v1473_v8 = vpop.trf.xlu0 }
 0x35c   :  { %v18667_v9 = vadd.f32 %v1489_v7, %v1473_v8 }
 0x35e   :  { %22771 = vst [vmem:[#allocation6_spill] sm:$0xff] %v18667_v9  ;;  %14541 = vmatprep.mubr.msk.f32.mxu0 %vm1523_vm2, %v18667_v9 }
 0x35f   :  { %v1474_v11 = vpop.trf.xlu0 }
 0x360   :  { %v18674_v12 = vadd.f32 %v1490_v10, %v1474_v11 }
 0x362   :  { %22772 = vst [vmem:[#allocation7_spill] sm:$0xff] %v18674_v12  ;;  %14542 = vmatmul.mubr.msk.f32.gmra.mrb[14].mxu0 %vm1523_vm2, %v18674_v12 }
 0x363   :  { %v1475_v14 = vpop.trf.xlu0 }
 0x364   :  { %v18681_v15 = vadd.f32 %v1491_v13, %v1475_v14 }
 0x366   :  { %22773 = vst [vmem:[#allocation8_spill] sm:$0xff] %v18681_v15  ;;  %14544 = vmatprep.mubr.msk.f32.mxu0 %vm1523_vm2, %v18681_v15 }
 0x367   :  { %v1476_v17 = vpop.trf.xlu0 }
 0x368   :  { %v18688_v18 = vadd.f32 %v1492_v16, %v1476_v17 }
 0x36a   :  { %22774 = vst [vmem:[#allocation9_spill] sm:$0xff] %v18688_v18  ;;  %14545 = vmatmul.mubr.msk.f32.gmra.mrb[16].mxu0 %vm1523_vm2, %v18688_v18 }
 0x36b   :  { %v1477_v20 = vpop.trf.xlu0 }
 0x36c   :  { %v18695_v21 = vadd.f32 %v1493_v19, %v1477_v20 }
 0x36e   :  { %22775 = vst [vmem:[#allocation10_spill] sm:$0xff] %v18695_v21  ;;  %14547 = vmatprep.mubr.msk.f32.mxu0 %vm1523_vm2, %v18695_v21 }
 0x36f   :  { %v1478_v23 = vpop.trf.xlu0 }
 0x370   :  { %v18702_v24 = vadd.f32 %v1494_v22, %v1478_v23 }
 0x372   :  { %22776 = vst [vmem:[#allocation11_spill] sm:$0xff] %v18702_v24  ;;  %14548 = vmatmul.mubr.msk.f32.gmra.mrb[18].mxu0 %vm1523_vm2, %v18702_v24 }
 0x40d   :  { %v14528_v26 = vpop.f32.mrb[4].mxu0 }
 0x40e   :  { %v18709_v27 = vadd.f32 %v14528_v26, %v12914_v25  ;;  %v1638_v28 = vpop.f32.mrb[5].mxu0 }
 0x40f   :  { %v18711_v29 = vadd.f32 %v12914_v25, %v1638_v28 }
 0x411   :  { %14566 = vmatprep.mubr.msk.f32.mxu0 %vm1749_vm3, %v18711_v29  ;;  %v18717_v30 = vpack.i.bf16 %v18709_v27, %v18711_v29 }
 0x413   :  { %16844 = vrot.lane.b32.xlu1 %v18717_v30, %s18171_s5 }
 0x415   :  { %v14531_v31 = vpop.f32.mrb[6].mxu0 }
 0x416   :  { %v18721_v32 = vadd.f32 %v14531_v31, %v12914_v25  ;;  %v1648_v33 = vpop.f32.mrb[7].mxu0 }
 0x417   :  { %v18723_v34 = vadd.f32 %v12914_v25, %v1648_v33 }
 0x419   :  { %v18727_v35 = vpack.i.bf16 %v18721_v32, %v18723_v34 }
 0x41b   :  { %16849 = vrot.lane.b32.xlu1 %v18727_v35, %s18171_s5 }
 0x41d   :  { %v14534_v36 = vpop.f32.mrb[8].mxu0 }
 0x41e   :  { %v18731_v37 = vadd.f32 %v14534_v36, %v12914_v25  ;;  %v1658_v38 = vpop.f32.mrb[9].mxu0 }
 0x41f   :  { %v18733_v39 = vadd.f32 %v12914_v25, %v1658_v38 }
 0x421   :  { %v18737_v40 = vpack.i.bf16 %v18731_v37, %v18733_v39 }
 0x423   :  { %16854 = vrot.lane.b32.xlu1 %v18737_v40, %s18171_s5 }
 0x425   :  { %v14537_v41 = vpop.f32.mrb[10].mxu0 }
 0x426   :  { %v18741_v43 = vadd.f32 %v14537_v41, %v12914_v25  ;;  %v1668_v44 = vpop.f32.mrb[11].mxu0 }
 0x427   :  { %v18743_v46 = vadd.f32 %v12914_v25, %v1668_v44 }
 0x429   :  { %v18747_v47 = vpack.i.bf16 %v18741_v43, %v18743_v46 }
 0x42b   :  { %16859 = vrot.lane.b32.xlu1 %v18747_v47, %s18171_s5 }
 0x42d   :  { %v18753_v49 = vpop.f32.mrb[12].mxu0 }
 0x42e   :  { %v18755_v50 = vpop.f32.mrb[13].mxu0 }
 0x42f   :  { %16864 = vrot.lane.b32.xlu1 %v18717_v30, %s18172_s3 }
 0x435   :  { %v18757_v52 = vpop.f32.mrb[14].mxu0 }
 0x436   :  { %v18759_v53 = vpop.f32.mrb[15].mxu0 }
 0x43d   :  { %v18761_v55 = vpop.f32.mrb[16].mxu0 }
 0x43e   :  { %v18763_v56 = vpop.f32.mrb[17].mxu0 }
 0x445   :  { %v18765_v58 = vpop.f32.mrb[18].mxu0 }
 0x446   :  { %v18767_v59 = vpop.f32.mrb[19].mxu0 }
 0x485   :  { %v16845_v61 = vpop.permute.xlu1 %16844 }
 0x486   :  { %v16847_v62 = vunpack.i.h.bf16 %v16845_v61  ;;  %v16846_v0 = vunpack.i.l.bf16 %v16845_v61 }
 0x488   :  { %v15954_v4 = vpack.c.bf16 %v16847_v62, %v16846_v0 }
 0x48a   :  { %15956 = vmatprep.subr.msk.bf16.mxu0 %vm18771_vm4, %v15954_v4 }
 0x48b   :  { %15959 = vmatpush3.bf16.xpose.msk.msra.mxu0 %vm18771_vm4, %v15954_v4 }
 0x48d   :  { %v16850_v5 = vpop.permute.xlu1 %16849 }
 0x48e   :  { %v16852_v7 = vunpack.i.h.bf16 %v16850_v5  ;;  %v16851_v8 = vunpack.i.l.bf16 %v16850_v5 }
 0x490   :  { %v15960_v10 = vpack.c.bf16 %v16852_v7, %v16851_v8 }
 0x492   :  { %15962 = vmatprep.subr.msk.bf16.mxu0 %vm18771_vm4, %v15960_v10 }
 0x493   :  { %15965 = vmatpush3.bf16.xpose.msk.msra.mxu0 %vm18771_vm4, %v15960_v10 }
 0x495   :  { %v16855_v11 = vpop.permute.xlu1 %16854 }
 0x496   :  { %v16857_v13 = vunpack.i.h.bf16 %v16855_v11  ;;  %v16856_v14 = vunpack.i.l.bf16 %v16855_v11 }
 0x498   :  { %v15966_v16 = vpack.c.bf16 %v16857_v13, %v16856_v14 }
 0x49a   :  { %15968 = vmatprep.subr.msk.bf16.mxu0 %vm18771_vm4, %v15966_v16 }
 0x49b   :  { %15971 = vmatpush3.bf16.xpose.msk.msra.mxu0 %vm18771_vm4, %v15966_v16 }
 0x49d   :  { %v16860_v17 = vpop.permute.xlu1 %16859 }
 0x49e   :  { %v16862_v19 = vunpack.i.h.bf16 %v16860_v17  ;;  %v16861_v20 = vunpack.i.l.bf16 %v16860_v17 }
 0x4a0   :  { %v15972_v22 = vpack.c.bf16 %v16862_v19, %v16861_v20 }
 0x4a1   :  { %v16865_v23 = vpop.permute.xlu1 %16864 }
 0x4a2   :  { %v16867_v25 = vunpack.i.h.bf16 %v16865_v23  ;;  %v16866_v26 = vunpack.i.l.bf16 %v16865_v23  ;;  %15974 = vmatprep.subr.msk.bf16.mxu0 %vm18771_vm4, %v15972_v22 }
 0x4a3   :  { %15977 = vmatpush3.bf16.xpose.msk.msra.mxu0 %vm18771_vm4, %v15972_v22 }
 0x4a4   :  { %v15978_v28 = vpack.c.bf16 %v16867_v25, %v16866_v26 }
 0x4a6   :  { %15979 = vmatprep.subr.bf16.mxu0 %v15978_v28 }
 0x4aa   :  { %14567 = vmatmul.mubr.msk.f32.vlgmr.msra.gmra.mrb[20].mxu0 %vm1749_vm3, %v18709_v27 }
 0x4ab   :  { %14569 = vmatprep.mubr.msk.f32.mxu0 %vm1749_vm3, %v18723_v34  ;;  %15981 = vmatpush3.bf16.msra.mxu0 %v15978_v28 }
 0x4ae   :  { %14570 = vmatmul.mubr.msk.f32.gmra.mrb[22].mxu0 %vm1749_vm3, %v18721_v32 }
 0x4af   :  { %14572 = vmatprep.mubr.msk.f32.mxu0 %vm1749_vm3, %v18733_v39 }
 0x4b2   :  { %14573 = vmatmul.mubr.msk.f32.gmra.mrb[24].mxu0 %vm1749_vm3, %v18731_v37 }
 0x4b3   :  { %14575 = vmatprep.mubr.msk.f32.mxu0 %vm1749_vm3, %v18743_v46 }
 0x4b6   :  { %14576 = vmatmul.mubr.msk.f32.gmra.mrb[26].mxu0 %vm1749_vm3, %v18741_v43 }
 0x57d   :  { %v14568_v31 = vpop.f32.mrb[20].mxu0 }
 0x57e   :  { %v1848_v33 = vpop.f32.mrb[21].mxu0  ;;  %v1891_v36 = vsel %vm1887_vm5, %v14568_v31, -inf }
 0x57f   :  { %1892 = vmax.xlane.f32.xlu0 %v1891_v36  ;;  %v1888_v38 = vsel %vm1887_vm5, %v1848_v33, -inf }
 0x580   :  { %1889 = vmax.xlane.f32.xlu1 %v1888_v38 }
 0x581   :  { %v14571_v41 = vpop.f32.mrb[22].mxu0 }
 0x582   :  { %v1858_v44 = vpop.f32.mrb[23].mxu0  ;;  %v1897_v61 = vsel %vm1887_vm5, %v14571_v41, -inf }
 0x583   :  { %v1894_v4 = vsel %vm1887_vm5, %v1858_v44, -inf }
 0x584   :  { %1898 = vmax.xlane.f32.xlu1 %v1897_v61 }
 0x585   :  { %v14574_v62 = vpop.f32.mrb[24].mxu0 }
 0x586   :  { %v18808_v0 = vpop.f32.mrb[25].mxu0  ;;  %v1903_v8 = vsel %vm1887_vm5, %v14574_v62, -inf }
 0x587   :  { %v1900_v10 = vsel %vm1887_vm5, %v18808_v0, -inf }
 0x588   :  { %1895 = vmax.xlane.f32.xlu1 %v1894_v4 }
 0x589   :  { %v18811_v5 = vpop.f32.mrb[26].mxu0 }
 0x58a   :  { %v18813_v7 = vpop.f32.mrb[27].mxu0  ;;  %v1909_v11 = vsel %vm1887_vm5, %v18811_v5, -inf }
 0x58b   :  { %v1906_v13 = vsel %vm1887_vm5, %v18813_v7, -inf }
 0x58c   :  { %1904 = vmax.xlane.f32.xlu1 %v1903_v8 }
 0x590   :  { %1901 = vmax.xlane.f32.xlu1 %v1900_v10 }
 0x594   :  { %1910 = vmax.xlane.f32.xlu1 %v1909_v11 }
 0x598   :  { %1907 = vmax.xlane.f32.xlu1 %v1906_v13 }
 0x5a9   :  { %16869 = vrot.lane.b32.xlu1 %v18727_v35, %s18172_s3 }
 0x60c   :  { %v1893_v14 = vpop.xlane.xlu0 %1892 }
 0x60d   :  { %v1913_v16 = vsub.f32 %v14568_v31, %v1893_v14  ;;  %v1890_v17 = vpop.xlane.xlu1 %1889 }
 0x60e   :  { %v1912_v19 = vsub.f32 %v1848_v33, %v1890_v17 }
 0x60f   :  { %v1922_v20 = vmul.f32 1.442695, %v1913_v16 }
 0x610   :  { %v1920_v22 = vmul.f32 1.442695, %v1912_v19  ;;  %v1717_v19 = vld [vmem:[%s22733_s8] sm:$0xff] }
 0x611   :  { %17483 = vpow2.f32 %v1922_v20  ;;  %v1899_v23 = vpop.xlane.xlu1 %1898  ;;  %14606 = vmatprep.subr.mxu1 %v1717_v19 }
 0x612   :  { %v1915_v25 = vsub.f32 %v14571_v41, %v1899_v23  ;;  %17485 = vpow2.f32 %v1920_v22  ;;  %14607 = vmatpush3.msra.mxu1 %v1717_v19 }
 0x614   :  { %v1926_v26 = vmul.f32 1.442695, %v1915_v25 }
 0x615   :  { %v1896_v28 = vpop.xlane.xlu1 %1895 }
 0x616   :  { %17487 = vpow2.f32 %v1926_v26  ;;  %v1914_v20 = vsub.f32 %v1858_v44, %v1896_v28 }
 0x618   :  { %v1924_v22 = vmul.f32 1.442695, %v1914_v20 }
 0x619   :  { %v1905_v36 = vpop.xlane.xlu1 %1904 }
 0x61a   :  { %v1917_v23 = vsub.f32 %v14574_v62, %v1905_v36  ;;  %17489 = vpow2.f32 %v1924_v22 }
 0x61b   :  { %v18824_v38 = vpop.eup %17483 }
 0x61c   :  { %v1939_v61 = vsel %vm1887_vm5, %v18824_v38, 0.0  ;;  %v18828_v4 = vpop.eup %17485  ;;  %v1930_v25 = vmul.f32 1.442695, %v1917_v23 }
 0x61d   :  { %v1902_v31 = vpop.xlane.xlu1 %1901  ;;  %1940 = vadd.xlane.f32.xlu1 %v1939_v61  ;;  %v1936_v8 = vsel %vm1887_vm5, %v18828_v4, 0.0 }
 0x61e   :  { %v1916_v26 = vsub.f32 %v18808_v0, %v1902_v31  ;;  %17491 = vpow2.f32 %v1930_v25 }
 0x620   :  { %v18830_v33 = vpop.eup %17487  ;;  %v1928_v61 = vmul.f32 1.442695, %v1916_v26 }
 0x621   :  { %v1911_v41 = vpop.xlane.xlu1 %1910  ;;  %1937 = vadd.xlane.f32.xlu1 %v1936_v8  ;;  %v1945_v10 = vsel %vm1887_vm5, %v18830_v33, 0.0 }
 0x622   :  { %1946 = vadd.xlane.f32.xlu0 %v1945_v10  ;;  %17493 = vpow2.f32 %v1928_v61  ;;  %v1919_v62 = vsub.f32 %v18811_v5, %v1911_v41 }
 0x624   :  { %v18858_v36 = vpop.eup %17489  ;;  %v1934_v0 = vmul.f32 1.442695, %v1919_v62 }
 0x625   :  { %v1908_v11 = vpop.xlane.xlu1 %1907 }
 0x626   :  { %v1918_v44 = vsub.f32 %v18813_v7, %v1908_v11  ;;  %v1942_v7 = vsel %vm1887_vm5, %v18858_v36, 0.0 }
 0x628   :  { %v1932_v28 = vmul.f32 1.442695, %v1918_v44  ;;  %v18864_v31 = vpop.eup %17491 }
 0x629   :  { %v16870_v13 = vpop.permute.xlu1 %16869  ;;  %v1951_v5 = vsel %vm1887_vm5, %v18864_v31, 0.0 }
 0x62a   :  { %v16872_v14 = vunpack.i.h.bf16 %v16870_v13  ;;  %v16871_v16 = vunpack.i.l.bf16 %v16870_v13  ;;  %17495 = vpow2.f32 %v1932_v28 }
 0x62b   :  { %17497 = vpow2.f32 %v1934_v0 }
 0x62c   :  { %v15982_v17 = vpack.c.bf16 %v16872_v14, %v16871_v16  ;;  %v18870_v8 = vpop.eup %17493 }
 0x62d   :  { %v1948_v41 = vsel %vm1887_vm5, %v18870_v8, 0.0 }
 0x62e   :  { %15983 = vmatprep.subr.bf16.mxu0 %v15982_v17 }
 0x62f   :  { %15985 = vmatpush3.bf16.msra.mxu0 %v15982_v17 }
 0x632   :  { %16874 = vrot.lane.b32.xlu1 %v18737_v40, %s18172_s3 }
 0x634   :  { %v18876_v10 = vpop.eup %17495 }
 0x635   :  { %v1954_v11 = vsel %vm1887_vm5, %v18876_v10, 0.0  ;;  %v18882_v13 = vpop.eup %17497 }
 0x636   :  { %v1957_v14 = vsel %vm1887_vm5, %v18882_v13, 0.0 }
 0x638   :  { %16879 = vrot.lane.b32.xlu0 %v18747_v47, %s18172_s3 }
 0x63c   :  { %16884 = vrot.lane.b32.xlu0 %v18717_v30, %s18173_s21 }
 0x640   :  { %16894 = vrot.lane.b32.xlu0 %v18737_v40, %s18173_s21 }
 0x644   :  { %16899 = vrot.lane.b32.xlu0 %v18747_v47, %s18173_s21 }
 0x648   :  { %2266 = vrot.lane.b32.xlu0 %v18711_v29, %s18174_s22 }
 0x64c   :  { %2268 = vrot.lane.b32.xlu0 %v18709_v27, %s18174_s22 }
 0x650   :  { %2272 = vrot.lane.b32.xlu0 %v18721_v32, %s18174_s22 }
 0x654   :  { %2276 = vrot.lane.b32.xlu0 %v18731_v37, %s18174_s22 }
 0x656   :  { %1943 = vadd.xlane.f32.xlu1 %v1942_v7 }
 0x658   :  { %2280 = vrot.lane.b32.xlu0 %v18741_v43, %s18174_s22 }
 0x65a   :  { %1952 = vadd.xlane.f32.xlu1 %v1951_v5 }
 0x65c   :  { %16904 = vrot.lane.b32.xlu0 %v18717_v30, %s18175_s23 }
 0x65e   :  { %1949 = vadd.xlane.f32.xlu1 %v1948_v41 }
 0x660   :  { %16919 = vrot.lane.b32.xlu0 %v18747_v47, %s18175_s23 }
 0x662   :  { %1955 = vadd.xlane.f32.xlu1 %v1954_v11 }
 0x666   :  { %1958 = vadd.xlane.f32.xlu1 %v1957_v14 }
 0x677   :  { %16889 = vrot.lane.b32.xlu1 %v18727_v35, %s18173_s21 }
 0x67b   :  { %2270 = vrot.lane.b32.xlu1 %v18723_v34, %s18174_s22 }
 0x67f   :  { %2274 = vrot.lane.b32.xlu1 %v18733_v39, %s18174_s22 }
 0x683   :  { %2278 = vrot.lane.b32.xlu1 %v18743_v46, %s18174_s22 }
 0x687   :  { %16909 = vrot.lane.b32.xlu1 %v18727_v35, %s18175_s23 }
 0x68b   :  { %16914 = vrot.lane.b32.xlu1 %v18737_v40, %s18175_s23 }
 0x6aa   :  { %v1941_v16 = vpop.xlane.xlu1 %1940 }
 0x6ae   :  { %v1938_v17 = vpop.xlane.xlu1 %1937 }
 0x6af   :  { %17499 = vrcp.f32 %v1938_v17  ;;  %v1947_v19 = vpop.xlane.xlu0 %1946 }
 0x6b0   :  { %17501 = vrcp.f32 %v1941_v16 }
 0x6b1   :  { %17503 = vrcp.f32 %v1947_v19 }
 0x6b2   :  { %v16875_v20 = vpop.permute.xlu1 %16874 }
 0x6b3   :  { %v16877_v22 = vunpack.i.h.bf16 %v16875_v20  ;;  %v16876_v23 = vunpack.i.l.bf16 %v16875_v20  ;;  %v16880_v25 = vpop.permute.xlu0 %16879 }
 0x6b4   :  { %v16882_v26 = vunpack.i.h.bf16 %v16880_v25  ;;  %v16881_v61 = vunpack.i.l.bf16 %v16880_v25 }
 0x6b5   :  { %v15986_v44 = vpack.c.bf16 %v16877_v22, %v16876_v23 }
 0x6b6   :  { %v15990_v62 = vpack.c.bf16 %v16882_v26, %v16881_v61 }
 0x6b7   :  { %v16885_v28 = vpop.permute.xlu0 %16884  ;;  %15987 = vmatprep.subr.bf16.mxu0 %v15986_v44 }
 0x6b8   :  { %v16887_v0 = vunpack.i.h.bf16 %v16885_v28  ;;  %v16886_v7 = vunpack.i.l.bf16 %v16885_v28  ;;  %15989 = vmatpush3.bf16.msra.mxu0 %v15986_v44 }
 0x6b9   :  { %v17500_v5 = vpop.eup %17499  ;;  %15991 = vmatprep.subr.bf16.mxu0 %v15990_v62 }
 0x6ba   :  { %v17502_v41 = vpop.eup %17501  ;;  %v18898_v11 = vpack.c.bf16 %v16887_v0, %v16886_v7  ;;  %v1968_v14 = vmul.f32 %v17500_v5, %v18828_v4 }
 0x6bb   :  { %v18901_v16 = vpop.permute.xlu0 %16894  ;;  %v1969_v17 = vmul.f32 %v17502_v41, %v18824_v38  ;;  %v17504_v5 = vpop.eup %17503 }
 0x6bc   :  { %15993 = vmatpush3.bf16.msra.mxu0 %v15990_v62  ;;  %14594 = vmatprep.mubr.msk.f32.mxu0 %vm1887_vm5, %v1968_v14  ;;  %v1971_v3 = vmul.f32 %v17504_v5, %v18830_v33 }
 0x6bd   :  { %15996 = vmatprep.subr.msk.bf16.mxu1 %vm18771_vm4, %v18898_v11 }
 0x6bf   :  { %v18908_v20 = vpop.permute.xlu0 %16899  ;;  %14595 = vmatmul.mubr.msk.f32.vlgmr.msra.gmra.mrb[28].mxu0 %vm1887_vm5, %v1969_v17 }
 0x6c3   :  { %v18911_v22 = vpop.permute.xlu0 %2266 }
 0x6c7   :  { %v18913_v23 = vpop.permute.xlu0 %2268 }
 0x6cb   :  { %v18915_v4 = vpop.permute.xlu0 %2272 }
 0x6cf   :  { %v18917_v25 = vpop.permute.xlu0 %2276 }
 0x6d3   :  { %v18919_v26 = vpop.permute.xlu0 %2280 }
 0x6d7   :  { %v16905_v61 = vpop.permute.xlu0 %16904 }
 0x6d8   :  { %v16907_v38 = vunpack.i.h.bf16 %v16905_v61  ;;  %v16906_v44 = vunpack.i.l.bf16 %v16905_v61 }
 0x6da   :  { %v16018_v62 = vpack.c.bf16 %v16907_v38, %v16906_v44 }
 0x6dc   :  { %16019 = vmatprep.subr.bf16.mxu0 %v16018_v62 }
 0x6dd   :  { %16021 = vmatpush3.bf16.msra.mxu0 %v16018_v62 }
 0x6e3   :  { %v1944_v28 = vpop.xlane.xlu1 %1943 }
 0x6e4   :  { %17505 = vrcp.f32 %v1944_v28 }
 0x6e7   :  { %v1953_v0 = vpop.xlane.xlu1 %1952 }
 0x6e8   :  { %17507 = vrcp.f32 %v1953_v0 }
 0x6eb   :  { %v1950_v7 = vpop.xlane.xlu1 %1949 }
 0x6ec   :  { %17509 = vrcp.f32 %v1950_v7 }
 0x6ee   :  { %v17506_v41 = vpop.eup %17505 }
 0x6ef   :  { %v1956_v14 = vpop.xlane.xlu1 %1955  ;;  %v1970_v17 = vmul.f32 %v17506_v41, %v18858_v36 }
 0x6f0   :  { %17511 = vrcp.f32 %v1956_v14 }
 0x6f1   :  { %14597 = vmatprep.mubr.msk.f32.mxu0 %vm1887_vm5, %v1970_v17  ;;  %v16920_v17 = vpop.permute.xlu0 %16919 }
 0x6f2   :  { %14598 = vmatmul.mubr.msk.f32.gmra.mrb[30].mxu0 %vm1887_vm5, %v1971_v3  ;;  %v17508_v19 = vpop.eup %17507 }
 0x6f3   :  { %v1959_v61 = vpop.xlane.xlu1 %1958  ;;  %v1973_v28 = vmul.f32 %v17508_v19, %v18864_v31 }
 0x6f4   :  { %17513 = vrcp.f32 %v1959_v61 }
 0x6f6   :  { %v17510_v38 = vpop.eup %17509 }
 0x6f7   :  { %v16890_v44 = vpop.permute.xlu1 %16889  ;;  %v1972_v62 = vmul.f32 %v17510_v38, %v18870_v8  ;;  %v16922_v38 = vunpack.i.h.bf16 %v16920_v17 }
 0x6f9   :  { %14600 = vmatprep.mubr.msk.f32.mxu0 %vm1887_vm5, %v1972_v62  ;;  %v16921_v62 = vunpack.i.l.bf16 %v16920_v17  ;;  %v16901_v17 = vunpack.i.l.bf16 %v18908_v20 }
 0x6fa   :  { %v17512_v0 = vpop.eup %17511  ;;  %14601 = vmatmul.mubr.msk.f32.gmra.mrb[32].mxu0 %vm1887_vm5, %v1973_v28 }
 0x6fb   :  { %v2271_v36 = vpop.permute.xlu1 %2270  ;;  %v1974_v33 = vmul.f32 %v17512_v0, %v18876_v10  ;;  %v16030_v0 = vpack.c.bf16 %v16922_v38, %v16921_v62 }
 0x6fd   :  { %14603 = vmatprep.mubr.msk.f32.mxu0 %vm1887_vm5, %v1974_v33  ;;  %v16891_v33 = vunpack.i.l.bf16 %v16890_v44 }
 0x6fe   :  { %v17514_v3 = vpop.eup %17513 }
 0x6ff   :  { %v2275_v7 = vpop.permute.xlu1 %2274  ;;  %v1975_v5 = vmul.f32 %v17514_v3, %v18882_v13  ;;  %v16892_v13 = vunpack.i.h.bf16 %v16890_v44  ;;  %v16902_v44 = vunpack.i.h.bf16 %v18908_v20 }
 0x701   :  { %14604 = vmatmul.mubr.msk.f32.gmra.mrb[34].mxu0 %vm1887_vm5, %v1975_v5 }
 0x703   :  { %v2279_v41 = vpop.permute.xlu1 %2278 }
 0x707   :  { %v16910_v8 = vpop.permute.xlu1 %16909 }
 0x708   :  { %v16912_v14 = vunpack.i.h.bf16 %v16910_v8  ;;  %v16911_v31 = vunpack.i.l.bf16 %v16910_v8  ;;  %v16000_v8 = vpack.c.bf16 %v16892_v13, %v16891_v33 }
 0x70a   :  { %v16022_v61 = vpack.c.bf16 %v16912_v14, %v16911_v31  ;;  %v16896_v14 = vunpack.i.l.bf16 %v18901_v16 }
 0x70b   :  { %v16915_v19 = vpop.permute.xlu1 %16914 }
 0x70c   :  { %v16917_v28 = vunpack.i.h.bf16 %v16915_v19  ;;  %v16916_v21 = vunpack.i.l.bf16 %v16915_v19  ;;  %16023 = vmatprep.subr.bf16.mxu0 %v16022_v61 }
 0x70d   :  { %16025 = vmatpush3.bf16.msra.mxu0 %v16022_v61  ;;  %v16012_v61 = vpack.c.bf16 %v16902_v44, %v16901_v17 }
 0x70e   :  { %v16026_v10 = vpack.c.bf16 %v16917_v28, %v16916_v21  ;;  %v16897_v21 = vunpack.i.h.bf16 %v18901_v16 }
 0x710   :  { %16027 = vmatprep.subr.bf16.mxu0 %v16026_v10  ;;  %v16006_v31 = vpack.c.bf16 %v16897_v21, %v16896_v14 }
 0x711   :  { %16029 = vmatpush3.bf16.msra.mxu0 %v16026_v10 }
 0x712   :  { %16031 = vmatprep.subr.bf16.mxu0 %v16030_v0 }
 0x715   :  { %16033 = vmatpush3.bf16.msra.mxu0 %v16030_v0 }
 0x792   :  { %v14596_v3 = vpop.f32.mrb[28].mxu0 }
 0x793   :  { %v2090_v5 = vpop.f32.mrb[29].mxu0 }
 0x794   :  { %14608 = vmatprep.mubr.msk.f32.mxu1 %vm1749_vm3, %v2090_v5 }
 0x795   :  { %14609 = vmatmul.mubr.msk.f32.vlgmr.msra.gmra.mrb[4].mxu1 %vm1749_vm3, %v14596_v3 }
 0x796   :  { %15999 = vmatpush3.bf16.xpose.msk.msra.mxu1 %vm18771_vm4, %v18898_v11 }
 0x797   :  { %16002 = vmatprep.subr.msk.bf16.mxu1 %vm18771_vm4, %v16000_v8 }
 0x79e   :  { %16005 = vmatpush3.bf16.xpose.msk.msra.mxu1 %vm18771_vm4, %v16000_v8 }
 0x79f   :  { %16008 = vmatprep.subr.msk.bf16.mxu1 %vm18771_vm4, %v16006_v31 }
 0x7a6   :  { %16011 = vmatpush3.bf16.xpose.msk.msra.mxu1 %vm18771_vm4, %v16006_v31 }
 0x7a7   :  { %16014 = vmatprep.subr.msk.bf16.mxu1 %vm18771_vm4, %v16012_v61 }
 0x7ae   :  { %16017 = vmatpush3.bf16.xpose.msk.msra.mxu1 %vm18771_vm4, %v16012_v61 }
 0x7c5   :  { %v14599_v11 = vpop.f32.mrb[30].mxu0 }
 0x7c6   :  { %v2100_v16 = vpop.f32.mrb[31].mxu0 }
 0x7c7   :  { %14611 = vmatprep.mubr.msk.f32.mxu1 %vm1749_vm3, %v2100_v16 }
 0x7c8   :  { %14612 = vmatmul.mubr.msk.f32.gmra.mrb[6].mxu1 %vm1749_vm3, %v14599_v11 }
 0x7cd   :  { %v14602_v19 = vpop.f32.mrb[32].mxu0 }
 0x7ce   :  { %v2110_v38 = vpop.f32.mrb[33].mxu0 }
 0x7cf   :  { %14614 = vmatprep.mubr.msk.f32.mxu1 %vm1749_vm3, %v2110_v38 }
 0x7d0   :  { %14615 = vmatmul.mubr.msk.f32.gmra.mrb[8].mxu1 %vm1749_vm3, %v14602_v19 }
 0x7d4   :  { %v14605_v20 = vpop.f32.mrb[34].mxu0 }
 0x7d5   :  { %v2120_v62 = vpop.f32.mrb[35].mxu0 }
 0x7d6   :  { %14617 = vmatprep.mubr.msk.f32.mxu1 %vm1749_vm3, %v2120_v62 }
 0x7d7   :  { %14618 = vmatmul.mubr.msk.f32.gmra.mrb[10].mxu1 %vm1749_vm3, %v14605_v20 }
 0x7d8   :  { %14636 = vmatprep.mubr.msk.f32.mxu1 %vm1749_vm3, %v18911_v22 }
 0x7db   :  { %14637 = vmatmul.mubr.msk.f32.vlgmr.msra.gmra.mrb[12].mxu1 %vm1749_vm3, %v18913_v23 }
 0x7dc   :  { %14639 = vmatprep.mubr.msk.f32.mxu1 %vm1749_vm3, %v2271_v36 }
 0x7df   :  { %14640 = vmatmul.mubr.msk.f32.gmra.mrb[14].mxu1 %vm1749_vm3, %v18915_v4 }
 0x7e0   :  { %14642 = vmatprep.mubr.msk.f32.mxu1 %vm1749_vm3, %v2275_v7 }
 0x7e3   :  { %14643 = vmatmul.mubr.msk.f32.gmra.mrb[16].mxu1 %vm1749_vm3, %v18917_v25 }
 0x7e4   :  { %14645 = vmatprep.mubr.msk.f32.mxu1 %vm1749_vm3, %v2279_v41 }
 0x7e7   :  { %14646 = vmatmul.mubr.msk.f32.gmra.mrb[18].mxu1 %vm1749_vm3, %v18919_v26 }
 0x8ae   :  { %v14638_v28 = vpop.f32.mrb[12].mxu1 }
 0x8af   :  { %v2396_v22 = vpop.f32.mrb[13].mxu1  ;;  %v2438_v10 = vsel %vm1887_vm5, %v14638_v28, -inf }
 0x8b0   :  { %2439 = vmax.xlane.f32.xlu0 %v2438_v10  ;;  %v2435_v23 = vsel %vm1887_vm5, %v2396_v22, -inf }
 0x8b1   :  { %2436 = vmax.xlane.f32.xlu1 %v2435_v23 }
 0x8b2   :  { %v14641_v36 = vpop.f32.mrb[14].mxu1 }
 0x8b3   :  { %v2406_v4 = vpop.f32.mrb[15].mxu1  ;;  %v2444_v7 = vsel %vm1887_vm5, %v14641_v36, -inf }
 0x8b4   :  { %v2441_v0 = vsel %vm1887_vm5, %v2406_v4, -inf }
 0x8b5   :  { %2445 = vmax.xlane.f32.xlu1 %v2444_v7  ;;  %2442 = vmax.xlane.f32.xlu0 %v2441_v0 }
 0x8b6   :  { %v14644_v25 = vpop.f32.mrb[16].mxu1 }
 0x8b7   :  { %v2416_v41 = vpop.f32.mrb[17].mxu1  ;;  %v2450_v26 = vsel %vm1887_vm5, %v14644_v25, -inf }
 0x8b8   :  { %v2447_v13 = vsel %vm1887_vm5, %v2416_v41, -inf }
 0x8b9   :  { %2451 = vmax.xlane.f32.xlu1 %v2450_v26  ;;  %2448 = vmax.xlane.f32.xlu0 %v2447_v13 }
 0x8ba   :  { %v14647_v33 = vpop.f32.mrb[18].mxu1 }
 0x8bb   :  { %v2426_v3 = vpop.f32.mrb[19].mxu1  ;;  %v2456_v5 = vsel %vm1887_vm5, %v14647_v33, -inf }
 0x8bc   :  { %v2453_v8 = vsel %vm1887_vm5, %v2426_v3, -inf }
 0x8bd   :  { %2457 = vmax.xlane.f32.xlu1 %v2456_v5  ;;  %2454 = vmax.xlane.f32.xlu0 %v2453_v8 }
 0x8ce   :  { %16929 = vrot.lane.b32.xlu1 %v18727_v35, %s18176_s25 }
 0x8d3   :  { %16924 = vrot.lane.b32.xlu0 %v18717_v30, %s18176_s25 }
 0x93d   :  { %v2440_v21 = vpop.xlane.xlu0 %2439 }
 0x93e   :  { %v2460_v14 = vsub.f32 %v14638_v28, %v2440_v21  ;;  %v2437_v31 = vpop.xlane.xlu1 %2436 }
 0x93f   :  { %v2459_v44 = vsub.f32 %v2396_v22, %v2437_v31 }
 0x940   :  { %v2469_v17 = vmul.f32 1.442695, %v2460_v14 }
 0x941   :  { %v2467_v61 = vmul.f32 1.442695, %v2459_v44 }
 0x942   :  { %17515 = vpow2.f32 %v2469_v17  ;;  %v2446_v11 = vpop.xlane.xlu1 %2445  ;;  %v2443_v16 = vpop.xlane.xlu0 %2442 }
 0x943   :  { %17517 = vpow2.f32 %v2467_v61  ;;  %v2461_v19 = vsub.f32 %v2406_v4, %v2443_v16  ;;  %v2462_v44 = vsub.f32 %v14641_v36, %v2446_v11 }
 0x945   :  { %v2471_v38 = vmul.f32 1.442695, %v2461_v19  ;;  %v2473_v17 = vmul.f32 1.442695, %v2462_v44 }
 0x946   :  { %v2452_v20 = vpop.xlane.xlu1 %2451  ;;  %v2449_v62 = vpop.xlane.xlu0 %2448 }
 0x947   :  { %v2464_v10 = vsub.f32 %v14644_v25, %v2452_v20  ;;  %17519 = vpow2.f32 %v2471_v38  ;;  %v2463_v61 = vsub.f32 %v2416_v41, %v2449_v62 }
 0x949   :  { %v2477_v23 = vmul.f32 1.442695, %v2464_v10  ;;  %v2475_v19 = vmul.f32 1.442695, %v2463_v61 }
 0x94a   :  { %v2455_v7 = vpop.xlane.xlu0 %2454  ;;  %v2458_v16 = vpop.xlane.xlu1 %2457 }
 0x94b   :  { %17521 = vpow2.f32 %v2477_v23  ;;  %v2466_v38 = vsub.f32 %v14647_v33, %v2458_v16  ;;  %v2465_v10 = vsub.f32 %v2426_v3, %v2455_v7 }
 0x94c   :  { %v18985_v0 = vpop.eup %17515  ;;  %17523 = vpow2.f32 %v2473_v17 }
 0x94d   :  { %v18987_v28 = vpop.eup %17517  ;;  %v2486_v22 = vsel %vm1887_vm5, %v18985_v0, 0.0  ;;  %17525 = vpow2.f32 %v2475_v19  ;;  %v2481_v20 = vmul.f32 1.442695, %v2466_v38  ;;  %v2479_v23 = vmul.f32 1.442695, %v2465_v10 }
 0x94e   :  { %2487 = vadd.xlane.f32.xlu1 %v2486_v22  ;;  %v16925_v26 = vpop.permute.xlu0 %16924  ;;  %v2483_v4 = vsel %vm1887_vm5, %v18987_v28, 0.0 }
 0x94f   :  { %v16927_v13 = vunpack.i.h.bf16 %v16925_v26  ;;  %2484 = vadd.xlane.f32.xlu0 %v2483_v4  ;;  %v16926_v5 = vunpack.i.l.bf16 %v16925_v26  ;;  %17527 = vpow2.f32 %v2481_v20 }
 0x950   :  { %17529 = vpow2.f32 %v2479_v23 }
 0x951   :  { %v18993_v25 = vpop.eup %17519  ;;  %v18995_v8 = vpack.c.bf16 %v16927_v13, %v16926_v5 }
 0x952   :  { %v2489_v21 = vsel %vm1887_vm5, %v18993_v25, 0.0 }
 0x953   :  { %2490 = vadd.xlane.f32.xlu1 %v2489_v21  ;;  %16036 = vmatprep.subr.msk.bf16.mxu0 %vm18771_vm4, %v18995_v8 }
 0x955   :  { %v19002_v14 = vpop.eup %17521 }
 0x956   :  { %v2498_v31 = vsel %vm1887_vm5, %v19002_v14, 0.0  ;;  %v19010_v22 = vpop.eup %17523 }
 0x957   :  { %2499 = vadd.xlane.f32.xlu1 %v2498_v31  ;;  %v2492_v26 = vsel %vm1887_vm5, %v19010_v22, 0.0  ;;  %v19014_v4 = vpop.eup %17525 }
 0x958   :  { %v2495_v36 = vsel %vm1887_vm5, %v19014_v4, 0.0 }
 0x959   :  { %v19018_v41 = vpop.eup %17527 }
 0x95a   :  { %v2504_v33 = vsel %vm1887_vm5, %v19018_v41, 0.0  ;;  %v19022_v3 = vpop.eup %17529 }
 0x95b   :  { %v2501_v11 = vsel %vm1887_vm5, %v19022_v3, 0.0 }
 0x965   :  { %16934 = vrot.lane.b32.xlu0 %v18737_v40, %s18176_s25 }
 0x968   :  { %2813 = vrot.lane.b32.xlu1 %v18711_v29, %s18177_s26 }
 0x984   :  { %2493 = vadd.xlane.f32.xlu0 %v2492_v26 }
 0x988   :  { %2496 = vadd.xlane.f32.xlu0 %v2495_v36 }
 0x98c   :  { %2505 = vadd.xlane.f32.xlu1 %v2504_v33 }
 0x990   :  { %2502 = vadd.xlane.f32.xlu1 %v2501_v11 }
 0x99e   :  { %16939 = vrot.lane.b32.xlu0 %v18747_v47, %s18176_s25 }
 0x9a1   :  { %2817 = vrot.lane.b32.xlu1 %v18723_v34, %s18177_s26 }
 0x9a2   :  { %2815 = vrot.lane.b32.xlu0 %v18709_v27, %s18177_s26 }
 0x9a5   :  { %2821 = vrot.lane.b32.xlu1 %v18733_v39, %s18177_s26 }
 0x9a6   :  { %2819 = vrot.lane.b32.xlu0 %v18721_v32, %s18177_s26 }
 0x9a9   :  { %2825 = vrot.lane.b32.xlu1 %v18743_v46, %s18177_s26 }
 0x9aa   :  { %2823 = vrot.lane.b32.xlu0 %v18731_v37, %s18177_s26 }
 0x9ad   :  { %16944 = vrot.lane.b32.xlu1 %v18717_v30, %s18178_s2 }
 0x9ae   :  { %2827 = vrot.lane.b32.xlu0 %v18741_v43, %s18177_s26 }
 0x9b1   :  { %16954 = vrot.lane.b32.xlu1 %v18737_v40, %s18178_s2 }
 0x9b2   :  { %16949 = vrot.lane.b32.xlu0 %v18727_v35, %s18178_s2 }
 0x9b5   :  { %3360 = vrot.lane.b32.xlu1 %v18711_v29, %s18179_s27  ;;  %v16930_v29 = vpop.permute.xlu1 %16929 }
 0x9b6   :  { %16959 = vrot.lane.b32.xlu0 %v18747_v47, %s18178_s2  ;;  %v16932_v13 = vunpack.i.h.bf16 %v16930_v29 }
 0x9b9   :  { %3364 = vrot.lane.b32.xlu1 %v18723_v34, %s18179_s27 }
 0x9ba   :  { %3362 = vrot.lane.b32.xlu0 %v18709_v27, %s18179_s27 }
 0x9bd   :  { %3368 = vrot.lane.b32.xlu1 %v18733_v39, %s18179_s27 }
 0x9be   :  { %3366 = vrot.lane.b32.xlu0 %v18721_v32, %s18179_s27  ;;  %v16931_v32 = vunpack.i.l.bf16 %v16930_v29 }
 0x9c1   :  { %3372 = vrot.lane.b32.xlu1 %v18743_v46, %s18179_s27 }
 0x9c2   :  { %3370 = vrot.lane.b32.xlu0 %v18731_v37, %s18179_s27  ;;  %v16040_v37 = vpack.c.bf16 %v16932_v13, %v16931_v32 }
 0x9c6   :  { %3374 = vrot.lane.b32.xlu0 %v18741_v43, %s18179_s27 }
 0x9db   :  { %v2488_v34 = vpop.xlane.xlu1 %2487 }
 0x9dc   :  { %17531 = vrcp.f32 %v2488_v34  ;;  %v2485_v62 = vpop.xlane.xlu0 %2484 }
 0x9dd   :  { %17533 = vrcp.f32 %v2485_v62 }
 0x9e0   :  { %v2491_v27 = vpop.xlane.xlu1 %2490  ;;  %v16935_v21 = vpop.permute.xlu0 %16934 }
 0x9e1   :  { %17535 = vrcp.f32 %v2491_v27  ;;  %v16937_v44 = vunpack.i.h.bf16 %v16935_v21 }
 0x9e6   :  { %v17532_v39 = vpop.eup %17531 }
 0x9e7   :  { %v17534_v7 = vpop.eup %17533  ;;  %v2516_v46 = vmul.f32 %v17532_v39, %v18985_v0 }
 0x9e8   :  { %v2515_v5 = vmul.f32 %v17534_v7, %v18987_v28  ;;  %v16936_v28 = vunpack.i.l.bf16 %v16935_v21 }
 0x9ea   :  { %14664 = vmatprep.mubr.msk.f32.mxu0 %vm1887_vm5, %v2515_v5  ;;  %v16046_v0 = vpack.c.bf16 %v16937_v44, %v16936_v28 }
 0x9eb   :  { %14665 = vmatmul.mubr.msk.f32.vlgmr.msra.gmra.mrb[36].mxu0 %vm1887_vm5, %v2516_v46  ;;  %v17536_v43 = vpop.eup %17535 }
 0x9ec   :  { %16039 = vmatpush3.bf16.xpose.msk.msra.mxu0 %vm18771_vm4, %v18995_v8  ;;  %v2517_v31 = vmul.f32 %v17536_v43, %v18993_v25  ;;  %v2500_v8 = vpop.xlane.xlu1 %2499 }
 0x9ed   :  { %16042 = vmatprep.subr.msk.bf16.mxu0 %vm18771_vm4, %v16040_v37 }
 0x9ee   :  { %14667 = vmatprep.mubr.msk.f32.mxu0 %vm1887_vm5, %v2517_v31 }
 0x9f0   :  { %v2814_v25 = vpop.permute.xlu1 %2813 }
 0x9f4   :  { %16045 = vmatpush3.bf16.xpose.msk.msra.mxu0 %vm18771_vm4, %v16040_v37 }
 0x9f5   :  { %16048 = vmatprep.subr.msk.bf16.mxu0 %vm18771_vm4, %v16046_v0 }
 0x9fc   :  { %16051 = vmatpush3.bf16.xpose.msk.msra.mxu0 %vm18771_vm4, %v16046_v0 }
 0xa11   :  { %v2494_v17 = vpop.xlane.xlu0 %2493 }
 0xa12   :  { %17537 = vrcp.f32 %v2494_v17 }
 0xa13   :  { %17539 = vrcp.f32 %v2500_v8 }
 0xa15   :  { %v2497_v61 = vpop.xlane.xlu0 %2496 }
 0xa16   :  { %17541 = vrcp.f32 %v2497_v61 }
 0xa19   :  { %v16940_v16 = vpop.permute.xlu0 %16939  ;;  %v2506_v19 = vpop.xlane.xlu1 %2505 }
 0xa1a   :  { %v16942_v38 = vunpack.i.h.bf16 %v16940_v16  ;;  %v16941_v20 = vunpack.i.l.bf16 %v16940_v16  ;;  %17543 = vrcp.f32 %v2506_v19 }
 0xa1c   :  { %v17538_v10 = vpop.eup %17537  ;;  %v16052_v23 = vpack.c.bf16 %v16942_v38, %v16941_v20  ;;  %v1718_v20 = vld [vmem:[%s22733_s8 + $0x8] sm:$0xff] }
 0xa1d   :  { %v2816_v26 = vpop.permute.xlu0 %2815  ;;  %v2518_v36 = vmul.f32 %v17538_v10, %v19010_v22  ;;  %v2503_v33 = vpop.xlane.xlu1 %2502  ;;  %14676 = vmatprep.subr.mxu1 %v1718_v20 }
 0xa1e   :  { %16054 = vmatprep.subr.msk.bf16.mxu0 %vm18771_vm4, %v16052_v23  ;;  %v17540_v11 = vpop.eup %17539  ;;  %17545 = vrcp.f32 %v2503_v33  ;;  %14677 = vmatpush3.msra.mxu1 %v1718_v20 }
 0xa1f   :  { %14668 = vmatmul.mubr.msk.f32.gmra.mrb[38].mxu0 %vm1887_vm5, %v2518_v36  ;;  %v2520_v39 = vmul.f32 %v17540_v11, %v19002_v14 }
 0xa20   :  { %v17542_v29 = vpop.eup %17541  ;;  %16057 = vmatpush3.bf16.xpose.msk.msra.mxu0 %vm18771_vm4, %v16052_v23 }
 0xa21   :  { %v2820_v34 = vpop.permute.xlu0 %2819  ;;  %v2519_v62 = vmul.f32 %v17542_v29, %v19014_v4  ;;  %v2818_v27 = vpop.permute.xlu1 %2817 }
 0xa23   :  { %14670 = vmatprep.mubr.msk.f32.mxu0 %vm1887_vm5, %v2519_v62 }
 0xa24   :  { %14671 = vmatmul.mubr.msk.f32.gmra.mrb[40].mxu0 %vm1887_vm5, %v2520_v39  ;;  %v17544_v13 = vpop.eup %17543 }
 0xa25   :  { %v2824_v22 = vpop.permute.xlu0 %2823  ;;  %v2822_v7 = vpop.permute.xlu1 %2821  ;;  %v2522_v43 = vmul.f32 %v17544_v13, %v19018_v41 }
 0xa28   :  { %v17546_v32 = vpop.eup %17545 }
 0xa29   :  { %v2828_v5 = vpop.permute.xlu0 %2827  ;;  %v2826_v46 = vpop.permute.xlu1 %2825  ;;  %v2521_v37 = vmul.f32 %v17546_v32, %v19022_v3 }
 0xa2b   :  { %14673 = vmatprep.mubr.msk.f32.mxu0 %vm1887_vm5, %v2521_v37 }
 0xa2c   :  { %14674 = vmatmul.mubr.msk.f32.gmra.mrb[42].mxu0 %vm1887_vm5, %v2522_v43 }
 0xa2d   :  { %v16950_v4 = vpop.permute.xlu0 %16949  ;;  %v16945_v14 = vpop.permute.xlu1 %16944  ;;  %14706 = vmatprep.mubr.msk.f32.mxu0 %vm1749_vm3, %v2814_v25 }
 0xa2e   :  { %v16947_v21 = vunpack.i.h.bf16 %v16945_v14  ;;  %v16946_v31 = vunpack.i.l.bf16 %v16945_v14  ;;  %v16952_v44 = vunpack.i.h.bf16 %v16950_v4  ;;  %v16951_v28 = vunpack.i.l.bf16 %v16950_v4 }
 0xa30   :  { %v16074_v0 = vpack.c.bf16 %v16947_v21, %v16946_v31  ;;  %14707 = vmatmul.mubr.msk.f32.vlgmr.msra.gmra.mrb[44].mxu0 %vm1749_vm3, %v2816_v26  ;;  %v16080_v3 = vpack.c.bf16 %v16952_v44, %v16951_v28 }
 0xa31   :  { %14709 = vmatprep.mubr.msk.f32.mxu0 %vm1749_vm3, %v2818_v27  ;;  %v16955_v41 = vpop.permute.xlu1 %16954  ;;  %v16960_v25 = vpop.permute.xlu0 %16959 }
 0xa32   :  { %16076 = vmatprep.subr.msk.bf16.mxu0 %vm18771_vm4, %v16074_v0  ;;  %v16957_v8 = vunpack.i.h.bf16 %v16955_v41  ;;  %v16956_v17 = vunpack.i.l.bf16 %v16955_v41  ;;  %v16962_v19 = vunpack.i.h.bf16 %v16960_v25  ;;  %v16961_v38 = vunpack.i.l.bf16 %v16960_v25 }
 0xa33   :  { %16079 = vmatpush3.bf16.xpose.msk.msra.mxu0 %vm18771_vm4, %v16074_v0 }
 0xa34   :  { %14710 = vmatmul.mubr.msk.f32.gmra.mrb[46].mxu0 %vm1749_vm3, %v2820_v34  ;;  %16082 = vmatprep.subr.msk.bf16.mxu0 %vm18771_vm4, %v16080_v3  ;;  %v16086_v61 = vpack.c.bf16 %v16957_v8, %v16956_v17  ;;  %v16092_v10 = vpack.c.bf16 %v16962_v19, %v16961_v38  ;;  %v19134_v34 = vld [vmem:[%s22732_s7] ss:$0 sm:$0xff] }
 0xa35   :  { %14712 = vmatprep.mubr.msk.f32.mxu0 %vm1749_vm3, %v2822_v7  ;;  %v3361_v16 = vpop.permute.xlu1 %3360  ;;  %v3363_v23 = vpop.permute.xlu0 %3362  ;;  %v19138_v62 = vadd.f32 %v19134_v34, %v18755_v50 }
 0xa38   :  { %14713 = vmatmul.mubr.msk.f32.gmra.mrb[48].mxu0 %vm1749_vm3, %v2824_v22 }
 0xa39   :  { %14715 = vmatprep.mubr.msk.f32.mxu0 %vm1749_vm3, %v2826_v46  ;;  %v3365_v26 = vpop.permute.xlu1 %3364  ;;  %v3367_v36 = vpop.permute.xlu0 %3366 }
 0xa3b   :  { %16085 = vmatpush3.bf16.xpose.msk.msra.mxu0 %vm18771_vm4, %v16080_v3 }
 0xa3c   :  { %14716 = vmatmul.mubr.msk.f32.gmra.mrb[50].mxu0 %vm1749_vm3, %v2828_v5  ;;  %16088 = vmatprep.subr.msk.bf16.mxu0 %vm18771_vm4, %v16086_v61 }
 0xa3d   :  { %14776 = vmatprep.mubr.msk.f32.mxu0 %vm1749_vm3, %v3361_v16  ;;  %v3369_v33 = vpop.permute.xlu1 %3368  ;;  %v3371_v11 = vpop.permute.xlu0 %3370 }
 0xa41   :  { %v3373_v29 = vpop.permute.xlu1 %3372  ;;  %v3375_v27 = vpop.permute.xlu0 %3374 }
 0xa43   :  { %16091 = vmatpush3.bf16.xpose.msk.msra.mxu0 %vm18771_vm4, %v16086_v61 }
 0xa44   :  { %16094 = vmatprep.subr.msk.bf16.mxu0 %vm18771_vm4, %v16092_v10 }
 0xa4b   :  { %16097 = vmatpush3.bf16.xpose.msk.msra.mxu0 %vm18771_vm4, %v16092_v10 }
 0xa52   :  { %14777 = vmatmul.mubr.msk.f32.vlgmr.msra.gmra.mrb[52].mxu0 %vm1749_vm3, %v3363_v23 }
 0xa53   :  { %14779 = vmatprep.mubr.msk.f32.mxu0 %vm1749_vm3, %v3365_v26 }
 0xa56   :  { %14780 = vmatmul.mubr.msk.f32.gmra.mrb[54].mxu0 %vm1749_vm3, %v3367_v36 }
 0xa57   :  { %14782 = vmatprep.mubr.msk.f32.mxu0 %vm1749_vm3, %v3369_v33 }
 0xa5a   :  { %14783 = vmatmul.mubr.msk.f32.gmra.mrb[56].mxu0 %vm1749_vm3, %v3371_v11 }
 0xa5b   :  { %14785 = vmatprep.mubr.msk.f32.mxu0 %vm1749_vm3, %v3373_v29 }
 0xa5e   :  { %14786 = vmatmul.mubr.msk.f32.gmra.mrb[58].mxu0 %vm1749_vm3, %v3375_v27 }
 0xa5f   :  { %14846 = vmatprep.mubr.msk.f32.mxu0 %vm1749_vm3, %v19138_v62 }
 0xabe   :  { %v14666_v39 = vpop.f32.mrb[36].mxu0 }
 0xabf   :  { %v2637_v22 = vpop.f32.mrb[37].mxu0 }
 0xac0   :  { %14678 = vmatprep.mubr.msk.f32.mxu1 %vm1749_vm3, %v2637_v22 }
 0xac1   :  { %14679 = vmatmul.mubr.msk.f32.vlgmr.msra.gmra.mrb[4].mxu1 %vm1749_vm3, %v14666_v39 }
 0xaf2   :  { %v14669_v7 = vpop.f32.mrb[38].mxu0 }
 0xaf3   :  { %v2647_v13 = vpop.f32.mrb[39].mxu0 }
 0xaf4   :  { %14681 = vmatprep.mubr.msk.f32.mxu1 %vm1749_vm3, %v2647_v13 }
 0xaf5   :  { %14682 = vmatmul.mubr.msk.f32.gmra.mrb[6].mxu1 %vm1749_vm3, %v14669_v7 }
 0xaf7   :  { %v14672_v50 = vpop.f32.mrb[40].mxu0 }
 0xaf8   :  { %v2657_v32 = vpop.f32.mrb[41].mxu0 }
 0xaf9   :  { %14684 = vmatprep.mubr.msk.f32.mxu1 %vm1749_vm3, %v2657_v32 }
 0xafa   :  { %14685 = vmatmul.mubr.msk.f32.gmra.mrb[8].mxu1 %vm1749_vm3, %v14672_v50 }
 0xaff   :  { %v14675_v5 = vpop.f32.mrb[42].mxu0 }
 0xb00   :  { %v2667_v46 = vpop.f32.mrb[43].mxu0 }
 0xb01   :  { %14687 = vmatprep.mubr.msk.f32.mxu1 %vm1749_vm3, %v2667_v46 }
 0xb02   :  { %14688 = vmatmul.mubr.msk.f32.gmra.mrb[10].mxu1 %vm1749_vm3, %v14675_v5 }
 0xb03   :  { %v14708_v37 = vpop.f32.mrb[44].mxu0 }
 0xb04   :  { %v2943_v43 = vpop.f32.mrb[45].mxu0  ;;  %v2985_v4 = vsel %vm1887_vm5, %v14708_v37, -inf }
 0xb05   :  { %2986 = vmax.xlane.f32.xlu0 %v2985_v4  ;;  %v2982_v14 = vsel %vm1887_vm5, %v2943_v43, -inf }
 0xb06   :  { %2983 = vmax.xlane.f32.xlu1 %v2982_v14 }
 0xb07   :  { %v14711_v21 = vpop.f32.mrb[46].mxu0 }
 0xb08   :  { %v2953_v31 = vpop.f32.mrb[47].mxu0  ;;  %v2991_v44 = vsel %vm1887_vm5, %v14711_v21, -inf }
 0xb09   :  { %v2988_v28 = vsel %vm1887_vm5, %v2953_v31, -inf }
 0xb0a   :  { %2992 = vmax.xlane.f32.xlu1 %v2991_v44  ;;  %2989 = vmax.xlane.f32.xlu0 %v2988_v28 }
 0xb0b   :  { %v14714_v0 = vpop.f32.mrb[48].mxu0 }
 0xb0c   :  { %v2963_v3 = vpop.f32.mrb[49].mxu0  ;;  %v2997_v41 = vsel %vm1887_vm5, %v14714_v0, -inf }
 0xb0d   :  { %v2994_v8 = vsel %vm1887_vm5, %v2963_v3, -inf }
 0xb0e   :  { %2998 = vmax.xlane.f32.xlu1 %v2997_v41  ;;  %2995 = vmax.xlane.f32.xlu0 %v2994_v8 }
 0xb0f   :  { %v14717_v17 = vpop.f32.mrb[50].mxu0 }
 0xb10   :  { %v2973_v61 = vpop.f32.mrb[51].mxu0  ;;  %v3003_v25 = vsel %vm1887_vm5, %v14717_v17, -inf }
 0xb11   :  { %v3000_v16 = vsel %vm1887_vm5, %v2973_v61, -inf }
 0xb12   :  { %3004 = vmax.xlane.f32.xlu1 %v3003_v25  ;;  %3001 = vmax.xlane.f32.xlu0 %v3000_v16 }
 0xb25   :  { %v19159_v19 = vpop.f32.mrb[52].mxu0 }
 0xb26   :  { %v19161_v38 = vpop.f32.mrb[53].mxu0 }
 0xb28   :  { %16964 = vrot.lane.b32.xlu0 %v18717_v30, %s18180_s0 }
 0xb29   :  { %v19165_v20 = vpop.f32.mrb[54].mxu0 }
 0xb2a   :  { %v19167_v10 = vpop.f32.mrb[55].mxu0 }
 0xb2d   :  { %v19169_v23 = vpop.f32.mrb[56].mxu0 }
 0xb2e   :  { %v19171_v26 = vpop.f32.mrb[57].mxu0 }
 0xb31   :  { %v19173_v36 = vpop.f32.mrb[58].mxu0 }
 0xb32   :  { %v19175_v33 = vpop.f32.mrb[59].mxu0 }
 0xb92   :  { %v2987_v11 = vpop.xlane.xlu0 %2986 }
 0xb93   :  { %v3007_v29 = vsub.f32 %v14708_v37, %v2987_v11  ;;  %v2984_v27 = vpop.xlane.xlu1 %2983 }
 0xb94   :  { %v3006_v39 = vsub.f32 %v2943_v43, %v2984_v27 }
 0xb95   :  { %v3016_v22 = vmul.f32 1.442695, %v3007_v29 }
 0xb96   :  { %v3014_v7 = vmul.f32 1.442695, %v3006_v39 }
 0xb97   :  { %17547 = vpow2.f32 %v3016_v22  ;;  %v2993_v13 = vpop.xlane.xlu1 %2992  ;;  %v2990_v50 = vpop.xlane.xlu0 %2989 }
 0xb98   :  { %17549 = vpow2.f32 %v3014_v7  ;;  %v3009_v32 = vsub.f32 %v14711_v21, %v2993_v13  ;;  %v3008_v5 = vsub.f32 %v2953_v31, %v2990_v50 }
 0xb9a   :  { %v3020_v46 = vmul.f32 1.442695, %v3009_v32  ;;  %v3018_v4 = vmul.f32 1.442695, %v3008_v5 }
 0xb9b   :  { %v2999_v14 = vpop.xlane.xlu1 %2998  ;;  %v2996_v44 = vpop.xlane.xlu0 %2995 }
 0xb9c   :  { %17551 = vpow2.f32 %v3020_v46  ;;  %v3011_v28 = vsub.f32 %v14714_v0, %v2999_v14  ;;  %v3010_v41 = vsub.f32 %v2963_v3, %v2996_v44 }
 0xb9d   :  { %17553 = vpow2.f32 %v3018_v4 }
 0xb9e   :  { %v3024_v8 = vmul.f32 1.442695, %v3011_v28  ;;  %v3022_v37 = vmul.f32 1.442695, %v3010_v41 }
 0xb9f   :  { %v3005_v25 = vpop.xlane.xlu1 %3004  ;;  %v3002_v43 = vpop.xlane.xlu0 %3001 }
 0xba0   :  { %17555 = vpow2.f32 %v3024_v8  ;;  %v3013_v16 = vsub.f32 %v14717_v17, %v3005_v25  ;;  %v3012_v11 = vsub.f32 %v2973_v61, %v3002_v43  ;;  %v19217_v25 = vadd.f32 %v19134_v34, %v18757_v52 }
 0xba1   :  { %v19177_v29 = vpop.eup %17547  ;;  %17557 = vpow2.f32 %v3022_v37  ;;  %v19211_v37 = vadd.f32 %v19134_v34, %v18753_v49  ;;  %v19221_v43 = vadd.f32 %v19134_v34, %v18759_v53  ;;  %v19231_v49 = vadd.f32 %v19134_v34, %v18763_v56 }
 0xba2   :  { %v19179_v21 = vpop.eup %17549  ;;  %v3028_v31 = vmul.f32 1.442695, %v3013_v16  ;;  %v3026_v27 = vmul.f32 1.442695, %v3012_v11  ;;  %v3033_v39 = vsel %vm1887_vm5, %v19177_v29, 0.0  ;;  %v19227_v16 = vadd.f32 %v19134_v34, %v18761_v55 }
 0xba3   :  { %3034 = vadd.xlane.f32.xlu1 %v3033_v39  ;;  %v16965_v0 = vpop.permute.xlu0 %16964  ;;  %v3030_v3 = vsel %vm1887_vm5, %v19179_v21, 0.0  ;;  %v19237_v52 = vpack.i.bf16 %v19211_v37, %v19138_v62  ;;  %v19241_v53 = vadd.f32 %v19134_v34, %v18765_v58  ;;  %v19245_v11 = vadd.f32 %v19134_v34, %v18767_v59 }
 0xba4   :  { %17559 = vpow2.f32 %v3028_v31  ;;  %v16967_v22 = vunpack.i.h.bf16 %v16965_v0  ;;  %v16966_v7 = vunpack.i.l.bf16 %v16965_v0  ;;  %3031 = vadd.xlane.f32.xlu0 %v3030_v3  ;;  %v19251_v55 = vpack.i.bf16 %v19217_v25, %v19221_v43 }
 0xba5   :  { %17561 = vpow2.f32 %v3026_v27  ;;  %v19257_v56 = vpack.i.bf16 %v19227_v16, %v19231_v49  ;;  %v19263_v58 = vpack.i.bf16 %v19241_v53, %v19245_v11  ;;  %v3532_v59 = vsel %vm1887_vm5, %v19159_v19, -inf }
 0xba6   :  { %v19185_v17 = vpop.eup %17551  ;;  %v16058_v61 = vpack.c.bf16 %v16967_v22, %v16966_v7  ;;  %v3529_v34 = vsel %vm1887_vm5, %v19161_v38, -inf  ;;  %v3535_v31 = vsel %vm1887_vm5, %v19167_v10, -inf  ;;  %v3538_v27 = vsel %vm1887_vm5, %v19165_v20, -inf }
 0xba7   :  { %v19187_v13 = vpop.eup %17553  ;;  %v3039_v50 = vsel %vm1887_vm5, %v19185_v17, 0.0  ;;  %v3541_v39 = vsel %vm1887_vm5, %v19171_v26, -inf  ;;  %v3544_v0 = vsel %vm1887_vm5, %v19169_v23, -inf  ;;  %v3547_v3 = vsel %vm1887_vm5, %v19175_v33, -inf }
 0xba8   :  { %3040 = vadd.xlane.f32.xlu1 %v3039_v50  ;;  %v3036_v32 = vsel %vm1887_vm5, %v19187_v13, 0.0  ;;  %16059 = vmatprep.subr.bf16.mxu1 %v16058_v61  ;;  %v3550_v22 = vsel %vm1887_vm5, %v19173_v36, -inf }
 0xba9   :  { %3037 = vadd.xlane.f32.xlu0 %v3036_v32  ;;  %16061 = vmatpush3.bf16.msra.mxu1 %v16058_v61 }
 0xbaa   :  { %v19193_v5 = vpop.eup %17555 }
 0xbab   :  { %v19195_v46 = vpop.eup %17557  ;;  %v3045_v4 = vsel %vm1887_vm5, %v19193_v5, 0.0 }
 0xbac   :  { %3046 = vadd.xlane.f32.xlu1 %v3045_v4  ;;  %v3042_v14 = vsel %vm1887_vm5, %v19195_v46, 0.0 }
 0xbad   :  { %3043 = vadd.xlane.f32.xlu0 %v3042_v14 }
 0xbae   :  { %v19201_v44 = vpop.eup %17559 }
 0xbaf   :  { %v3051_v28 = vsel %vm1887_vm5, %v19201_v44, 0.0  ;;  %v19205_v41 = vpop.eup %17561 }
 0xbb0   :  { %3052 = vadd.xlane.f32.xlu1 %v3051_v28  ;;  %v3048_v8 = vsel %vm1887_vm5, %v19205_v41, 0.0 }
 0xbb4   :  { %3049 = vadd.xlane.f32.xlu1 %v3048_v8 }
 0xbc3   :  { %16974 = vrot.lane.b32.xlu0 %v18737_v40, %s18180_s0 }
 0xbc5   :  { %16969 = vrot.lane.b32.xlu1 %v18727_v35, %s18180_s0 }
 0xbc7   :  { %16979 = vrot.lane.b32.xlu0 %v18747_v47, %s18180_s0 }
 0xbc9   :  { %16984 = vrot.lane.b32.xlu1 %v19237_v52, %s18171_s5 }
 0xbcb   :  { %16989 = vrot.lane.b32.xlu0 %v19251_v55, %s18171_s5 }
 0xbcd   :  { %16994 = vrot.lane.b32.xlu1 %v19257_v56, %s18171_s5 }
 0xbcf   :  { %16999 = vrot.lane.b32.xlu0 %v19263_v58, %s18171_s5 }
 0xbee   :  { %3533 = vmax.xlane.f32.xlu0 %v3532_v59 }
 0xbf1   :  { %3530 = vmax.xlane.f32.xlu1 %v3529_v34 }
 0xbf2   :  { %3536 = vmax.xlane.f32.xlu0 %v3535_v31 }
 0xbf5   :  { %3539 = vmax.xlane.f32.xlu1 %v3538_v27 }
 0xbf6   :  { %3542 = vmax.xlane.f32.xlu0 %v3541_v39 }
 0xbf9   :  { %3545 = vmax.xlane.f32.xlu1 %v3544_v0 }
 0xbfa   :  { %3548 = vmax.xlane.f32.xlu0 %v3547_v3 }
 0xbfd   :  { %3551 = vmax.xlane.f32.xlu1 %v3550_v22 }
 0xc0e   :  { %17009 = vrot.lane.b32.xlu1 %v18727_v35, %s18181_s30 }
 0xc10   :  { %17004 = vrot.lane.b32.xlu0 %v18717_v30, %s18181_s30 }
 0xc30   :  { %v3035_v7 = vpop.xlane.xlu1 %3034 }
 0xc31   :  { %v3032_v61 = vpop.xlane.xlu0 %3031 }
 0xc32   :  { %17563 = vrcp.f32 %v3032_v61 }
 0xc33   :  { %17565 = vrcp.f32 %v3035_v7 }
 0xc35   :  { %v3041_v50 = vpop.xlane.xlu1 %3040 }
 0xc36   :  { %v3038_v32 = vpop.xlane.xlu0 %3037 }
 0xc37   :  { %17567 = vrcp.f32 %v3038_v32 }
 0xc38   :  { %17569 = vrcp.f32 %v3041_v50 }
 0xc39   :  { %v3047_v4 = vpop.xlane.xlu1 %3046 }
 0xc3a   :  { %v3044_v14 = vpop.xlane.xlu0 %3043 }
 0xc3b   :  { %17571 = vrcp.f32 %v3044_v14 }
 0xc3c   :  { %v17564_v28 = vpop.eup %17563  ;;  %17573 = vrcp.f32 %v3047_v4 }
 0xc3d   :  { %v3053_v8 = vpop.xlane.xlu1 %3052  ;;  %v3062_v59 = vmul.f32 %v17564_v28, %v19179_v21 }
 0xc3e   :  { %v16975_v34 = vpop.permute.xlu0 %16974 }
 0xc3f   :  { %14734 = vmatprep.mubr.msk.f32.mxu1 %vm1887_vm5, %v3062_v59  ;;  %v16977_v35 = vunpack.i.h.bf16 %v16975_v34  ;;  %v16976_v39 = vunpack.i.l.bf16 %v16975_v34 }
 0xc41   :  { %v3050_v31 = vpop.xlane.xlu1 %3049  ;;  %v16066_v9 = vpack.c.bf16 %v16977_v35, %v16976_v39 }
 0xc42   :  { %v16980_v27 = vpop.permute.xlu0 %16979  ;;  %17575 = vrcp.f32 %v3050_v31 }
 0xc43   :  { %v16982_v24 = vunpack.i.h.bf16 %v16980_v27  ;;  %v16981_v15 = vunpack.i.l.bf16 %v16980_v27  ;;  %17577 = vrcp.f32 %v3053_v8 }
 0xc45   :  { %v16970_v0 = vpop.permute.xlu1 %16969  ;;  %v16070_v7 = vpack.c.bf16 %v16982_v24, %v16981_v15 }
 0xc46   :  { %v16972_v30 = vunpack.i.h.bf16 %v16970_v0  ;;  %v16971_v3 = vunpack.i.l.bf16 %v16970_v0  ;;  %v16990_v22 = vpop.permute.xlu0 %16989 }
 0xc47   :  { %v16992_v12 = vunpack.i.h.bf16 %v16990_v22  ;;  %v16991_v21 = vunpack.i.l.bf16 %v16990_v22 }
 0xc48   :  { %v16062_v61 = vpack.c.bf16 %v16972_v30, %v16971_v3 }
 0xc49   :  { %v16985_v18 = vpop.permute.xlu1 %16984  ;;  %v16120_v34 = vpack.c.bf16 %v16992_v12, %v16991_v21 }
 0xc4a   :  { %v16987_v28 = vunpack.i.h.bf16 %v16985_v18  ;;  %v16986_v2 = vunpack.i.l.bf16 %v16985_v18  ;;  %16063 = vmatprep.subr.bf16.mxu1 %v16062_v61  ;;  %v17566_v18 = vpop.eup %17565  ;;  %v17000_v27 = vpop.permute.xlu0 %16999 }
 0xc4b   :  { %16065 = vmatpush3.bf16.msra.mxu1 %v16062_v61  ;;  %v17568_v12 = vpop.eup %17567  ;;  %v17002_v39 = vunpack.i.h.bf16 %v17000_v27  ;;  %v17001_v0 = vunpack.i.l.bf16 %v17000_v27 }
 0xc4c   :  { %v16114_v59 = vpack.c.bf16 %v16987_v28, %v16986_v2  ;;  %16067 = vmatprep.subr.bf16.mxu1 %v16066_v9  ;;  %v1719_v2 = vld [vmem:[%s22733_s8 + $0x10] sm:$0xff]  ;;  %v17570_v15 = vpop.eup %17569  ;;  %v3064_v24 = vmul.f32 %v17568_v12, %v19187_v13 }
 0xc4d   :  { %v16995_v32 = vpop.permute.xlu1 %16994  ;;  %v17572_v4 = vpop.eup %17571  ;;  %v3065_v8 = vmul.f32 %v17570_v15, %v19185_v17  ;;  %v16132_v61 = vpack.c.bf16 %v17002_v39, %v17001_v0 }
 0xc4e   :  { %16116 = vmatprep.subr.msk.bf16.mxu0 %vm18771_vm4, %v16114_v59  ;;  %v16997_v50 = vunpack.i.h.bf16 %v16995_v32  ;;  %v16996_v14 = vunpack.i.l.bf16 %v16995_v32  ;;  %v3066_v35 = vmul.f32 %v17572_v4, %v19195_v46 }
 0xc4f   :  { %16069 = vmatpush3.bf16.msra.mxu1 %v16066_v9  ;;  %16119 = vmatpush3.bf16.xpose.msk.msra.mxu0 %vm18771_vm4, %v16114_v59  ;;  %v3063_v9 = vmul.f32 %v17566_v18, %v19177_v29  ;;  %v17574_v29 = vpop.eup %17573 }
 0xc50   :  { %16071 = vmatprep.subr.bf16.mxu1 %v16070_v7  ;;  %16122 = vmatprep.subr.msk.bf16.mxu0 %vm18771_vm4, %v16120_v34  ;;  %v16126_v31 = vpack.c.bf16 %v16997_v50, %v16996_v14  ;;  %v17576_v13 = vpop.eup %17575  ;;  %v3067_v30 = vmul.f32 %v17574_v29, %v19193_v5  ;;  %v18124_v5 = vld [vmem:[%s22733_s8] sm:$0xff] }
 0xc51   :  { %v17578_v3 = vpop.eup %17577  ;;  %v3068_v22 = vmul.f32 %v17576_v13, %v19205_v41 }
 0xc52   :  { %v3069_v17 = vmul.f32 %v17578_v3, %v19201_v44 }
 0xc53   :  { %16073 = vmatpush3.bf16.msra.mxu1 %v16070_v7 }
 0xc54   :  { %14746 = vmatprep.subr.mxu1 %v1719_v2 }
 0xc56   :  { %14735 = vmatmul.mubr.msk.f32.vlgmr.msra.gmra.mrb[20].mxu1 %vm1887_vm5, %v3063_v9 }
 0xc57   :  { %14737 = vmatprep.mubr.msk.f32.mxu1 %vm1887_vm5, %v3064_v24  ;;  %16125 = vmatpush3.bf16.xpose.msk.msra.mxu0 %vm18771_vm4, %v16120_v34 }
 0xc58   :  { %16128 = vmatprep.subr.msk.bf16.mxu0 %vm18771_vm4, %v16126_v31  ;;  %14747 = vmatpush3.msra.mxu1 %v1719_v2 }
 0xc5a   :  { %14738 = vmatmul.mubr.msk.f32.gmra.mrb[22].mxu1 %vm1887_vm5, %v3065_v8 }
 0xc5b   :  { %14740 = vmatprep.mubr.msk.f32.mxu1 %vm1887_vm5, %v3066_v35 }
 0xc5e   :  { %14741 = vmatmul.mubr.msk.f32.gmra.mrb[24].mxu1 %vm1887_vm5, %v3067_v30 }
 0xc5f   :  { %14743 = vmatprep.mubr.msk.f32.mxu1 %vm1887_vm5, %v3068_v22  ;;  %16131 = vmatpush3.bf16.xpose.msk.msra.mxu0 %vm18771_vm4, %v16126_v31 }
 0xc60   :  { %16134 = vmatprep.subr.msk.bf16.mxu0 %vm18771_vm4, %v16132_v61 }
 0xc62   :  { %14744 = vmatmul.mubr.msk.f32.gmra.mrb[26].mxu1 %vm1887_vm5, %v3069_v17 }
 0xc67   :  { %16137 = vmatpush3.bf16.xpose.msk.msra.mxu0 %vm18771_vm4, %v16132_v61 }
 0xc68   :  { %14886 = vmatprep.subr.mxu0 %v18124_v5 }
 0xc6e   :  { %14847 = vmatmul.mubr.msk.f32.vlgmr.msra.gmra.mrb[60].mxu0 %vm1749_vm3, %v19211_v37 }
 0xc6f   :  { %14849 = vmatprep.mubr.msk.f32.mxu0 %vm1749_vm3, %v19221_v43  ;;  %14887 = vmatpush3.msra.mxu0 %v18124_v5 }
 0xc72   :  { %14850 = vmatmul.mubr.msk.f32.gmra.mrb[62].mxu0 %vm1749_vm3, %v19217_v25 }
 0xc73   :  { %14852 = vmatprep.mubr.msk.f32.mxu0 %vm1749_vm3, %v19231_v49 }
 0xc76   :  { %14853 = vmatmul.mubr.msk.f32.gmra.mrb[64].mxu0 %vm1749_vm3, %v19227_v16 }
 0xc77   :  { %14855 = vmatprep.mubr.msk.f32.mxu0 %vm1749_vm3, %v19245_v11 }
 0xc7a   :  { %14856 = vmatmul.mubr.msk.f32.gmra.mrb[66].mxu0 %vm1749_vm3, %v19241_v53 }
 0xc7b   :  { %v3534_v46 = vpop.xlane.xlu0 %3533 }
 0xc7c   :  { %v3554_v44 = vsub.f32 %v19159_v19, %v3534_v46 }
 0xc7e   :  { %v3563_v41 = vmul.f32 1.442695, %v3554_v44  ;;  %v3531_v21 = vpop.xlane.xlu1 %3530 }
 0xc7f   :  { %v3553_v28 = vsub.f32 %v19161_v38, %v3531_v21  ;;  %v3537_v59 = vpop.xlane.xlu0 %3536 }
 0xc80   :  { %17579 = vpow2.f32 %v3563_v41  ;;  %v3555_v34 = vsub.f32 %v19167_v10, %v3537_v59 }
 0xc81   :  { %v3561_v7 = vmul.f32 1.442695, %v3553_v28 }
 0xc82   :  { %v3565_v32 = vmul.f32 1.442695, %v3555_v34  ;;  %v3540_v18 = vpop.xlane.xlu1 %3539 }
 0xc83   :  { %17581 = vpow2.f32 %v3561_v7  ;;  %v3556_v2 = vsub.f32 %v19165_v20, %v3540_v18  ;;  %v3543_v12 = vpop.xlane.xlu0 %3542 }
 0xc84   :  { %17583 = vpow2.f32 %v3565_v32  ;;  %v3557_v14 = vsub.f32 %v19171_v26, %v3543_v12 }
 0xc85   :  { %v3567_v50 = vmul.f32 1.442695, %v3556_v2 }
 0xc86   :  { %v3546_v19 = vpop.xlane.xlu1 %3545  ;;  %v3569_v24 = vmul.f32 1.442695, %v3557_v14 }
 0xc87   :  { %17585 = vpow2.f32 %v3567_v50  ;;  %v3558_v9 = vsub.f32 %v19169_v23, %v3546_v19  ;;  %v3549_v38 = vpop.xlane.xlu0 %3548 }
 0xc88   :  { %v3559_v15 = vsub.f32 %v19175_v33, %v3549_v38 }
 0xc89   :  { %v3571_v10 = vmul.f32 1.442695, %v3558_v9 }
 0xc8a   :  { %v19346_v4 = vpop.eup %17579  ;;  %v3573_v31 = vmul.f32 1.442695, %v3559_v15  ;;  %v3552_v27 = vpop.xlane.xlu1 %3551 }
 0xc8b   :  { %17587 = vpow2.f32 %v3571_v10  ;;  %v3560_v20 = vsub.f32 %v19173_v36, %v3552_v27  ;;  %v17005_v8 = vpop.permute.xlu0 %17004  ;;  %v3580_v26 = vsel %vm1887_vm5, %v19346_v4, 0.0 }
 0xc8c   :  { %17589 = vpow2.f32 %v3573_v31  ;;  %v17007_v29 = vunpack.i.h.bf16 %v17005_v8  ;;  %v17006_v35 = vunpack.i.l.bf16 %v17005_v8  ;;  %3581 = vadd.xlane.f32.xlu1 %v3580_v26 }
 0xc8d   :  { %v19351_v23 = vpop.eup %17581  ;;  %17591 = vpow2.f32 %v3569_v24  ;;  %v3575_v33 = vmul.f32 1.442695, %v3560_v20 }
 0xc8e   :  { %v3577_v13 = vsel %vm1887_vm5, %v19351_v23, 0.0  ;;  %v16098_v39 = vpack.c.bf16 %v17007_v29, %v17006_v35  ;;  %v19355_v0 = vpop.eup %17583  ;;  %v17010_v28 = vpop.permute.xlu1 %17009 }
 0xc8f   :  { %3578 = vadd.xlane.f32.xlu0 %v3577_v13  ;;  %17593 = vpow2.f32 %v3575_v33  ;;  %v3583_v3 = vsel %vm1887_vm5, %v19355_v0, 0.0  ;;  %v17012_v12 = vunpack.i.h.bf16 %v17010_v28  ;;  %v17011_v50 = vunpack.i.l.bf16 %v17010_v28 }
 0xc90   :  { %16099 = vmatprep.subr.bf16.mxu1 %v16098_v39 }
 0xc91   :  { %v19357_v36 = vpop.eup %17585  ;;  %v16102_v24 = vpack.c.bf16 %v17012_v12, %v17011_v50 }
 0xc92   :  { %v3586_v30 = vsel %vm1887_vm5, %v19357_v36, 0.0 }
 0xc93   :  { %3587 = vadd.xlane.f32.xlu1 %v3586_v30  ;;  %3584 = vadd.xlane.f32.xlu0 %v3583_v3 }
 0xc95   :  { %v19363_v22 = vpop.eup %17587 }
 0xc96   :  { %v19365_v61 = vpop.eup %17589  ;;  %v3592_v17 = vsel %vm1887_vm5, %v19363_v22, 0.0 }
 0xc97   :  { %v19369_v5 = vpop.eup %17591  ;;  %3593 = vadd.xlane.f32.xlu1 %v3592_v17  ;;  %v3595_v46 = vsel %vm1887_vm5, %v19365_v61, 0.0 }
 0xc98   :  { %3596 = vadd.xlane.f32.xlu0 %v3595_v46  ;;  %v3589_v44 = vsel %vm1887_vm5, %v19369_v5, 0.0 }
 0xc99   :  { %v19375_v41 = vpop.eup %17593 }
 0xc9a   :  { %v3598_v21 = vsel %vm1887_vm5, %v19375_v41, 0.0 }
 0xc9b   :  { %3590 = vadd.xlane.f32.xlu1 %v3589_v44 }
 0xc9f   :  { %3599 = vadd.xlane.f32.xlu1 %v3598_v21 }
 0xcae   :  { %17014 = vrot.lane.b32.xlu0 %v18737_v40, %s18181_s30 }
 0xcb0   :  { %17019 = vrot.lane.b32.xlu1 %v18747_v47, %s18181_s30 }
 0xd19   :  { %v3582_v59 = vpop.xlane.xlu1 %3581 }
 0xd1c   :  { %v3579_v34 = vpop.xlane.xlu0 %3578 }
 0xd1d   :  { %17595 = vrcp.f32 %v3579_v34 }
 0xd1e   :  { %17597 = vrcp.f32 %v3582_v59 }
 0xd20   :  { %v3588_v7 = vpop.xlane.xlu1 %3587  ;;  %v3585_v32 = vpop.xlane.xlu0 %3584 }
 0xd21   :  { %17599 = vrcp.f32 %v3585_v32 }
 0xd22   :  { %17601 = vrcp.f32 %v3588_v7 }
 0xd24   :  { %v3594_v18 = vpop.xlane.xlu1 %3593 }
 0xd25   :  { %v3597_v2 = vpop.xlane.xlu0 %3596 }
 0xd27   :  { %v17596_v13 = vpop.eup %17595 }
 0xd28   :  { %v3591_v14 = vpop.xlane.xlu1 %3590  ;;  %v17598_v3 = vpop.eup %17597  ;;  %v3609_v17 = vmul.f32 %v17596_v13, %v19351_v23 }
 0xd29   :  { %v17015_v19 = vpop.permute.xlu0 %17014  ;;  %v14736_v9 = vpop.f32.mrb[20].mxu1  ;;  %17603 = vrcp.f32 %v3591_v14  ;;  %v3610_v44 = vmul.f32 %v17598_v3, %v19346_v4 }
 0xd2a   :  { %v3184_v38 = vpop.f32.mrb[21].mxu1  ;;  %v17017_v40 = vunpack.i.h.bf16 %v17015_v19  ;;  %v17016_v15 = vunpack.i.l.bf16 %v17015_v19  ;;  %17605 = vrcp.f32 %v3594_v18 }
 0xd2b   :  { %14748 = vmatprep.mubr.msk.f32.mxu1 %vm1749_vm3, %v3184_v38  ;;  %17607 = vrcp.f32 %v3597_v2  ;;  %v17600_v46 = vpop.eup %17599 }
 0xd2c   :  { %14749 = vmatmul.mubr.msk.f32.vlgmr.msra.gmra.mrb[4].mxu1 %vm1749_vm3, %v14736_v9  ;;  %v3600_v47 = vpop.xlane.xlu1 %3599  ;;  %v16106_v20 = vpack.c.bf16 %v17017_v40, %v17016_v15  ;;  %v17602_v21 = vpop.eup %17601  ;;  %v3611_v28 = vmul.f32 %v17600_v46, %v19355_v0 }
 0xd2d   :  { %16101 = vmatpush3.bf16.msra.mxu1 %v16098_v39  ;;  %v14739_v10 = vpop.f32.mrb[22].mxu1  ;;  %17609 = vrcp.f32 %v3600_v47  ;;  %v3612_v34 = vmul.f32 %v17602_v21, %v19357_v36 }
 0xd2e   :  { %16103 = vmatprep.subr.bf16.mxu1 %v16102_v24  ;;  %v3194_v31 = vpop.f32.mrb[23].mxu1 }
 0xd2f   :  { %14751 = vmatprep.mubr.msk.f32.mxu1 %vm1749_vm3, %v3194_v31  ;;  %v1720_v31 = vld [vmem:[%s22733_s8 + $0x18] sm:$0xff] }
 0xd30   :  { %14752 = vmatmul.mubr.msk.f32.gmra.mrb[6].mxu1 %vm1749_vm3, %v14739_v10  ;;  %v17020_v27 = vpop.permute.xlu1 %17019 }
 0xd31   :  { %v17022_v8 = vunpack.i.h.bf16 %v17020_v27  ;;  %v17021_v26 = vunpack.i.l.bf16 %v17020_v27  ;;  %16105 = vmatpush3.bf16.msra.mxu1 %v16102_v24  ;;  %v14742_v29 = vpop.f32.mrb[24].mxu1 }
 0xd32   :  { %16107 = vmatprep.subr.bf16.mxu1 %v16106_v20  ;;  %v3204_v35 = vpop.f32.mrb[25].mxu1 }
 0xd33   :  { %14754 = vmatprep.mubr.msk.f32.mxu1 %vm1749_vm3, %v3204_v35  ;;  %v16110_v33 = vpack.c.bf16 %v17022_v8, %v17021_v26  ;;  %v17604_v59 = vpop.eup %17603 }
 0xd34   :  { %14755 = vmatmul.mubr.msk.f32.gmra.mrb[8].mxu1 %vm1749_vm3, %v14742_v29  ;;  %v17606_v23 = vpop.eup %17605  ;;  %v3613_v7 = vmul.f32 %v17604_v59, %v19369_v5 }
 0xd35   :  { %16109 = vmatpush3.bf16.msra.mxu1 %v16106_v20  ;;  %v14745_v39 = vpop.f32.mrb[26].mxu1  ;;  %v17608_v32 = vpop.eup %17607  ;;  %v3614_v0 = vmul.f32 %v17606_v23, %v19363_v22 }
 0xd36   :  { %16111 = vmatprep.subr.bf16.mxu1 %v16110_v33  ;;  %v3214_v30 = vpop.f32.mrb[27].mxu1  ;;  %v3615_v36 = vmul.f32 %v17608_v32, %v19365_v61 }
 0xd37   :  { %14757 = vmatprep.mubr.msk.f32.mxu1 %vm1749_vm3, %v3214_v30  ;;  %v17610_v12 = vpop.eup %17609 }
 0xd38   :  { %14758 = vmatmul.mubr.msk.f32.gmra.mrb[10].mxu1 %vm1749_vm3, %v14745_v39  ;;  %v3616_v19 = vmul.f32 %v17610_v12, %v19375_v41 }
 0xd39   :  { %16113 = vmatpush3.bf16.msra.mxu1 %v16110_v33  ;;  %14804 = vmatprep.mubr.msk.f32.mxu1 %vm1887_vm5, %v3609_v17 }
 0xd3a   :  { %14816 = vmatprep.subr.mxu1 %v1720_v31 }
 0xd3c   :  { %14805 = vmatmul.mubr.msk.f32.vlgmr.msra.gmra.mrb[28].mxu1 %vm1887_vm5, %v3610_v44 }
 0xd3d   :  { %14807 = vmatprep.mubr.msk.f32.mxu1 %vm1887_vm5, %v3611_v28  ;;  %14817 = vmatpush3.msra.mxu1 %v1720_v31 }
 0xd40   :  { %14808 = vmatmul.mubr.msk.f32.gmra.mrb[30].mxu1 %vm1887_vm5, %v3612_v34 }
 0xd41   :  { %14810 = vmatprep.mubr.msk.f32.mxu1 %vm1887_vm5, %v3613_v7  ;;  %v14848_v18 = vpop.f32.mrb[60].mxu0 }
 0xd42   :  { %v4029_v4 = vpop.f32.mrb[61].mxu0  ;;  %v4071_v2 = vsel %vm1887_vm5, %v14848_v18, -inf }
 0xd43   :  { %4072 = vmax.xlane.f32.xlu1 %v4071_v2  ;;  %v4068_v50 = vsel %vm1887_vm5, %v4029_v4, -inf }
 0xd44   :  { %14811 = vmatmul.mubr.msk.f32.gmra.mrb[32].mxu1 %vm1887_vm5, %v3614_v0  ;;  %4069 = vmax.xlane.f32.xlu0 %v4068_v50 }
 0xd45   :  { %14813 = vmatprep.mubr.msk.f32.mxu1 %vm1887_vm5, %v3615_v36  ;;  %v19407_v5 = vpop.f32.mrb[62].mxu0 }
 0xd46   :  { %v4039_v14 = vpop.f32.mrb[63].mxu0  ;;  %v4077_v40 = vsel %vm1887_vm5, %v19407_v5, -inf }
 0xd47   :  { %v4074_v9 = vsel %vm1887_vm5, %v4039_v14, -inf }
 0xd48   :  { %14814 = vmatmul.mubr.msk.f32.gmra.mrb[34].mxu1 %vm1887_vm5, %v3616_v19  ;;  %4075 = vmax.xlane.f32.xlu0 %v4074_v9 }
 0xd49   :  { %v14854_v22 = vpop.f32.mrb[64].mxu0 }
 0xd4a   :  { %v19412_v38 = vpop.f32.mrb[65].mxu0  ;;  %v4083_v61 = vsel %vm1887_vm5, %v14854_v22, -inf }
 0xd4b   :  { %4084 = vmax.xlane.f32.xlu1 %v4083_v61  ;;  %v4080_v24 = vsel %vm1887_vm5, %v19412_v38, -inf }
 0xd4c   :  { %4078 = vmax.xlane.f32.xlu0 %v4077_v40 }
 0xd4d   :  { %v19417_v15 = vpop.f32.mrb[66].mxu0 }
 0xd4e   :  { %v19419_v47 = vpop.f32.mrb[67].mxu0  ;;  %v4089_v41 = vsel %vm1887_vm5, %v19417_v15, -inf }
 0xd4f   :  { %4090 = vmax.xlane.f32.xlu1 %v4089_v41  ;;  %v4086_v10 = vsel %vm1887_vm5, %v19419_v47, -inf }
 0xd50   :  { %4081 = vmax.xlane.f32.xlu0 %v4080_v24 }
 0xd54   :  { %4087 = vmax.xlane.f32.xlu0 %v4086_v10 }
 0xd60   :  { %17029 = vrot.lane.b32.xlu1 %v19251_v55, %s18172_s3 }
 0xd64   :  { %17034 = vrot.lane.b32.xlu1 %v19257_v56, %s18172_s3 }
 0xd68   :  { %17049 = vrot.lane.b32.xlu1 %v19251_v55, %s18173_s21 }
 0xd6a   :  { %17024 = vrot.lane.b32.xlu0 %v19237_v52, %s18172_s3 }
 0xd6e   :  { %17039 = vrot.lane.b32.xlu0 %v19263_v58, %s18172_s3 }
 0xd72   :  { %17044 = vrot.lane.b32.xlu0 %v19237_v52, %s18173_s21 }
 0xdd0   :  { %v4073_v27 = vpop.xlane.xlu1 %4072 }
 0xdd1   :  { %v4093_v20 = vsub.f32 %v14848_v18, %v4073_v27  ;;  %v4070_v8 = vpop.xlane.xlu0 %4069 }
 0xdd2   :  { %v4092_v26 = vsub.f32 %v4029_v4, %v4070_v8 }
 0xdd3   :  { %v4102_v29 = vmul.f32 1.442695, %v4093_v20 }
 0xdd4   :  { %v4100_v35 = vmul.f32 1.442695, %v4092_v26 }
 0xdd5   :  { %17611 = vpow2.f32 %v4102_v29  ;;  %v4076_v33 = vpop.xlane.xlu0 %4075 }
 0xdd6   :  { %17613 = vpow2.f32 %v4100_v35  ;;  %v4094_v13 = vsub.f32 %v4039_v14, %v4076_v33 }
 0xdd8   :  { %v4104_v39 = vmul.f32 1.442695, %v4094_v13  ;;  %v4085_v30 = vpop.xlane.xlu1 %4084 }
 0xdd9   :  { %v4097_v3 = vsub.f32 %v14854_v22, %v4085_v30  ;;  %v4079_v17 = vpop.xlane.xlu0 %4078 }
 0xdda   :  { %17615 = vpow2.f32 %v4104_v39  ;;  %v4095_v36 = vsub.f32 %v19407_v5, %v4079_v17 }
 0xddb   :  { %v4110_v46 = vmul.f32 1.442695, %v4097_v3 }
 0xddc   :  { %v4091_v14 = vpop.xlane.xlu1 %4090  ;;  %v4106_v19 = vmul.f32 1.442695, %v4095_v36 }
 0xddd   :  { %17617 = vpow2.f32 %v4110_v46  ;;  %v4082_v44 = vpop.xlane.xlu0 %4081  ;;  %v4099_v22 = vsub.f32 %v19417_v15, %v4091_v14 }
 0xdde   :  { %v4096_v9 = vsub.f32 %v19412_v38, %v4082_v44  ;;  %17619 = vpow2.f32 %v4106_v19 }
 0xddf   :  { %v19442_v21 = vpop.eup %17611  ;;  %v4114_v41 = vmul.f32 1.442695, %v4099_v22 }
 0xde0   :  { %v19444_v28 = vpop.eup %17613  ;;  %v4119_v59 = vsel %vm1887_vm5, %v19442_v21, 0.0  ;;  %v4108_v61 = vmul.f32 1.442695, %v4096_v9  ;;  %v17030_v40 = vpop.permute.xlu1 %17029 }
 0xde1   :  { %4120 = vadd.xlane.f32.xlu1 %v4119_v59  ;;  %v4088_v34 = vpop.xlane.xlu0 %4087  ;;  %v4116_v23 = vsel %vm1887_vm5, %v19444_v28, 0.0  ;;  %v17032_v10 = vunpack.i.h.bf16 %v17030_v40  ;;  %v17031_v31 = vunpack.i.l.bf16 %v17030_v40 }
 0xde2   :  { %4117 = vadd.xlane.f32.xlu0 %v4116_v23  ;;  %17621 = vpow2.f32 %v4108_v61  ;;  %v4098_v24 = vsub.f32 %v19419_v47, %v4088_v34 }
 0xde3   :  { %17623 = vpow2.f32 %v4114_v41  ;;  %v16142_v15 = vpack.c.bf16 %v17032_v10, %v17031_v31 }
 0xde4   :  { %v19450_v7 = vpop.eup %17615  ;;  %v17035_v27 = vpop.permute.xlu1 %17034  ;;  %v4112_v5 = vmul.f32 1.442695, %v4098_v24 }
 0xde5   :  { %v17025_v32 = vpop.permute.xlu0 %17024  ;;  %v4122_v18 = vsel %vm1887_vm5, %v19450_v7, 0.0  ;;  %v17037_v38 = vunpack.i.h.bf16 %v17035_v27  ;;  %v17036_v29 = vunpack.i.l.bf16 %v17035_v27 }
 0xde6   :  { %v17027_v4 = vunpack.i.h.bf16 %v17025_v32  ;;  %v17026_v2 = vunpack.i.l.bf16 %v17025_v32  ;;  %4123 = vadd.xlane.f32.xlu1 %v4122_v18  ;;  %17625 = vpow2.f32 %v4112_v5 }
 0xde7   :  { %v19454_v0 = vpop.eup %17617  ;;  %v16146_v3 = vpack.c.bf16 %v17037_v38, %v17036_v29 }
 0xde8   :  { %v4131_v12 = vsel %vm1887_vm5, %v19454_v0, 0.0  ;;  %v16138_v50 = vpack.c.bf16 %v17027_v4, %v17026_v2  ;;  %v19468_v35 = vpop.eup %17619  ;;  %v17050_v9 = vpop.permute.xlu1 %17049 }
 0xde9   :  { %v17040_v26 = vpop.permute.xlu0 %17039  ;;  %v4125_v30 = vsel %vm1887_vm5, %v19468_v35, 0.0  ;;  %v17052_v10 = vunpack.i.h.bf16 %v17050_v9  ;;  %v17051_v31 = vunpack.i.l.bf16 %v17050_v9 }
 0xdea   :  { %4132 = vadd.xlane.f32.xlu1 %v4131_v12  ;;  %16139 = vmatprep.subr.bf16.mxu1 %v16138_v50  ;;  %v17042_v13 = vunpack.i.h.bf16 %v17040_v26  ;;  %v17041_v39 = vunpack.i.l.bf16 %v17040_v26 }
 0xdeb   :  { %v16160_v5 = vpack.c.bf16 %v17052_v10, %v17051_v31 }
 0xdec   :  { %v19474_v17 = vpop.eup %17621  ;;  %v16150_v18 = vpack.c.bf16 %v17042_v13, %v17041_v39 }
 0xded   :  { %v17045_v46 = vpop.permute.xlu0 %17044  ;;  %v4128_v32 = vsel %vm1887_vm5, %v19474_v17, 0.0  ;;  %v19480_v4 = vpop.eup %17623 }
 0xdee   :  { %v17047_v34 = vunpack.i.h.bf16 %v17045_v46  ;;  %v17046_v23 = vunpack.i.l.bf16 %v17045_v46  ;;  %v4137_v36 = vsel %vm1887_vm5, %v19480_v4, 0.0 }
 0xdf0   :  { %v19486_v14 = vpop.eup %17625 }
 0xdf1   :  { %v4134_v19 = vsel %vm1887_vm5, %v19486_v14, 0.0 }
 0xdf8   :  { %17054 = vrot.lane.b32.xlu0 %v19257_v56, %s18173_s21 }
 0xdfb   :  { %4446 = vrot.lane.b32.xlu1 %v19138_v62, %s18174_s22 }
 0xe0f   :  { %v14806_v20 = vpop.f32.mrb[28].mxu1 }
 0xe10   :  { %v3731_v8 = vpop.f32.mrb[29].mxu1 }
 0xe11   :  { %14818 = vmatprep.mubr.msk.f32.mxu1 %vm1749_vm3, %v3731_v8 }
 0xe12   :  { %14819 = vmatmul.mubr.msk.f32.vlgmr.msra.gmra.mrb[4].mxu1 %vm1749_vm3, %v14806_v20 }
 0xe13   :  { %16141 = vmatpush3.bf16.msra.mxu1 %v16138_v50  ;;  %v14809_v33 = vpop.f32.mrb[30].mxu1  ;;  %v16154_v50 = vpack.c.bf16 %v17047_v34, %v17046_v23 }
 0xe14   :  { %16143 = vmatprep.subr.bf16.mxu1 %v16142_v15  ;;  %v3741_v47 = vpop.f32.mrb[31].mxu1 }
 0xe15   :  { %14821 = vmatprep.mubr.msk.f32.mxu1 %vm1749_vm3, %v3741_v47 }
 0xe16   :  { %14822 = vmatmul.mubr.msk.f32.gmra.mrb[6].mxu1 %vm1749_vm3, %v14809_v33 }
 0xe17   :  { %16145 = vmatpush3.bf16.msra.mxu1 %v16142_v15  ;;  %v14812_v44 = vpop.f32.mrb[32].mxu1  ;;  %4126 = vadd.xlane.f32.xlu0 %v4125_v30 }
 0xe18   :  { %16147 = vmatprep.subr.bf16.mxu1 %v16146_v3  ;;  %v3751_v59 = vpop.f32.mrb[33].mxu1 }
 0xe19   :  { %14824 = vmatprep.mubr.msk.f32.mxu1 %vm1749_vm3, %v3751_v59 }
 0xe1a   :  { %14825 = vmatmul.mubr.msk.f32.gmra.mrb[8].mxu1 %vm1749_vm3, %v14812_v44 }
 0xe1b   :  { %16149 = vmatpush3.bf16.msra.mxu1 %v16146_v3  ;;  %v14815_v2 = vpop.f32.mrb[34].mxu1  ;;  %4129 = vadd.xlane.f32.xlu0 %v4128_v32 }
 0xe1c   :  { %16151 = vmatprep.subr.bf16.mxu1 %v16150_v18  ;;  %v3761_v12 = vpop.f32.mrb[35].mxu1 }
 0xe1d   :  { %14827 = vmatprep.mubr.msk.f32.mxu1 %vm1749_vm3, %v3761_v12 }
 0xe1e   :  { %14828 = vmatmul.mubr.msk.f32.gmra.mrb[10].mxu1 %vm1749_vm3, %v14815_v2 }
 0xe1f   :  { %16153 = vmatpush3.bf16.msra.mxu1 %v16150_v18  ;;  %4138 = vadd.xlane.f32.xlu1 %v4137_v36 }
 0xe20   :  { %16156 = vmatprep.subr.msk.bf16.mxu1 %vm18771_vm4, %v16154_v50 }
 0xe23   :  { %4135 = vadd.xlane.f32.xlu1 %v4134_v19 }
 0xe31   :  { %17059 = vrot.lane.b32.xlu0 %v19263_v58, %s18173_s21 }
 0xe34   :  { %4450 = vrot.lane.b32.xlu1 %v19221_v43, %s18174_s22 }
 0xe35   :  { %4448 = vrot.lane.b32.xlu0 %v19211_v37, %s18174_s22 }
 0xe38   :  { %4454 = vrot.lane.b32.xlu1 %v19231_v49, %s18174_s22 }
 0xe39   :  { %4452 = vrot.lane.b32.xlu0 %v19217_v25, %s18174_s22 }
 0xe3c   :  { %4458 = vrot.lane.b32.xlu1 %v19245_v11, %s18174_s22 }
 0xe3d   :  { %4456 = vrot.lane.b32.xlu0 %v19227_v16, %s18174_s22 }
 0xe40   :  { %17064 = vrot.lane.b32.xlu1 %v19237_v52, %s18176_s25 }
 0xe41   :  { %4460 = vrot.lane.b32.xlu0 %v19241_v53, %s18174_s22 }
 0xe44   :  { %17074 = vrot.lane.b32.xlu1 %v19257_v56, %s18176_s25 }
 0xe45   :  { %17069 = vrot.lane.b32.xlu0 %v19251_v55, %s18176_s25 }
 0xe48   :  { %4993 = vrot.lane.b32.xlu1 %v19138_v62, %s18177_s26 }
 0xe49   :  { %17079 = vrot.lane.b32.xlu0 %v19263_v58, %s18176_s25 }
 0xe4c   :  { %4997 = vrot.lane.b32.xlu1 %v19221_v43, %s18177_s26 }
 0xe4d   :  { %4995 = vrot.lane.b32.xlu0 %v19211_v37, %s18177_s26 }
 0xe50   :  { %5001 = vrot.lane.b32.xlu1 %v19231_v49, %s18177_s26 }
 0xe51   :  { %4999 = vrot.lane.b32.xlu0 %v19217_v25, %s18177_s26 }
 0xe54   :  { %5005 = vrot.lane.b32.xlu1 %v19245_v11, %s18177_s26 }
 0xe55   :  { %5003 = vrot.lane.b32.xlu0 %v19227_v16, %s18177_s26 }
 0xe59   :  { %5007 = vrot.lane.b32.xlu0 %v19241_v53, %s18177_s26 }
 0xe6e   :  { %v4121_v22 = vpop.xlane.xlu1 %4120 }
 0xe6f   :  { %17627 = vrcp.f32 %v4121_v22  ;;  %v4118_v61 = vpop.xlane.xlu0 %4117 }
 0xe70   :  { %17629 = vrcp.f32 %v4118_v61 }
 0xe73   :  { %v4124_v40 = vpop.xlane.xlu1 %4123  ;;  %v17055_v26 = vpop.permute.xlu0 %17054 }
 0xe74   :  { %17631 = vrcp.f32 %v4124_v40  ;;  %v17056_v29 = vunpack.i.l.bf16 %v17055_v26 }
 0xe77   :  { %v4133_v15 = vpop.xlane.xlu1 %4132 }
 0xe79   :  { %v17628_v41 = vpop.eup %17627 }
 0xe7a   :  { %v17630_v24 = vpop.eup %17629  ;;  %v4149_v20 = vmul.f32 %v17628_v41, %v19442_v21 }
 0xe7b   :  { %v4148_v27 = vmul.f32 %v17630_v24, %v19444_v28  ;;  %v17057_v28 = vunpack.i.h.bf16 %v17055_v26 }
 0xe7d   :  { %14874 = vmatprep.mubr.msk.f32.mxu1 %vm1887_vm5, %v4148_v27  ;;  %v16166_v21 = vpack.c.bf16 %v17057_v28, %v17056_v29 }
 0xe7e   :  { %v17632_v8 = vpop.eup %17631  ;;  %14875 = vmatmul.mubr.msk.f32.vlgmr.msra.gmra.mrb[36].mxu1 %vm1887_vm5, %v4149_v20 }
 0xe7f   :  { %16159 = vmatpush3.bf16.xpose.msk.msra.mxu1 %vm18771_vm4, %v16154_v50  ;;  %v4150_v38 = vmul.f32 %v17632_v8, %v19450_v7  ;;  %v4447_v7 = vpop.permute.xlu1 %4446 }
 0xe80   :  { %16162 = vmatprep.subr.msk.bf16.mxu1 %vm18771_vm4, %v16160_v5 }
 0xe81   :  { %14877 = vmatprep.mubr.msk.f32.mxu1 %vm1887_vm5, %v4150_v38 }
 0xe87   :  { %16165 = vmatpush3.bf16.xpose.msk.msra.mxu1 %vm18771_vm4, %v16160_v5 }
 0xe88   :  { %16168 = vmatprep.subr.msk.bf16.mxu1 %vm18771_vm4, %v16166_v21 }
 0xe8f   :  { %16171 = vmatpush3.bf16.xpose.msk.msra.mxu1 %vm18771_vm4, %v16166_v21 }
 0xea4   :  { %v4127_v33 = vpop.xlane.xlu0 %4126 }
 0xea5   :  { %17633 = vrcp.f32 %v4127_v33 }
 0xea6   :  { %17635 = vrcp.f32 %v4133_v15 }
 0xea8   :  { %v4130_v47 = vpop.xlane.xlu0 %4129 }
 0xea9   :  { %17637 = vrcp.f32 %v4130_v47 }
 0xeac   :  { %v4139_v13 = vpop.xlane.xlu1 %4138  ;;  %v17060_v39 = vpop.permute.xlu0 %17059 }
 0xead   :  { %v17062_v30 = vunpack.i.h.bf16 %v17060_v39  ;;  %v17061_v3 = vunpack.i.l.bf16 %v17060_v39  ;;  %17639 = vrcp.f32 %v4139_v13 }
 0xeaf   :  { %v17634_v46 = vpop.eup %17633  ;;  %v16172_v44 = vpack.c.bf16 %v17062_v30, %v17061_v3 }
 0xeb0   :  { %v4136_v59 = vpop.xlane.xlu1 %4135  ;;  %v4449_v34 = vpop.permute.xlu0 %4448  ;;  %v4151_v23 = vmul.f32 %v17634_v46, %v19468_v35 }
 0xeb1   :  { %17641 = vrcp.f32 %v4136_v59  ;;  %16174 = vmatprep.subr.msk.bf16.mxu1 %vm18771_vm4, %v16172_v44  ;;  %v17636_v32 = vpop.eup %17635 }
 0xeb2   :  { %14878 = vmatmul.mubr.msk.f32.gmra.mrb[38].mxu1 %vm1887_vm5, %v4151_v23  ;;  %v4153_v36 = vmul.f32 %v17636_v32, %v19454_v0 }
 0xeb3   :  { %v17638_v18 = vpop.eup %17637  ;;  %16177 = vmatpush3.bf16.xpose.msk.msra.mxu1 %vm18771_vm4, %v16172_v44 }
 0xeb4   :  { %v4451_v2 = vpop.permute.xlu1 %4450  ;;  %v4453_v12 = vpop.permute.xlu0 %4452  ;;  %v4152_v50 = vmul.f32 %v17638_v18, %v19474_v17 }
 0xeb6   :  { %14880 = vmatprep.mubr.msk.f32.mxu1 %vm1887_vm5, %v4152_v50 }
 0xeb7   :  { %14881 = vmatmul.mubr.msk.f32.gmra.mrb[40].mxu1 %vm1887_vm5, %v4153_v36  ;;  %v17640_v9 = vpop.eup %17639 }
 0xeb8   :  { %v4455_v35 = vpop.permute.xlu1 %4454  ;;  %v4457_v19 = vpop.permute.xlu0 %4456  ;;  %v4155_v24 = vmul.f32 %v17640_v9, %v19480_v4 }
 0xebb   :  { %v17642_v22 = vpop.eup %17641 }
 0xebc   :  { %v4459_v61 = vpop.permute.xlu1 %4458  ;;  %v4461_v40 = vpop.permute.xlu0 %4460  ;;  %v4154_v41 = vmul.f32 %v17642_v22, %v19486_v14 }
 0xebe   :  { %14883 = vmatprep.mubr.msk.f32.mxu1 %vm1887_vm5, %v4154_v41 }
 0xebf   :  { %14884 = vmatmul.mubr.msk.f32.gmra.mrb[42].mxu1 %vm1887_vm5, %v4155_v24 }
 0xec0   :  { %v17065_v17 = vpop.permute.xlu1 %17064  ;;  %v17070_v0 = vpop.permute.xlu0 %17069  ;;  %14916 = vmatprep.mubr.msk.f32.mxu1 %vm1749_vm3, %v4447_v7 }
 0xec1   :  { %v17067_v10 = vunpack.i.h.bf16 %v17065_v17  ;;  %v17066_v31 = vunpack.i.l.bf16 %v17065_v17  ;;  %v17072_v27 = vunpack.i.h.bf16 %v17070_v0  ;;  %v17071_v20 = vunpack.i.l.bf16 %v17070_v0 }
 0xec3   :  { %v16194_v8 = vpack.c.bf16 %v17067_v10, %v17066_v31  ;;  %14917 = vmatmul.mubr.msk.f32.vlgmr.msra.gmra.mrb[44].mxu1 %vm1749_vm3, %v4449_v34  ;;  %v16200_v14 = vpack.c.bf16 %v17072_v27, %v17071_v20 }
 0xec4   :  { %14919 = vmatprep.mubr.msk.f32.mxu1 %vm1749_vm3, %v4451_v2  ;;  %v17075_v4 = vpop.permute.xlu1 %17074  ;;  %v17080_v28 = vpop.permute.xlu0 %17079 }
 0xec5   :  { %16196 = vmatprep.subr.msk.bf16.mxu1 %vm18771_vm4, %v16194_v8  ;;  %v17077_v5 = vunpack.i.h.bf16 %v17075_v4  ;;  %v17076_v26 = vunpack.i.l.bf16 %v17075_v4  ;;  %v17082_v21 = vunpack.i.h.bf16 %v17080_v28  ;;  %v17081_v15 = vunpack.i.l.bf16 %v17080_v28 }
 0xec6   :  { %16199 = vmatpush3.bf16.xpose.msk.msra.mxu1 %vm18771_vm4, %v16194_v8 }
 0xec7   :  { %14920 = vmatmul.mubr.msk.f32.gmra.mrb[46].mxu1 %vm1749_vm3, %v4453_v12  ;;  %16202 = vmatprep.subr.msk.bf16.mxu1 %vm18771_vm4, %v16200_v14  ;;  %v16206_v38 = vpack.c.bf16 %v17077_v5, %v17076_v26  ;;  %v16212_v33 = vpack.c.bf16 %v17082_v21, %v17081_v15 }
 0xec8   :  { %14922 = vmatprep.mubr.msk.f32.mxu1 %vm1749_vm3, %v4455_v35  ;;  %v4994_v29 = vpop.permute.xlu1 %4993  ;;  %v4996_v7 = vpop.permute.xlu0 %4995 }
 0xecb   :  { %14923 = vmatmul.mubr.msk.f32.gmra.mrb[48].mxu1 %vm1749_vm3, %v4457_v19 }
 0xecc   :  { %14925 = vmatprep.mubr.msk.f32.mxu1 %vm1749_vm3, %v4459_v61  ;;  %v4998_v47 = vpop.permute.xlu1 %4997  ;;  %v5000_v13 = vpop.permute.xlu0 %4999 }
 0xece   :  { %16205 = vmatpush3.bf16.xpose.msk.msra.mxu1 %vm18771_vm4, %v16200_v14 }
 0xecf   :  { %14926 = vmatmul.mubr.msk.f32.gmra.mrb[50].mxu1 %vm1749_vm3, %v4461_v40  ;;  %16208 = vmatprep.subr.msk.bf16.mxu1 %vm18771_vm4, %v16206_v38 }
 0xed0   :  { %14986 = vmatprep.mubr.msk.f32.mxu1 %vm1749_vm3, %v4994_v29  ;;  %v5002_v3 = vpop.permute.xlu1 %5001  ;;  %v5004_v44 = vpop.permute.xlu0 %5003 }
 0xed4   :  { %v5006_v34 = vpop.permute.xlu1 %5005  ;;  %v5008_v18 = vpop.permute.xlu0 %5007 }
 0xed6   :  { %16211 = vmatpush3.bf16.xpose.msk.msra.mxu1 %vm18771_vm4, %v16206_v38 }
 0xed7   :  { %16214 = vmatprep.subr.msk.bf16.mxu1 %vm18771_vm4, %v16212_v33 }
 0xede   :  { %16217 = vmatpush3.bf16.xpose.msk.msra.mxu1 %vm18771_vm4, %v16212_v33 }
 0xee5   :  { %v19587_v39 = vpop.f32.mrb[4].mxu1  ;;  %14987 = vmatmul.mubr.msk.f32.vlgmr.msra.gmra.mrb[52].mxu1 %vm1749_vm3, %v4996_v7 }
 0xee6   :  { %v19590_v30 = vpop.f32.mrb[5].mxu1  ;;  %14989 = vmatprep.mubr.msk.f32.mxu1 %vm1749_vm3, %v4998_v47 }
 0xee9   :  { %v19593_v46 = vpop.f32.mrb[6].mxu1  ;;  %14990 = vmatmul.mubr.msk.f32.gmra.mrb[54].mxu1 %vm1749_vm3, %v5000_v13 }
 0xeea   :  { %v19596_v59 = vpop.f32.mrb[7].mxu1  ;;  %14992 = vmatprep.mubr.msk.f32.mxu1 %vm1749_vm3, %v5002_v3 }
 0xeed   :  { %v19599_v23 = vpop.f32.mrb[8].mxu1  ;;  %14993 = vmatmul.mubr.msk.f32.gmra.mrb[56].mxu1 %vm1749_vm3, %v5004_v44 }
 0xeee   :  { %v19602_v32 = vpop.f32.mrb[9].mxu1  ;;  %14995 = vmatprep.mubr.msk.f32.mxu1 %vm1749_vm3, %v5006_v34 }
 0xef1   :  { %v19605_v2 = vpop.f32.mrb[10].mxu1  ;;  %14996 = vmatmul.mubr.msk.f32.gmra.mrb[58].mxu1 %vm1749_vm3, %v5008_v18 }
 0xef2   :  { %v19608_v12 = vpop.f32.mrb[11].mxu1 }
 0xf51   :  { %v14876_v50 = vpop.f32.mrb[36].mxu1 }
 0xf52   :  { %v4270_v36 = vpop.f32.mrb[37].mxu1 }
 0xf53   :  { %14888 = vmatprep.mubr.msk.f32.mxu0 %vm1749_vm3, %v4270_v36 }
 0xf54   :  { %14889 = vmatmul.mubr.msk.f32.vlgmr.msra.gmra.mrb[68].mxu0 %vm1749_vm3, %v14876_v50 }
 0xf85   :  { %v14879_v35 = vpop.f32.mrb[38].mxu1 }
 0xf86   :  { %v4280_v19 = vpop.f32.mrb[39].mxu1 }
 0xf87   :  { %14891 = vmatprep.mubr.msk.f32.mxu0 %vm1749_vm3, %v4280_v19 }
 0xf88   :  { %14892 = vmatmul.mubr.msk.f32.gmra.mrb[70].mxu0 %vm1749_vm3, %v14879_v35 }
 0xf8a   :  { %v14882_v9 = vpop.f32.mrb[40].mxu1 }
 0xf8b   :  { %v4290_v22 = vpop.f32.mrb[41].mxu1 }
 0xf8c   :  { %14894 = vmatprep.mubr.msk.f32.mxu0 %vm1749_vm3, %v4290_v22 }
 0xf8d   :  { %14895 = vmatmul.mubr.msk.f32.gmra.mrb[72].mxu0 %vm1749_vm3, %v14882_v9 }
 0xf92   :  { %v14885_v61 = vpop.f32.mrb[42].mxu1 }
 0xf93   :  { %v4300_v40 = vpop.f32.mrb[43].mxu1 }
 0xf94   :  { %14897 = vmatprep.mubr.msk.f32.mxu0 %vm1749_vm3, %v4300_v40 }
 0xf95   :  { %14898 = vmatmul.mubr.msk.f32.gmra.mrb[74].mxu0 %vm1749_vm3, %v14885_v61 }
 0xf96   :  { %v14918_v41 = vpop.f32.mrb[44].mxu1 }
 0xf97   :  { %v4576_v24 = vpop.f32.mrb[45].mxu1  ;;  %v4618_v17 = vsel %vm1887_vm5, %v14918_v41, -inf }
 0xf98   :  { %4619 = vmax.xlane.f32.xlu0 %v4618_v17  ;;  %v4615_v0 = vsel %vm1887_vm5, %v4576_v24, -inf }
 0xf99   :  { %4616 = vmax.xlane.f32.xlu1 %v4615_v0 }
 0xf9a   :  { %v14921_v10 = vpop.f32.mrb[46].mxu1 }
 0xf9b   :  { %v4586_v31 = vpop.f32.mrb[47].mxu1  ;;  %v4624_v27 = vsel %vm1887_vm5, %v14921_v10, -inf }
 0xf9c   :  { %v4621_v20 = vsel %vm1887_vm5, %v4586_v31, -inf }
 0xf9d   :  { %4625 = vmax.xlane.f32.xlu1 %v4624_v27  ;;  %4622 = vmax.xlane.f32.xlu0 %v4621_v20 }
 0xf9e   :  { %v14924_v8 = vpop.f32.mrb[48].mxu1 }
 0xf9f   :  { %v4596_v14 = vpop.f32.mrb[49].mxu1  ;;  %v4630_v4 = vsel %vm1887_vm5, %v14924_v8, -inf }
 0xfa0   :  { %v4627_v5 = vsel %vm1887_vm5, %v4596_v14, -inf }
 0xfa1   :  { %4631 = vmax.xlane.f32.xlu1 %v4630_v4  ;;  %4628 = vmax.xlane.f32.xlu0 %v4627_v5 }
 0xfa2   :  { %v14927_v26 = vpop.f32.mrb[50].mxu1 }
 0xfa3   :  { %v4606_v38 = vpop.f32.mrb[51].mxu1  ;;  %v4636_v28 = vsel %vm1887_vm5, %v14927_v26, -inf }
 0xfa4   :  { %v4633_v29 = vsel %vm1887_vm5, %v4606_v38, -inf }
 0xfa5   :  { %4637 = vmax.xlane.f32.xlu1 %v4636_v28  ;;  %4634 = vmax.xlane.f32.xlu0 %v4633_v29 }
 0xfb8   :  { %v19626_v21 = vpop.f32.mrb[52].mxu1 }
 0xfb9   :  { %v19628_v15 = vpop.f32.mrb[53].mxu1 }
 0xfbb   :  { %17084 = vrot.lane.b32.xlu0 %v19237_v52, %s18175_s23 }
 0xfbc   :  { %v19632_v33 = vpop.f32.mrb[54].mxu1 }
 0xfbd   :  { %v19634_v7 = vpop.f32.mrb[55].mxu1 }
 0xfc0   :  { %v19636_v47 = vpop.f32.mrb[56].mxu1 }
 0xfc1   :  { %v19638_v13 = vpop.f32.mrb[57].mxu1 }
 0xfc4   :  { %v19640_v3 = vpop.f32.mrb[58].mxu1 }
 0xfc5   :  { %v19642_v44 = vpop.f32.mrb[59].mxu1 }
0x1025   :  { %v4620_v34 = vpop.xlane.xlu0 %4619 }
0x1026   :  { %v4640_v18 = vsub.f32 %v14918_v41, %v4620_v34  ;;  %v4617_v50 = vpop.xlane.xlu1 %4616 }
0x1027   :  { %v4639_v36 = vsub.f32 %v4576_v24, %v4617_v50 }
0x1028   :  { %v4649_v35 = vmul.f32 1.442695, %v4640_v18 }
0x1029   :  { %v4647_v19 = vmul.f32 1.442695, %v4639_v36 }
0x102a   :  { %17643 = vpow2.f32 %v4649_v35  ;;  %v4626_v9 = vpop.xlane.xlu1 %4625  ;;  %v4623_v22 = vpop.xlane.xlu0 %4622 }
0x102b   :  { %17645 = vpow2.f32 %v4647_v19  ;;  %v4642_v61 = vsub.f32 %v14921_v10, %v4626_v9  ;;  %v4641_v40 = vsub.f32 %v4586_v31, %v4623_v22 }
0x102d   :  { %v4653_v17 = vmul.f32 1.442695, %v4642_v61  ;;  %v4651_v0 = vmul.f32 1.442695, %v4641_v40 }
0x102e   :  { %v4632_v27 = vpop.xlane.xlu1 %4631  ;;  %v4629_v20 = vpop.xlane.xlu0 %4628 }
0x102f   :  { %17647 = vpow2.f32 %v4653_v17  ;;  %v4644_v4 = vsub.f32 %v14924_v8, %v4632_v27  ;;  %v4643_v5 = vsub.f32 %v4596_v14, %v4629_v20 }
0x1030   :  { %17649 = vpow2.f32 %v4651_v0 }
0x1031   :  { %v4657_v28 = vmul.f32 1.442695, %v4644_v4  ;;  %v4655_v41 = vmul.f32 1.442695, %v4643_v5 }
0x1032   :  { %v4638_v29 = vpop.xlane.xlu1 %4637  ;;  %v4635_v24 = vpop.xlane.xlu0 %4634 }
0x1033   :  { %17651 = vpow2.f32 %v4657_v28  ;;  %v4646_v34 = vsub.f32 %v14927_v26, %v4638_v29  ;;  %v4645_v18 = vsub.f32 %v4606_v38, %v4635_v24 }
0x1034   :  { %v19644_v50 = vpop.eup %17643  ;;  %17653 = vpow2.f32 %v4655_v41 }
0x1035   :  { %v19646_v10 = vpop.eup %17645  ;;  %v4661_v31 = vmul.f32 1.442695, %v4646_v34  ;;  %v4659_v36 = vmul.f32 1.442695, %v4645_v18  ;;  %v4666_v35 = vsel %vm1887_vm5, %v19644_v50, 0.0 }
0x1036   :  { %4667 = vadd.xlane.f32.xlu1 %v4666_v35  ;;  %v17085_v8 = vpop.permute.xlu0 %17084  ;;  %v4663_v14 = vsel %vm1887_vm5, %v19646_v10, 0.0 }
0x1037   :  { %17655 = vpow2.f32 %v4661_v31  ;;  %v17087_v19 = vunpack.i.h.bf16 %v17085_v8  ;;  %v17086_v9 = vunpack.i.l.bf16 %v17085_v8  ;;  %4664 = vadd.xlane.f32.xlu0 %v4663_v14 }
0x1038   :  { %17657 = vpow2.f32 %v4659_v36 }
0x1039   :  { %v19652_v26 = vpop.eup %17647  ;;  %v16178_v38 = vpack.c.bf16 %v17087_v19, %v17086_v9 }
0x103a   :  { %v19654_v22 = vpop.eup %17649  ;;  %v4672_v61 = vsel %vm1887_vm5, %v19652_v26, 0.0 }
0x103b   :  { %4673 = vadd.xlane.f32.xlu1 %v4672_v61  ;;  %v4669_v40 = vsel %vm1887_vm5, %v19654_v22, 0.0  ;;  %16179 = vmatprep.subr.bf16.mxu0 %v16178_v38 }
0x103c   :  { %4670 = vadd.xlane.f32.xlu0 %v4669_v40  ;;  %16181 = vmatpush3.bf16.msra.mxu0 %v16178_v38 }
0x103d   :  { %v19660_v17 = vpop.eup %17651 }
0x103e   :  { %v19662_v0 = vpop.eup %17653  ;;  %v4678_v27 = vsel %vm1887_vm5, %v19660_v17, 0.0 }
0x103f   :  { %4679 = vadd.xlane.f32.xlu1 %v4678_v27  ;;  %v4675_v20 = vsel %vm1887_vm5, %v19662_v0, 0.0 }
0x1040   :  { %4676 = vadd.xlane.f32.xlu0 %v4675_v20 }
0x1041   :  { %v19668_v4 = vpop.eup %17655 }
0x1042   :  { %v4684_v5 = vsel %vm1887_vm5, %v19668_v4, 0.0  ;;  %v19672_v28 = vpop.eup %17657 }
0x1043   :  { %4685 = vadd.xlane.f32.xlu1 %v4684_v5  ;;  %v4681_v41 = vsel %vm1887_vm5, %v19672_v28, 0.0 }
0x1047   :  { %4682 = vadd.xlane.f32.xlu1 %v4681_v41 }
0x1056   :  { %17094 = vrot.lane.b32.xlu0 %v19257_v56, %s18175_s23 }
0x1058   :  { %17089 = vrot.lane.b32.xlu1 %v19251_v55, %s18175_s23 }
0x105a   :  { %17099 = vrot.lane.b32.xlu0 %v19263_v58, %s18175_s23 }
0x105c   :  { %17104 = vrot.lane.b32.xlu1 %v19237_v52, %s18178_s2 }
0x105e   :  { %17109 = vrot.lane.b32.xlu0 %v19251_v55, %s18178_s2 }
0x1060   :  { %17114 = vrot.lane.b32.xlu1 %v19257_v56, %s18178_s2 }
0x1062   :  { %17119 = vrot.lane.b32.xlu0 %v19263_v58, %s18178_s2 }
0x1064   :  { %5540 = vrot.lane.b32.xlu1 %v19138_v62, %s18179_s27  ;;  %v5165_v62 = vsel %vm1887_vm5, %v19626_v21, -inf }
0x1066   :  { %5542 = vrot.lane.b32.xlu0 %v19211_v37, %s18179_s27  ;;  %v5162_v37 = vsel %vm1887_vm5, %v19628_v15, -inf }
0x1068   :  { %5544 = vrot.lane.b32.xlu1 %v19221_v43, %s18179_s27  ;;  %v5171_v43 = vsel %vm1887_vm5, %v19632_v33, -inf }
0x106a   :  { %5546 = vrot.lane.b32.xlu0 %v19217_v25, %s18179_s27  ;;  %v5168_v25 = vsel %vm1887_vm5, %v19634_v7, -inf }
0x106c   :  { %5548 = vrot.lane.b32.xlu1 %v19231_v49, %s18179_s27  ;;  %v5177_v49 = vsel %vm1887_vm5, %v19636_v47, -inf }
0x106e   :  { %5550 = vrot.lane.b32.xlu0 %v19227_v16, %s18179_s27  ;;  %v5174_v16 = vsel %vm1887_vm5, %v19638_v13, -inf }
0x1070   :  { %5552 = vrot.lane.b32.xlu1 %v19245_v11, %s18179_s27  ;;  %v5183_v11 = vsel %vm1887_vm5, %v19640_v3, -inf }
0x1072   :  { %5554 = vrot.lane.b32.xlu0 %v19241_v53, %s18179_s27  ;;  %v5180_v53 = vsel %vm1887_vm5, %v19642_v44, -inf }
0x1091   :  { %5166 = vmax.xlane.f32.xlu0 %v5165_v62 }
0x1094   :  { %5163 = vmax.xlane.f32.xlu1 %v5162_v37 }
0x1095   :  { %5169 = vmax.xlane.f32.xlu0 %v5168_v25 }
0x1098   :  { %5172 = vmax.xlane.f32.xlu1 %v5171_v43 }
0x1099   :  { %5175 = vmax.xlane.f32.xlu0 %v5174_v16 }
0x109c   :  { %5178 = vmax.xlane.f32.xlu1 %v5177_v49 }
0x109d   :  { %5181 = vmax.xlane.f32.xlu0 %v5180_v53 }
0x10a0   :  { %5184 = vmax.xlane.f32.xlu1 %v5183_v11 }
0x10b3   :  { %17124 = vrot.lane.b32.xlu0 %v19237_v52, %s18180_s0 }
0x10c3   :  { %v4668_v29 = vpop.xlane.xlu1 %4667 }
0x10c4   :  { %v4665_v24 = vpop.xlane.xlu0 %4664 }
0x10c5   :  { %17659 = vrcp.f32 %v4665_v24 }
0x10c6   :  { %17661 = vrcp.f32 %v4668_v29 }
0x10c8   :  { %v4674_v34 = vpop.xlane.xlu1 %4673 }
0x10c9   :  { %v4671_v18 = vpop.xlane.xlu0 %4670 }
0x10ca   :  { %17663 = vrcp.f32 %v4671_v18 }
0x10cb   :  { %17665 = vrcp.f32 %v4674_v34 }
0x10cc   :  { %v4680_v31 = vpop.xlane.xlu1 %4679 }
0x10cd   :  { %v4677_v36 = vpop.xlane.xlu0 %4676 }
0x10ce   :  { %17667 = vrcp.f32 %v4677_v36 }
0x10cf   :  { %v17660_v35 = vpop.eup %17659  ;;  %17669 = vrcp.f32 %v4680_v31 }
0x10d0   :  { %v4686_v8 = vpop.xlane.xlu1 %4685  ;;  %v4695_v14 = vmul.f32 %v17660_v35, %v19646_v10  ;;  %v17662_v34 = vpop.eup %17661 }
0x10d1   :  { %v17095_v19 = vpop.permute.xlu0 %17094  ;;  %v4696_v31 = vmul.f32 %v17662_v34, %v19644_v50 }
0x10d2   :  { %14944 = vmatprep.mubr.msk.f32.mxu0 %vm1887_vm5, %v4695_v14  ;;  %v17097_v61 = vunpack.i.h.bf16 %v17095_v19  ;;  %v17096_v40 = vunpack.i.l.bf16 %v17095_v19 }
0x10d4   :  { %v4683_v9 = vpop.xlane.xlu1 %4682  ;;  %v16186_v16 = vpack.c.bf16 %v17097_v61, %v17096_v40  ;;  %v17664_v36 = vpop.eup %17663  ;;  %v18125_v61 = vld [vmem:[%s22733_s8 + $0x8] sm:$0xff] }
0x10d5   :  { %v17100_v38 = vpop.permute.xlu0 %17099  ;;  %17671 = vrcp.f32 %v4683_v9  ;;  %v17666_v9 = vpop.eup %17665  ;;  %v4697_v40 = vmul.f32 %v17664_v36, %v19654_v22 }
0x10d6   :  { %v17102_v37 = vunpack.i.h.bf16 %v17100_v38  ;;  %v17101_v25 = vunpack.i.l.bf16 %v17100_v38  ;;  %17673 = vrcp.f32 %v4686_v8  ;;  %v4698_v50 = vmul.f32 %v17666_v9, %v19652_v26 }
0x10d8   :  { %v17090_v27 = vpop.permute.xlu1 %17089  ;;  %v16190_v29 = vpack.c.bf16 %v17102_v37, %v17101_v25 }
0x10d9   :  { %v17092_v20 = vunpack.i.h.bf16 %v17090_v27  ;;  %v17091_v5 = vunpack.i.l.bf16 %v17090_v27  ;;  %v17110_v41 = vpop.permute.xlu0 %17109  ;;  %v17668_v27 = vpop.eup %17667 }
0x10da   :  { %v17112_v49 = vunpack.i.h.bf16 %v17110_v41  ;;  %v17111_v10 = vunpack.i.l.bf16 %v17110_v41  ;;  %v17670_v8 = vpop.eup %17669  ;;  %v4699_v41 = vmul.f32 %v17668_v27, %v19662_v0 }
0x10db   :  { %v16182_v62 = vpack.c.bf16 %v17092_v20, %v17091_v5  ;;  %v4700_v25 = vmul.f32 %v17670_v8, %v19660_v17 }
0x10dc   :  { %v17105_v43 = vpop.permute.xlu1 %17104  ;;  %v16240_v14 = vpack.c.bf16 %v17112_v49, %v17111_v10 }
0x10dd   :  { %v17107_v53 = vunpack.i.h.bf16 %v17105_v43  ;;  %v17106_v11 = vunpack.i.l.bf16 %v17105_v43  ;;  %16183 = vmatprep.subr.bf16.mxu0 %v16182_v62  ;;  %v17120_v5 = vpop.permute.xlu0 %17119 }
0x10de   :  { %16185 = vmatpush3.bf16.msra.mxu0 %v16182_v62  ;;  %v17122_v62 = vunpack.i.h.bf16 %v17120_v5  ;;  %v17121_v37 = vunpack.i.l.bf16 %v17120_v5 }
0x10df   :  { %v16234_v24 = vpack.c.bf16 %v17107_v53, %v17106_v11  ;;  %16187 = vmatprep.subr.bf16.mxu0 %v16186_v16  ;;  %v17672_v22 = vpop.eup %17671 }
0x10e0   :  { %v17115_v35 = vpop.permute.xlu1 %17114  ;;  %v17674_v43 = vpop.eup %17673  ;;  %v16252_v49 = vpack.c.bf16 %v17122_v62, %v17121_v37 }
0x10e1   :  { %16236 = vmatprep.subr.msk.bf16.mxu1 %vm18771_vm4, %v16234_v24  ;;  %v17117_v19 = vunpack.i.h.bf16 %v17115_v35  ;;  %v17116_v38 = vunpack.i.l.bf16 %v17115_v35  ;;  %v4702_v26 = vmul.f32 %v17674_v43, %v19668_v4  ;;  %v5543_v0 = vpop.permute.xlu0 %5542 }
0x10e2   :  { %16189 = vmatpush3.bf16.msra.mxu0 %v16186_v16  ;;  %16239 = vmatpush3.bf16.xpose.msk.msra.mxu1 %vm18771_vm4, %v16234_v24  ;;  %v4701_v16 = vmul.f32 %v17672_v22, %v19672_v28 }
0x10e3   :  { %16191 = vmatprep.subr.bf16.mxu0 %v16190_v29  ;;  %16242 = vmatprep.subr.msk.bf16.mxu1 %vm18771_vm4, %v16240_v14  ;;  %v16246_v20 = vpack.c.bf16 %v17117_v19, %v17116_v38 }
0x10e4   :  { %v5541_v18 = vpop.permute.xlu1 %5540 }
0x10e5   :  { %15056 = vmatprep.mubr.msk.f32.mxu1 %vm1749_vm3, %v5541_v18  ;;  %v5547_v28 = vpop.permute.xlu0 %5546 }
0x10e6   :  { %16193 = vmatpush3.bf16.msra.mxu0 %v16190_v29 }
0x10e7   :  { %14956 = vmatprep.subr.mxu0 %v18125_v61 }
0x10e8   :  { %v5545_v17 = vpop.permute.xlu1 %5544 }
0x10e9   :  { %14945 = vmatmul.mubr.msk.f32.vlgmr.msra.gmra.mrb[76].mxu0 %vm1887_vm5, %v4696_v31  ;;  %v5551_v53 = vpop.permute.xlu0 %5550 }
0x10ea   :  { %14947 = vmatprep.mubr.msk.f32.mxu0 %vm1887_vm5, %v4697_v40  ;;  %16245 = vmatpush3.bf16.xpose.msk.msra.mxu1 %vm18771_vm4, %v16240_v14 }
0x10eb   :  { %16248 = vmatprep.subr.msk.bf16.mxu1 %vm18771_vm4, %v16246_v20  ;;  %14957 = vmatpush3.msra.mxu0 %v18125_v61 }
0x10ec   :  { %v5549_v10 = vpop.permute.xlu1 %5548 }
0x10ed   :  { %14948 = vmatmul.mubr.msk.f32.gmra.mrb[78].mxu0 %vm1887_vm5, %v4698_v50  ;;  %v5555_v4 = vpop.permute.xlu0 %5554 }
0x10ee   :  { %14950 = vmatprep.mubr.msk.f32.mxu0 %vm1887_vm5, %v4699_v41 }
0x10f0   :  { %v5553_v11 = vpop.permute.xlu1 %5552 }
0x10f1   :  { %14951 = vmatmul.mubr.msk.f32.gmra.mrb[80].mxu0 %vm1887_vm5, %v4700_v25 }
0x10f2   :  { %14953 = vmatprep.mubr.msk.f32.mxu0 %vm1887_vm5, %v4701_v16  ;;  %16251 = vmatpush3.bf16.xpose.msk.msra.mxu1 %vm18771_vm4, %v16246_v20 }
0x10f3   :  { %16254 = vmatprep.subr.msk.bf16.mxu1 %vm18771_vm4, %v16252_v49 }
0x10f5   :  { %14954 = vmatmul.mubr.msk.f32.gmra.mrb[82].mxu0 %vm1887_vm5, %v4702_v26 }
0x10fa   :  { %16257 = vmatpush3.bf16.xpose.msk.msra.mxu1 %vm18771_vm4, %v16252_v49 }
0x1101   :  { %15057 = vmatmul.mubr.msk.f32.vlgmr.msra.gmra.mrb[60].mxu1 %vm1749_vm3, %v5543_v0 }
0x1102   :  { %15059 = vmatprep.mubr.msk.f32.mxu1 %vm1749_vm3, %v5545_v17 }
0x1105   :  { %15060 = vmatmul.mubr.msk.f32.gmra.mrb[62].mxu1 %vm1749_vm3, %v5547_v28 }
0x1106   :  { %15062 = vmatprep.mubr.msk.f32.mxu1 %vm1749_vm3, %v5549_v10 }
0x1109   :  { %15063 = vmatmul.mubr.msk.f32.gmra.mrb[64].mxu1 %vm1749_vm3, %v5551_v53 }
0x110a   :  { %15065 = vmatprep.mubr.msk.f32.mxu1 %vm1749_vm3, %v5553_v11 }
0x110d   :  { %15066 = vmatmul.mubr.msk.f32.gmra.mrb[66].mxu1 %vm1749_vm3, %v5555_v4 }
0x111e   :  { %v5167_v24 = vpop.xlane.xlu0 %5166 }
0x111f   :  { %v5187_v35 = vsub.f32 %v19626_v21, %v5167_v24 }
0x1121   :  { %v5196_v14 = vmul.f32 1.442695, %v5187_v35  ;;  %v5164_v29 = vpop.xlane.xlu1 %5163 }
0x1122   :  { %v5186_v34 = vsub.f32 %v19628_v15, %v5164_v29  ;;  %v5170_v18 = vpop.xlane.xlu0 %5169 }
0x1123   :  { %17675 = vpow2.f32 %v5196_v14  ;;  %v5188_v36 = vsub.f32 %v19634_v7, %v5170_v18 }
0x1124   :  { %v5194_v19 = vmul.f32 1.442695, %v5186_v34 }
0x1125   :  { %v5198_v38 = vmul.f32 1.442695, %v5188_v36  ;;  %v5173_v31 = vpop.xlane.xlu1 %5172 }
0x1126   :  { %17677 = vpow2.f32 %v5194_v19  ;;  %v5189_v61 = vsub.f32 %v19632_v33, %v5173_v31  ;;  %v5176_v9 = vpop.xlane.xlu0 %5175 }
0x1127   :  { %v5190_v40 = vsub.f32 %v19638_v13, %v5176_v9  ;;  %17679 = vpow2.f32 %v5198_v38 }
0x1128   :  { %v5200_v27 = vmul.f32 1.442695, %v5189_v61 }
0x1129   :  { %v5202_v21 = vmul.f32 1.442695, %v5190_v40  ;;  %v5179_v20 = vpop.xlane.xlu1 %5178 }
0x112a   :  { %17681 = vpow2.f32 %v5200_v27  ;;  %v5191_v15 = vsub.f32 %v19636_v47, %v5179_v20  ;;  %v5182_v5 = vpop.xlane.xlu0 %5181 }
0x112b   :  { %17683 = vpow2.f32 %v5202_v21  ;;  %v5192_v7 = vsub.f32 %v19642_v44, %v5182_v5 }
0x112c   :  { %v5204_v50 = vmul.f32 1.442695, %v5191_v15 }
0x112d   :  { %v19774_v8 = vpop.eup %17675  ;;  %v5185_v41 = vpop.xlane.xlu1 %5184  ;;  %v5206_v47 = vmul.f32 1.442695, %v5192_v7  ;;  %v1721_v7 = vlaneseq }
0x112e   :  { %17685 = vpow2.f32 %v5204_v50  ;;  %v5193_v33 = vsub.f32 %v19640_v3, %v5185_v41  ;;  %v17125_v22 = vpop.permute.xlu0 %17124  ;;  %v5213_v13 = vsel %vm1887_vm5, %v19774_v8, 0.0 }
0x112f   :  { %v17127_v62 = vunpack.i.h.bf16 %v17125_v22  ;;  %v17126_v37 = vunpack.i.l.bf16 %v17125_v22  ;;  %5214 = vadd.xlane.f32.xlu1 %v5213_v13  ;;  %v19819_v22 = vshrl.u32 %v1721_v7, 7 }
0x1130   :  { %v17678_v25 = vpop.eup %17677  ;;  %v5208_v43 = vmul.f32 1.442695, %v5193_v33 }
0x1131   :  { %v5210_v16 = vsel %vm1887_vm5, %v17678_v25, 0.0  ;;  %v16218_v49 = vpack.c.bf16 %v17127_v62, %v17126_v37  ;;  %v19780_v44 = vpop.eup %17679 }
0x1132   :  { %17687 = vpow2.f32 %v5208_v43  ;;  %5211 = vadd.xlane.f32.xlu0 %v5210_v16  ;;  %v5216_v0 = vsel %vm1887_vm5, %v19780_v44, 0.0 }
0x1133   :  { %16219 = vmatprep.subr.bf16.mxu0 %v16218_v49  ;;  %17689 = vpow2.f32 %v5206_v47 }
0x1134   :  { %v19782_v26 = vpop.eup %17681 }
0x1135   :  { %v5219_v3 = vsel %vm1887_vm5, %v19782_v26, 0.0  ;;  %v19788_v17 = vpop.eup %17683 }
0x1136   :  { %5220 = vadd.xlane.f32.xlu1 %v5219_v3  ;;  %5217 = vadd.xlane.f32.xlu0 %v5216_v0  ;;  %v5222_v53 = vsel %vm1887_vm5, %v19788_v17, 0.0  ;;  %v22759_v0 = vsub.s32 0, %v19819_v22 }
0x1138   :  { %v19790_v28 = vpop.eup %17685 }
0x1139   :  { %v5225_v10 = vsel %vm1887_vm5, %v19790_v28, 0.0 }
0x113a   :  { %5226 = vadd.xlane.f32.xlu1 %v5225_v10  ;;  %5223 = vadd.xlane.f32.xlu0 %v5222_v53 }
0x113c   :  { %v19796_v11 = vpop.eup %17687 }
0x113d   :  { %v5231_v4 = vsel %vm1887_vm5, %v19796_v11, 0.0  ;;  %v19800_v24 = vpop.eup %17689 }
0x113e   :  { %5232 = vadd.xlane.f32.xlu1 %v5231_v4  ;;  %v5228_v35 = vsel %vm1887_vm5, %v19800_v24, 0.0  ;;  %v19833_v4 = vld [vmem:[%s22737_s12] sm:$0x3f] }
0x1142   :  { %5229 = vadd.xlane.f32.xlu1 %v5228_v35 }
0x1150   :  { %17134 = vrot.lane.b32.xlu0 %v19257_v56, %s18180_s0 }
0x1153   :  { %17129 = vrot.lane.b32.xlu1 %v19251_v55, %s18180_s0 }
0x1154   :  { %17139 = vrot.lane.b32.xlu0 %v19263_v58, %s18180_s0 }
0x11bc   :  { %v14946_v14 = vpop.f32.mrb[76].mxu0  ;;  %v5215_v34 = vpop.xlane.xlu1 %5214 }
0x11bd   :  { %v4817_v29 = vpop.f32.mrb[77].mxu0 }
0x11be   :  { %14958 = vmatprep.mubr.msk.f32.mxu0 %vm1749_vm3, %v4817_v29 }
0x11bf   :  { %v5212_v18 = vpop.xlane.xlu0 %5211  ;;  %14959 = vmatmul.mubr.msk.f32.vlgmr.msra.gmra.mrb[68].mxu0 %vm1749_vm3, %v14946_v14 }
0x11c0   :  { %17691 = vrcp.f32 %v5212_v18  ;;  %16221 = vmatpush3.bf16.msra.mxu0 %v16218_v49  ;;  %v14949_v36 = vpop.f32.mrb[78].mxu0 }
0x11c1   :  { %v4827_v19 = vpop.f32.mrb[79].mxu0  ;;  %17693 = vrcp.f32 %v5215_v34 }
0x11c2   :  { %14961 = vmatprep.mubr.msk.f32.mxu0 %vm1749_vm3, %v4827_v19  ;;  %v19844_v19 = vrot.slane %v19833_v4, %v22759_v0 }
0x11c3   :  { %v5221_v38 = vpop.xlane.xlu1 %5220  ;;  %v5218_v31 = vpop.xlane.xlu0 %5217  ;;  %14962 = vmatmul.mubr.msk.f32.gmra.mrb[70].mxu0 %vm1749_vm3, %v14949_v36 }
0x11c4   :  { %v14952_v61 = vpop.f32.mrb[80].mxu0  ;;  %17695 = vrcp.f32 %v5218_v31 }
0x11c5   :  { %v4837_v9 = vpop.f32.mrb[81].mxu0  ;;  %17697 = vrcp.f32 %v5221_v38 }
0x11c6   :  { %14964 = vmatprep.mubr.msk.f32.mxu0 %vm1749_vm3, %v4837_v9 }
0x11c7   :  { %v5227_v40 = vpop.xlane.xlu1 %5226  ;;  %14965 = vmatmul.mubr.msk.f32.gmra.mrb[72].mxu0 %vm1749_vm3, %v14952_v61  ;;  %v5224_v21 = vpop.xlane.xlu0 %5223 }
0x11c8   :  { %v14955_v27 = vpop.f32.mrb[82].mxu0  ;;  %17699 = vrcp.f32 %v5224_v21  ;;  %v16649_v21 = vadd.f32 %v19590_v30, %v19844_v19 }
0x11c9   :  { %v4847_v20 = vpop.f32.mrb[83].mxu0  ;;  %17701 = vrcp.f32 %v5227_v40 }
0x11ca   :  { %v17692_v15 = vpop.eup %17691  ;;  %14967 = vmatprep.mubr.msk.f32.mxu0 %vm1749_vm3, %v4847_v20  ;;  %v16648_v20 = vadd.f32 %v19587_v39, %v19844_v19  ;;  %v16651_v39 = vadd.f32 %v19596_v59, %v19844_v19  ;;  %v18126_v59 = vld [vmem:[%s22733_s8 + $0x10] sm:$0xff] }
0x11cb   :  { %v5233_v5 = vpop.xlane.xlu1 %5232  ;;  %14968 = vmatmul.mubr.msk.f32.gmra.mrb[74].mxu0 %vm1749_vm3, %v14955_v27  ;;  %v5242_v50 = vmul.f32 %v17692_v15, %v17678_v25  ;;  %v17135_v41 = vpop.permute.xlu0 %17134 }
0x11cc   :  { %v17137_v62 = vunpack.i.h.bf16 %v17135_v41  ;;  %v17136_v37 = vunpack.i.l.bf16 %v17135_v41  ;;  %v16650_v41 = vadd.f32 %v19593_v46, %v19844_v19 }
0x11cd   :  { %15014 = vmatprep.mubr.msk.f32.mxu0 %vm1887_vm5, %v5242_v50  ;;  %v17694_v50 = vpop.eup %17693 }
0x11ce   :  { %v16226_v34 = vpack.c.bf16 %v17137_v62, %v17136_v37  ;;  %v17696_v40 = vpop.eup %17695  ;;  %v19874_v62 = vadd.f32 %v16649_v21, %v18597_v42  ;;  %v5243_v37 = vmul.f32 %v17694_v50, %v19774_v8  ;;  %v19885_v42 = vadd.f32 %v16650_v41, %v18618_v51 }
0x11cf   :  { %v5230_v33 = vpop.xlane.xlu1 %5229  ;;  %v17140_v49 = vpop.permute.xlu0 %17139  ;;  %v19888_v8 = vadd.f32 %v16651_v39, %v18611_v48 }
0x11d0   :  { %v17142_v35 = vunpack.i.h.bf16 %v17140_v49  ;;  %v17141_v14 = vunpack.i.l.bf16 %v17140_v49  ;;  %17703 = vrcp.f32 %v5230_v33  ;;  %v16653_v49 = vadd.f32 %v19602_v32, %v19844_v19 }
0x11d1   :  { %17705 = vrcp.f32 %v5233_v5  ;;  %v17698_v5 = vpop.eup %17697  ;;  %v6112_v32 = vsel %vm1523_vm2, %v19885_v42, 0.0 }
0x11d2   :  { %v16230_v38 = vpack.c.bf16 %v17142_v35, %v17141_v14  ;;  %v5245_v51 = vmul.f32 %v17698_v5, %v19782_v26  ;;  %v6109_v35 = vsel %vm1523_vm2, %v19888_v8, 0.0  ;;  %v19911_v26 = vadd.f32 %v16653_v49, %v18625_v54 }
0x11d3   :  { %v17130_v13 = vpop.permute.xlu1 %17129  ;;  %v16655_v14 = vadd.f32 %v19608_v12, %v19844_v19 }
0x11d4   :  { %v17132_v47 = vunpack.i.h.bf16 %v17130_v13  ;;  %v17131_v43 = vunpack.i.l.bf16 %v17130_v13  ;;  %v19821_v16 = vpop.f32.mrb[60].mxu1  ;;  %v19871_v13 = vadd.f32 %v16648_v20, %v18604_v45  ;;  %v17700_v45 = vpop.eup %17699  ;;  %v6115_v12 = vsel %vm1523_vm2, %v19911_v26, 0.0 }
0x11d5   :  { %v19823_v3 = vpop.f32.mrb[61].mxu1  ;;  %v5712_v25 = vsel %vm1887_vm5, %v19821_v16, -inf  ;;  %v5246_v48 = vmul.f32 %v17700_v45, %v19788_v17  ;;  %v16654_v17 = vadd.f32 %v19605_v2, %v19844_v19  ;;  %v19927_v2 = vadd.f32 %v16655_v14, %v18639_v60 }
0x11d6   :  { %5713 = vmax.xlane.f32.xlu0 %v5712_v25  ;;  %v5709_v10 = vsel %vm1887_vm5, %v19823_v3, -inf  ;;  %v16222_v53 = vpack.c.bf16 %v17132_v47, %v17131_v43  ;;  %v5244_v47 = vmul.f32 %v17696_v40, %v19780_v44  ;;  %v16652_v43 = vadd.f32 %v19599_v23, %v19844_v19 }
0x11d7   :  { %5710 = vmax.xlane.f32.xlu1 %v5709_v10  ;;  %v6106_v44 = vsel %vm1523_vm2, %v19871_v13, 0.0  ;;  %v6103_v25 = vsel %vm1523_vm2, %v19874_v62, 0.0  ;;  %v17702_v10 = vpop.eup %17701 }
0x11d8   :  { %16223 = vmatprep.subr.bf16.mxu0 %v16222_v53  ;;  %v19835_v29 = vpop.f32.mrb[62].mxu1 }
0x11d9   :  { %16225 = vmatpush3.bf16.msra.mxu0 %v16222_v53  ;;  %v19837_v18 = vpop.f32.mrb[63].mxu1  ;;  %v5718_v36 = vsel %vm1887_vm5, %v19835_v29, -inf  ;;  %v19903_v53 = vadd.f32 %v16652_v43, %v18632_v57  ;;  %v5247_v57 = vmul.f32 %v17702_v10, %v19790_v28 }
0x11da   :  { %16227 = vmatprep.subr.bf16.mxu0 %v16226_v34  ;;  %v5715_v31 = vsel %vm1887_vm5, %v19837_v18, -inf  ;;  %v17704_v23 = vpop.eup %17703 }
0x11db   :  { %5719 = vmax.xlane.f32.xlu1 %v5718_v36  ;;  %5716 = vmax.xlane.f32.xlu0 %v5715_v31  ;;  %v5248_v36 = vmul.f32 %v17704_v23, %v19800_v24  ;;  %v6118_v54 = vsel %vm1523_vm2, %v19903_v53, 0.0  ;;  %v19924_v31 = vadd.f32 %v16654_v17, %v18646_v63 }
0x11dc   :  { %v19848_v61 = vpop.f32.mrb[64].mxu1 }
0x11dd   :  { %16229 = vmatpush3.bf16.msra.mxu0 %v16226_v34  ;;  %v19850_v9 = vpop.f32.mrb[65].mxu1  ;;  %v5724_v27 = vsel %vm1887_vm5, %v19848_v61, -inf  ;;  %v17706_v34 = vpop.eup %17705  ;;  %v6124_v24 = vsel %vm1523_vm2, %v19924_v31, 0.0 }
0x11de   :  { %16231 = vmatprep.subr.bf16.mxu0 %v16230_v38  ;;  %v5721_v15 = vsel %vm1887_vm5, %v19850_v9, -inf  ;;  %v5249_v28 = vmul.f32 %v17706_v34, %v19796_v11 }
0x11df   :  { %5725 = vmax.xlane.f32.xlu1 %v5724_v27  ;;  %5722 = vmax.xlane.f32.xlu0 %v5721_v15 }
0x11e0   :  { %v19860_v7 = vpop.f32.mrb[66].mxu1 }
0x11e1   :  { %16233 = vmatpush3.bf16.msra.mxu0 %v16230_v38  ;;  %v19866_v30 = vpop.f32.mrb[67].mxu1  ;;  %v5730_v33 = vsel %vm1887_vm5, %v19860_v7, -inf  ;;  %v6121_v38 = vsel %vm1523_vm2, %v19927_v2, 0.0 }
0x11e2   :  { %v5727_v46 = vsel %vm1887_vm5, %v19866_v30, -inf  ;;  %15026 = vmatprep.subr.mxu0 %v18126_v59 }
0x11e3   :  { %5731 = vmax.xlane.f32.xlu1 %v5730_v33  ;;  %5728 = vmax.xlane.f32.xlu0 %v5727_v46 }
0x11e4   :  { %15015 = vmatmul.mubr.msk.f32.vlgmr.msra.gmra.mrb[84].mxu0 %vm1887_vm5, %v5243_v37 }
0x11e5   :  { %15017 = vmatprep.mubr.msk.f32.mxu0 %vm1887_vm5, %v5244_v47  ;;  %15027 = vmatpush3.msra.mxu0 %v18126_v59 }
0x11e7   :  { %6107 = vadd.xlane.f32.xlu1 %v6106_v44  ;;  %6104 = vadd.xlane.f32.xlu0 %v6103_v25 }
0x11e8   :  { %15018 = vmatmul.mubr.msk.f32.gmra.mrb[86].mxu0 %vm1887_vm5, %v5245_v51 }
0x11e9   :  { %15020 = vmatprep.mubr.msk.f32.mxu0 %vm1887_vm5, %v5246_v48 }
0x11eb   :  { %6113 = vadd.xlane.f32.xlu1 %v6112_v32  ;;  %6110 = vadd.xlane.f32.xlu0 %v6109_v35 }
0x11ec   :  { %15021 = vmatmul.mubr.msk.f32.gmra.mrb[88].mxu0 %vm1887_vm5, %v5247_v57 }
0x11ed   :  { %15023 = vmatprep.mubr.msk.f32.mxu0 %vm1887_vm5, %v5248_v36 }
0x11ef   :  { %6119 = vadd.xlane.f32.xlu1 %v6118_v54  ;;  %6116 = vadd.xlane.f32.xlu0 %v6115_v12 }
0x11f0   :  { %15024 = vmatmul.mubr.msk.f32.gmra.mrb[90].mxu0 %vm1887_vm5, %v5249_v28 }
0x11f3   :  { %6125 = vadd.xlane.f32.xlu1 %v6124_v24  ;;  %6122 = vadd.xlane.f32.xlu0 %v6121_v38 }
0x1209   :  { %17144 = vrot.lane.b32.xlu0 %v19237_v52, %s18181_s30 }
0x1263   :  { %v5714_v60 = vpop.xlane.xlu0 %5713 }
0x1264   :  { %v5711_v63 = vpop.xlane.xlu1 %5710  ;;  %v5734_v43 = vsub.f32 %v19821_v16, %v5714_v60 }
0x1265   :  { %v5733_v27 = vsub.f32 %v19823_v3, %v5711_v63 }
0x1266   :  { %v5743_v32 = vmul.f32 1.442695, %v5734_v43 }
0x1267   :  { %v5741_v11 = vmul.f32 1.442695, %v5733_v27 }
0x1268   :  { %v5720_v20 = vpop.xlane.xlu1 %5719  ;;  %v5717_v21 = vpop.xlane.xlu0 %5716 }
0x1269   :  { %17707 = vpow2.f32 %v5741_v11  ;;  %v5736_v15 = vsub.f32 %v19835_v29, %v5720_v20  ;;  %v5735_v50 = vsub.f32 %v19837_v18, %v5717_v21 }
0x126b   :  { %v5747_v40 = vmul.f32 1.442695, %v5736_v15  ;;  %v5745_v41 = vmul.f32 1.442695, %v5735_v50 }
0x126c   :  { %v5726_v39 = vpop.xlane.xlu1 %5725  ;;  %v5723_v33 = vpop.xlane.xlu0 %5722 }
0x126d   :  { %17709 = vpow2.f32 %v5747_v40  ;;  %v5737_v37 = vsub.f32 %v19850_v9, %v5723_v33  ;;  %v5738_v35 = vsub.f32 %v19848_v61, %v5726_v39 }
0x126e   :  { %17711 = vpow2.f32 %v5745_v41 }
0x126f   :  { %v5749_v52 = vmul.f32 1.442695, %v5737_v37  ;;  %v5751_v54 = vmul.f32 1.442695, %v5738_v35 }
0x1270   :  { %v5732_v46 = vpop.xlane.xlu1 %5731  ;;  %v5729_v59 = vpop.xlane.xlu0 %5728 }
0x1271   :  { %17713 = vpow2.f32 %v5749_v52  ;;  %v5740_v61 = vsub.f32 %v19860_v7, %v5732_v46  ;;  %v5739_v63 = vsub.f32 %v19866_v30, %v5729_v59  ;;  %v6352_v59 = vld [vmem:[%s22734_s9] sm:$0xff] }
0x1272   :  { %17715 = vpow2.f32 %v5743_v32 }
0x1273   :  { %v19943_v3 = vpop.eup %17707  ;;  %17717 = vpow2.f32 %v5751_v54  ;;  %v5755_v60 = vmul.f32 1.442695, %v5740_v61  ;;  %v5753_v21 = vmul.f32 1.442695, %v5739_v63 }
0x1274   :  { %v6108_v5 = vpop.xlane.xlu1 %6107  ;;  %v6105_v47 = vpop.xlane.xlu0 %6104  ;;  %v5757_v29 = vsel %vm1887_vm5, %v19943_v3, 0.0 }
0x1275   :  { %v6153_v18 = vmul.f32 0.03125, %v6108_v5  ;;  %v6152_v45 = vmul.f32 0.03125, %v6105_v47  ;;  %5758 = vadd.xlane.f32.xlu0 %v5757_v29  ;;  %17719 = vpow2.f32 %v5755_v60  ;;  %v6353_v5 = vld [vmem:[%s22734_s9 + $0x8] sm:$0xff]  ;;  %v6354_v29 = vld [vmem:[%s22734_s9 + $0x10] sm:$0xff] }
0x1276   :  { %17721 = vpow2.f32 %v5753_v21  ;;  %v16274_v47 = vpack.c.bf16 %v6353_v5, %v6352_v59  ;;  %v22757_v5 = vsub.s32 2, %v19819_v22 }
0x1277   :  { %v19948_v49 = vpop.eup %17709  ;;  %v19951_v9 = vsub.f32 %v19871_v13, %v6153_v18  ;;  %v19954_v44 = vsub.f32 %v19874_v62, %v6152_v45 }
0x1278   :  { %v6114_v25 = vpop.xlane.xlu1 %6113  ;;  %v6111_v51 = vpop.xlane.xlu0 %6110  ;;  %v5766_v10 = vsel %vm1887_vm5, %v19948_v49, 0.0  ;;  %16275 = vmatprep.subr.bf16.mxu1 %v16274_v47 }
0x1279   :  { %v19958_v48 = vpop.eup %17711  ;;  %v6154_v23 = vmul.f32 0.03125, %v6111_v51  ;;  %5767 = vadd.xlane.f32.xlu0 %v5766_v10  ;;  %v6184_v16 = vmul.f32 %v19954_v44, %v19954_v44  ;;  %v6155_v13 = vmul.f32 0.03125, %v6114_v25  ;;  %v6185_v14 = vmul.f32 %v19951_v9, %v19951_v9  ;;  %16277 = vmatpush3.bf16.msra.mxu1 %v16274_v47 }
0x127a   :  { %v5763_v34 = vsel %vm1887_vm5, %v19958_v48, 0.0 }
0x127b   :  { %v19964_v17 = vsub.f32 %v19888_v8, %v6154_v23  ;;  %v6200_v62 = vsel %vm1523_vm2, %v6184_v16, 0.0  ;;  %v19971_v36 = vpop.eup %17713  ;;  %v19975_v8 = vsub.f32 %v19885_v42, %v6155_v13  ;;  %v6203_v12 = vsel %vm1523_vm2, %v6185_v14, 0.0 }
0x127c   :  { %6201 = vadd.xlane.f32.xlu1 %v6200_v62  ;;  %v6117_v57 = vpop.xlane.xlu0 %6116  ;;  %v5769_v38 = vsel %vm1887_vm5, %v19971_v36, 0.0  ;;  %v19989_v40 = vpop.eup %17715 }
0x127d   :  { %5764 = vadd.xlane.f32.xlu0 %v5763_v34  ;;  %v6186_v28 = vmul.f32 %v19964_v17, %v19964_v17  ;;  %v6187_v42 = vmul.f32 %v19975_v8, %v19975_v8  ;;  %v5760_v30 = vsel %vm1887_vm5, %v19989_v40, 0.0  ;;  %v19993_v41 = vpop.eup %17717  ;;  %v6156_v45 = vmul.f32 0.03125, %v6117_v57  ;;  %v6120_v35 = vpop.xlane.xlu1 %6119 }
0x127e   :  { %v5772_v39 = vsel %vm1887_vm5, %v19993_v41, 0.0 }
0x127f   :  { %v6206_v7 = vsel %vm1523_vm2, %v6186_v28, 0.0  ;;  %v6209_v15 = vsel %vm1523_vm2, %v6187_v42, 0.0  ;;  %v19997_v33 = vpop.eup %17719  ;;  %v20022_v43 = vsub.f32 %v19911_v26, %v6156_v45  ;;  %v6157_v26 = vmul.f32 0.03125, %v6120_v35 }
0x1280   :  { %6204 = vadd.xlane.f32.xlu1 %v6203_v12  ;;  %v19980_v24 = vpop.xlane.xlu0 %6122  ;;  %v5778_v37 = vsel %vm1887_vm5, %v19997_v33, 0.0  ;;  %v20001_v52 = vpop.eup %17721 }
0x1281   :  { %5770 = vadd.xlane.f32.xlu0 %v5769_v38  ;;  %v5775_v46 = vsel %vm1887_vm5, %v20001_v52, 0.0  ;;  %v6188_v25 = vmul.f32 %v20022_v43, %v20022_v43  ;;  %v20034_v14 = vsub.f32 %v19903_v53, %v6157_v26  ;;  %v6158_v57 = vmul.f32 0.03125, %v19980_v24  ;;  %v6126_v54 = vpop.xlane.xlu1 %6125 }
0x1282   :  { %v6159_v61 = vmul.f32 0.03125, %v6126_v54 }
0x1283   :  { %v6212_v51 = vsel %vm1523_vm2, %v6188_v25, 0.0  ;;  %v20040_v12 = vsub.f32 %v19927_v2, %v6158_v57  ;;  %v6189_v28 = vmul.f32 %v20034_v14, %v20034_v14  ;;  %v20069_v25 = vrot.slane %v19833_v4, %v22757_v5 }
0x1284   :  { %6207 = vadd.xlane.f32.xlu1 %v6206_v7  ;;  %v17145_v27 = vpop.permute.xlu0 %17144  ;;  %v20045_v38 = vsub.f32 %v19924_v31, %v6159_v61 }
0x1285   :  { %v17147_v11 = vunpack.i.h.bf16 %v17145_v27  ;;  %v17146_v20 = vunpack.i.l.bf16 %v17145_v27  ;;  %v6215_v53 = vsel %vm1523_vm2, %v6189_v28, 0.0  ;;  %v6190_v24 = vmul.f32 %v20040_v12, %v20040_v12 }
0x1286   :  { %v6191_v2 = vmul.f32 %v20045_v38, %v20045_v38 }
0x1287   :  { %v16258_v50 = vpack.c.bf16 %v17147_v11, %v17146_v20  ;;  %v6218_v60 = vsel %vm1523_vm2, %v6190_v24, 0.0 }
0x1288   :  { %6210 = vadd.xlane.f32.xlu1 %v6209_v15  ;;  %v6221_v63 = vsel %vm1523_vm2, %v6191_v2, 0.0 }
0x1289   :  { %16259 = vmatprep.subr.bf16.mxu0 %v16258_v50 }
0x128c   :  { %5761 = vadd.xlane.f32.xlu1 %v5760_v30 }
0x1290   :  { %5773 = vadd.xlane.f32.xlu1 %v5772_v39  ;;  %v22758_v39 = vsub.s32 1, %v19819_v22 }
0x1294   :  { %5779 = vadd.xlane.f32.xlu1 %v5778_v37 }
0x1297   :  { %17154 = vrot.lane.b32.xlu0 %v19257_v56, %s18181_s30  ;;  %v6355_v56 = vld [vmem:[%s22734_s9 + $0x18] sm:$0xff] }
0x1298   :  { %5776 = vadd.xlane.f32.xlu1 %v5775_v46  ;;  %v16278_v18 = vpack.c.bf16 %v6355_v56, %v6354_v29  ;;  %v20063_v29 = vrot.slane %v19833_v4, %v22758_v39 }
0x129a   :  { %16279 = vmatprep.subr.bf16.mxu1 %v16278_v18 }
0x129b   :  { %16281 = vmatpush3.bf16.msra.mxu1 %v16278_v18 }
0x12a9   :  { %17149 = vrot.lane.b32.xlu1 %v19251_v55, %s18181_s30 }
0x12b6   :  { %6213 = vadd.xlane.f32.xlu0 %v6212_v51 }
0x12b7   :  { %v15016_v10 = vpop.f32.mrb[84].mxu0 }
0x12b8   :  { %v5364_v23 = vpop.f32.mrb[85].mxu0 }
0x12b9   :  { %15028 = vmatprep.mubr.msk.f32.mxu0 %vm1749_vm3, %v5364_v23 }
0x12ba   :  { %15029 = vmatmul.mubr.msk.f32.vlgmr.msra.gmra.mrb[68].mxu0 %vm1749_vm3, %v15016_v10 }
0x12bb   :  { %16261 = vmatpush3.bf16.msra.mxu0 %v16258_v50  ;;  %v15019_v16 = vpop.f32.mrb[86].mxu0 }
0x12bc   :  { %v5374_v32 = vpop.f32.mrb[87].mxu0 }
0x12bd   :  { %15031 = vmatprep.mubr.msk.f32.mxu0 %vm1749_vm3, %v5374_v32 }
0x12be   :  { %15032 = vmatmul.mubr.msk.f32.gmra.mrb[70].mxu0 %vm1749_vm3, %v15019_v16 }
0x12bf   :  { %v15022_v55 = vpop.f32.mrb[88].mxu0 }
0x12c0   :  { %v5384_v13 = vpop.f32.mrb[89].mxu0 }
0x12c1   :  { %15034 = vmatprep.mubr.msk.f32.mxu0 %vm1749_vm3, %v5384_v13 }
0x12c2   :  { %15035 = vmatmul.mubr.msk.f32.gmra.mrb[72].mxu0 %vm1749_vm3, %v15022_v55 }
0x12c3   :  { %v15025_v62 = vpop.f32.mrb[90].mxu0 }
0x12c4   :  { %v5394_v34 = vpop.f32.mrb[91].mxu0 }
0x12c5   :  { %15037 = vmatprep.mubr.msk.f32.mxu0 %vm1749_vm3, %v5394_v34 }
0x12c6   :  { %15038 = vmatmul.mubr.msk.f32.gmra.mrb[74].mxu0 %vm1749_vm3, %v15025_v62 }
0x12cc   :  { %17159 = vrot.lane.b32.xlu0 %v19263_v58, %s18181_s30 }
0x12cd   :  { %6216 = vadd.xlane.f32.xlu1 %v6215_v53 }
0x12d1   :  { %6219 = vadd.xlane.f32.xlu1 %v6218_v60 }
0x12d5   :  { %6222 = vadd.xlane.f32.xlu1 %v6221_v63 }
0x1302   :  { %v5759_v31 = vpop.xlane.xlu0 %5758 }
0x1303   :  { %17723 = vrcp.f32 %v5759_v31 }
0x1306   :  { %v5768_v46 = vpop.xlane.xlu0 %5767 }
0x1309   :  { %v6202_v7 = vpop.xlane.xlu1 %6201 }
0x130a   :  { %v6248_v42 = vmul.f32 0.03125, %v6202_v7  ;;  %v5765_v51 = vpop.xlane.xlu0 %5764 }
0x130c   :  { %v6264_v58 = vadd.f32 1e-05, %v6248_v42 }
0x130d   :  { %v17724_v27 = vpop.eup %17723  ;;  %v6205_v11 = vpop.xlane.xlu1 %6204 }
0x130e   :  { %17725 = vrsqrt.f32 %v6264_v58  ;;  %v6249_v20 = vmul.f32 0.03125, %v6205_v11  ;;  %v5789_v21 = vmul.f32 %v17724_v27, %v19943_v3  ;;  %v5771_v26 = vpop.xlane.xlu0 %5770 }
0x1310   :  { %v6265_v15 = vadd.f32 1e-05, %v6249_v20  ;;  %15084 = vmatprep.mubr.msk.f32.mxu0 %vm1887_vm5, %v5789_v21 }
0x1311   :  { %v6208_v50 = vpop.xlane.xlu1 %6207 }
0x1312   :  { %17727 = vrsqrt.f32 %v6265_v15  ;;  %v6250_v30 = vmul.f32 0.03125, %v6208_v50  ;;  %v17155_v53 = vpop.permute.xlu0 %17154 }
0x1313   :  { %v17157_v2 = vunpack.i.h.bf16 %v17155_v53  ;;  %v17156_v63 = vunpack.i.l.bf16 %v17155_v53 }
0x1314   :  { %v6266_v37 = vadd.f32 1e-05, %v6250_v30 }
0x1315   :  { %v6211_v59 = vpop.xlane.xlu1 %6210 }
0x1316   :  { %17729 = vrsqrt.f32 %v6266_v37  ;;  %v6251_v47 = vmul.f32 0.03125, %v6211_v59 }
0x1318   :  { %v17726_v3 = vpop.eup %17725  ;;  %v6267_v56 = vadd.f32 1e-05, %v6251_v47 }
0x1319   :  { %v5762_v18 = vpop.xlane.xlu1 %5761  ;;  %v6296_v45 = vmul.f32 %v17726_v3, %v19954_v44 }
0x131a   :  { %17731 = vrsqrt.f32 %v6267_v56 }
0x131b   :  { %v6316_v10 = vmul.f32 %v20063_v29, %v6296_v45  ;;  %17733 = vrcp.f32 %v5762_v18 }
0x131c   :  { %v17728_v23 = vpop.eup %17727  ;;  %17735 = vrcp.f32 %v5765_v51 }
0x131d   :  { %v6297_v16 = vmul.f32 %v17728_v23, %v19951_v9  ;;  %v5774_v32 = vpop.xlane.xlu1 %5773  ;;  %v20074_v35 = vadd.f32 %v20069_v25, %v6316_v10  ;;  %17737 = vrcp.f32 %v5768_v46  ;;  %v18127_v46 = vld [vmem:[%s22733_s8 + $0x18] sm:$0xff] }
0x131e   :  { %17739 = vrcp.f32 %v5771_v26 }
0x131f   :  { %v6317_v55 = vmul.f32 %v20063_v29, %v6297_v16  ;;  %15118 = vmatprep.mubr.msk.f32.mxu1 %vm1523_vm2, %v20074_v35 }
0x1320   :  { %v17730_v44 = vpop.eup %17729 }
0x1321   :  { %v5780_v13 = vpop.xlane.xlu1 %5779  ;;  %v20080_v62 = vadd.f32 %v20069_v25, %v6317_v55  ;;  %v6298_v57 = vmul.f32 %v17730_v44, %v19964_v17 }
0x1323   :  { %15119 = vmatmul.mubr.msk.f32.vlgmr.msra.gmra.mrb[68].mxu1 %vm1523_vm2, %v20080_v62  ;;  %v6318_v9 = vmul.f32 %v20063_v29, %v6298_v57 }
0x1324   :  { %v17732_v34 = vpop.eup %17731 }
0x1325   :  { %v5777_v54 = vpop.xlane.xlu1 %5776  ;;  %v20087_v61 = vadd.f32 %v20069_v25, %v6318_v9  ;;  %v6299_v28 = vmul.f32 %v17732_v34, %v19975_v8  ;;  %v16266_v8 = vpack.c.bf16 %v17157_v2, %v17156_v63  ;;  %v17734_v30 = vpop.eup %17733 }
0x1326   :  { %v17736_v37 = vpop.eup %17735  ;;  %v5790_v59 = vmul.f32 %v17734_v30, %v19989_v40 }
0x1327   :  { %15121 = vmatprep.mubr.msk.f32.mxu1 %vm1523_vm2, %v20087_v61  ;;  %v6319_v24 = vmul.f32 %v20063_v29, %v6299_v28  ;;  %v17738_v47 = vpop.eup %17737  ;;  %v5791_v3 = vmul.f32 %v17736_v37, %v19958_v48 }
0x1328   :  { %v17740_v56 = vpop.eup %17739  ;;  %v5792_v45 = vmul.f32 %v17738_v47, %v19948_v49 }
0x1329   :  { %v17150_v60 = vpop.permute.xlu1 %17149  ;;  %v20094_v17 = vadd.f32 %v20069_v25, %v6319_v24  ;;  %v5793_v40 = vmul.f32 %v17740_v56, %v19971_v36 }
0x132a   :  { %v17152_v31 = vunpack.i.h.bf16 %v17150_v60  ;;  %v17151_v7 = vunpack.i.l.bf16 %v17150_v60 }
0x132b   :  { %15122 = vmatmul.mubr.msk.f32.gmra.mrb[70].mxu1 %vm1523_vm2, %v20094_v17 }
0x132c   :  { %v16262_v42 = vpack.c.bf16 %v17152_v31, %v17151_v7 }
0x132e   :  { %16263 = vmatprep.subr.bf16.mxu0 %v16262_v42 }
0x132f   :  { %16265 = vmatpush3.bf16.msra.mxu0 %v16262_v42 }
0x1330   :  { %16267 = vmatprep.subr.bf16.mxu0 %v16266_v8 }
0x1333   :  { %16269 = vmatpush3.bf16.msra.mxu0 %v16266_v8 }
0x1343   :  { %v6214_v58 = vpop.xlane.xlu0 %6213 }
0x1344   :  { %v6252_v27 = vmul.f32 0.03125, %v6214_v58 }
0x1346   :  { %v6268_v11 = vadd.f32 1e-05, %v6252_v27 }
0x1347   :  { %v17160_v20 = vpop.permute.xlu0 %17159 }
0x1348   :  { %17741 = vrsqrt.f32 %v6268_v11  ;;  %v17162_v21 = vunpack.i.h.bf16 %v17160_v20  ;;  %v17161_v15 = vunpack.i.l.bf16 %v17160_v20 }
0x1349   :  { %17743 = vrcp.f32 %v5774_v32 }
0x134a   :  { %17745 = vrcp.f32 %v5777_v54  ;;  %v16270_v50 = vpack.c.bf16 %v17162_v21, %v17161_v15 }
0x134b   :  { %17747 = vrcp.f32 %v5780_v13 }
0x134c   :  { %16271 = vmatprep.subr.bf16.mxu0 %v16270_v50 }
0x134d   :  { %16273 = vmatpush3.bf16.msra.mxu0 %v16270_v50  ;;  %v20154_v50 = vld [vmem:[%s22735_s10] ss:$0 sm:$0xff] }
0x134e   :  { %15096 = vmatprep.subr.mxu0 %v18127_v46 }
0x1350   :  { %15085 = vmatmul.mubr.msk.f32.vlgmr.msra.gmra.mrb[92].mxu0 %vm1887_vm5, %v5790_v59 }
0x1351   :  { %15087 = vmatprep.mubr.msk.f32.mxu0 %vm1887_vm5, %v5791_v3  ;;  %15097 = vmatpush3.msra.mxu0 %v18127_v46 }
0x1352   :  { %v17742_v18 = vpop.eup %17741 }
0x1353   :  { %v17744_v51 = vpop.eup %17743  ;;  %v6300_v10 = vmul.f32 %v17742_v18, %v20022_v43 }
0x1354   :  { %v17746_v23 = vpop.eup %17745  ;;  %15088 = vmatmul.mubr.msk.f32.gmra.mrb[94].mxu0 %vm1887_vm5, %v5792_v45  ;;  %v5794_v16 = vmul.f32 %v17744_v51, %v19993_v41 }
0x1355   :  { %15090 = vmatprep.mubr.msk.f32.mxu0 %vm1887_vm5, %v5793_v40  ;;  %v6320_v48 = vmul.f32 %v20063_v29, %v6300_v10  ;;  %v17748_v32 = vpop.eup %17747  ;;  %v5795_v55 = vmul.f32 %v17746_v23, %v20001_v52 }
0x1356   :  { %v5796_v36 = vmul.f32 %v17748_v32, %v19997_v33 }
0x1357   :  { %v20114_v44 = vadd.f32 %v20069_v25, %v6320_v48 }
0x1358   :  { %15091 = vmatmul.mubr.msk.f32.gmra.mrb[96].mxu0 %vm1887_vm5, %v5794_v16 }
0x1359   :  { %15093 = vmatprep.mubr.msk.f32.mxu0 %vm1887_vm5, %v5795_v55  ;;  %15124 = vmatprep.mubr.msk.f32.mxu1 %vm1523_vm2, %v20114_v44 }
0x135a   :  { %v6217_v49 = vpop.xlane.xlu1 %6216 }
0x135b   :  { %v6253_v43 = vmul.f32 0.03125, %v6217_v49 }
0x135c   :  { %15094 = vmatmul.mubr.msk.f32.gmra.mrb[98].mxu0 %vm1887_vm5, %v5796_v36 }
0x135d   :  { %v6269_v41 = vadd.f32 1e-05, %v6253_v43 }
0x135e   :  { %v6220_v26 = vpop.xlane.xlu1 %6219 }
0x135f   :  { %17749 = vrsqrt.f32 %v6269_v41  ;;  %v6254_v52 = vmul.f32 0.03125, %v6220_v26 }
0x1361   :  { %v6270_v13 = vadd.f32 1e-05, %v6254_v52 }
0x1362   :  { %v6223_v57 = vpop.xlane.xlu1 %6222 }
0x1363   :  { %17751 = vrsqrt.f32 %v6270_v13  ;;  %v6255_v9 = vmul.f32 0.03125, %v6223_v57 }
0x1365   :  { %v6271_v34 = vadd.f32 1e-05, %v6255_v9 }
0x1367   :  { %17753 = vrsqrt.f32 %v6271_v34 }
0x1369   :  { %v17750_v54 = vpop.eup %17749 }
0x136a   :  { %v6301_v28 = vmul.f32 %v17750_v54, %v20034_v14 }
0x136c   :  { %v6321_v53 = vmul.f32 %v20063_v29, %v6301_v28 }
0x136d   :  { %v17752_v24 = vpop.eup %17751 }
0x136e   :  { %v20125_v33 = vadd.f32 %v20069_v25, %v6321_v53  ;;  %v6302_v60 = vmul.f32 %v17752_v24, %v20040_v12  ;;  %v6572_v12 = vld [vmem:[%s22736_s11] sm:$0x3]  ;;  %v22779_v53 = vld [vmem:[#allocation5_spill] sm:$0xff] }
0x136f   :  { %15142 = vmatprep.subr.msk.mxu0 %vm6626_vm6, %v6572_v12 }
0x1370   :  { %15125 = vmatmul.mubr.msk.f32.gmra.mrb[72].mxu1 %vm1523_vm2, %v20125_v33  ;;  %v6322_v2 = vmul.f32 %v20063_v29, %v6302_v60 }
0x1371   :  { %v17754_v63 = vpop.eup %17753 }
0x1372   :  { %v20132_v31 = vadd.f32 %v20069_v25, %v6322_v2  ;;  %v6303_v7 = vmul.f32 %v17754_v63, %v20045_v38 }
0x1374   :  { %15127 = vmatprep.mubr.msk.f32.mxu1 %vm1523_vm2, %v20132_v31  ;;  %v6323_v14 = vmul.f32 %v20063_v29, %v6303_v7 }
0x1376   :  { %v20139_v42 = vadd.f32 %v20069_v25, %v6323_v14 }
0x1378   :  { %15128 = vmatmul.mubr.msk.f32.gmra.mrb[74].mxu1 %vm1523_vm2, %v20139_v42 }
0x13f6   :  { %v15120_v8 = vpop.f32.mrb[68].mxu1 }
0x13f7   :  { %v6477_v38 = vpop.f32.mrb[69].mxu1  ;;  %v6483_v47 = vadd.f32 %v15120_v8, %v20154_v50  ;;  %v22780_v8 = vld [vmem:[#allocation7_spill] sm:$0xff] }
0x13f8   :  { %v6478_v59 = vadd.f32 %v20154_v50, %v6477_v38 }
0x13f9   :  { %v6557_v45 = vmax.f32 %v6483_v47, 0.0 }
0x13fa   :  { %v6556_v56 = vmax.f32 %v6478_v59, 0.0 }
0x13fe   :  { %v15123_v58 = vpop.f32.mrb[70].mxu1 }
0x13ff   :  { %v6487_v27 = vpop.f32.mrb[71].mxu1  ;;  %v6493_v51 = vadd.f32 %v15123_v58, %v20154_v50  ;;  %v22781_v58 = vld [vmem:[#allocation6_spill] sm:$0xff] }
0x1400   :  { %v6488_v18 = vadd.f32 %v20154_v50, %v6487_v27 }
0x1401   :  { %v6559_v10 = vmax.f32 %v6493_v51, 0.0 }
0x1402   :  { %v6558_v40 = vmax.f32 %v6488_v18, 0.0 }
0x1423   :  { %v15086_v11 = vpop.f32.mrb[92].mxu0 }
0x1424   :  { %v5911_v20 = vpop.f32.mrb[93].mxu0 }
0x1425   :  { %15098 = vmatprep.mubr.msk.f32.mxu0 %vm1749_vm3, %v5911_v20 }
0x1426   :  { %15099 = vmatmul.mubr.msk.f32.vlgmr.msra.gmra.mrb[68].mxu0 %vm1749_vm3, %v15086_v11 }
0x1427   :  { %v15089_v21 = vpop.f32.mrb[94].mxu0  ;;  %15143 = vmatpush3.msk.msra.mxu0 %vm6626_vm6, %v6572_v12 }
0x1428   :  { %v5921_v15 = vpop.f32.mrb[95].mxu0 }
0x1429   :  { %15101 = vmatprep.mubr.msk.f32.mxu0 %vm1749_vm3, %v5921_v15  ;;  %v22756_v15 = vsub.s32 3, %v19819_v22 }
0x142a   :  { %15102 = vmatmul.mubr.msk.f32.gmra.mrb[70].mxu0 %vm1749_vm3, %v15089_v21 }
0x142b   :  { %v15092_v30 = vpop.f32.mrb[96].mxu0 }
0x142c   :  { %v5931_v37 = vpop.f32.mrb[97].mxu0 }
0x142d   :  { %15104 = vmatprep.mubr.msk.f32.mxu0 %vm1749_vm3, %v5931_v37  ;;  %v22782_v37 = vld [vmem:[#allocation9_spill] sm:$0xff] }
0x142e   :  { %15105 = vmatmul.mubr.msk.f32.gmra.mrb[72].mxu0 %vm1749_vm3, %v15092_v30 }
0x142f   :  { %v15095_v46 = vpop.f32.mrb[98].mxu0 }
0x1430   :  { %v5941_v3 = vpop.f32.mrb[99].mxu0 }
0x1431   :  { %15107 = vmatprep.mubr.msk.f32.mxu0 %vm1749_vm3, %v5941_v3 }
0x1432   :  { %15108 = vmatmul.mubr.msk.f32.gmra.mrb[74].mxu0 %vm1749_vm3, %v15095_v46 }
0x1433   :  { %15144 = vmatprep.mubr.msk.f32.mxu0 %vm6577_vm7, %v6556_v56  ;;  %v20210_v56 = vrot.slane %v19833_v4, %v22756_v15 }
0x1436   :  { %15145 = vmatmul.mubr.msk.f32.vlgmr.msra.gmra.mrb[100].mxu0 %vm6577_vm7, %v6557_v45  ;;  %v22783_v45 = vld [vmem:[#allocation8_spill] sm:$0xff] }
0x1437   :  { %15147 = vmatprep.mubr.msk.f32.mxu0 %vm6577_vm7, %v6558_v40 }
0x143a   :  { %15148 = vmatmul.mubr.msk.f32.gmra.mrb[102].mxu0 %vm6577_vm7, %v6559_v10 }
0x1443   :  { %v15126_v23 = vpop.f32.mrb[72].mxu1 }
0x1444   :  { %v6503_v48 = vadd.f32 %v15126_v23, %v20154_v50  ;;  %v6497_v16 = vpop.f32.mrb[73].mxu1 }
0x1445   :  { %v6498_v32 = vadd.f32 %v20154_v50, %v6497_v16 }
0x1446   :  { %v6561_v49 = vmax.f32 %v6503_v48, 0.0 }
0x1447   :  { %v6560_v55 = vmax.f32 %v6498_v32, 0.0 }
0x1449   :  { %15150 = vmatprep.mubr.msk.f32.mxu0 %vm6577_vm7, %v6560_v55  ;;  %v22784_v55 = vld [vmem:[#allocation11_spill] sm:$0xff] }
0x144a   :  { %15151 = vmatmul.mubr.msk.f32.gmra.mrb[104].mxu0 %vm6577_vm7, %v6561_v49 }
0x144b   :  { %v15129_v36 = vpop.f32.mrb[74].mxu1 }
0x144c   :  { %v6513_v43 = vadd.f32 %v15129_v36, %v20154_v50  ;;  %v6507_v41 = vpop.f32.mrb[75].mxu1 }
0x144d   :  { %v6508_v26 = vadd.f32 %v20154_v50, %v6507_v41 }
0x144e   :  { %v6563_v13 = vmax.f32 %v6513_v43, 0.0 }
0x144f   :  { %v6562_v52 = vmax.f32 %v6508_v26, 0.0 }
0x1451   :  { %15153 = vmatprep.mubr.msk.f32.mxu0 %vm6577_vm7, %v6562_v52  ;;  %v22785_v52 = vld [vmem:[#allocation10_spill] sm:$0xff] }
0x1452   :  { %15154 = vmatmul.mubr.msk.f32.gmra.mrb[106].mxu0 %vm6577_vm7, %v6563_v13 }
0x14f9   :  { %v15100_v57 = vpop.f32.mrb[68].mxu0 }
0x14fa   :  { %v16656_v9 = vadd.f32 %v15100_v57, %v19844_v19  ;;  %v6040_v34 = vpop.f32.mrb[69].mxu0 }
0x14fb   :  { %v16657_v54 = vadd.f32 %v6040_v34, %v19844_v19 }
0x14fc   :  { %v20180_v28 = vadd.f32 %v16656_v9, %v18660_v6 }
0x14fd   :  { %v20183_v24 = vadd.f32 %v16657_v54, %v22779_v53  ;;  %v15103_v60 = vpop.f32.mrb[70].mxu0 }
0x14fe   :  { %v16658_v2 = vadd.f32 %v15103_v60, %v19844_v19  ;;  %v6050_v63 = vpop.f32.mrb[71].mxu0  ;;  %v6130_v7 = vsel %vm1523_vm2, %v20180_v28, 0.0 }
0x14ff   :  { %v16659_v14 = vadd.f32 %v6050_v63, %v19844_v19  ;;  %6131 = vadd.xlane.f32.xlu1 %v6130_v7  ;;  %v6127_v12 = vsel %vm1523_vm2, %v20183_v24, 0.0 }
0x1500   :  { %v20192_v38 = vadd.f32 %v16658_v2, %v22780_v8  ;;  %6128 = vadd.xlane.f32.xlu0 %v6127_v12 }
0x1501   :  { %v15106_v6 = vpop.f32.mrb[72].mxu0  ;;  %v20195_v27 = vadd.f32 %v16659_v14, %v22781_v58 }
0x1502   :  { %v16660_v11 = vadd.f32 %v15106_v6, %v19844_v19  ;;  %v6060_v20 = vpop.f32.mrb[73].mxu0  ;;  %v6136_v21 = vsel %vm1523_vm2, %v20192_v38, 0.0 }
0x1503   :  { %6137 = vadd.xlane.f32.xlu1 %v6136_v21  ;;  %v16661_v46 = vadd.f32 %v6060_v20, %v19844_v19  ;;  %v6133_v3 = vsel %vm1523_vm2, %v20195_v27, 0.0 }
0x1504   :  { %v20202_v59 = vadd.f32 %v16660_v11, %v22782_v37 }
0x1505   :  { %v15109_v30 = vpop.f32.mrb[74].mxu0  ;;  %v20213_v51 = vadd.f32 %v16661_v46, %v22783_v45 }
0x1506   :  { %v6070_v47 = vpop.f32.mrb[75].mxu0  ;;  %v16662_v40 = vadd.f32 %v15109_v30, %v19844_v19  ;;  %v6142_v48 = vsel %vm1523_vm2, %v20202_v59, 0.0 }
0x1507   :  { %6134 = vadd.xlane.f32.xlu1 %v6133_v3  ;;  %v16663_v4 = vadd.f32 %v6070_v47, %v19844_v19  ;;  %v6139_v41 = vsel %vm1523_vm2, %v20213_v51, 0.0 }
0x1508   :  { %v20224_v49 = vadd.f32 %v16662_v40, %v22784_v55 }
0x1509   :  { %v15146_v18 = vpop.f32.mrb[100].mxu0  ;;  %v20235_v19 = vadd.f32 %v16663_v4, %v22785_v52 }
0x150a   :  { %v6702_v10 = vadd.f32 %v15146_v18, %v20210_v56  ;;  %v6696_v23 = vpop.f32.mrb[101].mxu0  ;;  %v6148_v57 = vsel %vm1523_vm2, %v20224_v49, 0.0 }
0x150b   :  { %6143 = vadd.xlane.f32.xlu1 %v6142_v48  ;;  %v6697_v13 = vadd.f32 %v6696_v23, %v20210_v56 }
0x150c   :  { %v20220_v16 = vadd.f32 %v6702_v10, %v20080_v62 }
0x150d   :  { %v15149_v32 = vpop.f32.mrb[102].mxu0  ;;  %v20243_v34 = vadd.f32 %v6697_v13, %v20074_v35 }
0x150e   :  { %v6712_v36 = vadd.f32 %v15149_v32, %v20210_v56  ;;  %v6706_v43 = vpop.f32.mrb[103].mxu0  ;;  %v6794_v26 = vsel %vm1523_vm2, %v20220_v16, 0.0 }
0x150f   :  { %6140 = vadd.xlane.f32.xlu1 %v6139_v41  ;;  %6795 = vadd.xlane.f32.xlu0 %v6794_v26  ;;  %v6707_v54 = vadd.f32 %v6706_v43, %v20210_v56  ;;  %v6791_v60 = vsel %vm1523_vm2, %v20243_v34, 0.0 }
0x1510   :  { %v20232_v62 = vadd.f32 %v6712_v36, %v20094_v17  ;;  %v6145_v17 = vsel %vm1523_vm2, %v20235_v19, 0.0 }
0x1511   :  { %v20249_v53 = vadd.f32 %v6707_v54, %v20087_v61 }
0x1512   :  { %v6800_v9 = vsel %vm1523_vm2, %v20232_v62, 0.0 }
0x1513   :  { %6149 = vadd.xlane.f32.xlu1 %v6148_v57  ;;  %6801 = vadd.xlane.f32.xlu0 %v6800_v9  ;;  %v6797_v35 = vsel %vm1523_vm2, %v20249_v53, 0.0 }
0x1517   :  { %6146 = vadd.xlane.f32.xlu1 %v6145_v17 }
0x151b   :  { %6792 = vadd.xlane.f32.xlu1 %v6791_v60 }
0x151d   :  { %v15152_v2 = vpop.f32.mrb[104].mxu0 }
0x151e   :  { %v6722_v63 = vadd.f32 %v15152_v2, %v20210_v56  ;;  %v6716_v7 = vpop.f32.mrb[105].mxu0 }
0x151f   :  { %v6717_v14 = vadd.f32 %v6716_v7, %v20210_v56  ;;  %6798 = vadd.xlane.f32.xlu1 %v6797_v35 }
0x1520   :  { %v20258_v12 = vadd.f32 %v6722_v63, %v20125_v33 }
0x1521   :  { %v20261_v61 = vadd.f32 %v6717_v14, %v20114_v44 }
0x1522   :  { %v6806_v8 = vsel %vm1523_vm2, %v20258_v12, 0.0 }
0x1523   :  { %6807 = vadd.xlane.f32.xlu0 %v6806_v8  ;;  %v6803_v6 = vsel %vm1523_vm2, %v20261_v61, 0.0 }
0x1524   :  { %6804 = vadd.xlane.f32.xlu1 %v6803_v6 }
0x1525   :  { %v15155_v58 = vpop.f32.mrb[106].mxu0 }
0x1526   :  { %v6732_v11 = vadd.f32 %v15155_v58, %v20210_v56  ;;  %v6726_v20 = vpop.f32.mrb[107].mxu0 }
0x1527   :  { %v6727_v21 = vadd.f32 %v6726_v20, %v20210_v56 }
0x1528   :  { %v20270_v33 = vadd.f32 %v6732_v11, %v20139_v42 }
0x1529   :  { %v20273_v44 = vadd.f32 %v6727_v21, %v20132_v31 }
0x152a   :  { %v6812_v30 = vsel %vm1523_vm2, %v20270_v33, 0.0 }
0x152b   :  { %6813 = vadd.xlane.f32.xlu0 %v6812_v30  ;;  %v6809_v37 = vsel %vm1523_vm2, %v20273_v44, 0.0 }
0x152c   :  { %6810 = vadd.xlane.f32.xlu1 %v6809_v37 }
0x158c   :  { %v6132_v46 = vpop.xlane.xlu1 %6131 }
0x158d   :  { %v6161_v47 = vmul.f32 0.03125, %v6132_v46  ;;  %v6129_v3 = vpop.xlane.xlu0 %6128 }
0x158e   :  { %v6160_v18 = vmul.f32 0.03125, %v6129_v3 }
0x158f   :  { %v20280_v45 = vsub.f32 %v20180_v28, %v6161_v47 }
0x1590   :  { %v20283_v42 = vsub.f32 %v20183_v24, %v6160_v18  ;;  %v6138_v31 = vpop.xlane.xlu1 %6137 }
0x1591   :  { %v6163_v40 = vmul.f32 0.03125, %v6138_v31  ;;  %v6193_v10 = vmul.f32 %v20280_v45, %v20280_v45 }
0x1592   :  { %v6192_v23 = vmul.f32 %v20283_v42, %v20283_v42 }
0x1593   :  { %v20290_v48 = vsub.f32 %v20192_v38, %v6163_v40  ;;  %v6227_v4 = vsel %vm1523_vm2, %v6193_v10, 0.0 }
0x1594   :  { %v6135_v32 = vpop.xlane.xlu1 %6134  ;;  %6228 = vadd.xlane.f32.xlu0 %v6227_v4  ;;  %v6224_v28 = vsel %vm1523_vm2, %v6192_v23, 0.0 }
0x1595   :  { %v6162_v55 = vmul.f32 0.03125, %v6135_v32  ;;  %6225 = vadd.xlane.f32.xlu1 %v6224_v28  ;;  %v6195_v24 = vmul.f32 %v20290_v48, %v20290_v48 }
0x1597   :  { %v20297_v36 = vsub.f32 %v20195_v27, %v6162_v55  ;;  %v6233_v43 = vsel %vm1523_vm2, %v6195_v24, 0.0 }
0x1598   :  { %v6144_v41 = vpop.xlane.xlu1 %6143  ;;  %6234 = vadd.xlane.f32.xlu0 %v6233_v43 }
0x1599   :  { %v6165_v38 = vmul.f32 0.03125, %v6144_v41  ;;  %v6194_v26 = vmul.f32 %v20297_v36, %v20297_v36 }
0x159b   :  { %v20303_v52 = vsub.f32 %v20202_v59, %v6165_v38  ;;  %v6230_v13 = vsel %vm1523_vm2, %v6194_v26, 0.0 }
0x159c   :  { %v6141_v57 = vpop.xlane.xlu1 %6140  ;;  %v6796_v9 = vpop.xlane.xlu0 %6795  ;;  %6231 = vadd.xlane.f32.xlu1 %v6230_v13 }
0x159d   :  { %v6164_v54 = vmul.f32 0.03125, %v6141_v57  ;;  %v6197_v27 = vmul.f32 %v20303_v52, %v20303_v52  ;;  %v6840_v60 = vmul.f32 0.03125, %v6796_v9  ;;  %v13222_v57 = vld [vmem:[%s22731_s6 + $0x20] sm:$0xff] }
0x159f   :  { %v20309_v17 = vsub.f32 %v20213_v51, %v6164_v54  ;;  %v6239_v2 = vsel %vm1523_vm2, %v6197_v27, 0.0  ;;  %v20315_v14 = vsub.f32 %v20220_v16, %v6840_v60 }
0x15a0   :  { %v6150_v63 = vpop.xlane.xlu1 %6149  ;;  %v6802_v7 = vpop.xlane.xlu0 %6801  ;;  %6240 = vadd.xlane.f32.xlu0 %v6239_v2 }
0x15a1   :  { %v6167_v59 = vmul.f32 0.03125, %v6150_v63  ;;  %v6196_v35 = vmul.f32 %v20309_v17, %v20309_v17  ;;  %v6842_v6 = vmul.f32 0.03125, %v6802_v7 }
0x15a3   :  { %v20318_v8 = vsub.f32 %v20224_v49, %v6167_v59  ;;  %v6236_v51 = vsel %vm1523_vm2, %v6196_v35, 0.0  ;;  %v20324_v21 = vsub.f32 %v20232_v62, %v6842_v6  ;;  %v6872_v49 = vmul.f32 %v20315_v14, %v20315_v14 }
0x15a4   :  { %6237 = vadd.xlane.f32.xlu1 %v6236_v51  ;;  %v6147_v58 = vpop.xlane.xlu1 %6146 }
0x15a5   :  { %v6166_v11 = vmul.f32 0.03125, %v6147_v58  ;;  %v6199_v20 = vmul.f32 %v20318_v8, %v20318_v8  ;;  %v6890_v62 = vsel %vm1523_vm2, %v6872_v49, 0.0 }
0x15a7   :  { %v20327_v30 = vsub.f32 %v20235_v19, %v6166_v11  ;;  %v6245_v16 = vsel %vm1523_vm2, %v6199_v20, 0.0  ;;  %v6874_v19 = vmul.f32 %v20324_v21, %v20324_v21 }
0x15a8   :  { %6246 = vadd.xlane.f32.xlu0 %v6245_v16  ;;  %v6793_v37 = vpop.xlane.xlu1 %6792 }
0x15a9   :  { %v6839_v46 = vmul.f32 0.03125, %v6793_v37  ;;  %v6198_v47 = vmul.f32 %v20327_v30, %v20327_v30 }
0x15ab   :  { %v20335_v3 = vsub.f32 %v20243_v34, %v6839_v46  ;;  %v6242_v18 = vsel %vm1523_vm2, %v6198_v47, 0.0  ;;  %v6896_v34 = vsel %vm1523_vm2, %v6874_v19, 0.0 }
0x15ac   :  { %6891 = vadd.xlane.f32.xlu0 %v6890_v62  ;;  %6243 = vadd.xlane.f32.xlu1 %v6242_v18  ;;  %v6799_v31 = vpop.xlane.xlu1 %6798 }
0x15ad   :  { %v6841_v40 = vmul.f32 0.03125, %v6799_v31  ;;  %v6871_v10 = vmul.f32 %v20335_v3, %v20335_v3 }
0x15af   :  { %v20344_v23 = vsub.f32 %v20249_v53, %v6841_v40  ;;  %v6887_v4 = vsel %vm1523_vm2, %v6871_v10, 0.0 }
0x15b0   :  { %v6808_v32 = vpop.xlane.xlu0 %6807  ;;  %6897 = vadd.xlane.f32.xlu0 %v6896_v34  ;;  %6888 = vadd.xlane.f32.xlu1 %v6887_v4 }
0x15b1   :  { %v6844_v28 = vmul.f32 0.03125, %v6808_v32  ;;  %v6805_v55 = vpop.xlane.xlu1 %6804  ;;  %v6873_v24 = vmul.f32 %v20344_v23, %v20344_v23 }
0x15b2   :  { %v6843_v43 = vmul.f32 0.03125, %v6805_v55 }
0x15b3   :  { %v20351_v41 = vsub.f32 %v20258_v12, %v6844_v28  ;;  %v6893_v38 = vsel %vm1523_vm2, %v6873_v24, 0.0  ;;  %v13223_v12 = vld [vmem:[%s22731_s6 + $0x28] sm:$0xff] }
0x15b4   :  { %v20355_v53 = vsub.f32 %v20261_v61, %v6843_v43  ;;  %6894 = vadd.xlane.f32.xlu1 %v6893_v38  ;;  %v16282_v54 = vpack.c.bf16 %v13223_v12, %v13222_v57 }
0x15b5   :  { %v6876_v26 = vmul.f32 %v20351_v41, %v20351_v41 }
0x15b6   :  { %v6875_v13 = vmul.f32 %v20355_v53, %v20355_v53  ;;  %16283 = vmatprep.subr.bf16.mxu1 %v16282_v54 }
0x15b7   :  { %v6902_v9 = vsel %vm1523_vm2, %v6876_v26, 0.0  ;;  %16285 = vmatpush3.bf16.msra.mxu1 %v16282_v54 }
0x15b8   :  { %6903 = vadd.xlane.f32.xlu0 %v6902_v9  ;;  %v6814_v61 = vpop.xlane.xlu0 %6813  ;;  %v6899_v27 = vsel %vm1523_vm2, %v6875_v13, 0.0 }
0x15b9   :  { %v6846_v60 = vmul.f32 0.03125, %v6814_v61  ;;  %6900 = vadd.xlane.f32.xlu1 %v6899_v27  ;;  %v6811_v2 = vpop.xlane.xlu1 %6810 }
0x15ba   :  { %v6845_v63 = vmul.f32 0.03125, %v6811_v2 }
0x15bb   :  { %v20370_v7 = vsub.f32 %v20270_v33, %v6846_v60  ;;  %v13224_v33 = vld [vmem:[%s22731_s6 + $0x30] sm:$0xff] }
0x15bc   :  { %v20373_v59 = vsub.f32 %v20273_v44, %v6845_v63  ;;  %v13225_v44 = vld [vmem:[%s22731_s6 + $0x38] sm:$0xff] }
0x15bd   :  { %v6878_v35 = vmul.f32 %v20370_v7, %v20370_v7  ;;  %v16286_v11 = vpack.c.bf16 %v13225_v44, %v13224_v33 }
0x15be   :  { %v6877_v6 = vmul.f32 %v20373_v59, %v20373_v59 }
0x15bf   :  { %v6908_v51 = vsel %vm1523_vm2, %v6878_v35, 0.0  ;;  %16287 = vmatprep.subr.bf16.mxu1 %v16286_v11 }
0x15c0   :  { %6909 = vadd.xlane.f32.xlu0 %v6908_v51  ;;  %v6905_v58 = vsel %vm1523_vm2, %v6877_v6, 0.0  ;;  %16289 = vmatpush3.bf16.msra.mxu1 %v16286_v11 }
0x15c1   :  { %6906 = vadd.xlane.f32.xlu1 %v6905_v58 }
0x1621   :  { %v6229_v20 = vpop.xlane.xlu0 %6228 }
0x1622   :  { %v6257_v16 = vmul.f32 0.03125, %v6229_v20  ;;  %v6226_v49 = vpop.xlane.xlu1 %6225 }
0x1623   :  { %v6256_v37 = vmul.f32 0.03125, %v6226_v49 }
0x1624   :  { %v6273_v46 = vadd.f32 1e-05, %v6257_v16 }
0x1625   :  { %v6272_v47 = vadd.f32 1e-05, %v6256_v37  ;;  %v6235_v62 = vpop.xlane.xlu0 %6234 }
0x1626   :  { %17755 = vrsqrt.f32 %v6273_v46  ;;  %v6259_v18 = vmul.f32 0.03125, %v6235_v62 }
0x1627   :  { %17757 = vrsqrt.f32 %v6272_v47 }
0x1628   :  { %v6275_v19 = vadd.f32 1e-05, %v6259_v18 }
0x1629   :  { %v6232_v31 = vpop.xlane.xlu1 %6231 }
0x162a   :  { %17759 = vrsqrt.f32 %v6275_v19  ;;  %v6258_v40 = vmul.f32 0.03125, %v6232_v31 }
0x162c   :  { %v6274_v10 = vadd.f32 1e-05, %v6258_v40 }
0x162d   :  { %v6241_v34 = vpop.xlane.xlu0 %6240 }
0x162e   :  { %17761 = vrsqrt.f32 %v6274_v10  ;;  %v6261_v4 = vmul.f32 0.03125, %v6241_v34 }
0x1630   :  { %v17756_v32 = vpop.eup %17755  ;;  %v6277_v28 = vadd.f32 1e-05, %v6261_v4 }
0x1631   :  { %v17758_v55 = vpop.eup %17757  ;;  %v6238_v24 = vpop.xlane.xlu1 %6237  ;;  %v6305_v43 = vmul.f32 %v17756_v32, %v20280_v45 }
0x1632   :  { %17763 = vrsqrt.f32 %v6277_v28  ;;  %v6260_v38 = vmul.f32 0.03125, %v6238_v24  ;;  %v6304_v26 = vmul.f32 %v17758_v55, %v20283_v42 }
0x1633   :  { %v6325_v13 = vmul.f32 %v20063_v29, %v6305_v43 }
0x1634   :  { %v17760_v57 = vpop.eup %17759  ;;  %v6276_v12 = vadd.f32 1e-05, %v6260_v38  ;;  %v6324_v9 = vmul.f32 %v20063_v29, %v6304_v26 }
0x1635   :  { %v6247_v54 = vpop.xlane.xlu0 %6246  ;;  %v6307_v61 = vmul.f32 %v17760_v57, %v20290_v48  ;;  %v20396_v45 = vadd.f32 %v20069_v25, %v6325_v13 }
0x1636   :  { %17765 = vrsqrt.f32 %v6276_v12  ;;  %v6263_v27 = vmul.f32 0.03125, %v6247_v54  ;;  %v20393_v60 = vadd.f32 %v20069_v25, %v6324_v9 }
0x1637   :  { %v6327_v6 = vmul.f32 %v20063_v29, %v6307_v61 }
0x1638   :  { %v17762_v2 = vpop.eup %17761  ;;  %v6279_v63 = vadd.f32 1e-05, %v6263_v27  ;;  %15130 = vmatprep.mubr.msk.f32.mxu1 %vm1523_vm2, %v20393_v60 }
0x1639   :  { %v6892_v42 = vpop.xlane.xlu0 %6891  ;;  %15131 = vmatmul.mubr.msk.f32.gmra.mrb[76].mxu1 %vm1523_vm2, %v20396_v45  ;;  %v6244_v35 = vpop.xlane.xlu1 %6243  ;;  %v6306_v48 = vmul.f32 %v17762_v2, %v20297_v36  ;;  %v20409_v46 = vadd.f32 %v20069_v25, %v6327_v6  ;;  %v22754_v2 = vsub.s32 5, %v19819_v22 }
0x163a   :  { %17767 = vrsqrt.f32 %v6279_v63  ;;  %v6936_v51 = vmul.f32 0.03125, %v6892_v42  ;;  %v6262_v58 = vmul.f32 0.03125, %v6244_v35  ;;  %v18128_v63 = vld [vmem:[%s22737_s12] sm:$0x3f] }
0x163b   :  { %v6326_v33 = vmul.f32 %v20063_v29, %v6306_v48 }
0x163c   :  { %v17764_v44 = vpop.eup %17763  ;;  %v6952_v11 = vadd.f32 1e-05, %v6936_v51  ;;  %v6278_v20 = vadd.f32 1e-05, %v6262_v58 }
0x163d   :  { %v6898_v16 = vpop.xlane.xlu0 %6897  ;;  %v6889_v49 = vpop.xlane.xlu1 %6888  ;;  %v20406_v37 = vadd.f32 %v20069_v25, %v6326_v33  ;;  %v6309_v62 = vmul.f32 %v17764_v44, %v20303_v52 }
0x163e   :  { %17769 = vrsqrt.f32 %v6952_v11  ;;  %v6938_v36 = vmul.f32 0.03125, %v6898_v16  ;;  %v6935_v47 = vmul.f32 0.03125, %v6889_v49 }
0x163f   :  { %17771 = vrsqrt.f32 %v6278_v20  ;;  %15133 = vmatprep.mubr.msk.f32.mxu1 %vm1523_vm2, %v20406_v37  ;;  %v6329_v4 = vmul.f32 %v20063_v29, %v6309_v62  ;;  %v20449_v20 = vrot.slane %v18128_v63, %v22754_v2 }
0x1640   :  { %v17766_v18 = vpop.eup %17765  ;;  %v6954_v19 = vadd.f32 1e-05, %v6938_v36  ;;  %v6951_v31 = vadd.f32 1e-05, %v6935_v47  ;;  %15134 = vmatmul.mubr.msk.f32.gmra.mrb[78].mxu1 %vm1523_vm2, %v20409_v46 }
0x1641   :  { %v6895_v40 = vpop.xlane.xlu1 %6894  ;;  %v6308_v10 = vmul.f32 %v17766_v18, %v20309_v17  ;;  %v20423_v26 = vadd.f32 %v20069_v25, %v6329_v4  ;;  %v22755_v17 = vsub.s32 4, %v19819_v22 }
0x1642   :  { %17773 = vrsqrt.f32 %v6954_v19  ;;  %v6937_v34 = vmul.f32 0.03125, %v6895_v40 }
0x1643   :  { %17775 = vrsqrt.f32 %v6951_v31  ;;  %v6328_v52 = vmul.f32 %v20063_v29, %v6308_v10  ;;  %v20438_v42 = vrot.slane %v18128_v63, %v22755_v17 }
0x1644   :  { %v17768_v32 = vpop.eup %17767  ;;  %v6953_v28 = vadd.f32 1e-05, %v6937_v34 }
0x1645   :  { %v6904_v55 = vpop.xlane.xlu0 %6903  ;;  %v20420_v24 = vadd.f32 %v20069_v25, %v6328_v52  ;;  %v6311_v57 = vmul.f32 %v17768_v32, %v20318_v8 }
0x1646   :  { %17777 = vrsqrt.f32 %v6953_v28  ;;  %v6940_v43 = vmul.f32 0.03125, %v6904_v55  ;;  %v6901_v38 = vpop.xlane.xlu1 %6900 }
0x1647   :  { %v6939_v13 = vmul.f32 0.03125, %v6901_v38  ;;  %15136 = vmatprep.mubr.msk.f32.mxu1 %vm1523_vm2, %v20420_v24  ;;  %v6331_v35 = vmul.f32 %v20063_v29, %v6311_v57 }
0x1648   :  { %v17770_v12 = vpop.eup %17769  ;;  %v6956_v9 = vadd.f32 1e-05, %v6940_v43  ;;  %15137 = vmatmul.mubr.msk.f32.gmra.mrb[80].mxu1 %vm1523_vm2, %v20423_v26 }
0x1649   :  { %v17772_v54 = vpop.eup %17771  ;;  %v6955_v61 = vadd.f32 1e-05, %v6939_v13  ;;  %v6984_v8 = vmul.f32 %v17770_v12, %v20315_v14  ;;  %v20453_v49 = vadd.f32 %v20069_v25, %v6331_v35 }
0x164a   :  { %17779 = vrsqrt.f32 %v6956_v9  ;;  %v6310_v27 = vmul.f32 %v17772_v54, %v20327_v30 }
0x164b   :  { %17781 = vrsqrt.f32 %v6955_v61  ;;  %v7004_v14 = vmul.f32 %v20438_v42, %v6984_v8 }
0x164c   :  { %v17774_v48 = vpop.eup %17773  ;;  %v6330_v6 = vmul.f32 %v20063_v29, %v6310_v27 }
0x164d   :  { %v17776_v51 = vpop.eup %17775  ;;  %v6910_v30 = vpop.xlane.xlu0 %6909  ;;  %v6986_v29 = vmul.f32 %v17774_v48, %v20324_v21 }
0x164e   :  { %v6942_v58 = vmul.f32 0.03125, %v6910_v30  ;;  %v6907_v33 = vpop.xlane.xlu1 %6906  ;;  %v20444_v44 = vadd.f32 %v20069_v25, %v6330_v6  ;;  %v6983_v11 = vmul.f32 %v17776_v51, %v20335_v3  ;;  %v20466_v25 = vadd.f32 %v20449_v20, %v7004_v14 }
0x164f   :  { %v6941_v16 = vmul.f32 0.03125, %v6907_v33  ;;  %v7006_v31 = vmul.f32 %v20438_v42, %v6986_v29 }
0x1650   :  { %v17778_v36 = vpop.eup %17777  ;;  %v6958_v47 = vadd.f32 1e-05, %v6942_v58  ;;  %15139 = vmatprep.mubr.msk.f32.mxu1 %vm1523_vm2, %v20444_v44  ;;  %v7003_v62 = vmul.f32 %v20438_v42, %v6983_v11 }
0x1651   :  { %v6957_v3 = vadd.f32 1e-05, %v6941_v16  ;;  %15140 = vmatmul.mubr.msk.f32.gmra.mrb[82].mxu1 %vm1523_vm2, %v20453_v49  ;;  %v6985_v18 = vmul.f32 %v17778_v36, %v20344_v23  ;;  %v20482_v52 = vadd.f32 %v20449_v20, %v7006_v31 }
0x1652   :  { %17783 = vrsqrt.f32 %v6958_v47  ;;  %v20463_v19 = vadd.f32 %v20449_v20, %v7003_v62 }
0x1653   :  { %17785 = vrsqrt.f32 %v6957_v3  ;;  %v7005_v21 = vmul.f32 %v20438_v42, %v6985_v18 }
0x1654   :  { %v17780_v40 = vpop.eup %17779  ;;  %15176 = vmatprep.mubr.msk.f32.mxu1 %vm1523_vm2, %v20463_v19 }
0x1655   :  { %v17782_v10 = vpop.eup %17781  ;;  %15177 = vmatmul.mubr.msk.f32.vlgmr.msra.gmra.mrb[84].mxu1 %vm1523_vm2, %v20466_v25  ;;  %v20475_v23 = vadd.f32 %v20449_v20, %v7005_v21  ;;  %v6988_v34 = vmul.f32 %v17780_v40, %v20351_v41  ;;  %v13227_v21 = vld [vmem:[%s22732_s7 + $0x1] ss:$0 sm:$0xff] }
0x1656   :  { %v6987_v4 = vmul.f32 %v17782_v10, %v20355_v53 }
0x1657   :  { %15179 = vmatprep.mubr.msk.f32.mxu1 %vm1523_vm2, %v20475_v23  ;;  %v7008_v32 = vmul.f32 %v20438_v42, %v6988_v34 }
0x1658   :  { %v7007_v28 = vmul.f32 %v20438_v42, %v6987_v4 }
0x1659   :  { %15180 = vmatmul.mubr.msk.f32.gmra.mrb[86].mxu1 %vm1523_vm2, %v20482_v52  ;;  %v20492_v41 = vadd.f32 %v20449_v20, %v7008_v32 }
0x165a   :  { %v20489_v55 = vadd.f32 %v20449_v20, %v7007_v28 }
0x165c   :  { %v17784_v53 = vpop.eup %17783  ;;  %15182 = vmatprep.mubr.msk.f32.mxu1 %vm1523_vm2, %v20489_v55 }
0x165d   :  { %v17786_v43 = vpop.eup %17785  ;;  %15183 = vmatmul.mubr.msk.f32.gmra.mrb[88].mxu1 %vm1523_vm2, %v20492_v41  ;;  %v6990_v38 = vmul.f32 %v17784_v53, %v20370_v7 }
0x165e   :  { %v6989_v13 = vmul.f32 %v17786_v43, %v20373_v59 }
0x165f   :  { %v7010_v57 = vmul.f32 %v20438_v42, %v6990_v38 }
0x1660   :  { %v7009_v12 = vmul.f32 %v20438_v42, %v6989_v13 }
0x1661   :  { %v20506_v54 = vadd.f32 %v20449_v20, %v7010_v57 }
0x1662   :  { %v20503_v9 = vadd.f32 %v20449_v20, %v7009_v12 }
0x1664   :  { %22786 = vst [vmem:[#allocation5_spill] sm:$0xff] %v20503_v9  ;;  %15185 = vmatprep.mubr.msk.f32.mxu1 %vm1523_vm2, %v20503_v9 }
0x1665   :  { %15186 = vmatmul.mubr.msk.f32.gmra.mrb[90].mxu1 %vm1523_vm2, %v20506_v54 }
0x170c   :  { %v15132_v61 = vpop.f32.mrb[76].mxu1 }
0x170d   :  { %v6523_v7 = vadd.f32 %v15132_v61, %v20154_v50  ;;  %v6517_v59 = vpop.f32.mrb[77].mxu1 }
0x170e   :  { %v6518_v27 = vadd.f32 %v20154_v50, %v6517_v59 }
0x170f   :  { %v6565_v8 = vmax.f32 %v6523_v7, 0.0 }
0x1710   :  { %v6564_v63 = vmax.f32 %v6518_v27, 0.0 }
0x1712   :  { %15156 = vmatprep.mubr.msk.f32.mxu0 %vm6577_vm7, %v6564_v63 }
0x1713   :  { %v15135_v35 = vpop.f32.mrb[78].mxu1  ;;  %15157 = vmatmul.mubr.msk.f32.gmra.mrb[108].mxu0 %vm6577_vm7, %v6565_v8 }
0x1714   :  { %v6533_v48 = vadd.f32 %v15135_v35, %v20154_v50  ;;  %v6527_v6 = vpop.f32.mrb[79].mxu1 }
0x1715   :  { %v6528_v51 = vadd.f32 %v20154_v50, %v6527_v6 }
0x1716   :  { %v6567_v58 = vmax.f32 %v6533_v48, 0.0 }
0x1717   :  { %v6566_v30 = vmax.f32 %v6528_v51, 0.0 }
0x1719   :  { %15159 = vmatprep.mubr.msk.f32.mxu0 %vm6577_vm7, %v6566_v30 }
0x171a   :  { %15160 = vmatmul.mubr.msk.f32.gmra.mrb[110].mxu0 %vm6577_vm7, %v6567_v58 }
0x171b   :  { %v15138_v33 = vpop.f32.mrb[80].mxu1 }
0x171c   :  { %v6543_v11 = vadd.f32 %v15138_v33, %v20154_v50  ;;  %v6537_v14 = vpop.f32.mrb[81].mxu1 }
0x171d   :  { %v6538_v16 = vadd.f32 %v20154_v50, %v6537_v14 }
0x171e   :  { %v6569_v36 = vmax.f32 %v6543_v11, 0.0 }
0x171f   :  { %v6568_v29 = vmax.f32 %v6538_v16, 0.0 }
0x1721   :  { %15162 = vmatprep.mubr.msk.f32.mxu0 %vm6577_vm7, %v6568_v29 }
0x1722   :  { %15163 = vmatmul.mubr.msk.f32.gmra.mrb[112].mxu0 %vm6577_vm7, %v6569_v36 }
0x1724   :  { %v15141_v47 = vpop.f32.mrb[82].mxu1 }
0x1725   :  { %v6553_v62 = vadd.f32 %v15141_v47, %v20154_v50  ;;  %v6547_v3 = vpop.f32.mrb[83].mxu1 }
0x1726   :  { %v6548_v18 = vadd.f32 %v20154_v50, %v6547_v3 }
0x1727   :  { %v6571_v10 = vmax.f32 %v6553_v62, 0.0 }
0x1728   :  { %v6570_v31 = vmax.f32 %v6548_v18, 0.0  ;;  %v15178_v40 = vpop.f32.mrb[84].mxu1 }
0x1729   :  { %v20529_v34 = vadd.f32 %v15178_v40, %v13227_v21  ;;  %v7168_v4 = vpop.f32.mrb[85].mxu1 }
0x172a   :  { %v20531_v32 = vadd.f32 %v13227_v21, %v7168_v4  ;;  %15165 = vmatprep.mubr.msk.f32.mxu0 %vm6577_vm7, %v6570_v31 }
0x172b   :  { %15166 = vmatmul.mubr.msk.f32.gmra.mrb[114].mxu0 %vm6577_vm7, %v6571_v10 }
0x172c   :  { %v15181_v28 = vpop.f32.mrb[86].mxu1  ;;  %15216 = vmatprep.mubr.msk.f32.mxu0 %vm1749_vm3, %v20531_v32  ;;  %v20539_v50 = vpack.i.bf16 %v20529_v34, %v20531_v32 }
0x172d   :  { %v20541_v53 = vadd.f32 %v15181_v28, %v13227_v21  ;;  %v7178_v43 = vpop.f32.mrb[87].mxu1 }
0x172e   :  { %v20543_v38 = vadd.f32 %v13227_v21, %v7178_v43  ;;  %17164 = vrot.lane.b32.xlu1 %v20539_v50, %s18171_s5 }
0x1730   :  { %v15184_v13 = vpop.f32.mrb[88].mxu1  ;;  %v20549_v57 = vpack.i.bf16 %v20541_v53, %v20543_v38 }
0x1731   :  { %v20551_v12 = vadd.f32 %v15184_v13, %v13227_v21  ;;  %v7188_v61 = vpop.f32.mrb[89].mxu1 }
0x1732   :  { %17169 = vrot.lane.b32.xlu0 %v20549_v57, %s18171_s5  ;;  %v20555_v7 = vadd.f32 %v13227_v21, %v7188_v61 }
0x1734   :  { %v20559_v59 = vpack.i.bf16 %v20551_v12, %v20555_v7 }
0x1736   :  { %17174 = vrot.lane.b32.xlu1 %v20559_v59, %s18171_s5 }
0x1738   :  { %v15187_v27 = vpop.f32.mrb[90].mxu1 }
0x1739   :  { %v20563_v63 = vadd.f32 %v15187_v27, %v13227_v21  ;;  %v7198_v8 = vpop.f32.mrb[91].mxu1 }
0x173a   :  { %v20565_v35 = vadd.f32 %v13227_v21, %v7198_v8 }
0x173c   :  { %v20569_v48 = vpack.i.bf16 %v20563_v63, %v20565_v35 }
0x173e   :  { %17179 = vrot.lane.b32.xlu1 %v20569_v48, %s18171_s5 }
0x17a0   :  { %v17165_v6 = vpop.permute.xlu1 %17164 }
0x17a1   :  { %v17167_v51 = vunpack.i.h.bf16 %v17165_v6  ;;  %v17166_v30 = vunpack.i.l.bf16 %v17165_v6 }
0x17a3   :  { %v16290_v58 = vpack.c.bf16 %v17167_v51, %v17166_v30 }
0x17a4   :  { %v17170_v33 = vpop.permute.xlu0 %17169 }
0x17a5   :  { %v17172_v11 = vunpack.i.h.bf16 %v17170_v33  ;;  %v17171_v14 = vunpack.i.l.bf16 %v17170_v33  ;;  %16292 = vmatprep.subr.msk.bf16.mxu0 %vm18771_vm4, %v16290_v58 }
0x17a6   :  { %16295 = vmatpush3.bf16.xpose.msk.msra.mxu0 %vm18771_vm4, %v16290_v58 }
0x17a7   :  { %v16296_v16 = vpack.c.bf16 %v17172_v11, %v17171_v14 }
0x17a8   :  { %v17175_v29 = vpop.permute.xlu1 %17174 }
0x17a9   :  { %v17177_v36 = vunpack.i.h.bf16 %v17175_v29  ;;  %v17176_v47 = vunpack.i.l.bf16 %v17175_v29  ;;  %16298 = vmatprep.subr.msk.bf16.mxu0 %vm18771_vm4, %v16296_v16 }
0x17ab   :  { %v16302_v62 = vpack.c.bf16 %v17177_v36, %v17176_v47 }
0x17ae   :  { %16301 = vmatpush3.bf16.xpose.msk.msra.mxu0 %vm18771_vm4, %v16296_v16 }
0x17af   :  { %16304 = vmatprep.subr.msk.bf16.mxu0 %vm18771_vm4, %v16302_v62 }
0x17b0   :  { %v17180_v3 = vpop.permute.xlu1 %17179 }
0x17b1   :  { %v17182_v18 = vunpack.i.h.bf16 %v17180_v3  ;;  %v17181_v21 = vunpack.i.l.bf16 %v17180_v3 }
0x17b3   :  { %v16308_v31 = vpack.c.bf16 %v17182_v18, %v17181_v21 }
0x17b6   :  { %16307 = vmatpush3.bf16.xpose.msk.msra.mxu0 %vm18771_vm4, %v16302_v62 }
0x17b7   :  { %16310 = vmatprep.subr.msk.bf16.mxu0 %vm18771_vm4, %v16308_v31 }
0x17be   :  { %16313 = vmatpush3.bf16.xpose.msk.msra.mxu0 %vm18771_vm4, %v16308_v31 }
0x17c5   :  { %15217 = vmatmul.mubr.msk.f32.vlgmr.msra.gmra.mrb[116].mxu0 %vm1749_vm3, %v20529_v34 }
0x17c6   :  { %15219 = vmatprep.mubr.msk.f32.mxu0 %vm1749_vm3, %v20543_v38 }
0x17c9   :  { %15220 = vmatmul.mubr.msk.f32.gmra.mrb[118].mxu0 %vm1749_vm3, %v20541_v53 }
0x17ca   :  { %15222 = vmatprep.mubr.msk.f32.mxu0 %vm1749_vm3, %v20555_v7 }
0x17cd   :  { %15223 = vmatmul.mubr.msk.f32.gmra.mrb[120].mxu0 %vm1749_vm3, %v20551_v12 }
0x17ce   :  { %15225 = vmatprep.mubr.msk.f32.mxu0 %vm1749_vm3, %v20565_v35 }
0x17d1   :  { %15226 = vmatmul.mubr.msk.f32.gmra.mrb[122].mxu0 %vm1749_vm3, %v20563_v63 }
0x17e6   :  { %v20603_v40 = vpop.f32.mrb[108].mxu0 }
0x17e7   :  { %v20605_v10 = vpop.f32.mrb[109].mxu0 }
0x17ed   :  { %v20607_v4 = vpop.f32.mrb[110].mxu0 }
0x17ee   :  { %v20609_v28 = vpop.f32.mrb[111].mxu0 }
0x17f5   :  { %v20611_v43 = vpop.f32.mrb[112].mxu0 }
0x17f6   :  { %v20613_v13 = vpop.f32.mrb[113].mxu0 }
0x17fe   :  { %v20615_v61 = vpop.f32.mrb[114].mxu0 }
0x17ff   :  { %v20617_v27 = vpop.f32.mrb[115].mxu0 }
0x1898   :  { %v15218_v8 = vpop.f32.mrb[116].mxu0 }
0x1899   :  { %v7378_v6 = vpop.f32.mrb[117].mxu0  ;;  %v7420_v51 = vsel %vm1887_vm5, %v15218_v8, -inf }
0x189a   :  { %7421 = vmax.xlane.f32.xlu1 %v7420_v51  ;;  %v7417_v30 = vsel %vm1887_vm5, %v7378_v6, -inf }
0x189b   :  { %7418 = vmax.xlane.f32.xlu0 %v7417_v30 }
0x189c   :  { %v20621_v58 = vpop.f32.mrb[118].mxu0 }
0x189d   :  { %v7388_v33 = vpop.f32.mrb[119].mxu0  ;;  %v7426_v11 = vsel %vm1887_vm5, %v20621_v58, -inf }
0x189e   :  { %v7423_v29 = vsel %vm1887_vm5, %v7388_v33, -inf }
0x189f   :  { %7427 = vmax.xlane.f32.xlu0 %v7426_v11 }
0x18a0   :  { %v15224_v14 = vpop.f32.mrb[120].mxu0 }
0x18a1   :  { %v20625_v16 = vpop.f32.mrb[121].mxu0  ;;  %v7432_v62 = vsel %vm1887_vm5, %v15224_v14, -inf }
0x18a2   :  { %v7429_v18 = vsel %vm1887_vm5, %v20625_v16, -inf }
0x18a3   :  { %7424 = vmax.xlane.f32.xlu0 %v7423_v29 }
0x18a4   :  { %v15227_v36 = vpop.f32.mrb[122].mxu0 }
0x18a5   :  { %v20628_v47 = vpop.f32.mrb[123].mxu0  ;;  %v7438_v3 = vsel %vm1887_vm5, %v15227_v36, -inf }
0x18a6   :  { %v7435_v21 = vsel %vm1887_vm5, %v20628_v47, -inf }
0x18a7   :  { %7433 = vmax.xlane.f32.xlu0 %v7432_v62 }
0x18ab   :  { %17184 = vrot.lane.b32.xlu1 %v20539_v50, %s18172_s3  ;;  %7439 = vmax.xlane.f32.xlu0 %v7438_v3 }
0x18c1   :  { %17189 = vrot.lane.b32.xlu0 %v20549_v57, %s18172_s3 }
0x18cf   :  { %7430 = vmax.xlane.f32.xlu1 %v7429_v18 }
0x18e0   :  { %17194 = vrot.lane.b32.xlu1 %v20559_v59, %s18172_s3 }
0x1904   :  { %7436 = vmax.xlane.f32.xlu1 %v7435_v21 }
0x1915   :  { %17199 = vrot.lane.b32.xlu1 %v20569_v48, %s18172_s3 }
0x1927   :  { %v7422_v31 = vpop.xlane.xlu1 %7421 }
0x1928   :  { %v7442_v51 = vsub.f32 %v15218_v8, %v7422_v31  ;;  %v7419_v30 = vpop.xlane.xlu0 %7418 }
0x1929   :  { %v7441_v11 = vsub.f32 %v7378_v6, %v7419_v30 }
0x192a   :  { %v7451_v29 = vmul.f32 1.442695, %v7442_v51 }
0x192b   :  { %v7449_v62 = vmul.f32 1.442695, %v7441_v11  ;;  %v17185_v3 = vpop.permute.xlu1 %17184 }
0x192c   :  { %17787 = vpow2.f32 %v7451_v29  ;;  %v17187_v2 = vunpack.i.h.bf16 %v17185_v3  ;;  %v17186_v18 = vunpack.i.l.bf16 %v17185_v3  ;;  %v7428_v17 = vpop.xlane.xlu0 %7427 }
0x192d   :  { %17789 = vpow2.f32 %v7449_v62  ;;  %v7444_v29 = vsub.f32 %v20621_v58, %v7428_v17 }
0x192e   :  { %v16314_v15 = vpack.c.bf16 %v17187_v2, %v17186_v18 }
0x192f   :  { %v7455_v3 = vmul.f32 1.442695, %v7444_v29 }
0x1930   :  { %16315 = vmatprep.subr.bf16.mxu0 %v16314_v15  ;;  %v7425_v5 = vpop.xlane.xlu0 %7424 }
0x1931   :  { %v7443_v39 = vsub.f32 %v7388_v33, %v7425_v5  ;;  %16317 = vmatpush3.bf16.msra.mxu0 %v16314_v15 }
0x1933   :  { %v7453_v21 = vmul.f32 1.442695, %v7443_v39 }
0x1934   :  { %v7434_v0 = vpop.xlane.xlu0 %7433 }
0x1935   :  { %17791 = vpow2.f32 %v7453_v21  ;;  %v7446_v9 = vsub.f32 %v15224_v14, %v7434_v0 }
0x1936   :  { %v20644_v8 = vpop.eup %17787 }
0x1937   :  { %v20646_v6 = vpop.eup %17789  ;;  %v7459_v31 = vmul.f32 1.442695, %v7446_v9  ;;  %v7468_v51 = vsel %vm1887_vm5, %v20644_v8, 0.0 }
0x1938   :  { %7469 = vadd.xlane.f32.xlu0 %v7468_v51  ;;  %v7440_v30 = vpop.xlane.xlu0 %7439  ;;  %v7465_v2 = vsel %vm1887_vm5, %v20646_v6, 0.0 }
0x1939   :  { %17793 = vpow2.f32 %v7459_v31  ;;  %7466 = vadd.xlane.f32.xlu1 %v7465_v2  ;;  %v7448_v62 = vsub.f32 %v15227_v36, %v7440_v30 }
0x193a   :  { %17795 = vpow2.f32 %v7455_v3 }
0x193b   :  { %v7463_v31 = vmul.f32 1.442695, %v7448_v62 }
0x193c   :  { %v17190_v5 = vpop.permute.xlu0 %17189 }
0x193d   :  { %v17192_v39 = vunpack.i.h.bf16 %v17190_v5  ;;  %v17191_v15 = vunpack.i.l.bf16 %v17190_v5 }
0x193f   :  { %v20652_v33 = vpop.eup %17791  ;;  %v16318_v0 = vpack.c.bf16 %v17192_v39, %v17191_v15 }
0x1940   :  { %v7471_v14 = vsel %vm1887_vm5, %v20652_v33, 0.0 }
0x1941   :  { %7472 = vadd.xlane.f32.xlu0 %v7471_v14  ;;  %16319 = vmatprep.subr.bf16.mxu0 %v16318_v0 }
0x1942   :  { %16321 = vmatpush3.bf16.msra.mxu0 %v16318_v0 }
0x1943   :  { %v20656_v9 = vpop.eup %17793 }
0x1944   :  { %v7480_v11 = vsel %vm1887_vm5, %v20656_v9, 0.0  ;;  %v20664_v0 = vpop.eup %17795 }
0x1945   :  { %7481 = vadd.xlane.f32.xlu0 %v7480_v11 }
0x194a   :  { %17204 = vrot.lane.b32.xlu1 %v20539_v50, %s18173_s21 }
0x195c   :  { %v7431_v18 = vpop.xlane.xlu1 %7430 }
0x195d   :  { %v7445_v21 = vsub.f32 %v20625_v16, %v7431_v18  ;;  %v7474_v16 = vsel %vm1887_vm5, %v20664_v0, 0.0 }
0x195f   :  { %v7457_v51 = vmul.f32 1.442695, %v7445_v21 }
0x1960   :  { %v17195_v2 = vpop.permute.xlu1 %17194 }
0x1961   :  { %17797 = vpow2.f32 %v7457_v51  ;;  %v17197_v5 = vunpack.i.h.bf16 %v17195_v2  ;;  %v17196_v39 = vunpack.i.l.bf16 %v17195_v2 }
0x1962   :  { %17799 = vpow2.f32 %v7463_v31 }
0x1963   :  { %v16322_v15 = vpack.c.bf16 %v17197_v5, %v17196_v39  ;;  %v6742_v5 = vadd.f32 %v20603_v40, %v20210_v56 }
0x1965   :  { %16323 = vmatprep.subr.bf16.mxu0 %v16322_v15 }
0x1966   :  { %16325 = vmatpush3.bf16.msra.mxu0 %v16322_v15 }
0x196b   :  { %v20666_v14 = vpop.eup %17797 }
0x196c   :  { %v7477_v17 = vsel %vm1887_vm5, %v20666_v14, 0.0  ;;  %v20670_v58 = vpop.eup %17799 }
0x196d   :  { %7478 = vadd.xlane.f32.xlu0 %v7477_v17  ;;  %v7486_v36 = vsel %vm1887_vm5, %v20670_v58, 0.0 }
0x196e   :  { %7475 = vadd.xlane.f32.xlu1 %v7474_v16 }
0x1971   :  { %7487 = vadd.xlane.f32.xlu0 %v7486_v36  ;;  %v20722_v36 = vadd.f32 %v6742_v5, %v20396_v45 }
0x1973   :  { %v6818_v45 = vsel %vm1523_vm2, %v20722_v36, 0.0 }
0x197f   :  { %17214 = vrot.lane.b32.xlu1 %v20559_v59, %s18173_s21 }
0x1983   :  { %17219 = vrot.lane.b32.xlu1 %v20569_v48, %s18173_s21 }
0x1987   :  { %7795 = vrot.lane.b32.xlu1 %v20531_v32, %s18174_s22 }
0x198b   :  { %7797 = vrot.lane.b32.xlu1 %v20529_v34, %s18174_s22 }
0x198f   :  { %7801 = vrot.lane.b32.xlu1 %v20541_v53, %s18174_s22 }
0x1991   :  { %v7437_v30 = vpop.xlane.xlu1 %7436 }
0x1992   :  { %v7447_v11 = vsub.f32 %v20628_v47, %v7437_v30  ;;  %v6747_v30 = vadd.f32 %v20609_v28, %v20210_v56 }
0x1993   :  { %7805 = vrot.lane.b32.xlu1 %v20551_v12, %s18174_s22 }
0x1994   :  { %v7461_v29 = vmul.f32 1.442695, %v7447_v11 }
0x1995   :  { %v17200_v62 = vpop.permute.xlu1 %17199 }
0x1996   :  { %17801 = vpow2.f32 %v7461_v29  ;;  %v17202_v3 = vunpack.i.h.bf16 %v17200_v62  ;;  %v17201_v18 = vunpack.i.l.bf16 %v17200_v62  ;;  %v6752_v62 = vadd.f32 %v20607_v4, %v20210_v56 }
0x1997   :  { %7809 = vrot.lane.b32.xlu1 %v20563_v63, %s18174_s22 }
0x1998   :  { %v16326_v21 = vpack.c.bf16 %v17202_v3, %v17201_v18  ;;  %v20733_v3 = vadd.f32 %v6747_v30, %v20406_v37  ;;  %v20744_v4 = vadd.f32 %v6752_v62, %v20409_v46  ;;  %v6757_v37 = vadd.f32 %v20613_v13, %v20210_v56 }
0x199a   :  { %16327 = vmatprep.subr.bf16.mxu0 %v16326_v21  ;;  %v20757_v46 = vadd.f32 %v6757_v37, %v20420_v24  ;;  %v6824_v13 = vsel %vm1523_vm2, %v20744_v4, 0.0 }
0x199b   :  { %17229 = vrot.lane.b32.xlu1 %v20549_v57, %s18176_s25  ;;  %16329 = vmatpush3.bf16.msra.mxu0 %v16326_v21  ;;  %v6762_v21 = vadd.f32 %v20611_v43, %v20210_v56 }
0x199c   :  { %v6827_v43 = vsel %vm1523_vm2, %v20757_v46, 0.0 }
0x199f   :  { %17239 = vrot.lane.b32.xlu1 %v20569_v48, %s18176_s25 }
0x19a0   :  { %v20695_v47 = vpop.eup %17801 }
0x19a1   :  { %v7483_v31 = vsel %vm1887_vm5, %v20695_v47, 0.0 }
0x19a2   :  { %7484 = vadd.xlane.f32.xlu0 %v7483_v31 }
0x19a3   :  { %8344 = vrot.lane.b32.xlu1 %v20529_v34, %s18177_s26 }
0x19a7   :  { %8348 = vrot.lane.b32.xlu1 %v20541_v53, %s18177_s26 }
0x19ab   :  { %8352 = vrot.lane.b32.xlu1 %v20551_v12, %s18177_s26 }
0x19af   :  { %8354 = vrot.lane.b32.xlu1 %v20565_v35, %s18177_s26 }
0x19b8   :  { %17209 = vrot.lane.b32.xlu0 %v20549_v57, %s18173_s21 }
0x19bc   :  { %7799 = vrot.lane.b32.xlu0 %v20543_v38, %s18174_s22 }
0x19c0   :  { %7803 = vrot.lane.b32.xlu0 %v20555_v7, %s18174_s22 }
0x19c4   :  { %7807 = vrot.lane.b32.xlu0 %v20565_v35, %s18174_s22 }
0x19c5   :  { %v7470_v51 = vpop.xlane.xlu0 %7469 }
0x19c6   :  { %17803 = vrcp.f32 %v7470_v51  ;;  %v7467_v2 = vpop.xlane.xlu1 %7466  ;;  %v20764_v51 = vadd.f32 %v6762_v21, %v20423_v26  ;;  %v6737_v26 = vadd.f32 %v20605_v10, %v20210_v56 }
0x19c7   :  { %17805 = vrcp.f32 %v7467_v2  ;;  %v6772_v2 = vadd.f32 %v20615_v61, %v20210_v56 }
0x19c8   :  { %17224 = vrot.lane.b32.xlu0 %v20539_v50, %s18176_s25  ;;  %v6830_v5 = vsel %vm1523_vm2, %v20764_v51, 0.0  ;;  %v20780_v61 = vadd.f32 %v6737_v26, %v20393_v60 }
0x19c9   :  { %v20771_v24 = vadd.f32 %v6772_v2, %v20453_v49 }
0x19ca   :  { %v17205_v39 = vpop.permute.xlu1 %17204 }
0x19cb   :  { %v17207_v15 = vunpack.i.h.bf16 %v17205_v39  ;;  %v17206_v17 = vunpack.i.l.bf16 %v17205_v39 }
0x19cc   :  { %17234 = vrot.lane.b32.xlu0 %v20559_v59, %s18176_s25 }
0x19cd   :  { %v16330_v16 = vpack.c.bf16 %v17207_v15, %v17206_v17  ;;  %v6815_v15 = vsel %vm1523_vm2, %v20780_v61, 0.0 }
0x19ce   :  { %v7473_v11 = vpop.xlane.xlu0 %7472 }
0x19cf   :  { %17807 = vrcp.f32 %v7473_v11  ;;  %16332 = vmatprep.subr.msk.bf16.mxu0 %vm18771_vm4, %v16330_v16 }
0x19d0   :  { %v17804_v29 = vpop.eup %17803  ;;  %8342 = vrot.lane.b32.xlu0 %v20531_v32, %s18177_s26 }
0x19d1   :  { %v17806_v40 = vpop.eup %17805  ;;  %v7498_v18 = vmul.f32 %v17804_v29, %v20644_v8  ;;  %v6821_v8 = vsel %vm1523_vm2, %v20733_v3, 0.0 }
0x19d2   :  { %v7497_v28 = vmul.f32 %v17806_v40, %v20646_v6  ;;  %v7482_v39 = vpop.xlane.xlu0 %7481 }
0x19d3   :  { %6819 = vadd.xlane.f32.xlu1 %v6818_v45 }
0x19d4   :  { %8346 = vrot.lane.b32.xlu0 %v20543_v38, %s18177_s26  ;;  %15244 = vmatprep.mubr.msk.f32.mxu0 %vm1887_vm5, %v7497_v28 }
0x19d5   :  { %15245 = vmatmul.mubr.msk.f32.vlgmr.msra.gmra.mrb[124].mxu0 %vm1887_vm5, %v7498_v18 }
0x19d6   :  { %16335 = vmatpush3.bf16.xpose.msk.msra.mxu0 %vm18771_vm4, %v16330_v16 }
0x19d7   :  { %6822 = vadd.xlane.f32.xlu1 %v6821_v8 }
0x19d8   :  { %8350 = vrot.lane.b32.xlu0 %v20555_v7, %s18177_s26 }
0x19d9   :  { %v17808_v6 = vpop.eup %17807 }
0x19da   :  { %v7499_v31 = vmul.f32 %v17808_v6, %v20652_v33  ;;  %v6836_v33 = vsel %vm1523_vm2, %v20771_v24, 0.0 }
0x19db   :  { %6825 = vadd.xlane.f32.xlu1 %v6824_v13 }
0x19dc   :  { %15247 = vmatprep.mubr.msk.f32.mxu0 %vm1887_vm5, %v7499_v31 }
0x19df   :  { %6828 = vadd.xlane.f32.xlu1 %v6827_v43 }
0x19e3   :  { %6831 = vadd.xlane.f32.xlu1 %v6830_v5 }
0x19e7   :  { %6837 = vadd.xlane.f32.xlu1 %v6836_v33 }
0x19f7   :  { %6816 = vadd.xlane.f32.xlu0 %v6815_v15 }
0x19fa   :  { %v7479_v49 = vpop.xlane.xlu0 %7478 }
0x19fb   :  { %17809 = vrcp.f32 %v7479_v49  ;;  %v7476_v17 = vpop.xlane.xlu1 %7475 }
0x19fc   :  { %17811 = vrcp.f32 %v7476_v17 }
0x19fd   :  { %17813 = vrcp.f32 %v7482_v39 }
0x19fe   :  { %v7488_v18 = vpop.xlane.xlu0 %7487 }
0x19ff   :  { %v17215_v40 = vpop.permute.xlu1 %17214  ;;  %17815 = vrcp.f32 %v7488_v18 }
0x1a00   :  { %v17217_v13 = vunpack.i.h.bf16 %v17215_v40  ;;  %v17216_v31 = vunpack.i.l.bf16 %v17215_v40 }
0x1a02   :  { %v16342_v5 = vpack.c.bf16 %v17217_v13, %v17216_v31 }
0x1a03   :  { %v17220_v62 = vpop.permute.xlu1 %17219 }
0x1a04   :  { %v17222_v49 = vunpack.i.h.bf16 %v17220_v62  ;;  %v17221_v17 = vunpack.i.l.bf16 %v17220_v62 }
0x1a05   :  { %v17810_v16 = vpop.eup %17809 }
0x1a06   :  { %v17812_v30 = vpop.eup %17811  ;;  %v7501_v10 = vmul.f32 %v17810_v16, %v20666_v14 }
0x1a07   :  { %v7500_v11 = vmul.f32 %v17812_v30, %v20664_v0  ;;  %v17814_v29 = vpop.eup %17813  ;;  %v7796_v45 = vpop.permute.xlu1 %7795  ;;  %v6767_v0 = vadd.f32 %v20617_v27, %v20210_v56 }
0x1a08   :  { %v7502_v60 = vmul.f32 %v17814_v29, %v20656_v9  ;;  %v16348_v29 = vpack.c.bf16 %v17222_v49, %v17221_v17 }
0x1a09   :  { %15248 = vmatmul.mubr.msk.f32.gmra.mrb[126].mxu0 %vm1887_vm5, %v7500_v11  ;;  %v20795_v14 = vadd.f32 %v6767_v0, %v20444_v44  ;;  %v17816_v33 = vpop.eup %17815 }
0x1a0a   :  { %15250 = vmatprep.mubr.msk.f32.mxu0 %vm1887_vm5, %v7501_v10  ;;  %v7504_v16 = vmul.f32 %v17816_v33, %v20670_v58 }
0x1a0b   :  { %v7798_v28 = vpop.permute.xlu1 %7797  ;;  %v6833_v37 = vsel %vm1523_vm2, %v20795_v14, 0.0 }
0x1a0d   :  { %8356 = vrot.lane.b32.xlu0 %v20563_v63, %s18177_s26  ;;  %15251 = vmatmul.mubr.msk.f32.gmra.mrb[128].mxu0 %vm1887_vm5, %v7502_v60 }
0x1a0f   :  { %v7802_v9 = vpop.permute.xlu1 %7801 }
0x1a13   :  { %v7806_v6 = vpop.permute.xlu1 %7805 }
0x1a17   :  { %v7810_v44 = vpop.permute.xlu1 %7809 }
0x1a1b   :  { %v17230_v30 = vpop.permute.xlu1 %17229 }
0x1a1c   :  { %v17231_v0 = vunpack.i.l.bf16 %v17230_v30 }
0x1a1f   :  { %v17240_v10 = vpop.permute.xlu1 %17239 }
0x1a23   :  { %v8345_v62 = vpop.permute.xlu1 %8344 }
0x1a2c   :  { %6834 = vadd.xlane.f32.xlu0 %v6833_v37  ;;  %v8349_v37 = vpop.permute.xlu1 %8348 }
0x1a2f   :  { %v7485_v8 = vpop.xlane.xlu0 %7484 }
0x1a30   :  { %17817 = vrcp.f32 %v7485_v8  ;;  %v8353_v31 = vpop.permute.xlu1 %8352 }
0x1a33   :  { %v17210_v21 = vpop.permute.xlu0 %17209 }
0x1a34   :  { %v17212_v2 = vunpack.i.h.bf16 %v17210_v21  ;;  %v17211_v43 = vunpack.i.l.bf16 %v17210_v21 }
0x1a36   :  { %v16336_v56 = vpack.c.bf16 %v17212_v2, %v17211_v43  ;;  %v17241_v43 = vunpack.i.l.bf16 %v17240_v10 }
0x1a37   :  { %v7800_v27 = vpop.permute.xlu0 %7799 }
0x1a38   :  { %16338 = vmatprep.subr.msk.bf16.mxu0 %vm18771_vm4, %v16336_v56 }
0x1a39   :  { %16341 = vmatpush3.bf16.xpose.msk.msra.mxu0 %vm18771_vm4, %v16336_v56  ;;  %v8355_v56 = vpop.permute.xlu1 %8354 }
0x1a3a   :  { %v17818_v26 = vpop.eup %17817  ;;  %16344 = vmatprep.subr.msk.bf16.mxu0 %vm18771_vm4, %v16342_v5 }
0x1a3b   :  { %v7804_v39 = vpop.permute.xlu0 %7803  ;;  %v7503_v15 = vmul.f32 %v17818_v26, %v20695_v47 }
0x1a3d   :  { %15253 = vmatprep.mubr.msk.f32.mxu0 %vm1887_vm5, %v7503_v15 }
0x1a3e   :  { %15254 = vmatmul.mubr.msk.f32.gmra.mrb[130].mxu0 %vm1887_vm5, %v7504_v16 }
0x1a3f   :  { %v7808_v11 = vpop.permute.xlu0 %7807  ;;  %15286 = vmatprep.mubr.msk.f32.mxu0 %vm1749_vm3, %v7796_v45  ;;  %v17232_v45 = vunpack.i.h.bf16 %v17230_v30 }
0x1a41   :  { %16347 = vmatpush3.bf16.xpose.msk.msra.mxu0 %vm18771_vm4, %v16342_v5  ;;  %v16376_v18 = vpack.c.bf16 %v17232_v45, %v17231_v0 }
0x1a42   :  { %16350 = vmatprep.subr.msk.bf16.mxu0 %vm18771_vm4, %v16348_v29 }
0x1a43   :  { %v17225_v47 = vpop.permute.xlu0 %17224 }
0x1a44   :  { %v17227_v60 = vunpack.i.h.bf16 %v17225_v47  ;;  %v17226_v40 = vunpack.i.l.bf16 %v17225_v47 }
0x1a46   :  { %v16370_v58 = vpack.c.bf16 %v17227_v60, %v17226_v40 }
0x1a47   :  { %v17235_v8 = vpop.permute.xlu0 %17234 }
0x1a48   :  { %v17237_v21 = vunpack.i.h.bf16 %v17235_v8  ;;  %v17236_v13 = vunpack.i.l.bf16 %v17235_v8 }
0x1a49   :  { %16353 = vmatpush3.bf16.xpose.msk.msra.mxu0 %vm18771_vm4, %v16348_v29 }
0x1a4a   :  { %16372 = vmatprep.subr.msk.bf16.mxu0 %vm18771_vm4, %v16370_v58  ;;  %v16382_v2 = vpack.c.bf16 %v17237_v21, %v17236_v13 }
0x1a50   :  { %15287 = vmatmul.mubr.msk.f32.vlgmr.msra.gmra.mrb[132].mxu0 %vm1749_vm3, %v7798_v28  ;;  %v17242_v28 = vunpack.i.h.bf16 %v17240_v10 }
0x1a51   :  { %15289 = vmatprep.mubr.msk.f32.mxu0 %vm1749_vm3, %v7800_v27  ;;  %16375 = vmatpush3.bf16.xpose.msk.msra.mxu0 %vm18771_vm4, %v16370_v58  ;;  %v8343_v27 = vpop.permute.xlu0 %8342 }
0x1a52   :  { %16378 = vmatprep.subr.msk.bf16.mxu0 %vm18771_vm4, %v16376_v18 }
0x1a54   :  { %15290 = vmatmul.mubr.msk.f32.gmra.mrb[134].mxu0 %vm1749_vm3, %v7802_v9  ;;  %v16388_v9 = vpack.c.bf16 %v17242_v28, %v17241_v43 }
0x1a55   :  { %15292 = vmatprep.mubr.msk.f32.mxu0 %vm1749_vm3, %v7804_v39  ;;  %v8347_v30 = vpop.permute.xlu0 %8346 }
0x1a58   :  { %15293 = vmatmul.mubr.msk.f32.gmra.mrb[136].mxu0 %vm1749_vm3, %v7806_v6 }
0x1a59   :  { %15295 = vmatprep.mubr.msk.f32.mxu0 %vm1749_vm3, %v7808_v11  ;;  %16381 = vmatpush3.bf16.xpose.msk.msra.mxu0 %vm18771_vm4, %v16376_v18  ;;  %v8351_v60 = vpop.permute.xlu0 %8350 }
0x1a5a   :  { %16384 = vmatprep.subr.msk.bf16.mxu0 %vm18771_vm4, %v16382_v2 }
0x1a5c   :  { %15296 = vmatmul.mubr.msk.f32.gmra.mrb[138].mxu0 %vm1749_vm3, %v7810_v44 }
0x1a5d   :  { %15356 = vmatprep.mubr.msk.f32.mxu0 %vm1749_vm3, %v8343_v27 }
0x1a60   :  { %v6820_v5 = vpop.xlane.xlu1 %6819 }
0x1a61   :  { %v6848_v33 = vmul.f32 0.03125, %v6820_v5  ;;  %16387 = vmatpush3.bf16.xpose.msk.msra.mxu0 %vm18771_vm4, %v16382_v2 }
0x1a62   :  { %16390 = vmatprep.subr.msk.bf16.mxu0 %vm18771_vm4, %v16388_v9 }
0x1a63   :  { %v20839_v6 = vsub.f32 %v20722_v36, %v6848_v33 }
0x1a64   :  { %v6823_v26 = vpop.xlane.xlu1 %6822 }
0x1a65   :  { %v6880_v39 = vmul.f32 %v20839_v6, %v20839_v6  ;;  %v6849_v58 = vmul.f32 0.03125, %v6823_v26 }
0x1a67   :  { %v6914_v44 = vsel %vm1523_vm2, %v6880_v39, 0.0 }
0x1a68   :  { %6915 = vadd.xlane.f32.xlu1 %v6914_v44  ;;  %v6826_v15 = vpop.xlane.xlu1 %6825 }
0x1a69   :  { %v6850_v49 = vmul.f32 0.03125, %v6826_v15  ;;  %16393 = vmatpush3.bf16.xpose.msk.msra.mxu0 %vm18771_vm4, %v16388_v9 }
0x1a6b   :  { %v20847_v17 = vsub.f32 %v20744_v4, %v6850_v49 }
0x1a6c   :  { %v6829_v16 = vpop.xlane.xlu1 %6828 }
0x1a6d   :  { %v6882_v36 = vmul.f32 %v20847_v17, %v20847_v17  ;;  %v6851_v0 = vmul.f32 0.03125, %v6829_v16 }
0x1a6f   :  { %v6920_v11 = vsel %vm1523_vm2, %v6882_v36, 0.0  ;;  %v20870_v21 = vsub.f32 %v20757_v46, %v6851_v0 }
0x1a70   :  { %6921 = vadd.xlane.f32.xlu1 %v6920_v11  ;;  %v6832_v29 = vpop.xlane.xlu1 %6831  ;;  %15357 = vmatmul.mubr.msk.f32.vlgmr.msra.gmra.mrb[140].mxu0 %vm1749_vm3, %v8345_v62 }
0x1a71   :  { %v6852_v47 = vmul.f32 0.03125, %v6832_v29  ;;  %15359 = vmatprep.mubr.msk.f32.mxu0 %vm1749_vm3, %v8347_v30 }
0x1a73   :  { %v20855_v10 = vsub.f32 %v20764_v51, %v6852_v47  ;;  %v20865_v51 = vsub.f32 %v20733_v3, %v6849_v58  ;;  %v6883_v3 = vmul.f32 %v20870_v21, %v20870_v21 }
0x1a74   :  { %15360 = vmatmul.mubr.msk.f32.gmra.mrb[142].mxu0 %vm1749_vm3, %v8349_v37  ;;  %v20891_v5 = vpop.xlane.xlu1 %6837 }
0x1a75   :  { %15362 = vmatprep.mubr.msk.f32.mxu0 %vm1749_vm3, %v8351_v60  ;;  %v6884_v4 = vmul.f32 %v20855_v10, %v20855_v10 }
0x1a77   :  { %v6926_v40 = vsel %vm1523_vm2, %v6884_v4, 0.0 }
0x1a78   :  { %6927 = vadd.xlane.f32.xlu1 %v6926_v40  ;;  %15363 = vmatmul.mubr.msk.f32.gmra.mrb[144].mxu0 %vm1749_vm3, %v8353_v31  ;;  %v6881_v31 = vmul.f32 %v20865_v51, %v20865_v51 }
0x1a79   :  { %15365 = vmatprep.mubr.msk.f32.mxu0 %vm1749_vm3, %v8355_v56 }
0x1a7a   :  { %v6917_v2 = vsel %vm1523_vm2, %v6881_v31, 0.0 }
0x1a84   :  { %v6817_v62 = vpop.xlane.xlu0 %6816 }
0x1a85   :  { %v6847_v45 = vmul.f32 0.03125, %v6817_v62 }
0x1a87   :  { %v6863_v18 = vsub.f32 %v20780_v61, %v6847_v45  ;;  %v6923_v61 = vsel %vm1523_vm2, %v6883_v3, 0.0 }
0x1a88   :  { %v8357_v37 = vpop.permute.xlu0 %8356 }
0x1a89   :  { %15366 = vmatmul.mubr.msk.f32.gmra.mrb[146].mxu0 %vm1749_vm3, %v8357_v37  ;;  %v6879_v8 = vmul.f32 %v6863_v18, %v6863_v18 }
0x1a8b   :  { %v6911_v13 = vsel %vm1523_vm2, %v6879_v8, 0.0 }
0x1a8c   :  { %6912 = vadd.xlane.f32.xlu0 %v6911_v13 }
0x1a90   :  { %6918 = vadd.xlane.f32.xlu0 %v6917_v2 }
0x1a94   :  { %6924 = vadd.xlane.f32.xlu0 %v6923_v61 }
0x1aa8   :  { %v20879_v28 = vpop.f32.mrb[124].mxu0 }
0x1aa9   :  { %v20881_v43 = vpop.f32.mrb[125].mxu0 }
0x1ab9   :  { %v6835_v49 = vpop.xlane.xlu0 %6834 }
0x1adc   :  { %v20883_v46 = vpop.f32.mrb[126].mxu0 }
0x1add   :  { %v20885_v56 = vpop.f32.mrb[127].mxu0 }
0x1ae0   :  { %v20887_v27 = vpop.f32.mrb[128].mxu0 }
0x1ae1   :  { %v20889_v9 = vpop.f32.mrb[129].mxu0 }
0x1af5   :  { %v6916_v33 = vpop.xlane.xlu1 %6915 }
0x1af6   :  { %v6944_v26 = vmul.f32 0.03125, %v6916_v33 }
0x1af8   :  { %v6960_v16 = vadd.f32 1e-05, %v6944_v26 }
0x1afa   :  { %17819 = vrsqrt.f32 %v6960_v16 }
0x1afd   :  { %v6922_v44 = vpop.xlane.xlu1 %6921 }
0x1afe   :  { %v6946_v36 = vmul.f32 0.03125, %v6922_v44 }
0x1b00   :  { %v6962_v11 = vadd.f32 1e-05, %v6946_v36 }
0x1b02   :  { %17821 = vrsqrt.f32 %v6962_v11 }
0x1b04   :  { %v17820_v8 = vpop.eup %17819 }
0x1b05   :  { %v6928_v30 = vpop.xlane.xlu1 %6927  ;;  %v6992_v61 = vmul.f32 %v17820_v8, %v20839_v6 }
0x1b06   :  { %v6948_v29 = vmul.f32 0.03125, %v6928_v30  ;;  %v6853_v30 = vmul.f32 0.03125, %v6835_v49 }
0x1b08   :  { %v6964_v40 = vadd.f32 1e-05, %v6948_v29  ;;  %v7012_v29 = vmul.f32 %v20438_v42, %v6992_v61 }
0x1b0a   :  { %v20927_v49 = vadd.f32 %v20449_v20, %v7012_v29  ;;  %v6854_v29 = vmul.f32 0.03125, %v20891_v5 }
0x1b0c   :  { %v17822_v33 = vpop.eup %17821  ;;  %v20972_v5 = vsub.f32 %v20771_v24, %v6854_v29 }
0x1b11   :  { %v20893_v39 = vpop.f32.mrb[130].mxu0 }
0x1b12   :  { %v20895_v15 = vpop.f32.mrb[131].mxu0 }
0x1b19   :  { %v6913_v47 = vpop.xlane.xlu0 %6912 }
0x1b1a   :  { %v6943_v60 = vmul.f32 0.03125, %v6913_v47  ;;  %v6994_v47 = vmul.f32 %v17822_v33, %v20847_v17 }
0x1b1c   :  { %v6959_v4 = vadd.f32 1e-05, %v6943_v60 }
0x1b1d   :  { %v6919_v58 = vpop.xlane.xlu0 %6918 }
0x1b1e   :  { %17823 = vrsqrt.f32 %v6959_v4  ;;  %v6945_v62 = vmul.f32 0.03125, %v6919_v58 }
0x1b1f   :  { %17825 = vrsqrt.f32 %v6964_v40 }
0x1b20   :  { %v6961_v45 = vadd.f32 1e-05, %v6945_v62 }
0x1b21   :  { %v6925_v0 = vpop.xlane.xlu0 %6924 }
0x1b22   :  { %17827 = vrsqrt.f32 %v6961_v45  ;;  %v6947_v37 = vmul.f32 0.03125, %v6925_v0  ;;  %v20920_v45 = vsub.f32 %v20795_v14, %v6853_v30  ;;  %v7014_v0 = vmul.f32 %v20438_v42, %v6994_v47 }
0x1b23   :  { %v20897_v13 = vpop.f32.mrb[132].mxu0 }
0x1b24   :  { %v6963_v31 = vadd.f32 1e-05, %v6947_v37  ;;  %v20899_v2 = vpop.f32.mrb[133].mxu0  ;;  %v7967_v3 = vsel %vm1887_vm5, %v20897_v13, -inf  ;;  %v6885_v33 = vmul.f32 %v20920_v45, %v20920_v45 }
0x1b25   :  { %7968 = vmax.xlane.f32.xlu1 %v7967_v3  ;;  %v7964_v36 = vsel %vm1887_vm5, %v20899_v2, -inf }
0x1b26   :  { %17829 = vrsqrt.f32 %v6963_v31 }
0x1b27   :  { %v20904_v26 = vpop.f32.mrb[134].mxu0 }
0x1b28   :  { %v17824_v44 = vpop.eup %17823  ;;  %v20906_v16 = vpop.f32.mrb[135].mxu0  ;;  %v7973_v62 = vsel %vm1887_vm5, %v20904_v26, -inf }
0x1b29   :  { %7965 = vmax.xlane.f32.xlu1 %v7964_v36  ;;  %v6991_v11 = vmul.f32 %v17824_v44, %v6863_v18  ;;  %v17826_v60 = vpop.eup %17825  ;;  %v20951_v36 = vadd.f32 %v20449_v20, %v7014_v0 }
0x1b2a   :  { %v6996_v37 = vmul.f32 %v17826_v60, %v20855_v10 }
0x1b2b   :  { %v20912_v4 = vpop.f32.mrb[136].mxu0  ;;  %v7011_v6 = vmul.f32 %v20438_v42, %v6991_v11  ;;  %22789 = vst [vmem:[#allocation9_spill] sm:$0xff] %v20951_v36 }
0x1b2c   :  { %v17828_v40 = vpop.eup %17827  ;;  %v20915_v58 = vpop.f32.mrb[137].mxu0  ;;  %v7016_v30 = vmul.f32 %v20438_v42, %v6996_v37  ;;  %v7979_v47 = vsel %vm1887_vm5, %v20912_v4, -inf }
0x1b2d   :  { %7974 = vmax.xlane.f32.xlu1 %v7973_v62  ;;  %v20923_v18 = vadd.f32 %v20449_v20, %v7011_v6  ;;  %v6993_v17 = vmul.f32 %v17828_v40, %v20865_v51  ;;  %v7970_v51 = vsel %vm1887_vm5, %v20906_v16, -inf  ;;  %v7976_v40 = vsel %vm1887_vm5, %v20915_v58, -inf }
0x1b2e   :  { %v20967_v6 = vadd.f32 %v20449_v20, %v7016_v30 }
0x1b2f   :  { %22787 = vst [vmem:[#allocation7_spill] sm:$0xff] %v20923_v18  ;;  %15188 = vmatprep.mubr.msk.f32.mxu1 %vm1523_vm2, %v20923_v18  ;;  %v20933_v8 = vpop.f32.mrb[138].mxu0  ;;  %v7013_v14 = vmul.f32 %v20438_v42, %v6993_v17  ;;  %v6886_v17 = vmul.f32 %v20972_v5, %v20972_v5 }
0x1b30   :  { %v17830_v31 = vpop.eup %17829  ;;  %15189 = vmatmul.mubr.msk.f32.gmra.mrb[92].mxu1 %vm1523_vm2, %v20927_v49  ;;  %v20938_v3 = vpop.f32.mrb[139].mxu0  ;;  %22791 = vst [vmem:[#allocation11_spill] sm:$0xff] %v20967_v6  ;;  %v7985_v62 = vsel %vm1887_vm5, %v20933_v8, -inf }
0x1b31   :  { %7971 = vmax.xlane.f32.xlu1 %v7970_v51  ;;  %v7982_v10 = vsel %vm1887_vm5, %v20938_v3, -inf  ;;  %v20945_v61 = vadd.f32 %v20449_v20, %v7013_v14  ;;  %v6995_v44 = vmul.f32 %v17830_v31, %v20870_v21  ;;  %v6929_v21 = vsel %vm1523_vm2, %v6885_v33, 0.0  ;;  %v13244_v51 = vld [vmem:[%s22733_s8 + $0x20] sm:$0xff] }
0x1b32   :  { %7983 = vmax.xlane.f32.xlu0 %v7982_v10  ;;  %v6932_v0 = vsel %vm1523_vm2, %v6886_v17, 0.0  ;;  %15256 = vmatprep.subr.mxu1 %v13244_v51 }
0x1b33   :  { %22788 = vst [vmem:[#allocation6_spill] sm:$0xff] %v20945_v61  ;;  %15191 = vmatprep.mubr.msk.f32.mxu1 %vm1523_vm2, %v20945_v61  ;;  %v7015_v11 = vmul.f32 %v20438_v42, %v6995_v44  ;;  %15257 = vmatpush3.msra.mxu1 %v13244_v51 }
0x1b34   :  { %15192 = vmatmul.mubr.msk.f32.gmra.mrb[94].mxu1 %vm1523_vm2, %v20951_v36 }
0x1b35   :  { %7980 = vmax.xlane.f32.xlu1 %v7979_v47  ;;  %v20964_v60 = vadd.f32 %v20449_v20, %v7015_v11 }
0x1b36   :  { %6930 = vadd.xlane.f32.xlu0 %v6929_v21 }
0x1b37   :  { %22790 = vst [vmem:[#allocation8_spill] sm:$0xff] %v20964_v60  ;;  %15194 = vmatprep.mubr.msk.f32.mxu1 %vm1523_vm2, %v20964_v60 }
0x1b38   :  { %15195 = vmatmul.mubr.msk.f32.gmra.mrb[96].mxu1 %vm1523_vm2, %v20967_v6 }
0x1b39   :  { %7977 = vmax.xlane.f32.xlu1 %v7976_v40 }
0x1b3d   :  { %7986 = vmax.xlane.f32.xlu1 %v7985_v62 }
0x1b41   :  { %6933 = vadd.xlane.f32.xlu1 %v6932_v0 }
0x1b43   :  { %v20983_v37 = vpop.f32.mrb[140].mxu0 }
0x1b44   :  { %v20985_v24 = vpop.f32.mrb[141].mxu0 }
0x1b47   :  { %v20987_v14 = vpop.f32.mrb[142].mxu0 }
0x1b48   :  { %v20989_v31 = vpop.f32.mrb[143].mxu0 }
0x1b4b   :  { %v20994_v10 = vpop.f32.mrb[144].mxu0 }
0x1b4c   :  { %v20996_v33 = vpop.f32.mrb[145].mxu0  ;;  %17244 = vrot.lane.b32.xlu0 %v20539_v50, %s18175_s23 }
0x1b52   :  { %17249 = vrot.lane.b32.xlu1 %v20549_v57, %s18175_s23 }
0x1b5c   :  { %v21002_v44 = vpop.f32.mrb[146].mxu0 }
0x1b5d   :  { %v21004_v30 = vpop.f32.mrb[147].mxu0 }
0x1bb2   :  { %v7969_v11 = vpop.xlane.xlu1 %7968 }
0x1bb3   :  { %v7989_v29 = vsub.f32 %v20897_v13, %v7969_v11 }
0x1bb5   :  { %v7998_v47 = vmul.f32 1.442695, %v7989_v29 }
0x1bb6   :  { %v7966_v21 = vpop.xlane.xlu1 %7965 }
0x1bb7   :  { %17831 = vpow2.f32 %v7998_v47  ;;  %v7988_v40 = vsub.f32 %v20899_v2, %v7966_v21 }
0x1bb9   :  { %v7996_v62 = vmul.f32 1.442695, %v7988_v40 }
0x1bba   :  { %v7975_v17 = vpop.xlane.xlu1 %7974 }
0x1bbb   :  { %17833 = vpow2.f32 %v7996_v62  ;;  %v7991_v0 = vsub.f32 %v20904_v26, %v7975_v17 }
0x1bbd   :  { %v8002_v51 = vmul.f32 1.442695, %v7991_v0 }
0x1bbe   :  { %v7972_v60 = vpop.xlane.xlu1 %7971 }
0x1bbf   :  { %17835 = vpow2.f32 %v8002_v51  ;;  %v7990_v6 = vsub.f32 %v20906_v16, %v7972_v60  ;;  %v7984_v61 = vpop.xlane.xlu0 %7983 }
0x1bc0   :  { %v7994_v0 = vsub.f32 %v20938_v3, %v7984_v61 }
0x1bc1   :  { %v21010_v36 = vpop.eup %17831  ;;  %v8000_v18 = vmul.f32 1.442695, %v7990_v6 }
0x1bc2   :  { %v7981_v13 = vpop.xlane.xlu1 %7980  ;;  %v8015_v11 = vsel %vm1887_vm5, %v21010_v36, 0.0 }
0x1bc3   :  { %17837 = vpow2.f32 %v8000_v18  ;;  %v7993_v2 = vsub.f32 %v20912_v4, %v7981_v13  ;;  %8016 = vadd.xlane.f32.xlu1 %v8015_v11  ;;  %v6931_v29 = vpop.xlane.xlu0 %6930 }
0x1bc4   :  { %v6949_v47 = vmul.f32 0.03125, %v6931_v29 }
0x1bc5   :  { %v21015_v26 = vpop.eup %17833  ;;  %v8006_v21 = vmul.f32 1.442695, %v7993_v2 }
0x1bc6   :  { %v6965_v40 = vadd.f32 1e-05, %v6949_v47  ;;  %v7978_v62 = vpop.xlane.xlu1 %7977  ;;  %v8012_v16 = vsel %vm1887_vm5, %v21015_v26, 0.0  ;;  %v8008_v47 = vmul.f32 1.442695, %v7994_v0 }
0x1bc7   :  { %17839 = vpow2.f32 %v8006_v21  ;;  %v7992_v60 = vsub.f32 %v20915_v58, %v7978_v62  ;;  %8013 = vadd.xlane.f32.xlu0 %v8012_v16  ;;  %v17245_v6 = vpop.permute.xlu0 %17244 }
0x1bc8   :  { %17841 = vrsqrt.f32 %v6965_v40  ;;  %v17247_v18 = vunpack.i.h.bf16 %v17245_v6  ;;  %v17246_v17 = vunpack.i.l.bf16 %v17245_v6 }
0x1bc9   :  { %v21020_v4 = vpop.eup %17835  ;;  %v8004_v51 = vmul.f32 1.442695, %v7992_v60 }
0x1bca   :  { %v7987_v13 = vpop.xlane.xlu1 %7986  ;;  %v8021_v11 = vsel %vm1887_vm5, %v21020_v4, 0.0  ;;  %v16354_v2 = vpack.c.bf16 %v17247_v18, %v17246_v17 }
0x1bcb   :  { %17843 = vpow2.f32 %v8004_v51  ;;  %v7995_v29 = vsub.f32 %v20933_v8, %v7987_v13  ;;  %8022 = vadd.xlane.f32.xlu1 %v8021_v11 }
0x1bcc   :  { %16355 = vmatprep.subr.bf16.mxu1 %v16354_v2 }
0x1bcd   :  { %v21026_v58 = vpop.eup %17837  ;;  %v8010_v21 = vmul.f32 1.442695, %v7995_v29 }
0x1bce   :  { %v6934_v40 = vpop.xlane.xlu1 %6933  ;;  %v8018_v62 = vsel %vm1887_vm5, %v21026_v58, 0.0 }
0x1bcf   :  { %17845 = vpow2.f32 %v8010_v21  ;;  %v6950_v3 = vmul.f32 0.03125, %v6934_v40  ;;  %8019 = vadd.xlane.f32.xlu0 %v8018_v62 }
0x1bd0   :  { %17847 = vpow2.f32 %v8008_v47 }
0x1bd1   :  { %v21030_v61 = vpop.eup %17839  ;;  %v6966_v16 = vadd.f32 1e-05, %v6950_v3 }
0x1bd2   :  { %v17842_v60 = vpop.eup %17841  ;;  %v8027_v8 = vsel %vm1887_vm5, %v21030_v61, 0.0  ;;  %v17250_v62 = vpop.permute.xlu1 %17249 }
0x1bd3   :  { %17849 = vrsqrt.f32 %v6966_v16  ;;  %8028 = vadd.xlane.f32.xlu1 %v8027_v8  ;;  %v6997_v6 = vmul.f32 %v17842_v60, %v20920_v45  ;;  %v17252_v16 = vunpack.i.h.bf16 %v17250_v62  ;;  %v17251_v60 = vunpack.i.l.bf16 %v17250_v62 }
0x1bd5   :  { %v21035_v18 = vpop.eup %17843  ;;  %v7017_v17 = vmul.f32 %v20438_v42, %v6997_v6  ;;  %v16358_v8 = vpack.c.bf16 %v17252_v16, %v17251_v60 }
0x1bd6   :  { %v8024_v0 = vsel %vm1887_vm5, %v21035_v18, 0.0 }
0x1bd7   :  { %8025 = vadd.xlane.f32.xlu0 %v8024_v0  ;;  %v21041_v51 = vadd.f32 %v20449_v20, %v7017_v17 }
0x1bd9   :  { %v21043_v13 = vpop.eup %17845  ;;  %15197 = vmatprep.mubr.msk.f32.mxu1 %vm1523_vm2, %v21041_v51 }
0x1bda   :  { %v8033_v11 = vsel %vm1887_vm5, %v21043_v13, 0.0  ;;  %v21049_v45 = vpop.eup %17847 }
0x1bdb   :  { %8034 = vadd.xlane.f32.xlu1 %v8033_v11  ;;  %v8030_v47 = vsel %vm1887_vm5, %v21049_v45, 0.0 }
0x1bdd   :  { %v17850_v29 = vpop.eup %17849 }
0x1bde   :  { %v6998_v21 = vmul.f32 %v17850_v29, %v20972_v5 }
0x1bdf   :  { %8031 = vadd.xlane.f32.xlu1 %v8030_v47 }
0x1be0   :  { %v7018_v40 = vmul.f32 %v20438_v42, %v6998_v21 }
0x1be2   :  { %v21056_v3 = vadd.f32 %v20449_v20, %v7018_v40 }
0x1be4   :  { %15198 = vmatmul.mubr.msk.f32.gmra.mrb[98].mxu1 %vm1523_vm2, %v21056_v3 }
0x1be5   :  { %15258 = vmatprep.mubr.msk.f32.mxu1 %vm1749_vm3, %v20881_v43  ;;  %v8526_v43 = vsel %vm1887_vm5, %v20994_v10, -inf }
0x1be8   :  { %15259 = vmatmul.mubr.msk.f32.vlgmr.msra.gmra.mrb[100].mxu1 %vm1749_vm3, %v20879_v28  ;;  %v8514_v28 = vsel %vm1887_vm5, %v20983_v37, -inf }
0x1be9   :  { %16357 = vmatpush3.bf16.msra.mxu1 %v16354_v2  ;;  %15261 = vmatprep.mubr.msk.f32.mxu1 %vm1749_vm3, %v20885_v56  ;;  %v8532_v56 = vsel %vm1887_vm5, %v21002_v44, -inf }
0x1bea   :  { %16359 = vmatprep.subr.bf16.mxu1 %v16358_v8 }
0x1bec   :  { %15262 = vmatmul.mubr.msk.f32.gmra.mrb[102].mxu1 %vm1749_vm3, %v20883_v46  ;;  %v8529_v46 = vsel %vm1887_vm5, %v21004_v30, -inf }
0x1bed   :  { %16361 = vmatpush3.bf16.msra.mxu1 %v16358_v8  ;;  %17254 = vrot.lane.b32.xlu0 %v20559_v59, %s18175_s23 }
0x1bee   :  { %15264 = vmatprep.mubr.msk.f32.mxu1 %vm1749_vm3, %v20889_v9 }
0x1bf0   :  { %17259 = vrot.lane.b32.xlu1 %v20569_v48, %s18175_s23  ;;  %15265 = vmatmul.mubr.msk.f32.gmra.mrb[104].mxu1 %vm1749_vm3, %v20887_v27 }
0x1bf1   :  { %17264 = vrot.lane.b32.xlu0 %v20539_v50, %s18178_s2  ;;  %15267 = vmatprep.mubr.msk.f32.mxu1 %vm1749_vm3, %v20895_v15 }
0x1bf4   :  { %17269 = vrot.lane.b32.xlu1 %v20549_v57, %s18178_s2  ;;  %15268 = vmatmul.mubr.msk.f32.gmra.mrb[106].mxu1 %vm1749_vm3, %v20893_v39 }
0x1bf5   :  { %17274 = vrot.lane.b32.xlu0 %v20559_v59, %s18178_s2 }
0x1bf8   :  { %17279 = vrot.lane.b32.xlu1 %v20569_v48, %s18178_s2 }
0x1bf9   :  { %8889 = vrot.lane.b32.xlu0 %v20531_v32, %s18179_s27 }
0x1bfc   :  { %8891 = vrot.lane.b32.xlu1 %v20529_v34, %s18179_s27 }
0x1bfd   :  { %8893 = vrot.lane.b32.xlu0 %v20543_v38, %s18179_s27 }
0x1c00   :  { %8895 = vrot.lane.b32.xlu1 %v20541_v53, %s18179_s27 }
0x1c01   :  { %8897 = vrot.lane.b32.xlu0 %v20555_v7, %s18179_s27  ;;  %v8511_v7 = vsel %vm1887_vm5, %v20985_v24, -inf }
0x1c03   :  { %v21098_v42 = vpop.f32.mrb[92].mxu1 }
0x1c04   :  { %v21100_v20 = vpop.f32.mrb[93].mxu1  ;;  %8899 = vrot.lane.b32.xlu1 %v20551_v12, %s18179_s27  ;;  %v8517_v12 = vsel %vm1887_vm5, %v20989_v31, -inf }
0x1c05   :  { %8901 = vrot.lane.b32.xlu0 %v20565_v35, %s18179_s27  ;;  %v8520_v35 = vsel %vm1887_vm5, %v20987_v14, -inf }
0x1c07   :  { %v21106_v34 = vpop.f32.mrb[94].mxu1 }
0x1c08   :  { %v21108_v32 = vpop.f32.mrb[95].mxu1  ;;  %8903 = vrot.lane.b32.xlu1 %v20563_v63, %s18179_s27  ;;  %v8523_v63 = vsel %vm1887_vm5, %v20996_v33, -inf }
0x1c0b   :  { %v21112_v53 = vpop.f32.mrb[96].mxu1 }
0x1c0c   :  { %v21114_v38 = vpop.f32.mrb[97].mxu1 }
0x1c24   :  { %8512 = vmax.xlane.f32.xlu0 %v8511_v7 }
0x1c28   :  { %8518 = vmax.xlane.f32.xlu0 %v8517_v12 }
0x1c2c   :  { %8521 = vmax.xlane.f32.xlu0 %v8520_v35  ;;  %8515 = vmax.xlane.f32.xlu1 %v8514_v28 }
0x1c30   :  { %8524 = vmax.xlane.f32.xlu0 %v8523_v63  ;;  %8527 = vmax.xlane.f32.xlu1 %v8526_v43 }
0x1c34   :  { %8530 = vmax.xlane.f32.xlu0 %v8529_v46  ;;  %8533 = vmax.xlane.f32.xlu1 %v8532_v56  ;;  %v13245_v56 = vld [vmem:[%s22733_s8 + $0x28] sm:$0xff] }
0x1c45   :  { %17289 = vrot.lane.b32.xlu1 %v20549_v57, %s18180_s0 }
0x1c4a   :  { %17284 = vrot.lane.b32.xlu0 %v20539_v50, %s18180_s0 }
0x1c50   :  { %v8017_v9 = vpop.xlane.xlu1 %8016 }
0x1c54   :  { %v8014_v27 = vpop.xlane.xlu0 %8013 }
0x1c55   :  { %17851 = vrcp.f32 %v8014_v27 }
0x1c56   :  { %17853 = vrcp.f32 %v8017_v9 }
0x1c58   :  { %v8023_v15 = vpop.xlane.xlu1 %8022 }
0x1c5c   :  { %v8020_v5 = vpop.xlane.xlu0 %8019 }
0x1c5d   :  { %17855 = vrcp.f32 %v8020_v5 }
0x1c5e   :  { %17857 = vrcp.f32 %v8023_v15 }
0x1c5f   :  { %v17852_v39 = vpop.eup %17851 }
0x1c60   :  { %v8044_v2 = vmul.f32 %v17852_v39, %v21015_v26  ;;  %v8029_v6 = vpop.xlane.xlu1 %8028  ;;  %v17854_v63 = vpop.eup %17853 }
0x1c62   :  { %15314 = vmatprep.mubr.msk.f32.mxu1 %vm1887_vm5, %v8044_v2  ;;  %v8045_v2 = vmul.f32 %v17854_v63, %v21010_v36 }
0x1c64   :  { %v8026_v17 = vpop.xlane.xlu0 %8025 }
0x1c65   :  { %17859 = vrcp.f32 %v8026_v17 }
0x1c66   :  { %17861 = vrcp.f32 %v8029_v6 }
0x1c67   :  { %v17856_v27 = vpop.eup %17855 }
0x1c68   :  { %v8035_v0 = vpop.xlane.xlu1 %8034  ;;  %v17255_v11 = vpop.permute.xlu0 %17254 }
0x1c69   :  { %v17257_v29 = vunpack.i.h.bf16 %v17255_v11  ;;  %v17256_v47 = vunpack.i.l.bf16 %v17255_v11  ;;  %v17858_v17 = vpop.eup %17857  ;;  %v8046_v11 = vmul.f32 %v17856_v27, %v21026_v58 }
0x1c6a   :  { %v8047_v36 = vmul.f32 %v17858_v17, %v21020_v4 }
0x1c6b   :  { %v16362_v21 = vpack.c.bf16 %v17257_v29, %v17256_v47 }
0x1c6c   :  { %v8032_v40 = vpop.xlane.xlu1 %8031  ;;  %v17265_v62 = vpop.permute.xlu0 %17264 }
0x1c6d   :  { %v17267_v16 = vunpack.i.h.bf16 %v17265_v62  ;;  %v17266_v60 = vunpack.i.l.bf16 %v17265_v62  ;;  %16363 = vmatprep.subr.bf16.mxu1 %v16362_v21  ;;  %17863 = vrcp.f32 %v8032_v40 }
0x1c6e   :  { %16365 = vmatpush3.bf16.msra.mxu1 %v16362_v21  ;;  %17865 = vrcp.f32 %v8035_v0 }
0x1c6f   :  { %v16410_v26 = vpack.c.bf16 %v17267_v16, %v17266_v60  ;;  %v17860_v29 = vpop.eup %17859 }
0x1c70   :  { %v17260_v8 = vpop.permute.xlu1 %17259  ;;  %v17275_v7 = vpop.permute.xlu0 %17274  ;;  %v8048_v0 = vmul.f32 %v17860_v29, %v21035_v18 }
0x1c71   :  { %v17262_v12 = vunpack.i.h.bf16 %v17260_v8  ;;  %v17261_v35 = vunpack.i.l.bf16 %v17260_v8  ;;  %16412 = vmatprep.subr.msk.bf16.mxu0 %vm18771_vm4, %v16410_v26  ;;  %v17277_v9 = vunpack.i.h.bf16 %v17275_v7  ;;  %v17276_v39 = vunpack.i.l.bf16 %v17275_v7  ;;  %v17862_v58 = vpop.eup %17861 }
0x1c72   :  { %16415 = vmatpush3.bf16.xpose.msk.msra.mxu0 %vm18771_vm4, %v16410_v26  ;;  %v8049_v60 = vmul.f32 %v17862_v58, %v21030_v61 }
0x1c73   :  { %v16366_v28 = vpack.c.bf16 %v17262_v12, %v17261_v35  ;;  %v16422_v47 = vpack.c.bf16 %v17277_v9, %v17276_v39 }
0x1c74   :  { %v17270_v43 = vpop.permute.xlu1 %17269  ;;  %v8890_v46 = vpop.permute.xlu0 %8889 }
0x1c75   :  { %v17272_v15 = vunpack.i.h.bf16 %v17270_v43  ;;  %v17271_v5 = vunpack.i.l.bf16 %v17270_v43  ;;  %16367 = vmatprep.subr.bf16.mxu1 %v16366_v28  ;;  %15426 = vmatprep.mubr.msk.f32.mxu0 %vm1749_vm3, %v8890_v46 }
0x1c76   :  { %16369 = vmatpush3.bf16.msra.mxu1 %v16366_v28 }
0x1c77   :  { %v16416_v6 = vpack.c.bf16 %v17272_v15, %v17271_v5  ;;  %15326 = vmatprep.subr.mxu1 %v13245_v56  ;;  %v17864_v40 = vpop.eup %17863 }
0x1c78   :  { %v17280_v21 = vpop.permute.xlu1 %17279  ;;  %v17866_v26 = vpop.eup %17865  ;;  %v8050_v8 = vmul.f32 %v17864_v40, %v21049_v45 }
0x1c79   :  { %15315 = vmatmul.mubr.msk.f32.vlgmr.msra.gmra.mrb[108].mxu1 %vm1887_vm5, %v8045_v2  ;;  %16418 = vmatprep.subr.msk.bf16.mxu0 %vm18771_vm4, %v16416_v6  ;;  %v17282_v62 = vunpack.i.h.bf16 %v17280_v21  ;;  %v17281_v16 = vunpack.i.l.bf16 %v17280_v21  ;;  %v8051_v4 = vmul.f32 %v17866_v26, %v21043_v13  ;;  %v8894_v61 = vpop.permute.xlu0 %8893  ;;  %v21181_v13 = vld [vmem:[%s22732_s7 + $0x1] ss:$0 sm:$0xff] }
0x1c7a   :  { %15317 = vmatprep.mubr.msk.f32.mxu1 %vm1887_vm5, %v8046_v11  ;;  %16421 = vmatpush3.bf16.xpose.msk.msra.mxu0 %vm18771_vm4, %v16416_v6  ;;  %v21185_v63 = vadd.f32 %v21181_v13, %v21100_v20 }
0x1c7b   :  { %16424 = vmatprep.subr.msk.bf16.mxu0 %vm18771_vm4, %v16422_v47  ;;  %15327 = vmatpush3.msra.mxu1 %v13245_v56  ;;  %v16428_v7 = vpack.c.bf16 %v17282_v62, %v17281_v16 }
0x1c7c   :  { %v8892_v18 = vpop.permute.xlu1 %8891 }
0x1c7d   :  { %15318 = vmatmul.mubr.msk.f32.gmra.mrb[110].mxu1 %vm1887_vm5, %v8047_v36  ;;  %v8898_v12 = vpop.permute.xlu0 %8897 }
0x1c7e   :  { %15320 = vmatprep.mubr.msk.f32.mxu1 %vm1887_vm5, %v8048_v0 }
0x1c80   :  { %v8896_v45 = vpop.permute.xlu1 %8895 }
0x1c81   :  { %15321 = vmatmul.mubr.msk.f32.gmra.mrb[112].mxu1 %vm1887_vm5, %v8049_v60  ;;  %v8902_v28 = vpop.permute.xlu0 %8901 }
0x1c82   :  { %15323 = vmatprep.mubr.msk.f32.mxu1 %vm1887_vm5, %v8050_v8  ;;  %16427 = vmatpush3.bf16.xpose.msk.msra.mxu0 %vm18771_vm4, %v16422_v47 }
0x1c83   :  { %16430 = vmatprep.subr.msk.bf16.mxu0 %vm18771_vm4, %v16428_v7 }
0x1c84   :  { %v8900_v35 = vpop.permute.xlu1 %8899 }
0x1c85   :  { %15324 = vmatmul.mubr.msk.f32.gmra.mrb[114].mxu1 %vm1887_vm5, %v8051_v4 }
0x1c88   :  { %v8904_v43 = vpop.permute.xlu1 %8903 }
0x1c8a   :  { %16433 = vmatpush3.bf16.xpose.msk.msra.mxu0 %vm18771_vm4, %v16428_v7 }
0x1c91   :  { %15427 = vmatmul.mubr.msk.f32.vlgmr.msra.gmra.mrb[148].mxu0 %vm1749_vm3, %v8892_v18 }
0x1c92   :  { %15429 = vmatprep.mubr.msk.f32.mxu0 %vm1749_vm3, %v8894_v61 }
0x1c95   :  { %15430 = vmatmul.mubr.msk.f32.gmra.mrb[150].mxu0 %vm1749_vm3, %v8896_v45 }
0x1c96   :  { %15432 = vmatprep.mubr.msk.f32.mxu0 %vm1749_vm3, %v8898_v12 }
0x1c99   :  { %15433 = vmatmul.mubr.msk.f32.gmra.mrb[152].mxu0 %vm1749_vm3, %v8900_v35 }
0x1c9a   :  { %15435 = vmatprep.mubr.msk.f32.mxu0 %vm1749_vm3, %v8902_v28 }
0x1c9d   :  { %15436 = vmatmul.mubr.msk.f32.gmra.mrb[154].mxu0 %vm1749_vm3, %v8904_v43 }
0x1c9e   :  { %15496 = vmatprep.mubr.msk.f32.mxu0 %vm1749_vm3, %v21185_v63 }
0x1cb1   :  { %v8513_v46 = vpop.xlane.xlu0 %8512 }
0x1cb2   :  { %v8535_v56 = vsub.f32 %v20985_v24, %v8513_v46 }
0x1cb4   :  { %v8543_v27 = vmul.f32 1.442695, %v8535_v56 }
0x1cb5   :  { %v8519_v9 = vpop.xlane.xlu0 %8518 }
0x1cb6   :  { %17867 = vpow2.f32 %v8543_v27  ;;  %v8537_v39 = vsub.f32 %v20989_v31, %v8519_v9 }
0x1cb7   :  { %v21192_v15 = vpop.f32.mrb[98].mxu1 }
0x1cb8   :  { %v8547_v5 = vmul.f32 1.442695, %v8537_v39  ;;  %v21194_v2 = vpop.f32.mrb[99].mxu1 }
0x1cb9   :  { %v8516_v20 = vpop.xlane.xlu1 %8515  ;;  %v8522_v6 = vpop.xlane.xlu0 %8521 }
0x1cba   :  { %17869 = vpow2.f32 %v8547_v5  ;;  %v8536_v17 = vsub.f32 %v20983_v37, %v8516_v20  ;;  %v8538_v11 = vsub.f32 %v20987_v14, %v8522_v6  ;;  %v21236_v5 = vadd.f32 %v21181_v13, %v21098_v42 }
0x1cbb   :  { %v21242_v20 = vadd.f32 %v21181_v13, %v21112_v53  ;;  %v21246_v6 = vadd.f32 %v21181_v13, %v21114_v38  ;;  %v21258_v42 = vadd.f32 %v21181_v13, %v21108_v32  ;;  %v21270_v38 = vadd.f32 %v21181_v13, %v21192_v15 }
0x1cbc   :  { %v8545_v29 = vmul.f32 1.442695, %v8536_v17  ;;  %v8549_v47 = vmul.f32 1.442695, %v8538_v11  ;;  %v21250_v17 = vpack.i.bf16 %v21236_v5, %v21185_v63  ;;  %v21254_v11 = vadd.f32 %v21181_v13, %v21106_v34 }
0x1cbd   :  { %v8528_v24 = vpop.xlane.xlu1 %8527  ;;  %v8525_v21 = vpop.xlane.xlu0 %8524  ;;  %v21266_v53 = vpack.i.bf16 %v21242_v20, %v21246_v6  ;;  %v21274_v34 = vadd.f32 %v21181_v13, %v21194_v2 }
0x1cbe   :  { %17871 = vpow2.f32 %v8545_v29  ;;  %v8540_v36 = vsub.f32 %v20994_v10, %v8528_v24  ;;  %v8539_v31 = vsub.f32 %v20996_v33, %v8525_v21  ;;  %v21280_v32 = vpack.i.bf16 %v21254_v11, %v21258_v42 }
0x1cbf   :  { %17873 = vpow2.f32 %v8549_v47  ;;  %v21286_v29 = vpack.i.bf16 %v21270_v38, %v21274_v34 }
0x1cc0   :  { %v21200_v58 = vpop.eup %17867  ;;  %v8553_v0 = vmul.f32 1.442695, %v8540_v36  ;;  %v8551_v40 = vmul.f32 1.442695, %v8539_v31 }
0x1cc1   :  { %v8534_v62 = vpop.xlane.xlu1 %8533  ;;  %v8531_v16 = vpop.xlane.xlu0 %8530  ;;  %v8559_v37 = vsel %vm1887_vm5, %v21200_v58, 0.0 }
0x1cc2   :  { %v8542_v14 = vsub.f32 %v21002_v44, %v8534_v62  ;;  %8560 = vadd.xlane.f32.xlu0 %v8559_v37  ;;  %17875 = vpow2.f32 %v8551_v40  ;;  %v8541_v33 = vsub.f32 %v21004_v30, %v8531_v16 }
0x1cc3   :  { %17877 = vpow2.f32 %v8553_v0 }
0x1cc4   :  { %v21205_v60 = vpop.eup %17869  ;;  %v8557_v10 = vmul.f32 1.442695, %v8542_v14  ;;  %v8555_v61 = vmul.f32 1.442695, %v8541_v33 }
0x1cc5   :  { %v17285_v26 = vpop.permute.xlu0 %17284  ;;  %v8565_v8 = vsel %vm1887_vm5, %v21205_v60, 0.0  ;;  %v17290_v15 = vpop.permute.xlu1 %17289 }
0x1cc6   :  { %v17287_v7 = vunpack.i.h.bf16 %v17285_v26  ;;  %8566 = vadd.xlane.f32.xlu0 %v8565_v8  ;;  %v17286_v4 = vunpack.i.l.bf16 %v17285_v26  ;;  %17879 = vpow2.f32 %v8557_v10  ;;  %v17292_v13 = vunpack.i.h.bf16 %v17290_v15 }
0x1cc7   :  { %17881 = vpow2.f32 %v8555_v61  ;;  %v17291_v2 = vunpack.i.l.bf16 %v17290_v15 }
0x1cc8   :  { %v21210_v18 = vpop.eup %17871  ;;  %v16394_v45 = vpack.c.bf16 %v17287_v7, %v17286_v4 }
0x1cc9   :  { %v8562_v44 = vsel %vm1887_vm5, %v21210_v18, 0.0  ;;  %v21214_v12 = vpop.eup %17873  ;;  %v16398_v36 = vpack.c.bf16 %v17292_v13, %v17291_v2 }
0x1cca   :  { %8563 = vadd.xlane.f32.xlu1 %v8562_v44  ;;  %16395 = vmatprep.subr.bf16.mxu1 %v16394_v45  ;;  %v8568_v35 = vsel %vm1887_vm5, %v21214_v12, 0.0 }
0x1ccc   :  { %v21216_v30 = vpop.eup %17875 }
0x1ccd   :  { %v21220_v28 = vpop.eup %17877  ;;  %v8571_v43 = vsel %vm1887_vm5, %v21216_v30, 0.0 }
0x1cce   :  { %8569 = vadd.xlane.f32.xlu1 %v8568_v35  ;;  %8572 = vadd.xlane.f32.xlu0 %v8571_v43  ;;  %v8574_v46 = vsel %vm1887_vm5, %v21220_v28, 0.0 }
0x1cd0   :  { %v21226_v56 = vpop.eup %17879 }
0x1cd1   :  { %v8580_v27 = vsel %vm1887_vm5, %v21226_v56, 0.0  ;;  %v21230_v9 = vpop.eup %17881 }
0x1cd2   :  { %8575 = vadd.xlane.f32.xlu1 %v8574_v46  ;;  %v8577_v39 = vsel %vm1887_vm5, %v21230_v9, 0.0 }
0x1cd6   :  { %8581 = vadd.xlane.f32.xlu1 %v8580_v27 }
0x1cda   :  { %8578 = vadd.xlane.f32.xlu1 %v8577_v39 }
0x1ce4   :  { %17294 = vrot.lane.b32.xlu0 %v20559_v59, %s18180_s0 }
0x1ce8   :  { %17304 = vrot.lane.b32.xlu0 %v21250_v17, %s18171_s5 }
0x1ceb   :  { %17299 = vrot.lane.b32.xlu1 %v20569_v48, %s18180_s0 }
0x1cec   :  { %17314 = vrot.lane.b32.xlu0 %v21266_v53, %s18171_s5 }
0x1cef   :  { %17309 = vrot.lane.b32.xlu1 %v21280_v32, %s18171_s5 }
0x1cf3   :  { %17319 = vrot.lane.b32.xlu1 %v21286_v29, %s18171_s5 }
0x1d4c   :  { %v15316_v47 = vpop.f32.mrb[108].mxu1 }
0x1d4d   :  { %v8166_v24 = vpop.f32.mrb[109].mxu1 }
0x1d4e   :  { %15328 = vmatprep.mubr.msk.f32.mxu1 %vm1749_vm3, %v8166_v24 }
0x1d4f   :  { %v8561_v21 = vpop.xlane.xlu0 %8560  ;;  %15329 = vmatmul.mubr.msk.f32.vlgmr.msra.gmra.mrb[100].mxu1 %vm1749_vm3, %v15316_v47 }
0x1d50   :  { %17883 = vrcp.f32 %v8561_v21  ;;  %16397 = vmatpush3.bf16.msra.mxu1 %v16394_v45  ;;  %v15319_v31 = vpop.f32.mrb[110].mxu1 }
0x1d51   :  { %16399 = vmatprep.subr.bf16.mxu1 %v16398_v36  ;;  %v8176_v0 = vpop.f32.mrb[111].mxu1 }
0x1d52   :  { %15331 = vmatprep.mubr.msk.f32.mxu1 %vm1749_vm3, %v8176_v0 }
0x1d53   :  { %15332 = vmatmul.mubr.msk.f32.gmra.mrb[102].mxu1 %vm1749_vm3, %v15319_v31  ;;  %v8567_v37 = vpop.xlane.xlu0 %8566 }
0x1d54   :  { %16401 = vmatpush3.bf16.msra.mxu1 %v16398_v36  ;;  %v15322_v40 = vpop.f32.mrb[112].mxu1 }
0x1d55   :  { %v8186_v62 = vpop.f32.mrb[113].mxu1 }
0x1d56   :  { %15334 = vmatprep.mubr.msk.f32.mxu1 %vm1749_vm3, %v8186_v62 }
0x1d57   :  { %v8564_v16 = vpop.xlane.xlu1 %8563  ;;  %15335 = vmatmul.mubr.msk.f32.gmra.mrb[104].mxu1 %vm1749_vm3, %v15322_v40 }
0x1d58   :  { %v15325_v14 = vpop.f32.mrb[114].mxu1  ;;  %17885 = vrcp.f32 %v8564_v16 }
0x1d59   :  { %v8196_v10 = vpop.f32.mrb[115].mxu1  ;;  %17887 = vrcp.f32 %v8567_v37 }
0x1d5a   :  { %v17884_v33 = vpop.eup %17883  ;;  %15337 = vmatprep.mubr.msk.f32.mxu1 %vm1749_vm3, %v8196_v10 }
0x1d5b   :  { %v8570_v26 = vpop.xlane.xlu1 %8569  ;;  %15338 = vmatmul.mubr.msk.f32.gmra.mrb[106].mxu1 %vm1749_vm3, %v15325_v14  ;;  %v8591_v8 = vmul.f32 %v17884_v33, %v21200_v58  ;;  %v8573_v7 = vpop.xlane.xlu0 %8572 }
0x1d5c   :  { %17889 = vrcp.f32 %v8570_v26 }
0x1d5d   :  { %15384 = vmatprep.mubr.msk.f32.mxu1 %vm1887_vm5, %v8591_v8  ;;  %17891 = vrcp.f32 %v8573_v7 }
0x1d5f   :  { %v8576_v4 = vpop.xlane.xlu1 %8575  ;;  %v17295_v61 = vpop.permute.xlu0 %17294 }
0x1d60   :  { %v17297_v44 = vunpack.i.h.bf16 %v17295_v61  ;;  %v17296_v45 = vunpack.i.l.bf16 %v17295_v61  ;;  %17893 = vrcp.f32 %v8576_v4 }
0x1d62   :  { %v16402_v43 = vpack.c.bf16 %v17297_v44, %v17296_v45  ;;  %v17886_v8 = vpop.eup %17885 }
0x1d63   :  { %v8582_v35 = vpop.xlane.xlu1 %8581  ;;  %v17305_v46 = vpop.permute.xlu0 %17304 }
0x1d64   :  { %v21300_v27 = vpop.f32.mrb[148].mxu0  ;;  %v17307_v39 = vunpack.i.h.bf16 %v17305_v46  ;;  %v17306_v15 = vunpack.i.l.bf16 %v17305_v46  ;;  %16403 = vmatprep.subr.bf16.mxu1 %v16402_v43  ;;  %v17888_v61 = vpop.eup %17887 }
0x1d65   :  { %v21302_v13 = vpop.f32.mrb[149].mxu0  ;;  %v9061_v58 = vsel %vm1887_vm5, %v21300_v27, -inf  ;;  %16405 = vmatpush3.bf16.msra.mxu1 %v16402_v43 }
0x1d66   :  { %9062 = vmax.xlane.f32.xlu1 %v9061_v58  ;;  %v9058_v2 = vsel %vm1887_vm5, %v21302_v13, -inf  ;;  %v16450_v47 = vpack.c.bf16 %v17307_v39, %v17306_v15  ;;  %v8592_v58 = vmul.f32 %v17886_v8, %v21210_v18 }
0x1d67   :  { %v8579_v24 = vpop.xlane.xlu1 %8578  ;;  %9059 = vmax.xlane.f32.xlu0 %v9058_v2  ;;  %v17315_v37 = vpop.permute.xlu0 %17314 }
0x1d68   :  { %v21308_v21 = vpop.f32.mrb[150].mxu0  ;;  %16452 = vmatprep.subr.msk.bf16.mxu0 %vm18771_vm4, %v16450_v47  ;;  %17895 = vrcp.f32 %v8579_v24  ;;  %v17317_v44 = vunpack.i.h.bf16 %v17315_v37  ;;  %v17316_v45 = vunpack.i.l.bf16 %v17315_v37  ;;  %v17890_v24 = vpop.eup %17889 }
0x1d69   :  { %v21312_v36 = vpop.f32.mrb[151].mxu0  ;;  %16455 = vmatpush3.bf16.xpose.msk.msra.mxu0 %vm18771_vm4, %v16450_v47  ;;  %v9067_v33 = vsel %vm1887_vm5, %v21308_v21, -inf  ;;  %17897 = vrcp.f32 %v8582_v35 }
0x1d6a   :  { %v9064_v31 = vsel %vm1887_vm5, %v21312_v36, -inf }
0x1d6b   :  { %v17300_v0 = vpop.permute.xlu1 %17299  ;;  %9065 = vmax.xlane.f32.xlu0 %v9064_v31  ;;  %v8593_v31 = vmul.f32 %v17888_v61, %v21205_v60  ;;  %v8594_v60 = vmul.f32 %v17890_v24, %v21214_v12 }
0x1d6c   :  { %v17302_v40 = vunpack.i.h.bf16 %v17300_v0  ;;  %v17301_v62 = vunpack.i.l.bf16 %v17300_v0  ;;  %v21318_v16 = vpop.f32.mrb[152].mxu0  ;;  %v17892_v0 = vpop.eup %17891 }
0x1d6d   :  { %v21320_v14 = vpop.f32.mrb[153].mxu0  ;;  %v9073_v10 = vsel %vm1887_vm5, %v21318_v16, -inf  ;;  %v8595_v37 = vmul.f32 %v17892_v0, %v21216_v30  ;;  %v13246_v30 = vld [vmem:[%s22733_s8 + $0x30] sm:$0xff] }
0x1d6e   :  { %9074 = vmax.xlane.f32.xlu1 %v9073_v10  ;;  %v16406_v26 = vpack.c.bf16 %v17302_v40, %v17301_v62  ;;  %v9070_v47 = vsel %vm1887_vm5, %v21320_v14, -inf  ;;  %v16462_v40 = vpack.c.bf16 %v17317_v44, %v17316_v45  ;;  %v17894_v62 = vpop.eup %17893 }
0x1d6f   :  { %v17310_v7 = vpop.permute.xlu1 %17309  ;;  %9068 = vmax.xlane.f32.xlu0 %v9067_v33  ;;  %v8596_v8 = vmul.f32 %v17894_v62, %v21220_v28 }
0x1d70   :  { %v17312_v43 = vunpack.i.h.bf16 %v17310_v7  ;;  %v17311_v4 = vunpack.i.l.bf16 %v17310_v7  ;;  %16407 = vmatprep.subr.bf16.mxu1 %v16406_v26  ;;  %v21326_v46 = vpop.f32.mrb[154].mxu0 }
0x1d71   :  { %16409 = vmatpush3.bf16.msra.mxu1 %v16406_v26  ;;  %v21328_v39 = vpop.f32.mrb[155].mxu0  ;;  %v9079_v15 = vsel %vm1887_vm5, %v21326_v46, -inf }
0x1d72   :  { %v16456_v2 = vpack.c.bf16 %v17312_v43, %v17311_v4  ;;  %9080 = vmax.xlane.f32.xlu1 %v9079_v15  ;;  %v9076_v18 = vsel %vm1887_vm5, %v21328_v39, -inf  ;;  %v17896_v10 = vpop.eup %17895  ;;  %15396 = vmatprep.subr.mxu1 %v13246_v30 }
0x1d73   :  { %9071 = vmax.xlane.f32.xlu0 %v9070_v47  ;;  %v17320_v35 = vpop.permute.xlu1 %17319  ;;  %v17898_v7 = vpop.eup %17897  ;;  %v8597_v61 = vmul.f32 %v17896_v10, %v21230_v9 }
0x1d74   :  { %15385 = vmatmul.mubr.msk.f32.vlgmr.msra.gmra.mrb[116].mxu1 %vm1887_vm5, %v8592_v58  ;;  %16458 = vmatprep.subr.msk.bf16.mxu0 %vm18771_vm4, %v16456_v2  ;;  %v17322_v33 = vunpack.i.h.bf16 %v17320_v35  ;;  %v17321_v26 = vunpack.i.l.bf16 %v17320_v35  ;;  %v8598_v12 = vmul.f32 %v17898_v7, %v21226_v56 }
0x1d75   :  { %15387 = vmatprep.mubr.msk.f32.mxu1 %vm1887_vm5, %v8593_v31  ;;  %16461 = vmatpush3.bf16.xpose.msk.msra.mxu0 %vm18771_vm4, %v16456_v2 }
0x1d76   :  { %16464 = vmatprep.subr.msk.bf16.mxu0 %vm18771_vm4, %v16462_v40  ;;  %v16468_v44 = vpack.c.bf16 %v17322_v33, %v17321_v26  ;;  %15397 = vmatpush3.msra.mxu1 %v13246_v30 }
0x1d77   :  { %9077 = vmax.xlane.f32.xlu0 %v9076_v18 }
0x1d78   :  { %15388 = vmatmul.mubr.msk.f32.gmra.mrb[118].mxu1 %vm1887_vm5, %v8594_v60 }
0x1d79   :  { %15390 = vmatprep.mubr.msk.f32.mxu1 %vm1887_vm5, %v8595_v37 }
0x1d7c   :  { %15391 = vmatmul.mubr.msk.f32.gmra.mrb[120].mxu1 %vm1887_vm5, %v8596_v8 }
0x1d7d   :  { %15393 = vmatprep.mubr.msk.f32.mxu1 %vm1887_vm5, %v8597_v61  ;;  %16467 = vmatpush3.bf16.xpose.msk.msra.mxu0 %vm18771_vm4, %v16462_v40 }
0x1d7e   :  { %16470 = vmatprep.subr.msk.bf16.mxu0 %vm18771_vm4, %v16468_v44 }
0x1d80   :  { %15394 = vmatmul.mubr.msk.f32.gmra.mrb[122].mxu1 %vm1887_vm5, %v8598_v12 }
0x1d83   :  { %17329 = vrot.lane.b32.xlu1 %v20549_v57, %s18181_s30 }
0x1d85   :  { %16473 = vmatpush3.bf16.xpose.msk.msra.mxu0 %vm18771_vm4, %v16468_v44 }
0x1d8c   :  { %15497 = vmatmul.mubr.msk.f32.vlgmr.msra.gmra.mrb[156].mxu0 %vm1749_vm3, %v21236_v5 }
0x1d8d   :  { %15499 = vmatprep.mubr.msk.f32.mxu0 %vm1749_vm3, %v21258_v42  ;;  %17324 = vrot.lane.b32.xlu0 %v20539_v50, %s18181_s30 }
0x1d90   :  { %15500 = vmatmul.mubr.msk.f32.gmra.mrb[158].mxu0 %vm1749_vm3, %v21254_v11 }
0x1d91   :  { %15502 = vmatprep.mubr.msk.f32.mxu0 %vm1749_vm3, %v21246_v6 }
0x1d94   :  { %15503 = vmatmul.mubr.msk.f32.gmra.mrb[160].mxu0 %vm1749_vm3, %v21242_v20 }
0x1d95   :  { %15505 = vmatprep.mubr.msk.f32.mxu0 %vm1749_vm3, %v21274_v34 }
0x1d98   :  { %15506 = vmatmul.mubr.msk.f32.gmra.mrb[162].mxu0 %vm1749_vm3, %v21270_v38 }
0x1df3   :  { %v9063_v57 = vpop.xlane.xlu1 %9062 }
0x1df4   :  { %v9083_v28 = vsub.f32 %v21300_v27, %v9063_v57  ;;  %v9060_v56 = vpop.xlane.xlu0 %9059 }
0x1df5   :  { %v9082_v50 = vsub.f32 %v21302_v13, %v9060_v56 }
0x1df6   :  { %v9092_v9 = vmul.f32 1.442695, %v9083_v28 }
0x1df7   :  { %v9090_v45 = vmul.f32 1.442695, %v9082_v50 }
0x1df8   :  { %17899 = vpow2.f32 %v9092_v9  ;;  %v9066_v43 = vpop.xlane.xlu0 %9065 }
0x1df9   :  { %17901 = vpow2.f32 %v9090_v45  ;;  %v9084_v4 = vsub.f32 %v21312_v36, %v9066_v43 }
0x1dfb   :  { %v9094_v15 = vmul.f32 1.442695, %v9084_v4  ;;  %v9075_v58 = vpop.xlane.xlu1 %9074 }
0x1dfc   :  { %v9087_v2 = vsub.f32 %v21318_v16, %v9075_v58  ;;  %v9069_v47 = vpop.xlane.xlu0 %9068 }
0x1dfd   :  { %17903 = vpow2.f32 %v9094_v15  ;;  %v9085_v24 = vsub.f32 %v21308_v21, %v9069_v47 }
0x1dfe   :  { %v9100_v31 = vmul.f32 1.442695, %v9087_v2 }
0x1dff   :  { %v9096_v27 = vmul.f32 1.442695, %v9085_v24  ;;  %v9081_v0 = vpop.xlane.xlu1 %9080 }
0x1e00   :  { %v9089_v13 = vsub.f32 %v21326_v46, %v9081_v0  ;;  %v9072_v40 = vpop.xlane.xlu0 %9071 }
0x1e01   :  { %17905 = vpow2.f32 %v9096_v27  ;;  %v9086_v35 = vsub.f32 %v21320_v14, %v9072_v40 }
0x1e02   :  { %v21390_v18 = vpop.eup %17899  ;;  %17907 = vpow2.f32 %v9100_v31  ;;  %v9104_v60 = vmul.f32 1.442695, %v9089_v13 }
0x1e03   :  { %v21392_v36 = vpop.eup %17901  ;;  %v9098_v16 = vmul.f32 1.442695, %v9086_v35  ;;  %v9109_v62 = vsel %vm1887_vm5, %v21390_v18, 0.0 }
0x1e04   :  { %9110 = vadd.xlane.f32.xlu1 %v9109_v62  ;;  %v9078_v21 = vpop.xlane.xlu0 %9077  ;;  %v9106_v37 = vsel %vm1887_vm5, %v21392_v36, 0.0 }
0x1e05   :  { %17909 = vpow2.f32 %v9098_v16  ;;  %v9088_v46 = vsub.f32 %v21328_v39, %v9078_v21  ;;  %9107 = vadd.xlane.f32.xlu0 %v9106_v37 }
0x1e06   :  { %17911 = vpow2.f32 %v9104_v60 }
0x1e07   :  { %v21399_v14 = vpop.eup %17903  ;;  %v9102_v10 = vmul.f32 1.442695, %v9088_v46 }
0x1e08   :  { %v17325_v33 = vpop.permute.xlu0 %17324  ;;  %v9112_v26 = vsel %vm1887_vm5, %v21399_v14, 0.0 }
0x1e09   :  { %v17327_v8 = vunpack.i.h.bf16 %v17325_v33  ;;  %v17326_v7 = vunpack.i.l.bf16 %v17325_v33  ;;  %9113 = vadd.xlane.f32.xlu0 %v9112_v26  ;;  %17913 = vpow2.f32 %v9102_v10 }
0x1e0b   :  { %v21403_v61 = vpop.eup %17905  ;;  %v16434_v44 = vpack.c.bf16 %v17327_v8, %v17326_v7 }
0x1e0c   :  { %v9115_v12 = vsel %vm1887_vm5, %v21403_v61, 0.0  ;;  %v21407_v39 = vpop.eup %17907 }
0x1e0d   :  { %9116 = vadd.xlane.f32.xlu1 %v9115_v12  ;;  %16435 = vmatprep.subr.bf16.mxu1 %v16434_v44  ;;  %v9121_v57 = vsel %vm1887_vm5, %v21407_v39, 0.0 }
0x1e0f   :  { %v21409_v30 = vpop.eup %17909 }
0x1e10   :  { %v9118_v28 = vsel %vm1887_vm5, %v21409_v30, 0.0  ;;  %v21415_v56 = vpop.eup %17911 }
0x1e11   :  { %9122 = vadd.xlane.f32.xlu1 %v9121_v57  ;;  %9119 = vadd.xlane.f32.xlu0 %v9118_v28  ;;  %v9127_v50 = vsel %vm1887_vm5, %v21415_v56, 0.0 }
0x1e13   :  { %v21419_v9 = vpop.eup %17913 }
0x1e14   :  { %v9124_v45 = vsel %vm1887_vm5, %v21419_v9, 0.0 }
0x1e15   :  { %9128 = vadd.xlane.f32.xlu1 %v9127_v50 }
0x1e19   :  { %9125 = vadd.xlane.f32.xlu1 %v9124_v45 }
0x1e27   :  { %17334 = vrot.lane.b32.xlu0 %v20559_v59, %s18181_s30  ;;  %v17330_v59 = vpop.permute.xlu1 %17329 }
0x1e28   :  { %v17331_v43 = vunpack.i.l.bf16 %v17330_v59 }
0x1e2a   :  { %17339 = vrot.lane.b32.xlu1 %v20569_v48, %s18181_s30  ;;  %v17332_v48 = vunpack.i.h.bf16 %v17330_v59 }
0x1e2b   :  { %17344 = vrot.lane.b32.xlu0 %v21250_v17, %s18173_s21 }
0x1e2c   :  { %v16438_v58 = vpack.c.bf16 %v17332_v48, %v17331_v43 }
0x1e2e   :  { %17349 = vrot.lane.b32.xlu1 %v21280_v32, %s18173_s21 }
0x1e2f   :  { %17354 = vrot.lane.b32.xlu0 %v21266_v53, %s18173_s21 }
0x1e32   :  { %17359 = vrot.lane.b32.xlu1 %v21286_v29, %s18173_s21 }
0x1e33   :  { %9975 = vrot.lane.b32.xlu0 %v21185_v63, %s18174_s22 }
0x1e36   :  { %9977 = vrot.lane.b32.xlu1 %v21236_v5, %s18174_s22 }
0x1e37   :  { %9979 = vrot.lane.b32.xlu0 %v21258_v42, %s18174_s22 }
0x1e3a   :  { %9981 = vrot.lane.b32.xlu1 %v21254_v11, %s18174_s22 }
0x1e3b   :  { %9983 = vrot.lane.b32.xlu0 %v21246_v6, %s18174_s22 }
0x1e3e   :  { %9985 = vrot.lane.b32.xlu1 %v21242_v20, %s18174_s22 }
0x1e3f   :  { %9987 = vrot.lane.b32.xlu0 %v21274_v34, %s18174_s22 }
0x1e42   :  { %9989 = vrot.lane.b32.xlu1 %v21270_v38, %s18174_s22 }
0x1e47   :  { %v15386_v4 = vpop.f32.mrb[116].mxu1 }
0x1e48   :  { %v8713_v15 = vpop.f32.mrb[117].mxu1 }
0x1e49   :  { %15398 = vmatprep.mubr.msk.f32.mxu1 %vm1749_vm3, %v8713_v15 }
0x1e4a   :  { %15399 = vmatmul.mubr.msk.f32.vlgmr.msra.gmra.mrb[100].mxu1 %vm1749_vm3, %v15386_v4 }
0x1e4b   :  { %16437 = vmatpush3.bf16.msra.mxu1 %v16434_v44  ;;  %v15389_v2 = vpop.f32.mrb[118].mxu1 }
0x1e4c   :  { %16439 = vmatprep.subr.bf16.mxu1 %v16438_v58  ;;  %v8723_v47 = vpop.f32.mrb[119].mxu1 }
0x1e4d   :  { %15401 = vmatprep.mubr.msk.f32.mxu1 %vm1749_vm3, %v8723_v47 }
0x1e4e   :  { %15402 = vmatmul.mubr.msk.f32.gmra.mrb[102].mxu1 %vm1749_vm3, %v15389_v2 }
0x1e4f   :  { %16441 = vmatpush3.bf16.msra.mxu1 %v16438_v58  ;;  %v15392_v24 = vpop.f32.mrb[120].mxu1 }
0x1e50   :  { %v8733_v31 = vpop.f32.mrb[121].mxu1 }
0x1e51   :  { %15404 = vmatprep.mubr.msk.f32.mxu1 %vm1749_vm3, %v8733_v31 }
0x1e52   :  { %15405 = vmatmul.mubr.msk.f32.gmra.mrb[104].mxu1 %vm1749_vm3, %v15392_v24 }
0x1e53   :  { %v15395_v27 = vpop.f32.mrb[122].mxu1 }
0x1e54   :  { %v8743_v0 = vpop.f32.mrb[123].mxu1 }
0x1e55   :  { %15407 = vmatprep.mubr.msk.f32.mxu1 %vm1749_vm3, %v8743_v0 }
0x1e56   :  { %15408 = vmatmul.mubr.msk.f32.gmra.mrb[106].mxu1 %vm1749_vm3, %v15395_v27 }
0x1e5f   :  { %v21459_v13 = vpop.f32.mrb[156].mxu0 }
0x1e60   :  { %v21461_v40 = vpop.f32.mrb[157].mxu0  ;;  %v9600_v21 = vsel %vm1887_vm5, %v21459_v13, -inf }
0x1e61   :  { %v9597_v35 = vsel %vm1887_vm5, %v21461_v40, -inf }
0x1e62   :  { %9598 = vmax.xlane.f32.xlu0 %v9597_v35 }
0x1e63   :  { %v21465_v60 = vpop.f32.mrb[158].mxu0 }
0x1e64   :  { %v21467_v16 = vpop.f32.mrb[159].mxu0  ;;  %v9606_v33 = vsel %vm1887_vm5, %v21465_v60, -inf }
0x1e65   :  { %v9603_v62 = vsel %vm1887_vm5, %v21467_v16, -inf }
0x1e66   :  { %9604 = vmax.xlane.f32.xlu0 %v9603_v62  ;;  %9601 = vmax.xlane.f32.xlu1 %v9600_v21 }
0x1e67   :  { %v21473_v37 = vpop.f32.mrb[160].mxu0 }
0x1e68   :  { %v21475_v46 = vpop.f32.mrb[161].mxu0  ;;  %v9612_v10 = vsel %vm1887_vm5, %v21473_v37, -inf }
0x1e69   :  { %v9609_v44 = vsel %vm1887_vm5, %v21475_v46, -inf }
0x1e6a   :  { %9607 = vmax.xlane.f32.xlu0 %v9606_v33  ;;  %9613 = vmax.xlane.f32.xlu1 %v9612_v10 }
0x1e6b   :  { %v21481_v26 = vpop.f32.mrb[162].mxu0 }
0x1e6c   :  { %v21483_v8 = vpop.f32.mrb[163].mxu0  ;;  %v9618_v7 = vsel %vm1887_vm5, %v21481_v26, -inf }
0x1e6d   :  { %v9615_v12 = vsel %vm1887_vm5, %v21483_v8, -inf }
0x1e6e   :  { %9610 = vmax.xlane.f32.xlu0 %v9609_v44  ;;  %9619 = vmax.xlane.f32.xlu1 %v9618_v7 }
0x1e72   :  { %9616 = vmax.xlane.f32.xlu0 %v9615_v12 }
0x1e7f   :  { %17369 = vrot.lane.b32.xlu1 %v21280_v32, %s18172_s3 }
0x1e88   :  { %17364 = vrot.lane.b32.xlu0 %v21250_v17, %s18172_s3 }
0x1e91   :  { %v9111_v28 = vpop.xlane.xlu1 %9110 }
0x1e92   :  { %v9108_v57 = vpop.xlane.xlu0 %9107 }
0x1e93   :  { %17915 = vrcp.f32 %v9108_v57 }
0x1e94   :  { %17917 = vrcp.f32 %v9111_v28  ;;  %v13247_v28 = vld [vmem:[%s22733_s8 + $0x38] sm:$0xff] }
0x1e96   :  { %v9114_v50 = vpop.xlane.xlu0 %9113 }
0x1e97   :  { %17919 = vrcp.f32 %v9114_v50 }
0x1e9a   :  { %v9117_v45 = vpop.xlane.xlu1 %9116 }
0x1e9b   :  { %17921 = vrcp.f32 %v9117_v45 }
0x1e9d   :  { %v17916_v59 = vpop.eup %17915 }
0x1e9e   :  { %v9123_v48 = vpop.xlane.xlu1 %9122  ;;  %v9120_v43 = vpop.xlane.xlu0 %9119  ;;  %v9138_v4 = vmul.f32 %v17916_v59, %v21392_v36 }
0x1e9f   :  { %17923 = vrcp.f32 %v9120_v43  ;;  %v17918_v44 = vpop.eup %17917 }
0x1ea0   :  { %15454 = vmatprep.mubr.msk.f32.mxu1 %vm1887_vm5, %v9138_v4  ;;  %17925 = vrcp.f32 %v9123_v48  ;;  %v9139_v48 = vmul.f32 %v17918_v44, %v21390_v18 }
0x1ea1   :  { %v17920_v50 = vpop.eup %17919 }
0x1ea2   :  { %v9129_v15 = vpop.xlane.xlu1 %9128  ;;  %v17335_v58 = vpop.permute.xlu0 %17334 }
0x1ea3   :  { %v17337_v2 = vunpack.i.h.bf16 %v17335_v58  ;;  %v17336_v47 = vunpack.i.l.bf16 %v17335_v58 }
0x1ea5   :  { %v16442_v24 = vpack.c.bf16 %v17337_v2, %v17336_v47  ;;  %v17922_v2 = vpop.eup %17921  ;;  %v9140_v47 = vmul.f32 %v17920_v50, %v21399_v14 }
0x1ea6   :  { %v9126_v31 = vpop.xlane.xlu1 %9125  ;;  %v17345_v27 = vpop.permute.xlu0 %17344  ;;  %v9141_v18 = vmul.f32 %v17922_v2, %v21403_v61 }
0x1ea7   :  { %v17347_v0 = vunpack.i.h.bf16 %v17345_v27  ;;  %v17346_v35 = vunpack.i.l.bf16 %v17345_v27  ;;  %16443 = vmatprep.subr.bf16.mxu1 %v16442_v24  ;;  %17927 = vrcp.f32 %v9126_v31 }
0x1ea8   :  { %16445 = vmatpush3.bf16.msra.mxu1 %v16442_v24  ;;  %17929 = vrcp.f32 %v9129_v15 }
0x1ea9   :  { %v16490_v62 = vpack.c.bf16 %v17347_v0, %v17346_v35  ;;  %v17924_v24 = vpop.eup %17923 }
0x1eaa   :  { %v17340_v21 = vpop.permute.xlu1 %17339  ;;  %v17355_v36 = vpop.permute.xlu0 %17354  ;;  %v9142_v15 = vmul.f32 %v17924_v24, %v21409_v30 }
0x1eab   :  { %v17342_v10 = vunpack.i.h.bf16 %v17340_v21  ;;  %v17341_v33 = vunpack.i.l.bf16 %v17340_v21  ;;  %16492 = vmatprep.subr.msk.bf16.mxu0 %vm18771_vm4, %v16490_v62  ;;  %v17357_v45 = vunpack.i.h.bf16 %v17355_v36  ;;  %v17356_v59 = vunpack.i.l.bf16 %v17355_v36  ;;  %v17926_v14 = vpop.eup %17925 }
0x1eac   :  { %16495 = vmatpush3.bf16.xpose.msk.msra.mxu0 %vm18771_vm4, %v16490_v62  ;;  %v9143_v21 = vmul.f32 %v17926_v14, %v21407_v39 }
0x1ead   :  { %v16446_v7 = vpack.c.bf16 %v17342_v10, %v17341_v33  ;;  %v16502_v31 = vpack.c.bf16 %v17357_v45, %v17356_v59 }
0x1eae   :  { %v17350_v12 = vpop.permute.xlu1 %17349  ;;  %v9976_v57 = vpop.permute.xlu0 %9975 }
0x1eaf   :  { %v17352_v43 = vunpack.i.h.bf16 %v17350_v12  ;;  %v17351_v4 = vunpack.i.l.bf16 %v17350_v12  ;;  %16447 = vmatprep.subr.bf16.mxu1 %v16446_v7  ;;  %15566 = vmatprep.mubr.msk.f32.mxu0 %vm1749_vm3, %v9976_v57 }
0x1eb0   :  { %16449 = vmatpush3.bf16.msra.mxu1 %v16446_v7 }
0x1eb1   :  { %v16496_v58 = vpack.c.bf16 %v17352_v43, %v17351_v4  ;;  %15466 = vmatprep.subr.mxu1 %v13247_v28  ;;  %v17928_v0 = vpop.eup %17927 }
0x1eb2   :  { %v17360_v27 = vpop.permute.xlu1 %17359  ;;  %v17930_v36 = vpop.eup %17929  ;;  %v9144_v10 = vmul.f32 %v17928_v0, %v21419_v9 }
0x1eb3   :  { %15455 = vmatmul.mubr.msk.f32.vlgmr.msra.gmra.mrb[124].mxu1 %vm1887_vm5, %v9139_v48  ;;  %16498 = vmatprep.subr.msk.bf16.mxu0 %vm18771_vm4, %v16496_v58  ;;  %v17362_v35 = vunpack.i.h.bf16 %v17360_v27  ;;  %v17361_v62 = vunpack.i.l.bf16 %v17360_v27  ;;  %v9145_v61 = vmul.f32 %v17930_v36, %v21415_v56  ;;  %v9980_v39 = vpop.permute.xlu0 %9979 }
0x1eb4   :  { %15457 = vmatprep.mubr.msk.f32.mxu1 %vm1887_vm5, %v9140_v47  ;;  %16501 = vmatpush3.bf16.xpose.msk.msra.mxu0 %vm18771_vm4, %v16496_v58 }
0x1eb5   :  { %16504 = vmatprep.subr.msk.bf16.mxu0 %vm18771_vm4, %v16502_v31  ;;  %15467 = vmatpush3.msra.mxu1 %v13247_v28  ;;  %v16508_v33 = vpack.c.bf16 %v17362_v35, %v17361_v62 }
0x1eb6   :  { %v9978_v30 = vpop.permute.xlu1 %9977 }
0x1eb7   :  { %15458 = vmatmul.mubr.msk.f32.gmra.mrb[126].mxu1 %vm1887_vm5, %v9141_v18  ;;  %v9984_v7 = vpop.permute.xlu0 %9983 }
0x1eb8   :  { %15460 = vmatprep.mubr.msk.f32.mxu1 %vm1887_vm5, %v9142_v15 }
0x1eba   :  { %v9982_v9 = vpop.permute.xlu1 %9981 }
0x1ebb   :  { %15461 = vmatmul.mubr.msk.f32.gmra.mrb[128].mxu1 %vm1887_vm5, %v9143_v21  ;;  %v9988_v12 = vpop.permute.xlu0 %9987 }
0x1ebc   :  { %15463 = vmatprep.mubr.msk.f32.mxu1 %vm1887_vm5, %v9144_v10  ;;  %16507 = vmatpush3.bf16.xpose.msk.msra.mxu0 %vm18771_vm4, %v16502_v31 }
0x1ebd   :  { %16510 = vmatprep.subr.msk.bf16.mxu0 %vm18771_vm4, %v16508_v33 }
0x1ebe   :  { %v9986_v44 = vpop.permute.xlu1 %9985 }
0x1ebf   :  { %15464 = vmatmul.mubr.msk.f32.gmra.mrb[130].mxu1 %vm1887_vm5, %v9145_v61 }
0x1ec2   :  { %v9990_v56 = vpop.permute.xlu1 %9989 }
0x1ec4   :  { %16513 = vmatpush3.bf16.xpose.msk.msra.mxu0 %vm18771_vm4, %v16508_v33 }
0x1ecb   :  { %15567 = vmatmul.mubr.msk.f32.vlgmr.msra.gmra.mrb[164].mxu0 %vm1749_vm3, %v9978_v30 }
0x1ecc   :  { %15569 = vmatprep.mubr.msk.f32.mxu0 %vm1749_vm3, %v9980_v39 }
0x1ecf   :  { %15570 = vmatmul.mubr.msk.f32.gmra.mrb[166].mxu0 %vm1749_vm3, %v9982_v9 }
0x1ed0   :  { %15572 = vmatprep.mubr.msk.f32.mxu0 %vm1749_vm3, %v9984_v7 }
0x1ed3   :  { %15573 = vmatmul.mubr.msk.f32.gmra.mrb[168].mxu0 %vm1749_vm3, %v9986_v44 }
0x1ed4   :  { %15575 = vmatprep.mubr.msk.f32.mxu0 %vm1749_vm3, %v9988_v12 }
0x1ed7   :  { %15576 = vmatmul.mubr.msk.f32.gmra.mrb[170].mxu0 %vm1749_vm3, %v9990_v56 }
0x1eef   :  { %v9599_v57 = vpop.xlane.xlu0 %9598 }
0x1ef0   :  { %v9621_v28 = vsub.f32 %v21461_v40, %v9599_v57 }
0x1ef2   :  { %v9629_v50 = vmul.f32 1.442695, %v9621_v28 }
0x1ef3   :  { %v9602_v45 = vpop.xlane.xlu1 %9601  ;;  %v9605_v59 = vpop.xlane.xlu0 %9604 }
0x1ef4   :  { %17931 = vpow2.f32 %v9629_v50  ;;  %v9622_v43 = vsub.f32 %v21459_v13, %v9602_v45  ;;  %v9623_v4 = vsub.f32 %v21467_v16, %v9605_v59 }
0x1ef6   :  { %v9631_v48 = vmul.f32 1.442695, %v9622_v43  ;;  %v9633_v58 = vmul.f32 1.442695, %v9623_v4 }
0x1ef7   :  { %v9614_v2 = vpop.xlane.xlu1 %9613  ;;  %v9608_v47 = vpop.xlane.xlu0 %9607 }
0x1ef8   :  { %17933 = vpow2.f32 %v9631_v48  ;;  %v9626_v24 = vsub.f32 %v21473_v37, %v9614_v2  ;;  %v9624_v31 = vsub.f32 %v21465_v60, %v9608_v47 }
0x1ef9   :  { %17935 = vpow2.f32 %v9633_v58 }
0x1efa   :  { %v9635_v27 = vmul.f32 1.442695, %v9624_v31  ;;  %v9639_v40 = vmul.f32 1.442695, %v9626_v24 }
0x1efb   :  { %v9620_v18 = vpop.xlane.xlu1 %9619  ;;  %v9611_v14 = vpop.xlane.xlu0 %9610 }
0x1efc   :  { %v9628_v15 = vsub.f32 %v21481_v26, %v9620_v18  ;;  %v9625_v13 = vsub.f32 %v21475_v46, %v9611_v14  ;;  %17937 = vpow2.f32 %v9635_v27 }
0x1efd   :  { %17939 = vpow2.f32 %v9639_v40 }
0x1efe   :  { %v21545_v16 = vpop.eup %17931  ;;  %v9637_v0 = vmul.f32 1.442695, %v9625_v13  ;;  %v9643_v35 = vmul.f32 1.442695, %v9628_v15 }
0x1eff   :  { %v9617_v62 = vpop.xlane.xlu0 %9616  ;;  %v9645_v37 = vsel %vm1887_vm5, %v21545_v16, 0.0  ;;  %v17370_v59 = vpop.permute.xlu1 %17369 }
0x1f00   :  { %v9627_v60 = vsub.f32 %v21483_v8, %v9617_v62  ;;  %9646 = vadd.xlane.f32.xlu0 %v9645_v37  ;;  %17941 = vpow2.f32 %v9637_v0  ;;  %v17372_v43 = vunpack.i.h.bf16 %v17370_v59  ;;  %v17371_v4 = vunpack.i.l.bf16 %v17370_v59 }
0x1f01   :  { %17943 = vpow2.f32 %v9643_v35 }
0x1f02   :  { %v21550_v21 = vpop.eup %17933  ;;  %v9641_v46 = vmul.f32 1.442695, %v9627_v60  ;;  %v16478_v2 = vpack.c.bf16 %v17372_v43, %v17371_v4 }
0x1f03   :  { %v21552_v36 = vpop.eup %17935  ;;  %v17365_v26 = vpop.permute.xlu0 %17364  ;;  %v9648_v10 = vsel %vm1887_vm5, %v21550_v21, 0.0 }
0x1f04   :  { %v17367_v33 = vunpack.i.h.bf16 %v17365_v26  ;;  %v17366_v61 = vunpack.i.l.bf16 %v17365_v26  ;;  %9649 = vadd.xlane.f32.xlu1 %v9648_v10  ;;  %v9651_v30 = vsel %vm1887_vm5, %v21552_v36, 0.0  ;;  %17945 = vpow2.f32 %v9641_v46 }
0x1f05   :  { %9652 = vadd.xlane.f32.xlu0 %v9651_v30 }
0x1f06   :  { %v16474_v8 = vpack.c.bf16 %v17367_v33, %v17366_v61  ;;  %v21558_v39 = vpop.eup %17937 }
0x1f07   :  { %v9654_v9 = vsel %vm1887_vm5, %v21558_v39, 0.0  ;;  %v21562_v7 = vpop.eup %17939 }
0x1f08   :  { %16475 = vmatprep.subr.bf16.mxu1 %v16474_v8  ;;  %9655 = vadd.xlane.f32.xlu1 %v9654_v9  ;;  %v9660_v12 = vsel %vm1887_vm5, %v21562_v7, 0.0 }
0x1f0a   :  { %v21564_v44 = vpop.eup %17941 }
0x1f0b   :  { %v9657_v56 = vsel %vm1887_vm5, %v21564_v44, 0.0  ;;  %v21570_v57 = vpop.eup %17943 }
0x1f0c   :  { %9661 = vadd.xlane.f32.xlu1 %v9660_v12  ;;  %9658 = vadd.xlane.f32.xlu0 %v9657_v56  ;;  %v9666_v28 = vsel %vm1887_vm5, %v21570_v57, 0.0 }
0x1f0e   :  { %v21574_v50 = vpop.eup %17945 }
0x1f0f   :  { %v9663_v45 = vsel %vm1887_vm5, %v21574_v50, 0.0 }
0x1f10   :  { %9667 = vadd.xlane.f32.xlu1 %v9666_v28 }
0x1f14   :  { %9664 = vadd.xlane.f32.xlu1 %v9663_v45 }
0x1f22   :  { %17374 = vrot.lane.b32.xlu0 %v21266_v53, %s18172_s3 }
0x1f25   :  { %17379 = vrot.lane.b32.xlu1 %v21286_v29, %s18172_s3 }
0x1f26   :  { %17384 = vrot.lane.b32.xlu0 %v21250_v17, %s18176_s25 }
0x1f29   :  { %17389 = vrot.lane.b32.xlu1 %v21280_v32, %s18176_s25 }
0x1f2a   :  { %17394 = vrot.lane.b32.xlu0 %v21266_v53, %s18176_s25 }
0x1f2d   :  { %17399 = vrot.lane.b32.xlu1 %v21286_v29, %s18176_s25 }
0x1f2e   :  { %10522 = vrot.lane.b32.xlu0 %v21185_v63, %s18177_s26 }
0x1f31   :  { %10524 = vrot.lane.b32.xlu1 %v21236_v5, %s18177_s26 }
0x1f32   :  { %10526 = vrot.lane.b32.xlu0 %v21258_v42, %s18177_s26 }
0x1f35   :  { %10528 = vrot.lane.b32.xlu1 %v21254_v11, %s18177_s26 }
0x1f36   :  { %10530 = vrot.lane.b32.xlu0 %v21246_v6, %s18177_s26 }
0x1f39   :  { %10532 = vrot.lane.b32.xlu1 %v21242_v20, %s18177_s26 }
0x1f3a   :  { %10534 = vrot.lane.b32.xlu0 %v21274_v34, %s18177_s26 }
0x1f3d   :  { %10536 = vrot.lane.b32.xlu1 %v21270_v38, %s18177_s26 }
0x1f86   :  { %v15456_v48 = vpop.f32.mrb[124].mxu1 }
0x1f87   :  { %v9260_v58 = vpop.f32.mrb[125].mxu1 }
0x1f88   :  { %15468 = vmatprep.mubr.msk.f32.mxu1 %vm1749_vm3, %v9260_v58 }
0x1f89   :  { %15469 = vmatmul.mubr.msk.f32.vlgmr.msra.gmra.mrb[100].mxu1 %vm1749_vm3, %v15456_v48 }
0x1f8a   :  { %16477 = vmatpush3.bf16.msra.mxu1 %v16474_v8  ;;  %v15459_v47 = vpop.f32.mrb[126].mxu1 }
0x1f8b   :  { %16479 = vmatprep.subr.bf16.mxu1 %v16478_v2  ;;  %v9270_v24 = vpop.f32.mrb[127].mxu1 }
0x1f8c   :  { %15471 = vmatprep.mubr.msk.f32.mxu1 %vm1749_vm3, %v9270_v24 }
0x1f8d   :  { %v9647_v31 = vpop.xlane.xlu0 %9646  ;;  %15472 = vmatmul.mubr.msk.f32.gmra.mrb[102].mxu1 %vm1749_vm3, %v15459_v47 }
0x1f8e   :  { %17947 = vrcp.f32 %v9647_v31  ;;  %16481 = vmatpush3.bf16.msra.mxu1 %v16478_v2  ;;  %v15462_v27 = vpop.f32.mrb[128].mxu1 }
0x1f8f   :  { %v9280_v40 = vpop.f32.mrb[129].mxu1 }
0x1f90   :  { %15474 = vmatprep.mubr.msk.f32.mxu1 %vm1749_vm3, %v9280_v40 }
0x1f91   :  { %v9650_v18 = vpop.xlane.xlu1 %9649  ;;  %15475 = vmatmul.mubr.msk.f32.gmra.mrb[104].mxu1 %vm1749_vm3, %v15462_v27 }
0x1f92   :  { %v15465_v14 = vpop.f32.mrb[130].mxu1  ;;  %v9653_v13 = vpop.xlane.xlu0 %9652  ;;  %17949 = vrcp.f32 %v9650_v18 }
0x1f93   :  { %v9290_v15 = vpop.f32.mrb[131].mxu1  ;;  %17951 = vrcp.f32 %v9653_v13 }
0x1f94   :  { %15477 = vmatprep.mubr.msk.f32.mxu1 %vm1749_vm3, %v9290_v15 }
0x1f95   :  { %15478 = vmatmul.mubr.msk.f32.gmra.mrb[106].mxu1 %vm1749_vm3, %v15465_v14  ;;  %v9656_v0 = vpop.xlane.xlu1 %9655 }
0x1f96   :  { %17953 = vrcp.f32 %v9656_v0 }
0x1f98   :  { %v17948_v35 = vpop.eup %17947 }
0x1f99   :  { %v9677_v62 = vmul.f32 %v17948_v35, %v21545_v16  ;;  %v9662_v37 = vpop.xlane.xlu1 %9661  ;;  %v9659_v60 = vpop.xlane.xlu0 %9658 }
0x1f9a   :  { %17955 = vrcp.f32 %v9659_v60 }
0x1f9b   :  { %15524 = vmatprep.mubr.msk.f32.mxu1 %vm1887_vm5, %v9677_v62  ;;  %17957 = vrcp.f32 %v9662_v37 }
0x1f9c   :  { %v17950_v15 = vpop.eup %17949 }
0x1f9d   :  { %v9668_v46 = vpop.xlane.xlu1 %9667  ;;  %v17375_v26 = vpop.permute.xlu0 %17374 }
0x1f9e   :  { %v17377_v10 = vunpack.i.h.bf16 %v17375_v26  ;;  %v17376_v33 = vunpack.i.l.bf16 %v17375_v26  ;;  %v21616_v61 = vpop.f32.mrb[164].mxu0  ;;  %v17952_v35 = vpop.eup %17951 }
0x1f9f   :  { %v21618_v30 = vpop.f32.mrb[165].mxu0  ;;  %v10147_v8 = vsel %vm1887_vm5, %v21616_v61, -inf }
0x1fa0   :  { %10148 = vmax.xlane.f32.xlu1 %v10147_v8  ;;  %v10144_v16 = vsel %vm1887_vm5, %v21618_v30, -inf  ;;  %v16482_v9 = vpack.c.bf16 %v17377_v10, %v17376_v33 }
0x1fa1   :  { %v9665_v12 = vpop.xlane.xlu1 %9664  ;;  %v17385_v56 = vpop.permute.xlu0 %17384  ;;  %10145 = vmax.xlane.f32.xlu0 %v10144_v16  ;;  %v9678_v16 = vmul.f32 %v17950_v15, %v21550_v21 }
0x1fa2   :  { %v17387_v28 = vunpack.i.h.bf16 %v17385_v56  ;;  %v17386_v45 = vunpack.i.l.bf16 %v17385_v56  ;;  %16483 = vmatprep.subr.bf16.mxu1 %v16482_v9  ;;  %v21624_v59 = vpop.f32.mrb[166].mxu0  ;;  %17959 = vrcp.f32 %v9665_v12  ;;  %v18130_v56 = vld [vmem:[%s22733_s8 + $0x20] sm:$0xff] }
0x1fa3   :  { %16485 = vmatpush3.bf16.msra.mxu1 %v16482_v9  ;;  %v21626_v43 = vpop.f32.mrb[167].mxu0  ;;  %v10153_v18 = vsel %vm1887_vm5, %v21624_v59, -inf  ;;  %17961 = vrcp.f32 %v9668_v46  ;;  %v9679_v46 = vmul.f32 %v17952_v35, %v21552_v36 }
0x1fa4   :  { %v16530_v4 = vpack.c.bf16 %v17387_v28, %v17386_v45  ;;  %v10150_v48 = vsel %vm1887_vm5, %v21626_v43, -inf  ;;  %v17954_v28 = vpop.eup %17953 }
0x1fa5   :  { %v17380_v58 = vpop.permute.xlu1 %17379  ;;  %v17395_v2 = vpop.permute.xlu0 %17394  ;;  %10151 = vmax.xlane.f32.xlu0 %v10150_v48  ;;  %v9680_v36 = vmul.f32 %v17954_v28, %v21558_v39 }
0x1fa6   :  { %v17382_v47 = vunpack.i.h.bf16 %v17380_v58  ;;  %v17381_v24 = vunpack.i.l.bf16 %v17380_v58  ;;  %v21630_v31 = vpop.f32.mrb[168].mxu0  ;;  %16532 = vmatprep.subr.msk.bf16.mxu0 %vm18771_vm4, %v16530_v4  ;;  %v17397_v62 = vunpack.i.h.bf16 %v17395_v2  ;;  %v17396_v37 = vunpack.i.l.bf16 %v17395_v2  ;;  %v17956_v45 = vpop.eup %17955 }
0x1fa7   :  { %v21634_v27 = vpop.f32.mrb[169].mxu0  ;;  %16535 = vmatpush3.bf16.xpose.msk.msra.mxu0 %vm18771_vm4, %v16530_v4  ;;  %v10159_v40 = vsel %vm1887_vm5, %v21630_v31, -inf  ;;  %v17958_v58 = vpop.eup %17957  ;;  %v9681_v2 = vmul.f32 %v17956_v45, %v21564_v44 }
0x1fa8   :  { %10160 = vmax.xlane.f32.xlu1 %v10159_v40  ;;  %v16486_v14 = vpack.c.bf16 %v17382_v47, %v17381_v24  ;;  %v10156_v12 = vsel %vm1887_vm5, %v21634_v27, -inf  ;;  %v16542_v4 = vpack.c.bf16 %v17397_v62, %v17396_v37 }
0x1fa9   :  { %v17390_v13 = vpop.permute.xlu1 %17389  ;;  %v10523_v0 = vpop.permute.xlu0 %10522  ;;  %10154 = vmax.xlane.f32.xlu0 %v10153_v18  ;;  %v9682_v18 = vmul.f32 %v17958_v58, %v21562_v7 }
0x1faa   :  { %v17392_v60 = vunpack.i.h.bf16 %v17390_v13  ;;  %v17391_v26 = vunpack.i.l.bf16 %v17390_v13  ;;  %16487 = vmatprep.subr.bf16.mxu1 %v16486_v14  ;;  %v21642_v10 = vpop.f32.mrb[170].mxu0  ;;  %15636 = vmatprep.mubr.msk.f32.mxu0 %vm1749_vm3, %v10523_v0 }
0x1fab   :  { %16489 = vmatpush3.bf16.msra.mxu1 %v16486_v14  ;;  %v21645_v33 = vpop.f32.mrb[171].mxu0  ;;  %v10165_v8 = vsel %vm1887_vm5, %v21642_v10, -inf }
0x1fac   :  { %v16536_v9 = vpack.c.bf16 %v17392_v60, %v17391_v26  ;;  %10166 = vmax.xlane.f32.xlu1 %v10165_v8  ;;  %15536 = vmatprep.subr.mxu1 %v18130_v56  ;;  %v10162_v48 = vsel %vm1887_vm5, %v21645_v33, -inf  ;;  %v17960_v47 = vpop.eup %17959 }
0x1fad   :  { %10157 = vmax.xlane.f32.xlu0 %v10156_v12  ;;  %v17400_v21 = vpop.permute.xlu1 %17399  ;;  %v17962_v14 = vpop.eup %17961  ;;  %v9683_v15 = vmul.f32 %v17960_v47, %v21574_v50 }
0x1fae   :  { %15525 = vmatmul.mubr.msk.f32.vlgmr.msra.gmra.mrb[132].mxu1 %vm1887_vm5, %v9678_v16  ;;  %16538 = vmatprep.subr.msk.bf16.mxu0 %vm18771_vm4, %v16536_v9  ;;  %v17402_v24 = vunpack.i.h.bf16 %v17400_v21  ;;  %v17401_v40 = vunpack.i.l.bf16 %v17400_v21  ;;  %v9684_v39 = vmul.f32 %v17962_v14, %v21570_v57  ;;  %v10527_v44 = vpop.permute.xlu0 %10526 }
0x1faf   :  { %15527 = vmatprep.mubr.msk.f32.mxu1 %vm1887_vm5, %v9679_v46  ;;  %16541 = vmatpush3.bf16.xpose.msk.msra.mxu0 %vm18771_vm4, %v16536_v9 }
0x1fb0   :  { %16544 = vmatprep.subr.msk.bf16.mxu0 %vm18771_vm4, %v16542_v4  ;;  %15537 = vmatpush3.msra.mxu1 %v18130_v56  ;;  %v16548_v13 = vpack.c.bf16 %v17402_v24, %v17401_v40 }
0x1fb1   :  { %10163 = vmax.xlane.f32.xlu0 %v10162_v48  ;;  %v10525_v7 = vpop.permute.xlu1 %10524 }
0x1fb2   :  { %15528 = vmatmul.mubr.msk.f32.gmra.mrb[134].mxu1 %vm1887_vm5, %v9680_v36  ;;  %v10531_v0 = vpop.permute.xlu0 %10530 }
0x1fb3   :  { %15530 = vmatprep.mubr.msk.f32.mxu1 %vm1887_vm5, %v9681_v2 }
0x1fb5   :  { %v10529_v50 = vpop.permute.xlu1 %10528 }
0x1fb6   :  { %15531 = vmatmul.mubr.msk.f32.gmra.mrb[136].mxu1 %vm1887_vm5, %v9682_v18  ;;  %v10535_v35 = vpop.permute.xlu0 %10534 }
0x1fb7   :  { %15533 = vmatprep.mubr.msk.f32.mxu1 %vm1887_vm5, %v9683_v15  ;;  %16547 = vmatpush3.bf16.xpose.msk.msra.mxu0 %vm18771_vm4, %v16542_v4 }
0x1fb8   :  { %16550 = vmatprep.subr.msk.bf16.mxu0 %vm18771_vm4, %v16548_v13 }
0x1fb9   :  { %v10533_v57 = vpop.permute.xlu1 %10532 }
0x1fba   :  { %15534 = vmatmul.mubr.msk.f32.gmra.mrb[138].mxu1 %vm1887_vm5, %v9684_v39 }
0x1fbd   :  { %17409 = vrot.lane.b32.xlu1 %v21280_v32, %s18175_s23  ;;  %v10537_v62 = vpop.permute.xlu1 %10536 }
0x1fbf   :  { %16553 = vmatpush3.bf16.xpose.msk.msra.mxu0 %vm18771_vm4, %v16548_v13 }
0x1fc6   :  { %15637 = vmatmul.mubr.msk.f32.vlgmr.msra.gmra.mrb[172].mxu0 %vm1749_vm3, %v10525_v7 }
0x1fc7   :  { %15639 = vmatprep.mubr.msk.f32.mxu0 %vm1749_vm3, %v10527_v44  ;;  %17404 = vrot.lane.b32.xlu0 %v21250_v17, %s18175_s23 }
0x1fca   :  { %15640 = vmatmul.mubr.msk.f32.gmra.mrb[174].mxu0 %vm1749_vm3, %v10529_v50 }
0x1fcb   :  { %15642 = vmatprep.mubr.msk.f32.mxu0 %vm1749_vm3, %v10531_v0 }
0x1fce   :  { %15643 = vmatmul.mubr.msk.f32.gmra.mrb[176].mxu0 %vm1749_vm3, %v10533_v57 }
0x1fcf   :  { %15645 = vmatprep.mubr.msk.f32.mxu0 %vm1749_vm3, %v10535_v35 }
0x1fd2   :  { %15646 = vmatmul.mubr.msk.f32.gmra.mrb[178].mxu0 %vm1749_vm3, %v10537_v62 }
0x202d   :  { %v10149_v37 = vpop.xlane.xlu1 %10148 }
0x202e   :  { %v10169_v60 = vsub.f32 %v21616_v61, %v10149_v37  ;;  %v10146_v26 = vpop.xlane.xlu0 %10145 }
0x202f   :  { %v10168_v8 = vsub.f32 %v21618_v30, %v10146_v26 }
0x2030   :  { %v10178_v16 = vmul.f32 1.442695, %v10169_v60 }
0x2031   :  { %v10176_v9 = vmul.f32 1.442695, %v10168_v8 }
0x2032   :  { %17963 = vpow2.f32 %v10178_v16  ;;  %v10152_v12 = vpop.xlane.xlu0 %10151 }
0x2033   :  { %17965 = vpow2.f32 %v10176_v9  ;;  %v10170_v56 = vsub.f32 %v21626_v43, %v10152_v12 }
0x2035   :  { %v10180_v28 = vmul.f32 1.442695, %v10170_v56  ;;  %v10161_v46 = vpop.xlane.xlu1 %10160 }
0x2036   :  { %v10173_v45 = vsub.f32 %v21630_v31, %v10161_v46  ;;  %v10155_v4 = vpop.xlane.xlu0 %10154 }
0x2037   :  { %17967 = vpow2.f32 %v10180_v28  ;;  %v10171_v21 = vsub.f32 %v21624_v59, %v10155_v4 }
0x2038   :  { %v10186_v48 = vmul.f32 1.442695, %v10173_v45 }
0x2039   :  { %v10182_v61 = vmul.f32 1.442695, %v10171_v21  ;;  %v10167_v36 = vpop.xlane.xlu1 %10166 }
0x203a   :  { %v10175_v30 = vsub.f32 %v21642_v10, %v10167_v36  ;;  %v10158_v58 = vpop.xlane.xlu0 %10157 }
0x203b   :  { %17969 = vpow2.f32 %v10182_v61  ;;  %v10172_v2 = vsub.f32 %v21634_v27, %v10158_v58 }
0x203c   :  { %v21700_v47 = vpop.eup %17963  ;;  %17971 = vpow2.f32 %v10186_v48  ;;  %v10190_v24 = vmul.f32 1.442695, %v10175_v30 }
0x203d   :  { %v21702_v43 = vpop.eup %17965  ;;  %v10184_v31 = vmul.f32 1.442695, %v10172_v2  ;;  %v10195_v40 = vsel %vm1887_vm5, %v21700_v47, 0.0 }
0x203e   :  { %10196 = vadd.xlane.f32.xlu1 %v10195_v40  ;;  %v10164_v59 = vpop.xlane.xlu0 %10163  ;;  %v10192_v18 = vsel %vm1887_vm5, %v21702_v43, 0.0 }
0x203f   :  { %17973 = vpow2.f32 %v10184_v31  ;;  %v10174_v10 = vsub.f32 %v21645_v33, %v10164_v59  ;;  %10193 = vadd.xlane.f32.xlu0 %v10192_v18 }
0x2040   :  { %17975 = vpow2.f32 %v10190_v24 }
0x2041   :  { %v21709_v27 = vpop.eup %17967  ;;  %v10188_v14 = vmul.f32 1.442695, %v10174_v10 }
0x2042   :  { %v17405_v15 = vpop.permute.xlu0 %17404  ;;  %v10198_v13 = vsel %vm1887_vm5, %v21709_v27, 0.0 }
0x2043   :  { %v17407_v39 = vunpack.i.h.bf16 %v17405_v15  ;;  %v17406_v7 = vunpack.i.l.bf16 %v17405_v15  ;;  %10199 = vadd.xlane.f32.xlu0 %v10198_v13  ;;  %17977 = vpow2.f32 %v10188_v14 }
0x2045   :  { %v21713_v44 = vpop.eup %17969  ;;  %v16514_v50 = vpack.c.bf16 %v17407_v39, %v17406_v7 }
0x2046   :  { %v10201_v0 = vsel %vm1887_vm5, %v21713_v44, 0.0  ;;  %v21717_v33 = vpop.eup %17971 }
0x2047   :  { %10202 = vadd.xlane.f32.xlu1 %v10201_v0  ;;  %16515 = vmatprep.subr.bf16.mxu1 %v16514_v50  ;;  %v10207_v35 = vsel %vm1887_vm5, %v21717_v33, 0.0 }
0x2049   :  { %v21719_v57 = vpop.eup %17973 }
0x204a   :  { %v10204_v62 = vsel %vm1887_vm5, %v21719_v57, 0.0  ;;  %v21725_v37 = vpop.eup %17975 }
0x204b   :  { %10208 = vadd.xlane.f32.xlu1 %v10207_v35  ;;  %10205 = vadd.xlane.f32.xlu0 %v10204_v62  ;;  %v10213_v60 = vsel %vm1887_vm5, %v21725_v37, 0.0 }
0x204d   :  { %v21729_v26 = vpop.eup %17977 }
0x204e   :  { %v10210_v8 = vsel %vm1887_vm5, %v21729_v26, 0.0 }
0x204f   :  { %10214 = vadd.xlane.f32.xlu1 %v10213_v60 }
0x2053   :  { %10211 = vadd.xlane.f32.xlu1 %v10210_v8 }
0x205c   :  { %v21733_v16 = vpop.f32.mrb[100].mxu1 }
0x205d   :  { %v21735_v9 = vpop.f32.mrb[101].mxu1 }
0x2060   :  { %v21737_v12 = vpop.f32.mrb[102].mxu1 }
0x2061   :  { %v21739_v56 = vpop.f32.mrb[103].mxu1  ;;  %17414 = vrot.lane.b32.xlu0 %v21266_v53, %s18175_s23 }
0x2064   :  { %v21743_v28 = vpop.f32.mrb[104].mxu1  ;;  %17419 = vrot.lane.b32.xlu1 %v21286_v29, %s18175_s23 }
0x2065   :  { %v21747_v46 = vpop.f32.mrb[105].mxu1  ;;  %17424 = vrot.lane.b32.xlu0 %v21250_v17, %s18178_s2 }
0x2068   :  { %v21751_v45 = vpop.f32.mrb[106].mxu1  ;;  %17429 = vrot.lane.b32.xlu1 %v21280_v32, %s18178_s2 }
0x2069   :  { %v21755_v4 = vpop.f32.mrb[107].mxu1  ;;  %17434 = vrot.lane.b32.xlu0 %v21266_v53, %s18178_s2 }
0x206c   :  { %17439 = vrot.lane.b32.xlu1 %v21286_v29, %s18178_s2 }
0x206d   :  { %11069 = vrot.lane.b32.xlu0 %v21185_v63, %s18179_s27  ;;  %v17410_v63 = vpop.permute.xlu1 %17409 }
0x206e   :  { %v17411_v21 = vunpack.i.l.bf16 %v17410_v63 }
0x2070   :  { %11071 = vrot.lane.b32.xlu1 %v21236_v5, %s18179_s27  ;;  %v17412_v5 = vunpack.i.h.bf16 %v17410_v63 }
0x2071   :  { %11073 = vrot.lane.b32.xlu0 %v21258_v42, %s18179_s27 }
0x2074   :  { %11075 = vrot.lane.b32.xlu1 %v21254_v11, %s18179_s27  ;;  %v16518_v11 = vpack.c.bf16 %v17412_v5, %v17411_v21 }
0x2075   :  { %11077 = vrot.lane.b32.xlu0 %v21246_v6, %s18179_s27 }
0x2078   :  { %11079 = vrot.lane.b32.xlu1 %v21242_v20, %s18179_s27 }
0x2079   :  { %11081 = vrot.lane.b32.xlu0 %v21274_v34, %s18179_s27 }
0x207c   :  { %11083 = vrot.lane.b32.xlu1 %v21270_v38, %s18179_s27 }
0x2081   :  { %v15526_v48 = vpop.f32.mrb[132].mxu1 }
0x2082   :  { %v9799_v42 = vpop.f32.mrb[133].mxu1 }
0x2083   :  { %15538 = vmatprep.mubr.msk.f32.mxu1 %vm1749_vm3, %v9799_v42 }
0x2084   :  { %15539 = vmatmul.mubr.msk.f32.vlgmr.msra.gmra.mrb[140].mxu1 %vm1749_vm3, %v15526_v48 }
0x2085   :  { %16517 = vmatpush3.bf16.msra.mxu1 %v16514_v50  ;;  %v15529_v6 = vpop.f32.mrb[134].mxu1 }
0x2086   :  { %16519 = vmatprep.subr.bf16.mxu1 %v16518_v11  ;;  %v9809_v20 = vpop.f32.mrb[135].mxu1 }
0x2087   :  { %15541 = vmatprep.mubr.msk.f32.mxu1 %vm1749_vm3, %v9809_v20 }
0x2088   :  { %15542 = vmatmul.mubr.msk.f32.gmra.mrb[142].mxu1 %vm1749_vm3, %v15529_v6 }
0x2089   :  { %16521 = vmatpush3.bf16.msra.mxu1 %v16518_v11  ;;  %v15532_v38 = vpop.f32.mrb[136].mxu1 }
0x208a   :  { %v9819_v34 = vpop.f32.mrb[137].mxu1 }
0x208b   :  { %15544 = vmatprep.mubr.msk.f32.mxu1 %vm1749_vm3, %v9819_v34 }
0x208c   :  { %15545 = vmatmul.mubr.msk.f32.gmra.mrb[144].mxu1 %vm1749_vm3, %v15532_v38 }
0x208d   :  { %v15535_v61 = vpop.f32.mrb[138].mxu1 }
0x208e   :  { %v9829_v36 = vpop.f32.mrb[139].mxu1 }
0x208f   :  { %15547 = vmatprep.mubr.msk.f32.mxu1 %vm1749_vm3, %v9829_v36 }
0x2090   :  { %15548 = vmatmul.mubr.msk.f32.gmra.mrb[146].mxu1 %vm1749_vm3, %v15535_v61 }
0x2099   :  { %v21785_v30 = vpop.f32.mrb[172].mxu0 }
0x209a   :  { %v21787_v58 = vpop.f32.mrb[173].mxu0  ;;  %v10694_v59 = vsel %vm1887_vm5, %v21785_v30, -inf }
0x209b   :  { %v10691_v2 = vsel %vm1887_vm5, %v21787_v58, -inf }
0x209c   :  { %10692 = vmax.xlane.f32.xlu0 %v10691_v2 }
0x209d   :  { %v21791_v24 = vpop.f32.mrb[174].mxu0 }
0x209e   :  { %v21793_v31 = vpop.f32.mrb[175].mxu0  ;;  %v10700_v15 = vsel %vm1887_vm5, %v21791_v24, -inf }
0x209f   :  { %v10697_v40 = vsel %vm1887_vm5, %v21793_v31, -inf }
0x20a0   :  { %10698 = vmax.xlane.f32.xlu0 %v10697_v40  ;;  %10695 = vmax.xlane.f32.xlu1 %v10694_v59 }
0x20a1   :  { %v21799_v18 = vpop.f32.mrb[176].mxu0 }
0x20a2   :  { %v21801_v10 = vpop.f32.mrb[177].mxu0  ;;  %v10706_v14 = vsel %vm1887_vm5, %v21799_v18, -inf }
0x20a3   :  { %v10703_v50 = vsel %vm1887_vm5, %v21801_v10, -inf }
0x20a4   :  { %10701 = vmax.xlane.f32.xlu0 %v10700_v15  ;;  %10707 = vmax.xlane.f32.xlu1 %v10706_v14 }
0x20a5   :  { %v21807_v13 = vpop.f32.mrb[178].mxu0 }
0x20a6   :  { %v21809_v39 = vpop.f32.mrb[179].mxu0  ;;  %v10712_v7 = vsel %vm1887_vm5, %v21807_v13, -inf }
0x20a7   :  { %v10709_v0 = vsel %vm1887_vm5, %v21809_v39, -inf }
0x20a8   :  { %10704 = vmax.xlane.f32.xlu0 %v10703_v50  ;;  %10713 = vmax.xlane.f32.xlu1 %v10712_v7 }
0x20ac   :  { %10710 = vmax.xlane.f32.xlu0 %v10709_v0 }
0x20b9   :  { %17449 = vrot.lane.b32.xlu1 %v21280_v32, %s18180_s0 }
0x20c2   :  { %17444 = vrot.lane.b32.xlu0 %v21250_v17, %s18180_s0 }
0x20cb   :  { %v10197_v62 = vpop.xlane.xlu1 %10196 }
0x20cc   :  { %v10194_v35 = vpop.xlane.xlu0 %10193 }
0x20cd   :  { %17979 = vrcp.f32 %v10194_v35 }
0x20ce   :  { %17981 = vrcp.f32 %v10197_v62 }
0x20d0   :  { %v10200_v60 = vpop.xlane.xlu0 %10199 }
0x20d1   :  { %17983 = vrcp.f32 %v10200_v60 }
0x20d4   :  { %v10203_v8 = vpop.xlane.xlu1 %10202 }
0x20d5   :  { %17985 = vrcp.f32 %v10203_v8 }
0x20d7   :  { %v17980_v63 = vpop.eup %17979 }
0x20d8   :  { %v10209_v5 = vpop.xlane.xlu1 %10208  ;;  %v10206_v21 = vpop.xlane.xlu0 %10205  ;;  %v10224_v48 = vmul.f32 %v17980_v63, %v21702_v43 }
0x20d9   :  { %17987 = vrcp.f32 %v10206_v21  ;;  %v17982_v50 = vpop.eup %17981 }
0x20da   :  { %15594 = vmatprep.mubr.msk.f32.mxu1 %vm1887_vm5, %v10224_v48  ;;  %17989 = vrcp.f32 %v10209_v5  ;;  %v10225_v5 = vmul.f32 %v17982_v50, %v21700_v47 }
0x20db   :  { %v17984_v62 = vpop.eup %17983 }
0x20dc   :  { %v10215_v42 = vpop.xlane.xlu1 %10214  ;;  %v17415_v11 = vpop.permute.xlu0 %17414 }
0x20dd   :  { %v17417_v6 = vunpack.i.h.bf16 %v17415_v11  ;;  %v17416_v20 = vunpack.i.l.bf16 %v17415_v11  ;;  %v18131_v11 = vld [vmem:[%s22733_s8 + $0x28] sm:$0xff] }
0x20df   :  { %v16522_v38 = vpack.c.bf16 %v17417_v6, %v17416_v20  ;;  %v17986_v6 = vpop.eup %17985  ;;  %v10226_v20 = vmul.f32 %v17984_v62, %v21709_v27 }
0x20e0   :  { %v10212_v34 = vpop.xlane.xlu1 %10211  ;;  %v17425_v61 = vpop.permute.xlu0 %17424  ;;  %v10227_v47 = vmul.f32 %v17986_v6, %v21713_v44 }
0x20e1   :  { %v17427_v36 = vunpack.i.h.bf16 %v17425_v61  ;;  %v17426_v2 = vunpack.i.l.bf16 %v17425_v61  ;;  %16523 = vmatprep.subr.bf16.mxu1 %v16522_v38  ;;  %17991 = vrcp.f32 %v10212_v34 }
0x20e2   :  { %16525 = vmatpush3.bf16.msra.mxu1 %v16522_v38  ;;  %17993 = vrcp.f32 %v10215_v42 }
0x20e3   :  { %v16570_v40 = vpack.c.bf16 %v17427_v36, %v17426_v2  ;;  %v17988_v38 = vpop.eup %17987 }
0x20e4   :  { %v17420_v59 = vpop.permute.xlu1 %17419  ;;  %v17435_v43 = vpop.permute.xlu0 %17434  ;;  %v10228_v61 = vmul.f32 %v17988_v38, %v21719_v57 }
0x20e5   :  { %v17422_v14 = vunpack.i.h.bf16 %v17420_v59  ;;  %v17421_v15 = vunpack.i.l.bf16 %v17420_v59  ;;  %16572 = vmatprep.subr.msk.bf16.mxu0 %vm18771_vm4, %v16570_v40  ;;  %v17437_v60 = vunpack.i.h.bf16 %v17435_v43  ;;  %v17436_v8 = vunpack.i.l.bf16 %v17435_v43  ;;  %v17990_v27 = vpop.eup %17989 }
0x20e6   :  { %16575 = vmatpush3.bf16.xpose.msk.msra.mxu0 %vm18771_vm4, %v16570_v40  ;;  %v10229_v59 = vmul.f32 %v17990_v27, %v21717_v33 }
0x20e7   :  { %v16526_v7 = vpack.c.bf16 %v17422_v14, %v17421_v15  ;;  %v16582_v34 = vpack.c.bf16 %v17437_v60, %v17436_v8 }
0x20e8   :  { %v17430_v0 = vpop.permute.xlu1 %17429  ;;  %v11070_v35 = vpop.permute.xlu0 %11069 }
0x20e9   :  { %v17432_v63 = vunpack.i.h.bf16 %v17430_v0  ;;  %v17431_v21 = vunpack.i.l.bf16 %v17430_v0  ;;  %16527 = vmatprep.subr.bf16.mxu1 %v16526_v7  ;;  %15706 = vmatprep.mubr.msk.f32.mxu0 %vm1749_vm3, %v11070_v35 }
0x20ea   :  { %16529 = vmatpush3.bf16.msra.mxu1 %v16526_v7 }
0x20eb   :  { %v16576_v48 = vpack.c.bf16 %v17432_v63, %v17431_v21  ;;  %15606 = vmatprep.subr.mxu1 %v18131_v11  ;;  %v17992_v36 = vpop.eup %17991 }
0x20ec   :  { %v17440_v42 = vpop.permute.xlu1 %17439  ;;  %v17994_v43 = vpop.eup %17993  ;;  %v10230_v14 = vmul.f32 %v17992_v36, %v21729_v26 }
0x20ed   :  { %15595 = vmatmul.mubr.msk.f32.vlgmr.msra.gmra.mrb[148].mxu1 %vm1887_vm5, %v10225_v5  ;;  %16578 = vmatprep.subr.msk.bf16.mxu0 %vm18771_vm4, %v16576_v48  ;;  %v17442_v2 = vunpack.i.h.bf16 %v17440_v42  ;;  %v17441_v40 = vunpack.i.l.bf16 %v17440_v42  ;;  %v10231_v44 = vmul.f32 %v17994_v43, %v21725_v37  ;;  %v11074_v33 = vpop.permute.xlu0 %11073 }
0x20ee   :  { %15597 = vmatprep.mubr.msk.f32.mxu1 %vm1887_vm5, %v10226_v20  ;;  %16581 = vmatpush3.bf16.xpose.msk.msra.mxu0 %vm18771_vm4, %v16576_v48 }
0x20ef   :  { %16584 = vmatprep.subr.msk.bf16.mxu0 %vm18771_vm4, %v16582_v34  ;;  %15607 = vmatpush3.msra.mxu1 %v18131_v11  ;;  %v16588_v15 = vpack.c.bf16 %v17442_v2, %v17441_v40 }
0x20f0   :  { %v11072_v57 = vpop.permute.xlu1 %11071 }
0x20f1   :  { %15598 = vmatmul.mubr.msk.f32.gmra.mrb[150].mxu1 %vm1887_vm5, %v10227_v47  ;;  %v11078_v7 = vpop.permute.xlu0 %11077 }
0x20f2   :  { %15600 = vmatprep.mubr.msk.f32.mxu1 %vm1887_vm5, %v10228_v61 }
0x20f4   :  { %v11076_v26 = vpop.permute.xlu1 %11075 }
0x20f5   :  { %15601 = vmatmul.mubr.msk.f32.gmra.mrb[152].mxu1 %vm1887_vm5, %v10229_v59  ;;  %v11082_v0 = vpop.permute.xlu0 %11081 }
0x20f6   :  { %15603 = vmatprep.mubr.msk.f32.mxu1 %vm1887_vm5, %v10230_v14  ;;  %16587 = vmatpush3.bf16.xpose.msk.msra.mxu0 %vm18771_vm4, %v16582_v34 }
0x20f7   :  { %16590 = vmatprep.subr.msk.bf16.mxu0 %vm18771_vm4, %v16588_v15 }
0x20f8   :  { %v11080_v50 = vpop.permute.xlu1 %11079 }
0x20f9   :  { %15604 = vmatmul.mubr.msk.f32.gmra.mrb[154].mxu1 %vm1887_vm5, %v10231_v44 }
0x20fc   :  { %v11084_v37 = vpop.permute.xlu1 %11083 }
0x20fe   :  { %16593 = vmatpush3.bf16.xpose.msk.msra.mxu0 %vm18771_vm4, %v16588_v15 }
0x2105   :  { %15707 = vmatmul.mubr.msk.f32.vlgmr.msra.gmra.mrb[180].mxu0 %vm1749_vm3, %v11072_v57 }
0x2106   :  { %15709 = vmatprep.mubr.msk.f32.mxu0 %vm1749_vm3, %v11074_v33 }
0x2109   :  { %15710 = vmatmul.mubr.msk.f32.gmra.mrb[182].mxu0 %vm1749_vm3, %v11076_v26 }
0x210a   :  { %15712 = vmatprep.mubr.msk.f32.mxu0 %vm1749_vm3, %v11078_v7 }
0x210d   :  { %15713 = vmatmul.mubr.msk.f32.gmra.mrb[184].mxu0 %vm1749_vm3, %v11080_v50 }
0x210e   :  { %15715 = vmatprep.mubr.msk.f32.mxu0 %vm1749_vm3, %v11082_v0 }
0x2111   :  { %15716 = vmatmul.mubr.msk.f32.gmra.mrb[186].mxu0 %vm1749_vm3, %v11084_v37 }
0x2129   :  { %v10693_v1 = vpop.xlane.xlu0 %10692 }
0x212a   :  { %v10715_v35 = vsub.f32 %v21787_v58, %v10693_v1 }
0x212c   :  { %v10723_v62 = vmul.f32 1.442695, %v10715_v35 }
0x212d   :  { %v10696_v60 = vpop.xlane.xlu1 %10695  ;;  %v10699_v8 = vpop.xlane.xlu0 %10698 }
0x212e   :  { %17995 = vpow2.f32 %v10723_v62  ;;  %v10716_v63 = vsub.f32 %v21785_v30, %v10696_v60  ;;  %v10717_v21 = vsub.f32 %v21793_v31, %v10699_v8 }
0x2130   :  { %v10725_v5 = vmul.f32 1.442695, %v10716_v63  ;;  %v10727_v48 = vmul.f32 1.442695, %v10717_v21 }
0x2131   :  { %v10708_v11 = vpop.xlane.xlu1 %10707  ;;  %v10702_v6 = vpop.xlane.xlu0 %10701 }
0x2132   :  { %17997 = vpow2.f32 %v10725_v5  ;;  %v10720_v20 = vsub.f32 %v21799_v18, %v10708_v11  ;;  %v10718_v38 = vsub.f32 %v21791_v24, %v10702_v6 }
0x2133   :  { %17999 = vpow2.f32 %v10727_v48 }
0x2134   :  { %v10729_v34 = vmul.f32 1.442695, %v10718_v38  ;;  %v10733_v58 = vmul.f32 1.442695, %v10720_v20 }
0x2135   :  { %v10714_v42 = vpop.xlane.xlu1 %10713  ;;  %v10705_v47 = vpop.xlane.xlu0 %10704 }
0x2136   :  { %v10722_v27 = vsub.f32 %v21807_v13, %v10714_v42  ;;  %v10719_v30 = vsub.f32 %v21801_v10, %v10705_v47  ;;  %18001 = vpow2.f32 %v10729_v34 }
0x2137   :  { %18003 = vpow2.f32 %v10733_v58 }
0x2138   :  { %v21871_v31 = vpop.eup %17995  ;;  %v10731_v61 = vmul.f32 1.442695, %v10719_v30  ;;  %v10737_v36 = vmul.f32 1.442695, %v10722_v27 }
0x2139   :  { %v10711_v2 = vpop.xlane.xlu0 %10710  ;;  %v10739_v18 = vsel %vm1887_vm5, %v21871_v31, 0.0  ;;  %v17450_v60 = vpop.permute.xlu1 %17449 }
0x213a   :  { %v10721_v24 = vsub.f32 %v21809_v39, %v10711_v2  ;;  %10740 = vadd.xlane.f32.xlu0 %v10739_v18  ;;  %18005 = vpow2.f32 %v10731_v61  ;;  %v17452_v8 = vunpack.i.h.bf16 %v17450_v60  ;;  %v17451_v63 = vunpack.i.l.bf16 %v17450_v60 }
0x213b   :  { %18007 = vpow2.f32 %v10737_v36 }
0x213c   :  { %v21876_v40 = vpop.eup %17997  ;;  %v10735_v10 = vmul.f32 1.442695, %v10721_v24  ;;  %v16558_v48 = vpack.c.bf16 %v17452_v8, %v17451_v63 }
0x213d   :  { %v21878_v59 = vpop.eup %17999  ;;  %v17445_v13 = vpop.permute.xlu0 %17444  ;;  %v10742_v43 = vsel %vm1887_vm5, %v21876_v40, 0.0 }
0x213e   :  { %v17447_v14 = vunpack.i.h.bf16 %v17445_v13  ;;  %v17446_v15 = vunpack.i.l.bf16 %v17445_v13  ;;  %10743 = vadd.xlane.f32.xlu1 %v10742_v43  ;;  %v10745_v44 = vsel %vm1887_vm5, %v21878_v59, 0.0  ;;  %18009 = vpow2.f32 %v10735_v10 }
0x213f   :  { %10746 = vadd.xlane.f32.xlu0 %v10745_v44 }
0x2140   :  { %v16554_v39 = vpack.c.bf16 %v17447_v14, %v17446_v15  ;;  %v21884_v57 = vpop.eup %18001 }
0x2141   :  { %v10748_v33 = vsel %vm1887_vm5, %v21884_v57, 0.0  ;;  %v21888_v26 = vpop.eup %18003 }
0x2142   :  { %16555 = vmatprep.subr.bf16.mxu1 %v16554_v39  ;;  %10749 = vadd.xlane.f32.xlu1 %v10748_v33  ;;  %v10754_v50 = vsel %vm1887_vm5, %v21888_v26, 0.0 }
0x2144   :  { %v21890_v7 = vpop.eup %18005 }
0x2145   :  { %v10751_v0 = vsel %vm1887_vm5, %v21890_v7, 0.0  ;;  %v21896_v37 = vpop.eup %18007 }
0x2146   :  { %10755 = vadd.xlane.f32.xlu1 %v10754_v50  ;;  %10752 = vadd.xlane.f32.xlu0 %v10751_v0  ;;  %v10760_v1 = vsel %vm1887_vm5, %v21896_v37, 0.0 }
0x2148   :  { %v21900_v35 = vpop.eup %18009 }
0x2149   :  { %v10757_v62 = vsel %vm1887_vm5, %v21900_v35, 0.0 }
0x214a   :  { %10761 = vadd.xlane.f32.xlu1 %v10760_v1 }
0x214e   :  { %10758 = vadd.xlane.f32.xlu1 %v10757_v62 }
0x215c   :  { %17454 = vrot.lane.b32.xlu0 %v21266_v53, %s18180_s0 }
0x215f   :  { %17459 = vrot.lane.b32.xlu1 %v21286_v29, %s18180_s0 }
0x21c0   :  { %v15596_v21 = vpop.f32.mrb[148].mxu1 }
0x21c1   :  { %v10346_v5 = vpop.f32.mrb[149].mxu1 }
0x21c2   :  { %15608 = vmatprep.mubr.msk.f32.mxu1 %vm1749_vm3, %v10346_v5 }
0x21c3   :  { %15609 = vmatmul.mubr.msk.f32.vlgmr.msra.gmra.mrb[140].mxu1 %vm1749_vm3, %v15596_v21 }
0x21c4   :  { %16557 = vmatpush3.bf16.msra.mxu1 %v16554_v39  ;;  %v15599_v11 = vpop.f32.mrb[150].mxu1 }
0x21c5   :  { %16559 = vmatprep.subr.bf16.mxu1 %v16558_v48  ;;  %v10356_v6 = vpop.f32.mrb[151].mxu1 }
0x21c6   :  { %15611 = vmatprep.mubr.msk.f32.mxu1 %vm1749_vm3, %v10356_v6 }
0x21c7   :  { %v10741_v20 = vpop.xlane.xlu0 %10740  ;;  %15612 = vmatmul.mubr.msk.f32.gmra.mrb[142].mxu1 %vm1749_vm3, %v15599_v11 }
0x21c8   :  { %18011 = vrcp.f32 %v10741_v20  ;;  %16561 = vmatpush3.bf16.msra.mxu1 %v16558_v48  ;;  %v15602_v38 = vpop.f32.mrb[152].mxu1 }
0x21c9   :  { %v10366_v34 = vpop.f32.mrb[153].mxu1 }
0x21ca   :  { %15614 = vmatprep.mubr.msk.f32.mxu1 %vm1749_vm3, %v10366_v34 }
0x21cb   :  { %v10744_v58 = vpop.xlane.xlu1 %10743  ;;  %15615 = vmatmul.mubr.msk.f32.gmra.mrb[144].mxu1 %vm1749_vm3, %v15602_v38 }
0x21cc   :  { %v15605_v42 = vpop.f32.mrb[154].mxu1  ;;  %v10747_v27 = vpop.xlane.xlu0 %10746  ;;  %18013 = vrcp.f32 %v10744_v58 }
0x21cd   :  { %v10376_v47 = vpop.f32.mrb[155].mxu1  ;;  %18015 = vrcp.f32 %v10747_v27  ;;  %v18132_v27 = vld [vmem:[%s22733_s8 + $0x30] sm:$0xff] }
0x21ce   :  { %15617 = vmatprep.mubr.msk.f32.mxu1 %vm1749_vm3, %v10376_v47 }
0x21cf   :  { %15618 = vmatmul.mubr.msk.f32.gmra.mrb[146].mxu1 %vm1749_vm3, %v15605_v42  ;;  %v10750_v30 = vpop.xlane.xlu1 %10749 }
0x21d0   :  { %18017 = vrcp.f32 %v10750_v30 }
0x21d2   :  { %v18012_v61 = vpop.eup %18011 }
0x21d3   :  { %v10771_v36 = vmul.f32 %v18012_v61, %v21871_v31  ;;  %v10756_v2 = vpop.xlane.xlu1 %10755  ;;  %v10753_v18 = vpop.xlane.xlu0 %10752 }
0x21d4   :  { %18019 = vrcp.f32 %v10753_v18 }
0x21d5   :  { %15664 = vmatprep.mubr.msk.f32.mxu1 %vm1887_vm5, %v10771_v36  ;;  %18021 = vrcp.f32 %v10756_v2 }
0x21d6   :  { %v18014_v6 = vpop.eup %18013 }
0x21d7   :  { %v10762_v24 = vpop.xlane.xlu1 %10761  ;;  %v17455_v10 = vpop.permute.xlu0 %17454  ;;  %v10772_v42 = vmul.f32 %v18014_v6, %v21876_v40 }
0x21d8   :  { %v17457_v13 = vunpack.i.h.bf16 %v17455_v10  ;;  %v17456_v43 = vunpack.i.l.bf16 %v17455_v10  ;;  %v21918_v14 = vpop.f32.mrb[180].mxu0  ;;  %v18016_v38 = vpop.eup %18015 }
0x21d9   :  { %v21920_v15 = vpop.f32.mrb[181].mxu0  ;;  %v11241_v44 = vsel %vm1887_vm5, %v21918_v14, -inf  ;;  %v10773_v61 = vmul.f32 %v18016_v38, %v21878_v59 }
0x21da   :  { %v16562_v39 = vpack.c.bf16 %v17457_v13, %v17456_v43  ;;  %11242 = vmax.xlane.f32.xlu1 %v11241_v44  ;;  %v11238_v31 = vsel %vm1887_vm5, %v21920_v15, -inf  ;;  %v18018_v30 = vpop.eup %18017 }
0x21db   :  { %v10759_v33 = vpop.xlane.xlu1 %10758  ;;  %11239 = vmax.xlane.f32.xlu0 %v11238_v31  ;;  %v10774_v2 = vmul.f32 %v18018_v30, %v21884_v57 }
0x21dc   :  { %v21926_v50 = vpop.f32.mrb[182].mxu0  ;;  %16563 = vmatprep.subr.bf16.mxu1 %v16562_v39  ;;  %18023 = vrcp.f32 %v10759_v33 }
0x21dd   :  { %v21928_v0 = vpop.f32.mrb[183].mxu0  ;;  %16565 = vmatpush3.bf16.msra.mxu1 %v16562_v39  ;;  %v11247_v11 = vsel %vm1887_vm5, %v21926_v50, -inf  ;;  %18025 = vrcp.f32 %v10762_v24 }
0x21de   :  { %v11244_v1 = vsel %vm1887_vm5, %v21928_v0, -inf  ;;  %v18020_v36 = vpop.eup %18019 }
0x21df   :  { %v17460_v62 = vpop.permute.xlu1 %17459  ;;  %11245 = vmax.xlane.f32.xlu0 %v11244_v1  ;;  %v18022_v18 = vpop.eup %18021  ;;  %v10775_v24 = vmul.f32 %v18020_v36, %v21890_v7 }
0x21e0   :  { %v21932_v60 = vpop.f32.mrb[184].mxu0  ;;  %v17462_v8 = vunpack.i.h.bf16 %v17460_v62  ;;  %v17461_v63 = vunpack.i.l.bf16 %v17460_v62  ;;  %v10776_v59 = vmul.f32 %v18022_v18, %v21888_v26 }
0x21e1   :  { %v21934_v21 = vpop.f32.mrb[185].mxu0  ;;  %v11253_v5 = vsel %vm1887_vm5, %v21932_v60, -inf }
0x21e2   :  { %11254 = vmax.xlane.f32.xlu1 %v11253_v5  ;;  %v16566_v48 = vpack.c.bf16 %v17462_v8, %v17461_v63  ;;  %v11250_v47 = vsel %vm1887_vm5, %v21934_v21, -inf }
0x21e3   :  { %11248 = vmax.xlane.f32.xlu0 %v11247_v11 }
0x21e4   :  { %v15717_v20 = vpop.f32.mrb[186].mxu0  ;;  %16567 = vmatprep.subr.bf16.mxu1 %v16566_v48 }
0x21e5   :  { %v21940_v34 = vpop.f32.mrb[187].mxu0  ;;  %v11259_v58 = vsel %vm1887_vm5, %v15717_v20, -inf  ;;  %16569 = vmatpush3.bf16.msra.mxu1 %v16566_v48 }
0x21e6   :  { %11260 = vmax.xlane.f32.xlu1 %v11259_v58  ;;  %15676 = vmatprep.subr.mxu1 %v18132_v27  ;;  %v11256_v40 = vsel %vm1887_vm5, %v21940_v34, -inf  ;;  %v18024_v10 = vpop.eup %18023 }
0x21e7   :  { %11251 = vmax.xlane.f32.xlu0 %v11250_v47  ;;  %v18026_v13 = vpop.eup %18025  ;;  %v10777_v43 = vmul.f32 %v18024_v10, %v21900_v35 }
0x21e8   :  { %15665 = vmatmul.mubr.msk.f32.vlgmr.msra.gmra.mrb[156].mxu1 %vm1887_vm5, %v10772_v42  ;;  %v10778_v57 = vmul.f32 %v18026_v13, %v21896_v37 }
0x21e9   :  { %15667 = vmatprep.mubr.msk.f32.mxu1 %vm1887_vm5, %v10773_v61  ;;  %15677 = vmatpush3.msra.mxu1 %v18132_v27 }
0x21eb   :  { %11257 = vmax.xlane.f32.xlu0 %v11256_v40 }
0x21ec   :  { %15668 = vmatmul.mubr.msk.f32.gmra.mrb[158].mxu1 %vm1887_vm5, %v10774_v2 }
0x21ed   :  { %15670 = vmatprep.mubr.msk.f32.mxu1 %vm1887_vm5, %v10775_v24 }
0x21f0   :  { %15671 = vmatmul.mubr.msk.f32.gmra.mrb[160].mxu1 %vm1887_vm5, %v10776_v59 }
0x21f1   :  { %15673 = vmatprep.mubr.msk.f32.mxu1 %vm1887_vm5, %v10777_v43 }
0x21f4   :  { %15674 = vmatmul.mubr.msk.f32.gmra.mrb[162].mxu1 %vm1887_vm5, %v10778_v57 }
0x21f7   :  { %17469 = vrot.lane.b32.xlu1 %v21280_v32, %s18181_s30 }
0x2201   :  { %17464 = vrot.lane.b32.xlu0 %v21250_v17, %s18181_s30 }
0x2267   :  { %v11243_v7 = vpop.xlane.xlu1 %11242 }
0x2268   :  { %v11263_v26 = vsub.f32 %v21918_v14, %v11243_v7  ;;  %v11240_v44 = vpop.xlane.xlu0 %11239 }
0x2269   :  { %v11262_v35 = vsub.f32 %v21920_v15, %v11240_v44  ;;  %v22792_v44 = vsub.s32 0, %v19819_v22 }
0x226a   :  { %v11272_v39 = vmul.f32 1.442695, %v11263_v26  ;;  %v22014_v26 = vld [vmem:[%s22737_s12 + $0x8] sm:$0x3f] }
0x226b   :  { %v11270_v31 = vmul.f32 1.442695, %v11262_v35  ;;  %v22019_v35 = vrot.slane %v22014_v26, %v22792_v44 }
0x226c   :  { %18027 = vpow2.f32 %v11272_v39  ;;  %v11246_v33 = vpop.xlane.xlu0 %11245 }
0x226d   :  { %18029 = vpow2.f32 %v11270_v31  ;;  %v11264_v37 = vsub.f32 %v21928_v0, %v11246_v33  ;;  %v16665_v39 = vadd.f32 %v21735_v9, %v22019_v35  ;;  %v16664_v33 = vadd.f32 %v21733_v16, %v22019_v35 }
0x226f   :  { %v11255_v1 = vpop.xlane.xlu1 %11254  ;;  %v11274_v62 = vmul.f32 1.442695, %v11264_v37  ;;  %v22024_v31 = vadd.f32 %v16665_v39, %v20463_v19  ;;  %v16667_v37 = vadd.f32 %v21739_v56, %v22019_v35  ;;  %v16668_v56 = vadd.f32 %v21743_v28, %v22019_v35 }
0x2270   :  { %v11267_v32 = vsub.f32 %v21932_v60, %v11255_v1  ;;  %v11249_v8 = vpop.xlane.xlu0 %11248 }
0x2271   :  { %18031 = vpow2.f32 %v11274_v62  ;;  %v11265_v17 = vsub.f32 %v21926_v50, %v11249_v8  ;;  %v11632_v62 = vsel %vm1523_vm2, %v22024_v31, 0.0  ;;  %v22038_v8 = vadd.f32 %v16664_v33, %v20466_v25 }
0x2272   :  { %v11280_v14 = vmul.f32 1.442695, %v11267_v32 }
0x2273   :  { %v11261_v63 = vpop.xlane.xlu1 %11260  ;;  %v11276_v5 = vmul.f32 1.442695, %v11265_v17 }
0x2274   :  { %v11269_v48 = vsub.f32 %v15717_v20, %v11261_v63  ;;  %v11252_v15 = vpop.xlane.xlu0 %11251 }
0x2275   :  { %18033 = vpow2.f32 %v11276_v5  ;;  %v11266_v11 = vsub.f32 %v21934_v21, %v11252_v15  ;;  %v16671_v15 = vadd.f32 %v21755_v4, %v22019_v35 }
0x2276   :  { %v21974_v6 = vpop.eup %18027  ;;  %18035 = vpow2.f32 %v11280_v14  ;;  %v11284_v0 = vmul.f32 1.442695, %v11269_v48  ;;  %v11635_v14 = vsel %vm1523_vm2, %v22038_v8, 0.0  ;;  %v16670_v48 = vadd.f32 %v21751_v45, %v22019_v35 }
0x2277   :  { %v21976_v38 = vpop.eup %18029  ;;  %v11278_v58 = vmul.f32 1.442695, %v11266_v11  ;;  %v11289_v60 = vsel %vm1887_vm5, %v21974_v6, 0.0 }
0x2278   :  { %v11258_v42 = vpop.xlane.xlu0 %11257  ;;  %v11286_v50 = vsel %vm1887_vm5, %v21976_v38, 0.0  ;;  %11290 = vadd.xlane.f32.xlu1 %v11289_v60 }
0x2279   :  { %18037 = vpow2.f32 %v11278_v58  ;;  %v11268_v20 = vsub.f32 %v21940_v34, %v11258_v42  ;;  %11287 = vadd.xlane.f32.xlu0 %v11286_v50 }
0x227a   :  { %18039 = vpow2.f32 %v11284_v0 }
0x227b   :  { %v21983_v21 = vpop.eup %18031  ;;  %v11282_v47 = vmul.f32 1.442695, %v11268_v20 }
0x227c   :  { %v17465_v27 = vpop.permute.xlu0 %17464  ;;  %v11292_v30 = vsel %vm1887_vm5, %v21983_v21, 0.0 }
0x227d   :  { %v17467_v61 = vunpack.i.h.bf16 %v17465_v27  ;;  %v17466_v36 = vunpack.i.l.bf16 %v17465_v27  ;;  %11293 = vadd.xlane.f32.xlu0 %v11292_v30  ;;  %18041 = vpow2.f32 %v11282_v47 }
0x227f   :  { %v21987_v40 = vpop.eup %18033  ;;  %v16594_v2 = vpack.c.bf16 %v17467_v61, %v17466_v36 }
0x2280   :  { %v11295_v18 = vsel %vm1887_vm5, %v21987_v40, 0.0  ;;  %v21991_v34 = vpop.eup %18035 }
0x2281   :  { %11296 = vadd.xlane.f32.xlu1 %v11295_v18  ;;  %16595 = vmatprep.subr.bf16.mxu1 %v16594_v2  ;;  %v11301_v10 = vsel %vm1887_vm5, %v21991_v34, 0.0 }
0x2283   :  { %v21993_v24 = vpop.eup %18037 }
0x2284   :  { %v11298_v59 = vsel %vm1887_vm5, %v21993_v24, 0.0  ;;  %v21999_v13 = vpop.eup %18039 }
0x2285   :  { %11302 = vadd.xlane.f32.xlu1 %v11301_v10  ;;  %11299 = vadd.xlane.f32.xlu0 %v11298_v59  ;;  %v11307_v43 = vsel %vm1887_vm5, %v21999_v13, 0.0 }
0x2287   :  { %v22003_v57 = vpop.eup %18041 }
0x2288   :  { %v11304_v7 = vsel %vm1887_vm5, %v22003_v57, 0.0 }
0x2289   :  { %11308 = vadd.xlane.f32.xlu1 %v11307_v43 }
0x228d   :  { %11305 = vadd.xlane.f32.xlu1 %v11304_v7 }
0x229b   :  { %17474 = vrot.lane.b32.xlu0 %v21266_v53, %s18181_s30  ;;  %v16666_v53 = vadd.f32 %v21737_v12, %v22019_v35  ;;  %v22041_v12 = vadd.f32 %v16667_v37, %v20475_v23 }
0x229d   :  { %v22033_v1 = vadd.f32 %v16666_v53, %v20482_v52  ;;  %v16669_v52 = vadd.f32 %v21747_v46, %v22019_v35  ;;  %v11638_v28 = vsel %vm1523_vm2, %v22041_v12, 0.0  ;;  %v22056_v46 = vadd.f32 %v16668_v56, %v20492_v41 }
0x229e   :  { %17479 = vrot.lane.b32.xlu1 %v21286_v29, %s18181_s30  ;;  %v17470_v29 = vpop.permute.xlu1 %17469  ;;  %v22068_v41 = vadd.f32 %v16670_v48, %v20506_v54 }
0x229f   :  { %v17472_v9 = vunpack.i.h.bf16 %v17470_v29  ;;  %v17471_v32 = vunpack.i.l.bf16 %v17470_v29  ;;  %v11641_v17 = vsel %vm1523_vm2, %v22033_v1, 0.0  ;;  %v22059_v5 = vadd.f32 %v16669_v52, %v20489_v55  ;;  %v22793_v55 = vld [vmem:[#allocation5_spill] sm:$0xff] }
0x22a0   :  { %v22071_v58 = vadd.f32 %v16671_v15, %v22793_v55  ;;  %v11647_v45 = vsel %vm1523_vm2, %v22056_v46, 0.0  ;;  %v11653_v54 = vsel %vm1523_vm2, %v22068_v41, 0.0 }
0x22a1   :  { %v16598_v63 = vpack.c.bf16 %v17472_v9, %v17471_v32  ;;  %v11644_v4 = vsel %vm1523_vm2, %v22059_v5, 0.0  ;;  %v18133_v32 = vld [vmem:[%s22733_s8 + $0x38] sm:$0xff] }
0x22a2   :  { %v11650_v50 = vsel %vm1523_vm2, %v22071_v58, 0.0 }
0x22ba   :  { %11633 = vadd.xlane.f32.xlu0 %v11632_v62 }
0x22bb   :  { %v15666_v19 = vpop.f32.mrb[156].mxu1 }
0x22bc   :  { %v10893_v16 = vpop.f32.mrb[157].mxu1 }
0x22bd   :  { %15678 = vmatprep.mubr.msk.f32.mxu1 %vm1749_vm3, %v10893_v16 }
0x22be   :  { %11642 = vadd.xlane.f32.xlu0 %v11641_v17  ;;  %15679 = vmatmul.mubr.msk.f32.vlgmr.msra.gmra.mrb[140].mxu1 %vm1749_vm3, %v15666_v19 }
0x22bf   :  { %16597 = vmatpush3.bf16.msra.mxu1 %v16594_v2  ;;  %v15669_v25 = vpop.f32.mrb[158].mxu1 }
0x22c0   :  { %16599 = vmatprep.subr.bf16.mxu1 %v16598_v63  ;;  %v10903_v23 = vpop.f32.mrb[159].mxu1 }
0x22c1   :  { %15681 = vmatprep.mubr.msk.f32.mxu1 %vm1749_vm3, %v10903_v23 }
0x22c2   :  { %11636 = vadd.xlane.f32.xlu1 %v11635_v14  ;;  %11639 = vadd.xlane.f32.xlu0 %v11638_v28 }
0x22c3   :  { %15682 = vmatmul.mubr.msk.f32.gmra.mrb[142].mxu1 %vm1749_vm3, %v15669_v25  ;;  %v15672_v11 = vpop.f32.mrb[160].mxu1 }
0x22c4   :  { %16601 = vmatpush3.bf16.msra.mxu1 %v16598_v63  ;;  %v10913_v0 = vpop.f32.mrb[161].mxu1 }
0x22c5   :  { %15684 = vmatprep.mubr.msk.f32.mxu1 %vm1749_vm3, %v10913_v0 }
0x22c6   :  { %11648 = vadd.xlane.f32.xlu1 %v11647_v45  ;;  %11645 = vadd.xlane.f32.xlu0 %v11644_v4 }
0x22c7   :  { %15685 = vmatmul.mubr.msk.f32.gmra.mrb[144].mxu1 %vm1749_vm3, %v15672_v11  ;;  %v15675_v60 = vpop.f32.mrb[162].mxu1 }
0x22c8   :  { %v10923_v42 = vpop.f32.mrb[163].mxu1 }
0x22c9   :  { %15687 = vmatprep.mubr.msk.f32.mxu1 %vm1749_vm3, %v10923_v42 }
0x22ca   :  { %11654 = vadd.xlane.f32.xlu1 %v11653_v54  ;;  %11651 = vadd.xlane.f32.xlu0 %v11650_v50  ;;  %v22794_v54 = vld [vmem:[#allocation7_spill] sm:$0xff] }
0x22cb   :  { %15688 = vmatmul.mubr.msk.f32.gmra.mrb[146].mxu1 %vm1749_vm3, %v15675_v60 }
0x2305   :  { %v11291_v47 = vpop.xlane.xlu1 %11290 }
0x2306   :  { %v11288_v20 = vpop.xlane.xlu0 %11287 }
0x2307   :  { %18043 = vrcp.f32 %v11288_v20 }
0x2308   :  { %18045 = vrcp.f32 %v11291_v47 }
0x230a   :  { %v11294_v27 = vpop.xlane.xlu0 %11293 }
0x230b   :  { %18047 = vrcp.f32 %v11294_v27 }
0x230e   :  { %v11297_v30 = vpop.xlane.xlu1 %11296 }
0x230f   :  { %18049 = vrcp.f32 %v11297_v30 }
0x2311   :  { %v18044_v61 = vpop.eup %18043 }
0x2312   :  { %v11303_v36 = vpop.xlane.xlu1 %11302  ;;  %v11300_v2 = vpop.xlane.xlu0 %11299  ;;  %v11318_v18 = vmul.f32 %v18044_v61, %v21976_v38 }
0x2313   :  { %18051 = vrcp.f32 %v11300_v2  ;;  %v18046_v37 = vpop.eup %18045 }
0x2314   :  { %15734 = vmatprep.mubr.msk.f32.mxu1 %vm1887_vm5, %v11318_v18  ;;  %18053 = vrcp.f32 %v11303_v36  ;;  %v11319_v9 = vmul.f32 %v18046_v37, %v21974_v6 }
0x2315   :  { %v18048_v62 = vpop.eup %18047 }
0x2316   :  { %v11309_v10 = vpop.xlane.xlu1 %11308  ;;  %v17475_v59 = vpop.permute.xlu0 %17474  ;;  %v11320_v16 = vmul.f32 %v18048_v62, %v21983_v21  ;;  %v22797_v62 = vld [vmem:[#allocation11_spill] sm:$0xff] }
0x2317   :  { %v17477_v43 = vunpack.i.h.bf16 %v17475_v59  ;;  %v17476_v7 = vunpack.i.l.bf16 %v17475_v59  ;;  %v22796_v59 = vld [vmem:[#allocation6_spill] sm:$0xff] }
0x2319   :  { %v16602_v44 = vpack.c.bf16 %v17477_v43, %v17476_v7  ;;  %v18050_v19 = vpop.eup %18049 }
0x231a   :  { %v11306_v39 = vpop.xlane.xlu1 %11305  ;;  %v11321_v52 = vmul.f32 %v18050_v19, %v21987_v40  ;;  %v22798_v19 = vld [vmem:[#allocation8_spill] sm:$0xff] }
0x231b   :  { %16603 = vmatprep.subr.bf16.mxu1 %v16602_v44  ;;  %18055 = vrcp.f32 %v11306_v39 }
0x231c   :  { %16605 = vmatpush3.bf16.msra.mxu1 %v16602_v44  ;;  %18057 = vrcp.f32 %v11309_v10 }
0x231d   :  { %v18052_v56 = vpop.eup %18051 }
0x231e   :  { %v17480_v53 = vpop.permute.xlu1 %17479  ;;  %v18054_v17 = vpop.eup %18053  ;;  %v11322_v63 = vmul.f32 %v18052_v56, %v21993_v24 }
0x231f   :  { %v17482_v29 = vunpack.i.h.bf16 %v17480_v53  ;;  %v17481_v33 = vunpack.i.l.bf16 %v17480_v53  ;;  %v11323_v25 = vmul.f32 %v18054_v17, %v21991_v34 }
0x2321   :  { %v16606_v38 = vpack.c.bf16 %v17482_v29, %v17481_v33 }
0x2323   :  { %16607 = vmatprep.subr.bf16.mxu1 %v16606_v38 }
0x2324   :  { %16609 = vmatpush3.bf16.msra.mxu1 %v16606_v38 }
0x2325   :  { %15746 = vmatprep.subr.mxu1 %v18133_v32  ;;  %v18056_v6 = vpop.eup %18055 }
0x2326   :  { %v18058_v23 = vpop.eup %18057  ;;  %v11324_v21 = vmul.f32 %v18056_v6, %v22003_v57 }
0x2327   :  { %15735 = vmatmul.mubr.msk.f32.vlgmr.msra.gmra.mrb[164].mxu1 %vm1887_vm5, %v11319_v9  ;;  %v11325_v14 = vmul.f32 %v18058_v23, %v21999_v13 }
0x2328   :  { %15737 = vmatprep.mubr.msk.f32.mxu1 %vm1887_vm5, %v11320_v16  ;;  %15747 = vmatpush3.msra.mxu1 %v18133_v32 }
0x232b   :  { %15738 = vmatmul.mubr.msk.f32.gmra.mrb[166].mxu1 %vm1887_vm5, %v11321_v52 }
0x232c   :  { %15740 = vmatprep.mubr.msk.f32.mxu1 %vm1887_vm5, %v11322_v63 }
0x232f   :  { %15741 = vmatmul.mubr.msk.f32.gmra.mrb[168].mxu1 %vm1887_vm5, %v11323_v25 }
0x2330   :  { %15743 = vmatprep.mubr.msk.f32.mxu1 %vm1887_vm5, %v11324_v21 }
0x2333   :  { %15744 = vmatmul.mubr.msk.f32.gmra.mrb[170].mxu1 %vm1887_vm5, %v11325_v14 }
0x2347   :  { %v11634_v11 = vpop.xlane.xlu0 %11633 }
0x2348   :  { %v11680_v33 = vmul.f32 0.03125, %v11634_v11 }
0x234a   :  { %v22151_v21 = vsub.f32 %v22024_v31, %v11680_v33 }
0x234b   :  { %v11643_v55 = vpop.xlane.xlu0 %11642 }
0x234c   :  { %v11683_v52 = vmul.f32 0.03125, %v11643_v55 }
0x234f   :  { %v11637_v61 = vpop.xlane.xlu1 %11636  ;;  %v11640_v18 = vpop.xlane.xlu0 %11639 }
0x2350   :  { %v11681_v44 = vmul.f32 0.03125, %v11637_v61  ;;  %v11682_v14 = vmul.f32 0.03125, %v11640_v18 }
0x2352   :  { %v22145_v17 = vsub.f32 %v22038_v8, %v11681_v44  ;;  %v13506_v44 = vld [vmem:[%s22734_s9 + $0x30] sm:$0xff] }
0x2353   :  { %v11649_v32 = vpop.xlane.xlu1 %11648  ;;  %v11646_v63 = vpop.xlane.xlu0 %11645 }
0x23fa   :  { %v15736_v40 = vpop.f32.mrb[164].mxu1 }
0x23fb   :  { %v11440_v24 = vpop.f32.mrb[165].mxu1 }
0x23fc   :  { %15748 = vmatprep.mubr.msk.f32.mxu1 %vm1749_vm3, %v11440_v24 }
0x23fd   :  { %15749 = vmatmul.mubr.msk.f32.vlgmr.msra.gmra.mrb[140].mxu1 %vm1749_vm3, %v15736_v40 }
0x23fe   :  { %v15739_v28 = vpop.f32.mrb[166].mxu1 }
0x23ff   :  { %v11450_v48 = vpop.f32.mrb[167].mxu1 }
0x2400   :  { %15751 = vmatprep.mubr.msk.f32.mxu1 %vm1749_vm3, %v11450_v48  ;;  %v22163_v48 = vsub.f32 %v22033_v1, %v11683_v52  ;;  %v11712_v1 = vmul.f32 %v22151_v21, %v22151_v21 }
0x2401   :  { %15752 = vmatmul.mubr.msk.f32.gmra.mrb[142].mxu1 %vm1749_vm3, %v15739_v28 }
0x2402   :  { %v15742_v34 = vpop.f32.mrb[168].mxu1 }
0x2403   :  { %v11460_v57 = vpop.f32.mrb[169].mxu1 }
0x2404   :  { %15754 = vmatprep.mubr.msk.f32.mxu1 %vm1749_vm3, %v11460_v57  ;;  %v22170_v57 = vsub.f32 %v22041_v12, %v11682_v14  ;;  %v11715_v12 = vmul.f32 %v22163_v48, %v22163_v48 }
0x2405   :  { %15755 = vmatmul.mubr.msk.f32.gmra.mrb[144].mxu1 %vm1749_vm3, %v15742_v34  ;;  %v11685_v34 = vmul.f32 0.03125, %v11649_v32 }
0x2406   :  { %v15745_v13 = vpop.f32.mrb[170].mxu1 }
0x2407   :  { %v11470_v15 = vpop.f32.mrb[171].mxu1  ;;  %v22177_v11 = vsub.f32 %v22056_v46, %v11685_v34 }
0x2408   :  { %15757 = vmatprep.mubr.msk.f32.mxu1 %vm1749_vm3, %v11470_v15  ;;  %v11652_v15 = vpop.xlane.xlu0 %11651 }
0x2409   :  { %15758 = vmatmul.mubr.msk.f32.gmra.mrb[146].mxu1 %vm1749_vm3, %v15745_v13  ;;  %v11684_v13 = vmul.f32 0.03125, %v11646_v63 }
0x24d0   :  { %v15750_v0 = vpop.f32.mrb[140].mxu1 }
0x24d1   :  { %v16672_v45 = vadd.f32 %v15750_v0, %v22019_v35  ;;  %v11569_v4 = vpop.f32.mrb[141].mxu1 }
0x24d2   :  { %v16673_v60 = vadd.f32 %v11569_v4, %v22019_v35  ;;  %v11686_v4 = vmul.f32 0.03125, %v11652_v15 }
0x24d3   :  { %v22115_v42 = vadd.f32 %v16672_v45, %v20927_v49  ;;  %v22795_v49 = vld [vmem:[#allocation9_spill] sm:$0xff]  ;;  %v22183_v45 = vsub.f32 %v22059_v5, %v11684_v13 }
0x24d4   :  { %v22118_v50 = vadd.f32 %v16673_v60, %v22794_v54  ;;  %v15753_v20 = vpop.f32.mrb[142].mxu1  ;;  %v11728_v60 = vsel %vm1523_vm2, %v11712_v1, 0.0  ;;  %v11714_v54 = vmul.f32 %v22170_v57, %v22170_v57 }
0x24d5   :  { %v16674_v47 = vadd.f32 %v15753_v20, %v22019_v35  ;;  %v11579_v27 = vpop.f32.mrb[143].mxu1  ;;  %v11659_v30 = vsel %vm1523_vm2, %v22115_v42, 0.0  ;;  %v11737_v20 = vsel %vm1523_vm2, %v11715_v12, 0.0 }
0x24d6   :  { %v16675_v36 = vadd.f32 %v11579_v27, %v22019_v35  ;;  %11660 = vadd.xlane.f32.xlu1 %v11659_v30  ;;  %v11656_v2 = vsel %vm1523_vm2, %v22118_v50, 0.0  ;;  %v22195_v27 = vsub.f32 %v22071_v58, %v11686_v4  ;;  %v11734_v5 = vsel %vm1523_vm2, %v11714_v54, 0.0 }
0x24d7   :  { %v22127_v10 = vadd.f32 %v16674_v47, %v22795_v49  ;;  %11657 = vadd.xlane.f32.xlu0 %v11656_v2  ;;  %v11717_v47 = vmul.f32 %v22177_v11, %v22177_v11  ;;  %v11716_v30 = vmul.f32 %v22183_v45, %v22183_v45  ;;  %v13504_v49 = vld [vmem:[%s22734_s9 + $0x20] sm:$0xff] }
0x24d8   :  { %v22130_v43 = vadd.f32 %v16675_v36, %v22796_v59  ;;  %v15756_v7 = vpop.f32.mrb[144].mxu1  ;;  %v11718_v2 = vmul.f32 %v22195_v27, %v22195_v27  ;;  %v13505_v59 = vld [vmem:[%s22734_s9 + $0x28] sm:$0xff] }
0x24d9   :  { %v16676_v39 = vadd.f32 %v15756_v7, %v22019_v35  ;;  %v11589_v53 = vpop.f32.mrb[145].mxu1  ;;  %v11665_v29 = vsel %vm1523_vm2, %v22127_v10, 0.0  ;;  %v11743_v61 = vsel %vm1523_vm2, %v11717_v47, 0.0  ;;  %v11740_v36 = vsel %vm1523_vm2, %v11716_v30, 0.0 }
0x24da   :  { %v16677_v38 = vadd.f32 %v11589_v53, %v22019_v35  ;;  %11666 = vadd.xlane.f32.xlu1 %v11665_v29  ;;  %v11662_v37 = vsel %vm1523_vm2, %v22130_v43, 0.0  ;;  %v11746_v18 = vsel %vm1523_vm2, %v11718_v2, 0.0  ;;  %v16610_v7 = vpack.c.bf16 %v13505_v59, %v13504_v49 }
0x24db   :  { %v22139_v9 = vadd.f32 %v16676_v39, %v22797_v62  ;;  %11663 = vadd.xlane.f32.xlu0 %v11662_v37  ;;  %v13507_v39 = vld [vmem:[%s22734_s9 + $0x38] sm:$0xff]  ;;  %v22799_v29 = vmov 0.0|0.0  }
0x24dc   :  { %v22142_v16 = vadd.f32 %v16677_v38, %v22798_v19  ;;  %v15759_v56 = vpop.f32.mrb[146].mxu1  ;;  %16611 = vmatprep.subr.bf16.mxu0 %v16610_v7  ;;  %v16614_v53 = vpack.c.bf16 %v13507_v39, %v13506_v44 }
0x24dd   :  { %v16678_v6 = vadd.f32 %v15759_v56, %v22019_v35  ;;  %v11599_v25 = vpop.f32.mrb[147].mxu1  ;;  %v11671_v23 = vsel %vm1523_vm2, %v22139_v9, 0.0  ;;  %16613 = vmatpush3.bf16.msra.mxu0 %v16610_v7 }
0x24de   :  { %v16679_v40 = vadd.f32 %v11599_v25, %v22019_v35  ;;  %11672 = vadd.xlane.f32.xlu1 %v11671_v23  ;;  %v11668_v24 = vsel %vm1523_vm2, %v22142_v16, 0.0  ;;  %v11713_v35 = vmul.f32 %v22145_v17, %v22145_v17  ;;  %16615 = vmatprep.subr.bf16.mxu0 %v16614_v53 }
0x24df   :  { %v22157_v8 = vadd.f32 %v16678_v6, %v21056_v3  ;;  %11669 = vadd.xlane.f32.xlu0 %v11668_v24  ;;  %v11655_v3 = vpop.xlane.xlu1 %11654 }
0x24e0   :  { %v22160_v28 = vadd.f32 %v16679_v40, %v21041_v51  ;;  %v11687_v0 = vmul.f32 0.03125, %v11655_v3  ;;  %v11731_v55 = vsel %vm1523_vm2, %v11713_v35, 0.0 }
0x24e1   :  { %v11677_v31 = vsel %vm1523_vm2, %v22157_v8, 0.0  ;;  %16617 = vmatpush3.bf16.msra.mxu0 %v16614_v53 }
0x24e2   :  { %11678 = vadd.xlane.f32.xlu1 %v11677_v31  ;;  %v11674_v51 = vsel %vm1523_vm2, %v22160_v28, 0.0  ;;  %v22189_v46 = vsub.f32 %v22068_v41, %v11687_v0  ;;  %16618 = vmatprep.subr.bf16.mxu0 %v22799_v29 }
0x24e3   :  { %11675 = vadd.xlane.f32.xlu0 %v11674_v51 }
0x24e4   :  { %v11719_v41 = vmul.f32 %v22189_v46, %v22189_v46 }
0x24e6   :  { %11732 = vadd.xlane.f32.xlu1 %v11731_v55  ;;  %v11749_v58 = vsel %vm1523_vm2, %v11719_v41, 0.0 }
0x24e7   :  { %11729 = vadd.xlane.f32.xlu0 %v11728_v60 }
0x24ea   :  { %11738 = vadd.xlane.f32.xlu1 %v11737_v20 }
0x24eb   :  { %11735 = vadd.xlane.f32.xlu0 %v11734_v5 }
0x24ee   :  { %11744 = vadd.xlane.f32.xlu1 %v11743_v61 }
0x24ef   :  { %11741 = vadd.xlane.f32.xlu0 %v11740_v36 }
0x24f2   :  { %11750 = vadd.xlane.f32.xlu1 %v11749_v58 }
0x24f3   :  { %11747 = vadd.xlane.f32.xlu0 %v11746_v18 }
0x2563   :  { %v11661_v33 = vpop.xlane.xlu1 %11660 }
0x2564   :  { %v11689_v38 = vmul.f32 0.03125, %v11661_v33  ;;  %v11658_v37 = vpop.xlane.xlu0 %11657 }
0x2565   :  { %v11688_v62 = vmul.f32 0.03125, %v11658_v37 }
0x2566   :  { %v22222_v32 = vsub.f32 %v22115_v42, %v11689_v38 }
0x2567   :  { %v22225_v19 = vsub.f32 %v22118_v50, %v11688_v62  ;;  %v11667_v56 = vpop.xlane.xlu1 %11666 }
0x2568   :  { %v11691_v52 = vmul.f32 0.03125, %v11667_v56  ;;  %v11664_v63 = vpop.xlane.xlu0 %11663  ;;  %v11721_v6 = vmul.f32 %v22222_v32, %v22222_v32 }
0x2569   :  { %v11690_v25 = vmul.f32 0.03125, %v11664_v63  ;;  %v11720_v23 = vmul.f32 %v22225_v19, %v22225_v19 }
0x256a   :  { %v22232_v14 = vsub.f32 %v22127_v10, %v11691_v52  ;;  %v11755_v40 = vsel %vm1523_vm2, %v11721_v6, 0.0 }
0x256b   :  { %v22236_v42 = vsub.f32 %v22130_v43, %v11690_v25  ;;  %v11673_v50 = vpop.xlane.xlu1 %11672  ;;  %11756 = vadd.xlane.f32.xlu1 %v11755_v40  ;;  %v11752_v24 = vsel %vm1523_vm2, %v11720_v23, 0.0  ;;  %v22800_v25 = vsub.s32 1, %v19819_v22 }
0x256c   :  { %v11693_v34 = vmul.f32 0.03125, %v11673_v50  ;;  %11753 = vadd.xlane.f32.xlu0 %v11752_v24  ;;  %v11670_v31 = vpop.xlane.xlu0 %11669  ;;  %v11723_v35 = vmul.f32 %v22232_v14, %v22232_v14 }
0x256d   :  { %v11692_v13 = vmul.f32 0.03125, %v11670_v31  ;;  %v11722_v10 = vmul.f32 %v22236_v42, %v22236_v42  ;;  %v22272_v23 = vrot.slane %v22014_v26, %v22800_v25 }
0x256e   :  { %v22244_v3 = vsub.f32 %v22139_v9, %v11693_v34  ;;  %v11761_v43 = vsel %vm1523_vm2, %v11723_v35, 0.0 }
0x256f   :  { %v22248_v51 = vsub.f32 %v22142_v16, %v11692_v13  ;;  %11762 = vadd.xlane.f32.xlu1 %v11761_v43  ;;  %v11679_v1 = vpop.xlane.xlu1 %11678  ;;  %v11758_v15 = vsel %vm1523_vm2, %v11722_v10, 0.0  ;;  %v22801_v13 = vsub.s32 2, %v19819_v22 }
0x2570   :  { %v11695_v0 = vmul.f32 0.03125, %v11679_v1  ;;  %11759 = vadd.xlane.f32.xlu0 %v11758_v15  ;;  %v11676_v55 = vpop.xlane.xlu0 %11675  ;;  %v11725_v12 = vmul.f32 %v22244_v3, %v22244_v3 }
0x2571   :  { %v11694_v4 = vmul.f32 0.03125, %v11676_v55  ;;  %v11724_v9 = vmul.f32 %v22248_v51, %v22248_v51  ;;  %v22278_v10 = vrot.slane %v22014_v26, %v22801_v13 }
0x2572   :  { %v22256_v60 = vsub.f32 %v22157_v8, %v11695_v0  ;;  %v11767_v16 = vsel %vm1523_vm2, %v11725_v12, 0.0 }
0x2573   :  { %v22260_v54 = vsub.f32 %v22160_v28, %v11694_v4  ;;  %11768 = vadd.xlane.f32.xlu1 %v11767_v16  ;;  %v11733_v20 = vpop.xlane.xlu1 %11732  ;;  %v11764_v47 = vsel %vm1523_vm2, %v11724_v9, 0.0 }
0x2574   :  { %v11777_v5 = vmul.f32 0.03125, %v11733_v20  ;;  %11765 = vadd.xlane.f32.xlu0 %v11764_v47  ;;  %v11730_v30 = vpop.xlane.xlu0 %11729  ;;  %v11727_v61 = vmul.f32 %v22256_v60, %v22256_v60 }
0x2575   :  { %v11776_v41 = vmul.f32 0.03125, %v11730_v30  ;;  %v11726_v8 = vmul.f32 %v22260_v54, %v22260_v54 }
0x2576   :  { %v11793_v36 = vadd.f32 1e-05, %v11777_v5  ;;  %v11773_v2 = vsel %vm1523_vm2, %v11727_v61, 0.0 }
0x2577   :  { %v11792_v58 = vadd.f32 1e-05, %v11776_v41  ;;  %11774 = vadd.xlane.f32.xlu1 %v11773_v2  ;;  %v11739_v28 = vpop.xlane.xlu1 %11738  ;;  %v11770_v18 = vsel %vm1523_vm2, %v11726_v8, 0.0 }
0x2578   :  { %18059 = vrsqrt.f32 %v11793_v36  ;;  %v11779_v49 = vmul.f32 0.03125, %v11739_v28  ;;  %11771 = vadd.xlane.f32.xlu0 %v11770_v18  ;;  %v11736_v59 = vpop.xlane.xlu0 %11735 }
0x2579   :  { %18061 = vrsqrt.f32 %v11792_v58  ;;  %v11778_v7 = vmul.f32 0.03125, %v11736_v59 }
0x257a   :  { %v11795_v44 = vadd.f32 1e-05, %v11779_v49 }
0x257b   :  { %v11794_v39 = vadd.f32 1e-05, %v11778_v7  ;;  %v11745_v53 = vpop.xlane.xlu1 %11744 }
0x257c   :  { %18063 = vrsqrt.f32 %v11795_v44  ;;  %v11781_v33 = vmul.f32 0.03125, %v11745_v53  ;;  %v11742_v38 = vpop.xlane.xlu0 %11741 }
0x257d   :  { %18065 = vrsqrt.f32 %v11794_v39  ;;  %v11780_v37 = vmul.f32 0.03125, %v11742_v38 }
0x257e   :  { %v11797_v62 = vadd.f32 1e-05, %v11781_v33 }
0x257f   :  { %v11796_v56 = vadd.f32 1e-05, %v11780_v37  ;;  %v11751_v52 = vpop.xlane.xlu1 %11750 }
0x2580   :  { %18067 = vrsqrt.f32 %v11797_v62  ;;  %v11783_v63 = vmul.f32 0.03125, %v11751_v52  ;;  %v11748_v6 = vpop.xlane.xlu0 %11747 }
0x2581   :  { %18069 = vrsqrt.f32 %v11796_v56  ;;  %v11782_v40 = vmul.f32 0.03125, %v11748_v6 }
0x2582   :  { %v18060_v50 = vpop.eup %18059  ;;  %v11799_v24 = vadd.f32 1e-05, %v11783_v63 }
0x2583   :  { %v18062_v34 = vpop.eup %18061  ;;  %v11825_v31 = vmul.f32 %v18060_v50, %v22145_v17  ;;  %v11798_v35 = vadd.f32 1e-05, %v11782_v40 }
0x2584   :  { %18071 = vrsqrt.f32 %v11799_v24  ;;  %v11824_v43 = vmul.f32 %v18062_v34, %v22151_v21 }
0x2585   :  { %v11845_v1 = vmul.f32 %v22272_v23, %v11825_v31  ;;  %18073 = vrsqrt.f32 %v11798_v35 }
0x2586   :  { %v18064_v15 = vpop.eup %18063  ;;  %v11844_v0 = vmul.f32 %v22272_v23, %v11824_v43 }
0x2587   :  { %v18066_v55 = vpop.eup %18065  ;;  %v11827_v12 = vmul.f32 %v18064_v15, %v22163_v48  ;;  %v22289_v9 = vadd.f32 %v22278_v10, %v11845_v1 }
0x2588   :  { %v22285_v17 = vadd.f32 %v22278_v10, %v11844_v0  ;;  %v11826_v4 = vmul.f32 %v18066_v55, %v22170_v57 }
0x2589   :  { %v11847_v16 = vmul.f32 %v22272_v23, %v11827_v12 }
0x258a   :  { %v18068_v21 = vpop.eup %18067  ;;  %15768 = vmatprep.mubr.msk.f32.mxu0 %vm1523_vm2, %v22285_v17  ;;  %v11846_v20 = vmul.f32 %v22272_v23, %v11826_v4 }
0x258b   :  { %v18070_v47 = vpop.eup %18069  ;;  %15769 = vmatmul.mubr.msk.f32.vlgmr.msra.gmra.mrb[188].mxu0 %vm1523_vm2, %v22289_v9  ;;  %v11829_v48 = vmul.f32 %v18068_v21, %v22177_v11  ;;  %v22303_v30 = vadd.f32 %v22278_v10, %v11847_v16 }
0x258c   :  { %v22299_v5 = vadd.f32 %v22278_v10, %v11846_v20  ;;  %v11828_v57 = vmul.f32 %v18070_v47, %v22183_v45 }
0x258d   :  { %v11849_v61 = vmul.f32 %v22272_v23, %v11829_v48 }
0x258e   :  { %v18072_v41 = vpop.eup %18071  ;;  %15771 = vmatprep.mubr.msk.f32.mxu0 %vm1523_vm2, %v22299_v5  ;;  %v11848_v8 = vmul.f32 %v22272_v23, %v11828_v57 }
0x258f   :  { %v18074_v36 = vpop.eup %18073  ;;  %15772 = vmatmul.mubr.msk.f32.gmra.mrb[190].mxu0 %vm1523_vm2, %v22303_v30  ;;  %v11831_v11 = vmul.f32 %v18072_v41, %v22189_v46  ;;  %v22317_v58 = vadd.f32 %v22278_v10, %v11849_v61 }
0x2590   :  { %v22313_v2 = vadd.f32 %v22278_v10, %v11848_v8  ;;  %v11830_v45 = vmul.f32 %v18074_v36, %v22195_v27  ;;  %v13526_v27 = vld [vmem:[%s22736_s11 + $0x2] sm:$0x3] }
0x2591   :  { %v11851_v28 = vmul.f32 %v22272_v23, %v11831_v11  ;;  %15792 = vmatprep.subr.msk.mxu1 %vm6626_vm6, %v13526_v27 }
0x2592   :  { %15774 = vmatprep.mubr.msk.f32.mxu0 %vm1523_vm2, %v22313_v2  ;;  %v11850_v18 = vmul.f32 %v22272_v23, %v11830_v45  ;;  %15793 = vmatpush3.msk.msra.mxu1 %vm6626_vm6, %v13526_v27 }
0x2593   :  { %15775 = vmatmul.mubr.msk.f32.gmra.mrb[192].mxu0 %vm1523_vm2, %v22317_v58  ;;  %v22329_v49 = vadd.f32 %v22278_v10, %v11851_v28 }
0x2594   :  { %v22326_v46 = vadd.f32 %v22278_v10, %v11850_v18 }
0x2596   :  { %15777 = vmatprep.mubr.msk.f32.mxu0 %vm1523_vm2, %v22326_v46 }
0x2597   :  { %15778 = vmatmul.mubr.msk.f32.gmra.mrb[194].mxu0 %vm1523_vm2, %v22329_v49 }
0x25f8   :  { %v11757_v59 = vpop.xlane.xlu1 %11756 }
0x25f9   :  { %v11785_v7 = vmul.f32 0.03125, %v11757_v59  ;;  %v11754_v44 = vpop.xlane.xlu0 %11753 }
0x25fa   :  { %v11784_v39 = vmul.f32 0.03125, %v11754_v44 }
0x25fb   :  { %v11801_v53 = vadd.f32 1e-05, %v11785_v7 }
0x25fc   :  { %v11800_v33 = vadd.f32 1e-05, %v11784_v39  ;;  %v11763_v38 = vpop.xlane.xlu1 %11762 }
0x25fd   :  { %18075 = vrsqrt.f32 %v11801_v53  ;;  %v11787_v37 = vmul.f32 0.03125, %v11763_v38  ;;  %v11760_v62 = vpop.xlane.xlu0 %11759 }
0x25fe   :  { %18077 = vrsqrt.f32 %v11800_v33  ;;  %v11786_v56 = vmul.f32 0.03125, %v11760_v62 }
0x25ff   :  { %v11803_v52 = vadd.f32 1e-05, %v11787_v37 }
0x2600   :  { %v11802_v63 = vadd.f32 1e-05, %v11786_v56  ;;  %v11769_v6 = vpop.xlane.xlu1 %11768 }
0x2601   :  { %18079 = vrsqrt.f32 %v11803_v52  ;;  %v11789_v25 = vmul.f32 0.03125, %v11769_v6  ;;  %v11766_v40 = vpop.xlane.xlu0 %11765 }
0x2602   :  { %18081 = vrsqrt.f32 %v11802_v63  ;;  %v11788_v50 = vmul.f32 0.03125, %v11766_v40 }
0x2603   :  { %v11805_v24 = vadd.f32 1e-05, %v11789_v25 }
0x2604   :  { %v11804_v34 = vadd.f32 1e-05, %v11788_v50  ;;  %v11775_v31 = vpop.xlane.xlu1 %11774 }
0x2605   :  { %18083 = vrsqrt.f32 %v11805_v24  ;;  %v11791_v35 = vmul.f32 0.03125, %v11775_v31  ;;  %v11772_v13 = vpop.xlane.xlu0 %11771 }
0x2606   :  { %18085 = vrsqrt.f32 %v11804_v34  ;;  %v11790_v43 = vmul.f32 0.03125, %v11772_v13 }
0x2607   :  { %v18076_v1 = vpop.eup %18075  ;;  %v11807_v15 = vadd.f32 1e-05, %v11791_v35 }
0x2608   :  { %v18078_v0 = vpop.eup %18077  ;;  %v11806_v55 = vadd.f32 1e-05, %v11790_v43  ;;  %v11833_v12 = vmul.f32 %v18076_v1, %v22222_v32 }
0x2609   :  { %18087 = vrsqrt.f32 %v11807_v15  ;;  %v11832_v4 = vmul.f32 %v18078_v0, %v22225_v19 }
0x260a   :  { %18089 = vrsqrt.f32 %v11806_v55  ;;  %v11853_v16 = vmul.f32 %v22272_v23, %v11833_v12 }
0x260b   :  { %v18080_v21 = vpop.eup %18079  ;;  %v11852_v20 = vmul.f32 %v22272_v23, %v11832_v4 }
0x260c   :  { %v18082_v47 = vpop.eup %18081  ;;  %v11835_v48 = vmul.f32 %v18080_v21, %v22232_v14  ;;  %v22350_v41 = vadd.f32 %v22278_v10, %v11853_v16 }
0x260d   :  { %v22346_v57 = vadd.f32 %v22278_v10, %v11852_v20  ;;  %v11834_v61 = vmul.f32 %v18082_v47, %v22236_v42 }
0x260e   :  { %v11855_v32 = vmul.f32 %v22272_v23, %v11835_v48 }
0x260f   :  { %v18084_v19 = vpop.eup %18083  ;;  %15780 = vmatprep.mubr.msk.f32.mxu0 %vm1523_vm2, %v22346_v57  ;;  %v11854_v8 = vmul.f32 %v22272_v23, %v11834_v61 }
0x2610   :  { %v18086_v36 = vpop.eup %18085  ;;  %15781 = vmatmul.mubr.msk.f32.gmra.mrb[196].mxu0 %vm1523_vm2, %v22350_v41  ;;  %v11837_v14 = vmul.f32 %v18084_v19, %v22244_v3  ;;  %v22364_v45 = vadd.f32 %v22278_v10, %v11855_v32 }
0x2611   :  { %v22360_v11 = vadd.f32 %v22278_v10, %v11854_v8  ;;  %v11836_v42 = vmul.f32 %v18086_v36, %v22248_v51 }
0x2612   :  { %v11857_v28 = vmul.f32 %v22272_v23, %v11837_v14 }
0x2613   :  { %v18088_v18 = vpop.eup %18087  ;;  %15783 = vmatprep.mubr.msk.f32.mxu0 %vm1523_vm2, %v22360_v11  ;;  %v11856_v27 = vmul.f32 %v22272_v23, %v11836_v42 }
0x2614   :  { %v18090_v59 = vpop.eup %18089  ;;  %15784 = vmatmul.mubr.msk.f32.gmra.mrb[198].mxu0 %vm1523_vm2, %v22364_v45  ;;  %v11839_v3 = vmul.f32 %v18088_v18, %v22256_v60  ;;  %v22378_v44 = vadd.f32 %v22278_v10, %v11857_v28 }
0x2615   :  { %v22374_v7 = vadd.f32 %v22278_v10, %v11856_v27  ;;  %v11838_v51 = vmul.f32 %v18090_v59, %v22260_v54  ;;  %v13509_v54 = vld [vmem:[%s22735_s10 + $0x1] ss:$0 sm:$0xff] }
0x2616   :  { %v11859_v39 = vmul.f32 %v22272_v23, %v11839_v3 }
0x2617   :  { %15786 = vmatprep.mubr.msk.f32.mxu0 %vm1523_vm2, %v22374_v7  ;;  %v11858_v53 = vmul.f32 %v22272_v23, %v11838_v51 }
0x2618   :  { %15787 = vmatmul.mubr.msk.f32.gmra.mrb[200].mxu0 %vm1523_vm2, %v22378_v44  ;;  %v22390_v33 = vadd.f32 %v22278_v10, %v11859_v39 }
0x2619   :  { %v22387_v60 = vadd.f32 %v22278_v10, %v11858_v53 }
0x261b   :  { %15789 = vmatprep.mubr.msk.f32.mxu0 %vm1523_vm2, %v22387_v60 }
0x261c   :  { %15790 = vmatmul.mubr.msk.f32.gmra.mrb[202].mxu0 %vm1523_vm2, %v22390_v33 }
0x265e   :  { %v15770_v23 = vpop.f32.mrb[188].mxu0 }
0x265f   :  { %v12013_v38 = vadd.f32 %v15770_v23, %v13509_v54  ;;  %v12007_v37 = vpop.f32.mrb[189].mxu0 }
0x2660   :  { %v12008_v62 = vadd.f32 %v13509_v54, %v12007_v37 }
0x2661   :  { %v12087_v63 = vmax.f32 %v12013_v38, 0.0 }
0x2662   :  { %v12086_v56 = vmax.f32 %v12008_v62, 0.0  ;;  %v15773_v52 = vpop.f32.mrb[190].mxu0 }
0x2663   :  { %v12023_v6 = vadd.f32 %v15773_v52, %v13509_v54  ;;  %v12017_v10 = vpop.f32.mrb[191].mxu0 }
0x2664   :  { %v12018_v25 = vadd.f32 %v13509_v54, %v12017_v10  ;;  %15794 = vmatprep.mubr.msk.f32.mxu1 %vm6577_vm7, %v12086_v56  ;;  %v22802_v56 = vsub.s32 3, %v19819_v22 }
0x2665   :  { %15795 = vmatmul.mubr.msk.f32.vlgmr.msra.gmra.mrb[172].mxu1 %vm6577_vm7, %v12087_v63  ;;  %v12089_v24 = vmax.f32 %v12023_v6, 0.0 }
0x2666   :  { %v12088_v40 = vmax.f32 %v12018_v25, 0.0  ;;  %v15776_v50 = vpop.f32.mrb[192].mxu0  ;;  %v22418_v52 = vrot.slane %v22014_v26, %v22802_v56 }
0x2667   :  { %v12033_v34 = vadd.f32 %v15776_v50, %v13509_v54  ;;  %v12027_v31 = vpop.f32.mrb[193].mxu0 }
0x2668   :  { %v12028_v35 = vadd.f32 %v13509_v54, %v12027_v31  ;;  %15797 = vmatprep.mubr.msk.f32.mxu1 %vm6577_vm7, %v12088_v40 }
0x2669   :  { %15798 = vmatmul.mubr.msk.f32.gmra.mrb[174].mxu1 %vm6577_vm7, %v12089_v24  ;;  %v12091_v1 = vmax.f32 %v12033_v34, 0.0 }
0x266a   :  { %v12090_v13 = vmax.f32 %v12028_v35, 0.0  ;;  %v15779_v43 = vpop.f32.mrb[194].mxu0 }
0x266b   :  { %v12043_v15 = vadd.f32 %v15779_v43, %v13509_v54  ;;  %v12037_v0 = vpop.f32.mrb[195].mxu0 }
0x266c   :  { %v12038_v55 = vadd.f32 %v13509_v54, %v12037_v0  ;;  %15800 = vmatprep.mubr.msk.f32.mxu1 %vm6577_vm7, %v12090_v13 }
0x266d   :  { %15801 = vmatmul.mubr.msk.f32.gmra.mrb[176].mxu1 %vm6577_vm7, %v12091_v1  ;;  %v12093_v4 = vmax.f32 %v12043_v15, 0.0 }
0x266e   :  { %v12092_v12 = vmax.f32 %v12038_v55, 0.0 }
0x2670   :  { %15803 = vmatprep.mubr.msk.f32.mxu1 %vm6577_vm7, %v12092_v12 }
0x2671   :  { %15804 = vmatmul.mubr.msk.f32.gmra.mrb[178].mxu1 %vm6577_vm7, %v12093_v4 }
0x26e3   :  { %v15782_v16 = vpop.f32.mrb[196].mxu0 }
0x26e4   :  { %v12053_v21 = vadd.f32 %v15782_v16, %v13509_v54  ;;  %v12047_v20 = vpop.f32.mrb[197].mxu0 }
0x26e5   :  { %v12048_v47 = vadd.f32 %v13509_v54, %v12047_v20 }
0x26e6   :  { %v12095_v32 = vmax.f32 %v12053_v21, 0.0 }
0x26e7   :  { %v12094_v48 = vmax.f32 %v12048_v47, 0.0  ;;  %v15785_v61 = vpop.f32.mrb[198].mxu0 }
0x26e8   :  { %v12063_v19 = vadd.f32 %v15785_v61, %v13509_v54  ;;  %v12057_v8 = vpop.f32.mrb[199].mxu0 }
0x26e9   :  { %v12058_v36 = vadd.f32 %v13509_v54, %v12057_v8  ;;  %15806 = vmatprep.mubr.msk.f32.mxu1 %vm6577_vm7, %v12094_v48 }
0x26ea   :  { %15807 = vmatmul.mubr.msk.f32.gmra.mrb[180].mxu1 %vm6577_vm7, %v12095_v32  ;;  %v12097_v28 = vmax.f32 %v12063_v19, 0.0 }
0x26eb   :  { %v12096_v14 = vmax.f32 %v12058_v36, 0.0  ;;  %v15788_v42 = vpop.f32.mrb[200].mxu0 }
0x26ec   :  { %v12073_v18 = vadd.f32 %v15788_v42, %v13509_v54  ;;  %v12067_v27 = vpop.f32.mrb[201].mxu0 }
0x26ed   :  { %v12068_v59 = vadd.f32 %v13509_v54, %v12067_v27  ;;  %15809 = vmatprep.mubr.msk.f32.mxu1 %vm6577_vm7, %v12096_v14 }
0x26ee   :  { %15810 = vmatmul.mubr.msk.f32.gmra.mrb[182].mxu1 %vm6577_vm7, %v12097_v28  ;;  %v12099_v39 = vmax.f32 %v12073_v18, 0.0 }
0x26ef   :  { %v12098_v3 = vmax.f32 %v12068_v59, 0.0  ;;  %v15791_v51 = vpop.f32.mrb[202].mxu0 }
0x26f0   :  { %v12083_v53 = vadd.f32 %v15791_v51, %v13509_v54  ;;  %v12077_v23 = vpop.f32.mrb[203].mxu0 }
0x26f1   :  { %v12078_v38 = vadd.f32 %v13509_v54, %v12077_v23  ;;  %15812 = vmatprep.mubr.msk.f32.mxu1 %vm6577_vm7, %v12098_v3 }
0x26f2   :  { %15813 = vmatmul.mubr.msk.f32.gmra.mrb[184].mxu1 %vm6577_vm7, %v12099_v39  ;;  %v12101_v62 = vmax.f32 %v12083_v53, 0.0 }
0x26f3   :  { %v12100_v37 = vmax.f32 %v12078_v38, 0.0 }
0x26f5   :  { %15815 = vmatprep.mubr.msk.f32.mxu1 %vm6577_vm7, %v12100_v37 }
0x26f6   :  { %15816 = vmatmul.mubr.msk.f32.gmra.mrb[186].mxu1 %vm6577_vm7, %v12101_v62 }
0x2738   :  { %v15796_v63 = vpop.f32.mrb[172].mxu1 }
0x2739   :  { %v12231_v6 = vadd.f32 %v15796_v63, %v22418_v52  ;;  %v12225_v10 = vpop.f32.mrb[173].mxu1 }
0x273a   :  { %v12226_v54 = vadd.f32 %v12225_v10, %v22418_v52 }
0x273b   :  { %v22423_v25 = vadd.f32 %v12231_v6, %v22289_v9 }
0x273c   :  { %v22426_v40 = vadd.f32 %v12226_v54, %v22285_v17  ;;  %v15799_v50 = vpop.f32.mrb[174].mxu1 }
0x273d   :  { %v12241_v24 = vadd.f32 %v15799_v50, %v22418_v52  ;;  %v12235_v34 = vpop.f32.mrb[175].mxu1  ;;  %v12323_v26 = vsel %vm1523_vm2, %v22423_v25, 0.0 }
0x273e   :  { %v12236_v31 = vadd.f32 %v12235_v34, %v22418_v52  ;;  %12324 = vadd.xlane.f32.xlu1 %v12323_v26  ;;  %v12320_v35 = vsel %vm1523_vm2, %v22426_v40, 0.0 }
0x273f   :  { %v22435_v13 = vadd.f32 %v12241_v24, %v22303_v30  ;;  %12321 = vadd.xlane.f32.xlu0 %v12320_v35 }
0x2740   :  { %v22438_v17 = vadd.f32 %v12236_v31, %v22299_v5  ;;  %v15802_v9 = vpop.f32.mrb[176].mxu1 }
0x2741   :  { %v12251_v43 = vadd.f32 %v15802_v9, %v22418_v52  ;;  %v12245_v1 = vpop.f32.mrb[177].mxu1  ;;  %v12329_v15 = vsel %vm1523_vm2, %v22435_v13, 0.0 }
0x2742   :  { %v12246_v0 = vadd.f32 %v12245_v1, %v22418_v52  ;;  %12330 = vadd.xlane.f32.xlu1 %v12329_v15  ;;  %v12326_v55 = vsel %vm1523_vm2, %v22438_v17, 0.0 }
0x2743   :  { %v22447_v30 = vadd.f32 %v12251_v43, %v22317_v58  ;;  %12327 = vadd.xlane.f32.xlu0 %v12326_v55 }
0x2744   :  { %v22450_v5 = vadd.f32 %v12246_v0, %v22313_v2  ;;  %v15805_v12 = vpop.f32.mrb[178].mxu1 }
0x2745   :  { %v12261_v4 = vadd.f32 %v15805_v12, %v22418_v52  ;;  %v12255_v16 = vpop.f32.mrb[179].mxu1  ;;  %v12335_v21 = vsel %vm1523_vm2, %v22447_v30, 0.0 }
0x2746   :  { %v12256_v20 = vadd.f32 %v12255_v16, %v22418_v52  ;;  %12336 = vadd.xlane.f32.xlu1 %v12335_v21  ;;  %v12332_v47 = vsel %vm1523_vm2, %v22450_v5, 0.0 }
0x2747   :  { %v22459_v58 = vadd.f32 %v12261_v4, %v22329_v49  ;;  %12333 = vadd.xlane.f32.xlu0 %v12332_v47 }
0x2748   :  { %v22462_v2 = vadd.f32 %v12256_v20, %v22326_v46 }
0x2749   :  { %v12341_v48 = vsel %vm1523_vm2, %v22459_v58, 0.0 }
0x274a   :  { %12342 = vadd.xlane.f32.xlu1 %v12341_v48  ;;  %v12338_v61 = vsel %vm1523_vm2, %v22462_v2, 0.0 }
0x274b   :  { %12339 = vadd.xlane.f32.xlu0 %v12338_v61 }
0x27bd   :  { %v15808_v32 = vpop.f32.mrb[180].mxu1 }
0x27be   :  { %v12271_v19 = vadd.f32 %v15808_v32, %v22418_v52  ;;  %v12265_v8 = vpop.f32.mrb[181].mxu1 }
0x27bf   :  { %v12266_v36 = vadd.f32 %v12265_v8, %v22418_v52 }
0x27c0   :  { %v22471_v49 = vadd.f32 %v12271_v19, %v22350_v41 }
0x27c1   :  { %v22474_v46 = vadd.f32 %v12266_v36, %v22346_v57  ;;  %v15811_v14 = vpop.f32.mrb[182].mxu1 }
0x27c2   :  { %v12281_v42 = vadd.f32 %v15811_v14, %v22418_v52  ;;  %v12275_v28 = vpop.f32.mrb[183].mxu1  ;;  %v12347_v18 = vsel %vm1523_vm2, %v22471_v49, 0.0 }
0x27c3   :  { %v12276_v27 = vadd.f32 %v12275_v28, %v22418_v52  ;;  %12348 = vadd.xlane.f32.xlu1 %v12347_v18  ;;  %v12344_v59 = vsel %vm1523_vm2, %v22474_v46, 0.0 }
0x27c4   :  { %v22483_v3 = vadd.f32 %v12281_v42, %v22364_v45  ;;  %12345 = vadd.xlane.f32.xlu0 %v12344_v59 }
0x27c5   :  { %v22486_v57 = vadd.f32 %v12276_v27, %v22360_v11  ;;  %v15814_v41 = vpop.f32.mrb[184].mxu1 }
0x27c6   :  { %v12291_v51 = vadd.f32 %v15814_v41, %v22418_v52  ;;  %v12285_v39 = vpop.f32.mrb[185].mxu1  ;;  %v12353_v53 = vsel %vm1523_vm2, %v22483_v3, 0.0 }
0x27c7   :  { %v12286_v23 = vadd.f32 %v12285_v39, %v22418_v52  ;;  %12354 = vadd.xlane.f32.xlu1 %v12353_v53  ;;  %v12350_v38 = vsel %vm1523_vm2, %v22486_v57, 0.0 }
0x27c8   :  { %v22495_v45 = vadd.f32 %v12291_v51, %v22378_v44  ;;  %12351 = vadd.xlane.f32.xlu0 %v12350_v38 }
0x27c9   :  { %v22498_v11 = vadd.f32 %v12286_v23, %v22374_v7  ;;  %v15817_v37 = vpop.f32.mrb[186].mxu1 }
0x27ca   :  { %v12301_v62 = vadd.f32 %v15817_v37, %v22418_v52  ;;  %v12295_v56 = vpop.f32.mrb[187].mxu1  ;;  %v12359_v63 = vsel %vm1523_vm2, %v22495_v45, 0.0 }
0x27cb   :  { %v12296_v6 = vadd.f32 %v12295_v56, %v22418_v52  ;;  %v12325_v10 = vpop.xlane.xlu1 %12324  ;;  %12360 = vadd.xlane.f32.xlu1 %v12359_v63  ;;  %v12356_v54 = vsel %vm1523_vm2, %v22498_v11, 0.0 }
0x27cc   :  { %v22507_v44 = vadd.f32 %v12301_v62, %v22390_v33  ;;  %v12369_v50 = vmul.f32 0.03125, %v12325_v10  ;;  %12357 = vadd.xlane.f32.xlu0 %v12356_v54  ;;  %v12322_v7 = vpop.xlane.xlu0 %12321 }
0x27cd   :  { %v22510_v24 = vadd.f32 %v12296_v6, %v22387_v60  ;;  %v12368_v34 = vmul.f32 0.03125, %v12322_v7 }
0x27ce   :  { %v22513_v26 = vsub.f32 %v22423_v25, %v12369_v50  ;;  %v12365_v52 = vsel %vm1523_vm2, %v22507_v44, 0.0 }
0x27cf   :  { %v22518_v31 = vsub.f32 %v22426_v40, %v12368_v34  ;;  %v12331_v35 = vpop.xlane.xlu1 %12330  ;;  %12366 = vadd.xlane.f32.xlu1 %v12365_v52  ;;  %v12362_v33 = vsel %vm1523_vm2, %v22510_v24, 0.0 }
0x27d0   :  { %v12371_v9 = vmul.f32 0.03125, %v12331_v35  ;;  %12363 = vadd.xlane.f32.xlu0 %v12362_v33  ;;  %v12328_v43 = vpop.xlane.xlu0 %12327  ;;  %v12401_v60 = vmul.f32 %v22513_v26, %v22513_v26 }
0x27d1   :  { %v12370_v1 = vmul.f32 0.03125, %v12328_v43  ;;  %v12400_v25 = vmul.f32 %v22518_v31, %v22518_v31 }
0x27d2   :  { %v22527_v15 = vsub.f32 %v22435_v13, %v12371_v9  ;;  %v12419_v40 = vsel %vm1523_vm2, %v12401_v60, 0.0 }
0x27d3   :  { %v22531_v0 = vsub.f32 %v22438_v17, %v12370_v1  ;;  %v12337_v55 = vpop.xlane.xlu1 %12336  ;;  %12420 = vadd.xlane.f32.xlu1 %v12419_v40  ;;  %v12416_v12 = vsel %vm1523_vm2, %v12400_v25, 0.0 }
0x27d4   :  { %v12373_v4 = vmul.f32 0.03125, %v12337_v55  ;;  %12417 = vadd.xlane.f32.xlu0 %v12416_v12  ;;  %v12334_v16 = vpop.xlane.xlu0 %12333  ;;  %v12403_v21 = vmul.f32 %v22527_v15, %v22527_v15 }
0x27d5   :  { %v12372_v20 = vmul.f32 0.03125, %v12334_v16  ;;  %v12402_v13 = vmul.f32 %v22531_v0, %v22531_v0 }
0x27d6   :  { %v22539_v47 = vsub.f32 %v22447_v30, %v12373_v4  ;;  %v12425_v17 = vsel %vm1523_vm2, %v12403_v21, 0.0 }
0x27d7   :  { %v22543_v48 = vsub.f32 %v22450_v5, %v12372_v20  ;;  %v12343_v61 = vpop.xlane.xlu1 %12342  ;;  %12426 = vadd.xlane.f32.xlu1 %v12425_v17  ;;  %v12422_v32 = vsel %vm1523_vm2, %v12402_v13, 0.0 }
0x27d8   :  { %v12375_v19 = vmul.f32 0.03125, %v12343_v61  ;;  %12423 = vadd.xlane.f32.xlu0 %v12422_v32  ;;  %v12340_v8 = vpop.xlane.xlu0 %12339  ;;  %v12405_v36 = vmul.f32 %v22539_v47, %v22539_v47 }
0x27d9   :  { %v12374_v14 = vmul.f32 0.03125, %v12340_v8  ;;  %v12404_v30 = vmul.f32 %v22543_v48, %v22543_v48 }
0x27da   :  { %v22551_v42 = vsub.f32 %v22459_v58, %v12375_v19  ;;  %v12431_v5 = vsel %vm1523_vm2, %v12405_v36, 0.0 }
0x27db   :  { %v22555_v28 = vsub.f32 %v22462_v2, %v12374_v14  ;;  %12432 = vadd.xlane.f32.xlu1 %v12431_v5  ;;  %v12428_v18 = vsel %vm1523_vm2, %v12404_v30, 0.0 }
0x27dc   :  { %12429 = vadd.xlane.f32.xlu0 %v12428_v18  ;;  %v12407_v27 = vmul.f32 %v22551_v42, %v22551_v42 }
0x27dd   :  { %v12406_v59 = vmul.f32 %v22555_v28, %v22555_v28 }
0x27de   :  { %v12437_v41 = vsel %vm1523_vm2, %v12407_v27, 0.0 }
0x27df   :  { %12438 = vadd.xlane.f32.xlu1 %v12437_v41  ;;  %v12434_v58 = vsel %vm1523_vm2, %v12406_v59, 0.0 }
0x27e0   :  { %12435 = vadd.xlane.f32.xlu0 %v12434_v58 }
0x2850   :  { %v12349_v51 = vpop.xlane.xlu1 %12348 }
0x2851   :  { %v12377_v39 = vmul.f32 0.03125, %v12349_v51  ;;  %v12346_v2 = vpop.xlane.xlu0 %12345 }
0x2852   :  { %v12376_v53 = vmul.f32 0.03125, %v12346_v2 }
0x2853   :  { %v22565_v23 = vsub.f32 %v22471_v49, %v12377_v39 }
0x2854   :  { %v22568_v38 = vsub.f32 %v22474_v46, %v12376_v53  ;;  %v12355_v37 = vpop.xlane.xlu1 %12354 }
0x2855   :  { %v12379_v62 = vmul.f32 0.03125, %v12355_v37  ;;  %v12352_v56 = vpop.xlane.xlu0 %12351  ;;  %v12409_v63 = vmul.f32 %v22565_v23, %v22565_v23 }
0x2856   :  { %v12378_v6 = vmul.f32 0.03125, %v12352_v56  ;;  %v12408_v10 = vmul.f32 %v22568_v38, %v22568_v38 }
0x2857   :  { %v22575_v54 = vsub.f32 %v22483_v3, %v12379_v62  ;;  %v12443_v50 = vsel %vm1523_vm2, %v12409_v63, 0.0 }
0x2858   :  { %v22579_v49 = vsub.f32 %v22486_v57, %v12378_v6  ;;  %v12361_v46 = vpop.xlane.xlu1 %12360  ;;  %12444 = vadd.xlane.f32.xlu1 %v12443_v50  ;;  %v12440_v7 = vsel %vm1523_vm2, %v12408_v10, 0.0  ;;  %v18134_v6 = vld [vmem:[%s22737_s12 + $0x8] sm:$0x3f]  ;;  %v22803_v10 = vsub.s32 4, %v19819_v22 }
0x2859   :  { %v12381_v34 = vmul.f32 0.03125, %v12361_v46  ;;  %12441 = vadd.xlane.f32.xlu0 %v12440_v7  ;;  %v12358_v52 = vpop.xlane.xlu0 %12357  ;;  %v12411_v35 = vmul.f32 %v22575_v54, %v22575_v54 }
0x285a   :  { %v12380_v33 = vmul.f32 0.03125, %v12358_v52  ;;  %v12410_v3 = vmul.f32 %v22579_v49, %v22579_v49  ;;  %v22617_v50 = vrot.slane %v18134_v6, %v22803_v10 }
0x285b   :  { %v22587_v9 = vsub.f32 %v22495_v45, %v12381_v34  ;;  %v12449_v57 = vsel %vm1523_vm2, %v12411_v35, 0.0 }
0x285c   :  { %v22591_v43 = vsub.f32 %v22498_v11, %v12380_v33  ;;  %12450 = vadd.xlane.f32.xlu1 %v12449_v57  ;;  %v12367_v60 = vpop.xlane.xlu1 %12366  ;;  %v12446_v1 = vsel %vm1523_vm2, %v12410_v3, 0.0  ;;  %v22804_v33 = vsub.s32 5, %v19819_v22 }
0x285d   :  { %v12383_v25 = vmul.f32 0.03125, %v12367_v60  ;;  %12447 = vadd.xlane.f32.xlu0 %v12446_v1  ;;  %v12364_v40 = vpop.xlane.xlu0 %12363  ;;  %v12413_v55 = vmul.f32 %v22587_v9, %v22587_v9 }
0x285e   :  { %v12382_v12 = vmul.f32 0.03125, %v12364_v40  ;;  %v12412_v45 = vmul.f32 %v22591_v43, %v22591_v43  ;;  %v22622_v3 = vrot.slane %v18134_v6, %v22804_v33 }
0x285f   :  { %v22599_v4 = vsub.f32 %v22507_v44, %v12383_v25  ;;  %v12455_v11 = vsel %vm1523_vm2, %v12413_v55, 0.0 }
0x2860   :  { %v22603_v16 = vsub.f32 %v22510_v24, %v12382_v12  ;;  %12456 = vadd.xlane.f32.xlu1 %v12455_v11  ;;  %v12421_v21 = vpop.xlane.xlu1 %12420  ;;  %v12452_v20 = vsel %vm1523_vm2, %v12412_v45, 0.0 }
0x2861   :  { %v12465_v13 = vmul.f32 0.03125, %v12421_v21  ;;  %12453 = vadd.xlane.f32.xlu0 %v12452_v20  ;;  %v12418_v17 = vpop.xlane.xlu0 %12417  ;;  %v12415_v61 = vmul.f32 %v22599_v4, %v22599_v4 }
0x2862   :  { %v12464_v32 = vmul.f32 0.03125, %v12418_v17  ;;  %v12414_v44 = vmul.f32 %v22603_v16, %v22603_v16 }
0x2863   :  { %v12481_v19 = vadd.f32 1e-05, %v12465_v13  ;;  %v12461_v8 = vsel %vm1523_vm2, %v12415_v61, 0.0 }
0x2864   :  { %v12480_v36 = vadd.f32 1e-05, %v12464_v32  ;;  %12462 = vadd.xlane.f32.xlu1 %v12461_v8  ;;  %v12427_v24 = vpop.xlane.xlu1 %12426  ;;  %v12458_v14 = vsel %vm1523_vm2, %v12414_v44, 0.0 }
0x2865   :  { %18091 = vrsqrt.f32 %v12481_v19  ;;  %v12467_v30 = vmul.f32 0.03125, %v12427_v24  ;;  %12459 = vadd.xlane.f32.xlu0 %v12458_v14  ;;  %v12424_v5 = vpop.xlane.xlu0 %12423 }
0x2866   :  { %18093 = vrsqrt.f32 %v12480_v36  ;;  %v12466_v18 = vmul.f32 0.03125, %v12424_v5 }
0x2867   :  { %v12483_v27 = vadd.f32 1e-05, %v12467_v30 }
0x2868   :  { %v12482_v59 = vadd.f32 1e-05, %v12466_v18  ;;  %v12433_v41 = vpop.xlane.xlu1 %12432 }
0x2869   :  { %18095 = vrsqrt.f32 %v12483_v27  ;;  %v12469_v58 = vmul.f32 0.03125, %v12433_v41  ;;  %v12430_v51 = vpop.xlane.xlu0 %12429 }
0x286a   :  { %18097 = vrsqrt.f32 %v12482_v59  ;;  %v12468_v39 = vmul.f32 0.03125, %v12430_v51 }
0x286b   :  { %v12485_v2 = vadd.f32 1e-05, %v12469_v58 }
0x286c   :  { %v12484_v53 = vadd.f32 1e-05, %v12468_v39  ;;  %v12439_v37 = vpop.xlane.xlu1 %12438 }
0x286d   :  { %18099 = vrsqrt.f32 %v12485_v2  ;;  %v12471_v62 = vmul.f32 0.03125, %v12439_v37  ;;  %v12436_v56 = vpop.xlane.xlu0 %12435 }
0x286e   :  { %18101 = vrsqrt.f32 %v12484_v53  ;;  %v12470_v63 = vmul.f32 0.03125, %v12436_v56 }
0x286f   :  { %v18092_v46 = vpop.eup %18091  ;;  %v12487_v7 = vadd.f32 1e-05, %v12471_v62 }
0x2870   :  { %v18094_v34 = vpop.eup %18093  ;;  %v12513_v52 = vmul.f32 %v18092_v46, %v22513_v26  ;;  %v12486_v35 = vadd.f32 1e-05, %v12470_v63 }
0x2871   :  { %v12512_v57 = vmul.f32 %v18094_v34, %v22518_v31  ;;  %18103 = vrsqrt.f32 %v12487_v7 }
0x2872   :  { %18105 = vrsqrt.f32 %v12486_v35  ;;  %v12533_v60 = vmul.f32 %v22617_v50, %v12513_v52 }
0x2873   :  { %v18096_v1 = vpop.eup %18095  ;;  %v12532_v25 = vmul.f32 %v22617_v50, %v12512_v57 }
0x2874   :  { %v18098_v40 = vpop.eup %18097  ;;  %v12515_v55 = vmul.f32 %v18096_v1, %v22527_v15  ;;  %v12553_v12 = vadd.f32 %v22622_v3, %v12533_v60 }
0x2875   :  { %v12514_v26 = vmul.f32 %v18098_v40, %v22531_v0  ;;  %v12552_v22 = vadd.f32 %v22622_v3, %v12532_v25 }
0x2876   :  { %v12535_v45 = vmul.f32 %v22617_v50, %v12515_v55 }
0x2877   :  { %v18100_v11 = vpop.eup %18099  ;;  %v16619_v31 = vpack.c.bf16 %v12553_v12, %v12552_v22  ;;  %v12534_v21 = vmul.f32 %v22617_v50, %v12514_v26 }
0x2878   :  { %v18102_v20 = vpop.eup %18101  ;;  %v12517_v13 = vmul.f32 %v18100_v11, %v22539_v47  ;;  %v12555_v17 = vadd.f32 %v22622_v3, %v12535_v45 }
0x2879   :  { %v12516_v61 = vmul.f32 %v18102_v20, %v22543_v48  ;;  %16620 = vmatpush3.bf16.msra.mxu0 %v16619_v31  ;;  %v12554_v15 = vadd.f32 %v22622_v3, %v12534_v21 }
0x287a   :  { %16621 = vmatprep.subr.bf16.mxu0 %v22799_v29  ;;  %v12537_v0 = vmul.f32 %v22617_v50, %v12517_v13 }
0x287b   :  { %v18104_v32 = vpop.eup %18103  ;;  %v16622_v44 = vpack.c.bf16 %v12555_v17, %v12554_v15  ;;  %v12536_v19 = vmul.f32 %v22617_v50, %v12516_v61 }
0x287c   :  { %v18106_v8 = vpop.eup %18105  ;;  %v12519_v36 = vmul.f32 %v18104_v32, %v22551_v42  ;;  %v12557_v47 = vadd.f32 %v22622_v3, %v12537_v0 }
0x287d   :  { %v12518_v24 = vmul.f32 %v18106_v8, %v22555_v28  ;;  %16623 = vmatpush3.bf16.msra.mxu0 %v16622_v44  ;;  %v12556_v48 = vadd.f32 %v22622_v3, %v12536_v19  ;;  %v18183_v28 = vmov 0.0  }
0x287e   :  { %16624 = vmatprep.subr.bf16.mxu0 %v22799_v29  ;;  %v12539_v14 = vmul.f32 %v22617_v50, %v12519_v36  ;;  %15850 = vmatprep.mubr.msk.f32.mxu0 %vm18182_vm8, %v18183_v28 }
0x287f   :  { %v16625_v30 = vpack.c.bf16 %v12557_v47, %v12556_v48  ;;  %v12538_v5 = vmul.f32 %v22617_v50, %v12518_v24  ;;  %15864 = vmatprep.subr.mxu1 %v18183_v28  ;;  %15866 = vmatprep.mubr.msk.f32.mxu1 %vm18182_vm8, %v18183_v28 }
0x2880   :  { %v12559_v18 = vadd.f32 %v22622_v3, %v12539_v14 }
0x2881   :  { %16626 = vmatpush3.bf16.msra.mxu0 %v16625_v30  ;;  %v12558_v27 = vadd.f32 %v22622_v3, %v12538_v5 }
0x2882   :  { %16627 = vmatprep.subr.bf16.mxu0 %v22799_v29 }
0x2883   :  { %v16628_v42 = vpack.c.bf16 %v12559_v18, %v12558_v27 }
0x2885   :  { %16629 = vmatpush3.bf16.msra.mxu0 %v16628_v42 }
0x2886   :  { %16630 = vmatprep.subr.bf16.mxu0 %v22799_v29 }
0x28e5   :  { %v12445_v59 = vpop.xlane.xlu1 %12444 }
0x28e6   :  { %v12473_v41 = vmul.f32 0.03125, %v12445_v59  ;;  %v12442_v58 = vpop.xlane.xlu0 %12441 }
0x28e7   :  { %v12472_v51 = vmul.f32 0.03125, %v12442_v58 }
0x28e8   :  { %v12489_v39 = vadd.f32 1e-05, %v12473_v41 }
0x28e9   :  { %v12488_v2 = vadd.f32 1e-05, %v12472_v51  ;;  %v12451_v53 = vpop.xlane.xlu1 %12450  ;;  %v12642_v51 = vld [vmem:[%s22739_s14 + $0x18] sm:$0xff] }
0x28ea   :  { %18107 = vrsqrt.f32 %v12489_v39  ;;  %v12475_v37 = vmul.f32 0.03125, %v12451_v53  ;;  %v12448_v62 = vpop.xlane.xlu0 %12447 }
0x28eb   :  { %18109 = vrsqrt.f32 %v12488_v2  ;;  %v12474_v56 = vmul.f32 0.03125, %v12448_v62  ;;  %v12724_v2 = vld [vmem:[%s22741_s16] sm:$0xff] }
0x28ec   :  { %v12491_v63 = vadd.f32 1e-05, %v12475_v37  ;;  %15865 = vmatpush3.msra.mxu1 %v12724_v2  ;;  %v13544_v62 = vld [vmem:[%s22740_s15] ss:$0 sm:$0xff] }
0x28ed   :  { %v12490_v6 = vadd.f32 1e-05, %v12474_v56  ;;  %v12457_v10 = vpop.xlane.xlu1 %12456 }
0x28ee   :  { %18111 = vrsqrt.f32 %v12491_v63  ;;  %v12477_v46 = vmul.f32 0.03125, %v12457_v10  ;;  %v12454_v7 = vpop.xlane.xlu0 %12453 }
0x28ef   :  { %18113 = vrsqrt.f32 %v12490_v6  ;;  %v12476_v34 = vmul.f32 0.03125, %v12454_v7 }
0x28f0   :  { %v12493_v52 = vadd.f32 1e-05, %v12477_v46 }
0x28f1   :  { %v12492_v35 = vadd.f32 1e-05, %v12476_v34  ;;  %v12463_v33 = vpop.xlane.xlu1 %12462 }
0x28f2   :  { %18115 = vrsqrt.f32 %v12493_v52  ;;  %v12479_v57 = vmul.f32 0.03125, %v12463_v33  ;;  %v12460_v60 = vpop.xlane.xlu0 %12459 }
0x28f3   :  { %18117 = vrsqrt.f32 %v12492_v35  ;;  %v12478_v1 = vmul.f32 0.03125, %v12460_v60 }
0x28f4   :  { %v18108_v25 = vpop.eup %18107  ;;  %v12495_v40 = vadd.f32 1e-05, %v12479_v57 }
0x28f5   :  { %v18110_v55 = vpop.eup %18109  ;;  %v12521_v12 = vmul.f32 %v18108_v25, %v22565_v23  ;;  %v12494_v26 = vadd.f32 1e-05, %v12478_v1 }
0x28f6   :  { %v12520_v22 = vmul.f32 %v18110_v55, %v22568_v38  ;;  %18119 = vrsqrt.f32 %v12495_v40 }
0x28f7   :  { %18121 = vrsqrt.f32 %v12494_v26  ;;  %v12541_v45 = vmul.f32 %v22617_v50, %v12521_v12 }
0x28f8   :  { %v18112_v11 = vpop.eup %18111  ;;  %v12540_v31 = vmul.f32 %v22617_v50, %v12520_v22 }
0x28f9   :  { %v18114_v21 = vpop.eup %18113  ;;  %v12523_v20 = vmul.f32 %v18112_v11, %v22575_v54  ;;  %v12561_v13 = vadd.f32 %v22622_v3, %v12541_v45 }
0x28fa   :  { %v12522_v17 = vmul.f32 %v18114_v21, %v22579_v49  ;;  %v12560_v61 = vadd.f32 %v22622_v3, %v12540_v31 }
0x28fb   :  { %v12543_v23 = vmul.f32 %v22617_v50, %v12523_v20 }
0x28fc   :  { %v18116_v15 = vpop.eup %18115  ;;  %v16631_v38 = vpack.c.bf16 %v12561_v13, %v12560_v61  ;;  %v12542_v0 = vmul.f32 %v22617_v50, %v12522_v17 }
0x28fd   :  { %v18118_v32 = vpop.eup %18117  ;;  %v12525_v44 = vmul.f32 %v18116_v15, %v22587_v9  ;;  %v12563_v19 = vadd.f32 %v22622_v3, %v12543_v23 }
0x28fe   :  { %v12524_v8 = vmul.f32 %v18118_v32, %v22591_v43  ;;  %16632 = vmatpush3.bf16.msra.mxu0 %v16631_v38  ;;  %v12562_v54 = vadd.f32 %v22622_v3, %v12542_v0 }
0x28ff   :  { %16633 = vmatprep.subr.bf16.mxu0 %v22799_v29  ;;  %v12545_v49 = vmul.f32 %v22617_v50, %v12525_v44 }
0x2900   :  { %v18120_v36 = vpop.eup %18119  ;;  %v16634_v47 = vpack.c.bf16 %v12563_v19, %v12562_v54  ;;  %v12544_v24 = vmul.f32 %v22617_v50, %v12524_v8 }
0x2901   :  { %v18122_v48 = vpop.eup %18121  ;;  %v12527_v14 = vmul.f32 %v18120_v36, %v22599_v4  ;;  %v12565_v9 = vadd.f32 %v22622_v3, %v12545_v49  ;;  %v12639_v4 = vld [vmem:[%s22739_s14] sm:$0xff] }
0x2902   :  { %v12526_v30 = vmul.f32 %v18122_v48, %v22603_v16  ;;  %16635 = vmatpush3.bf16.msra.mxu0 %v16634_v47  ;;  %v12564_v43 = vadd.f32 %v22622_v3, %v12544_v24  ;;  %v12640_v16 = vld [vmem:[%s22739_s14 + $0x8] sm:$0xff] }
0x2903   :  { %16636 = vmatprep.subr.bf16.mxu0 %v22799_v29  ;;  %v12547_v5 = vmul.f32 %v22617_v50, %v12527_v14  ;;  %v16643_v58 = vpack.c.bf16 %v12640_v16, %v12639_v4 }
0x2904   :  { %v16637_v18 = vpack.c.bf16 %v12565_v9, %v12564_v43  ;;  %v12546_v27 = vmul.f32 %v22617_v50, %v12526_v30  ;;  %v12568_v50 = vld [vmem:[%s22738_s13] sm:$0x3] }
0x2905   :  { %v12567_v42 = vadd.f32 %v22622_v3, %v12547_v5 }
0x2906   :  { %16638 = vmatpush3.bf16.msra.mxu0 %v16637_v18  ;;  %v12566_v59 = vadd.f32 %v22622_v3, %v12546_v27  ;;  %v12641_v3 = vld [vmem:[%s22739_s14 + $0x10] sm:$0xff] }
0x2907   :  { %16639 = vmatprep.subr.bf16.mxu0 %v22799_v29  ;;  %v16646_v39 = vpack.c.bf16 %v12642_v51, %v12641_v3 }
0x2908   :  { %v16640_v41 = vpack.c.bf16 %v12567_v42, %v12566_v59 }
0x290a   :  { %16641 = vmatpush3.bf16.msra.mxu0 %v16640_v41 }
0x290b   :  { %16642 = vmatprep.subr.bf16.mxu0 %v22799_v29 }
0x290d   :  { %15851 = vmatmul.mubr.f32.vlgmr.msra.gmra.mrb[204].mxu0 %v12568_v50 }
0x290e   :  { %16644 = vmatpush3.bf16.msra.mxu0 %v16643_v58  ;;  %15861 = vmatprep.mubr.msk.f32.mxu0 %vm18182_vm8, %v18183_v28 }
0x290f   :  { %16645 = vmatprep.subr.bf16.mxu0 %v22799_v29  ;;  %v13546_v29 = vld [vmem:[%s22741_s16 + $0x8] ss:$0 sm:$0xff] }
0x2912   :  { %16647 = vmatpush3.bf16.msra.mxu0 %v16646_v39 }
0x29e0   :  { %v12635_v53 = vpop.f32.mrb[204].mxu0 }
0x29e1   :  { %v15852_v37 = vpop.f32.mrb[205].mxu0  ;;  %15862 = vmatmul.mubr.msk.f32.vlgmr.msra.gmra.mrb[206].mxu0 %vm1523_vm2, %v12635_v53 }
0x2ab4   :  { %v12719_v56 = vpop.f32.mrb[206].mxu0 }
0x2ab5   :  { %v12720_v63 = vadd.f32 %v13544_v62, %v12719_v56  ;;  %v15863_v6 = vpop.f32.mrb[207].mxu0 }
0x2ab7   :  { %v12723_v28 = vmax.f32 %v12720_v63, 0.0 }
0x2ab9   :  { %15867 = vmatmul.mubr.msk.f32.vlgmr.msra.gmra.mrb[188].mxu1 %vm1749_vm3, %v12723_v28 }
0x2b8c   :  { %v12799_v10 = vpop.f32.mrb[188].mxu1 }
0x2b8d   :  { %v12800_v46 = vadd.f32 %v13546_v29, %v12799_v10  ;;  %v15868_v7 = vpop.f32.mrb[189].mxu1 }
0x2b8f   :  { %12803 = vst [vmem:[#allocation2] sm:$0x3] %v12800_v46 }
0x2b90   :  { %18146 = shalt.err (!%p18143_p4)
}
0x2b91   :  { %s18147_s19 = scalar_lea.hbm %s22742_s17, 32 }
0x2b92   :  { %p18148_p5 = scmp.ne.s32.totalorder %s22742_s17, %s18147_s19  ;;  %p18151_p6 = scmp.lt.u32.totalorder %s18147_s19, %s22742_s17 }
0x2b94   :  { %p18153_p7 = pnand %p18151_p6, %p18148_p5 }
0x2b96   :  { %18156 = shalt.err (!%p18153_p7)
}
0x2b97   :  { %12813 = dma.vmem_to_hbm [thread:$0]  %s12811_s28, 32, %s22742_s17, [#allocation3]  }
0x2b98   :  { %18157 = dma.done.wait [#allocation3], 32  }
0x2b99   :  { %18158 = vsyncadd [#allocation3], 4294967264 }
0x2b9a   :  { %12817 = vsyncpa [#allocation3], 1 }

</bundles_post_ra>
